<compile_context>
chip_gen: v6e
topology: v6e:2x2x1
jax: 0.10.0
libtpu: 0.0.40
codegen_flags: <defaults>
</compile_context>

<pallas_src>
import functools
import math

import jax
import jax.numpy as jnp
from jax.experimental import pallas as pl
from jax.experimental.pallas import tpu as pltpu

_VMEM_LIMIT = 48 * 1024 * 1024          # safe on v7x (64 MiB) and v5e/v6e (128 MiB)
_MXU_DTYPE = jnp.bfloat16               # MXU operand dtype; accumulation stays fp32


def _choose_row_tile(n, max_tile=512):
    """Return (tile, padded_n). tile divides padded_n; tile <= max(n, max_tile)."""
    if n <= max_tile:
        return n, n
    for t in range(max_tile, 7, -1):
        if n % t == 0 and t % 8 == 0:
            return t, n
    # No clean divisor: pad the row dim instead of emitting an oversized block
    # that could blow past the v7x VMEM budget; padded rows are sliced off.
    t = max_tile
    return t, ((n + t - 1) // t) * t


def _kv_tile(n, max_tile=1024):
    """Largest KV tile that divides n exactly (fallback: n -> single KV step)."""
    if n <= max_tile:
        return n
    for t in range(max_tile, 7, -1):
        if n % t == 0 and t % 8 == 0:
            return t
    return n


# --------------------------- fused attention kernel -------------------------- #

def _fused_attn_ln_kernel(*refs, num_heads, head_dim, add_q_pe, add_kv_pe,
                          add_residual, eps, mxu_dtype):
    it = iter(refs)
    q_ref = next(it)
    qpe_ref = next(it) if add_q_pe else None
    kv_ref = next(it)
    kvpe_ref = next(it) if add_kv_pe else None
    wq_ref = next(it); bq_ref = next(it)
    wk_ref = next(it); bk_ref = next(it)
    wv_ref = next(it); bv_ref = next(it)
    wo_ref = next(it); bo_ref = next(it)
    g_ref = next(it); beta_ref = next(it)
    o_ref = next(it)
    qp_sc = next(it)      # (TQ, internal) bf16 : cached Q projection
    m_sc = next(it)       # (TQ, H) fp32 : running max per head
    l_sc = next(it)       # (TQ, H) fp32 : running denom per head
    acc_sc = next(it)     # (TQ, internal) fp32 : unnormalized PV per head

    f32 = jnp.float32
    dh = head_dim
    kv_step = pl.program_id(2)
    n_kv = pl.num_programs(2)

    def mm(a, b):                                       # bf16 MXU, fp32 accumulate
        return jnp.dot(a.astype(mxu_dtype), b.astype(mxu_dtype),
                       preferred_element_type=f32)

    # ---- per query-tile init (kv step 0): Q projection + accumulator reset --
    @pl.when(kv_step == 0)
    def _init():
        q_base = q_ref[...].astype(f32)
        q_in = q_base + qpe_ref[...].astype(f32) if add_q_pe else q_base
        qp = mm(q_in, wq_ref[...]) + bq_ref[...]        # (TQ, I); scale pre-folded
        qp_sc[...] = qp.astype(mxu_dtype)
        m_sc[...] = jnp.full(m_sc.shape, -jnp.inf, m_sc.dtype)
        l_sc[...] = jnp.zeros(l_sc.shape, l_sc.dtype)
        acc_sc[...] = jnp.zeros(acc_sc.shape, acc_sc.dtype)

    # ---- per KV-tile work: K/V projections + online-softmax accumulation ----
    kv_blk = kv_ref[...]                                # bf16 (TK, Dk), no fp32 copy
    k_in = kv_blk + kvpe_ref[...] if add_kv_pe else kv_blk     # PE add in bf16
    kp = (mm(k_in, wk_ref[...]) + bk_ref[...]).astype(mxu_dtype)    # (TK, I)
    vp = (mm(kv_blk, wv_ref[...]) + bv_ref[...]).astype(mxu_dtype)  # (TK, I)
    qp = qp_sc[...]                                     # (TQ, I) bf16

    for h in range(num_heads):
        sl = slice(h * dh, (h + 1) * dh)
        s = jax.lax.dot_general(                        # q @ k^T, no k.T relayout
            qp[:, sl], kp[:, sl],
            (((1,), (1,)), ((), ())),
            preferred_element_type=f32)                 # (TQ, TK)
        m_prev = m_sc[:, h:h + 1]                       # (TQ, 1)
        m_new = jnp.maximum(m_prev, jnp.max(s, axis=-1, keepdims=True))
        alpha = jnp.exp(m_prev - m_new)
        p = jnp.exp(s - m_new)
        l_sc[:, h:h + 1] = alpha * l_sc[:, h:h + 1] + jnp.sum(p, axis=-1,
                                                              keepdims=True)
        acc_sc[:, sl] = alpha * acc_sc[:, sl] + jnp.dot(
            p.astype(mxu_dtype), vp[:, sl], preferred_element_type=f32)
        m_sc[:, h:h + 1] = m_new

    # ---- finalize (last KV step): normalize -> out proj -> residual -> LN ---
    @pl.when(kv_step == n_kv - 1)
    def _finalize():
        inv_l = pl.reciprocal(l_sc[...], approx=True)   # (TQ, H), EUP reciprocal
        for h in range(num_heads):                      # deferred normalization
            sl = slice(h * dh, (h + 1) * dh)
            acc_sc[:, sl] = acc_sc[:, sl] * inv_l[:, h:h + 1]
        out = mm(acc_sc[...], wo_ref[...]) + bo_ref[...]          # (TQ, D)
        if add_residual:
            out = out + q_ref[...].astype(f32)
        mean = jnp.mean(out, axis=-1, keepdims=True)
        var = jnp.mean((out - mean) ** 2, axis=-1, keepdims=True)
        xn = (out - mean) * jax.lax.rsqrt(var + eps)
        o_ref[...] = (xn * g_ref[...] + beta_ref[...]).astype(o_ref.dtype)


def fused_attention_ln(p, q_base, kv, *, q_pe=None, kv_pe=None,
                       add_residual=True, num_heads, ln_g, ln_b, eps=1e-5,
                       mxu_dtype=_MXU_DTYPE, max_q_tile=512, max_kv_tile=1024):
    """Fused (PE add -> attention -> out proj -> residual -> LayerNorm).

    `kv` is the single key/value source tensor (keys use kv + kv_pe, values use
    kv) — the module always passes the same array for both, so it is DMA'd once.
    """
    B, Nq, Dq = q_base.shape
    _, Nk, Dk = kv.shape
    internal = p["q_w"].shape[1]
    d_out = p["out_w"].shape[1]
    assert internal % num_heads == 0
    dh = internal // num_heads

    TQ, Nq_pad = _choose_row_tile(Nq, max_q_tile)
    TK = _kv_tile(Nk, max_kv_tile)

    if Nq_pad != Nq:
        pad = Nq_pad - Nq
        q_base_p = jnp.pad(q_base, ((0, 0), (0, pad), (0, 0)))
        q_pe_p = (jnp.pad(q_pe, ((0, 0), (0, pad), (0, 0)))
                  if q_pe is not None else None)
    else:
        q_base_p, q_pe_p = q_base, q_pe

    # Key/value source (and its PE) carried in bf16 -> half the DMA bytes and
    # VMEM residency of the memory-bound token->image path.
    kv_b = kv.astype(mxu_dtype)
    kvpe_b = kv_pe.astype(mxu_dtype) if kv_pe is not None else None

    grid = (B, Nq_pad // TQ, Nk // TK)

    inputs = [q_base_p]
    in_specs = [pl.BlockSpec((None, TQ, Dq), lambda b, t, s: (b, t, 0))]
    if q_pe_p is not None:
        inputs.append(q_pe_p)
        in_specs.append(pl.BlockSpec((None, TQ, Dq), lambda b, t, s: (b, t, 0)))
    inputs.append(kv_b)
    in_specs.append(pl.BlockSpec((None, TK, Dk), lambda b, t, s: (b, s, 0)))
    if kvpe_b is not None:
        inputs.append(kvpe_b)
        in_specs.append(pl.BlockSpec((None, TK, Dk), lambda b, t, s: (b, s, 0)))

    const_arrays = [
        p["q_w"], p["q_b"].reshape(1, -1),
        p["k_w"], p["k_b"].reshape(1, -1),
        p["v_w"], p["v_b"].reshape(1, -1),
        p["out_w"], p["out_b"].reshape(1, -1),
        ln_g.reshape(1, -1), ln_b.reshape(1, -1),
    ]
    for arr in const_arrays:
        inputs.append(arr)
        in_specs.append(pl.BlockSpec(arr.shape, lambda b, t, s: (0, 0)))

    kernel = functools.partial(
        _fused_attn_ln_kernel,
        num_heads=num_heads,
        head_dim=dh,
        add_q_pe=q_pe is not None,
        add_kv_pe=kv_pe is not None,
        add_residual=add_residual,
        eps=eps,
        mxu_dtype=mxu_dtype,
    )
    out = pl.pallas_call(
        kernel,
        out_shape=jax.ShapeDtypeStruct((B, Nq_pad, d_out), q_base.dtype),
        grid=grid,
        in_specs=in_specs,
        out_specs=pl.BlockSpec((None, TQ, d_out), lambda b, t, s: (b, t, 0)),
        scratch_shapes=[
            pltpu.VMEM((TQ, internal), mxu_dtype),   # cached Q projection
            pltpu.VMEM((TQ, num_heads), jnp.float32),  # running max
            pltpu.VMEM((TQ, num_heads), jnp.float32),  # running denom
            pltpu.VMEM((TQ, internal), jnp.float32),   # per-head PV accumulator
        ],
        compiler_params=pltpu.CompilerParams(
            dimension_semantics=("parallel", "parallel", "arbitrary"),
            vmem_limit_bytes=_VMEM_LIMIT),
    )(*inputs)
    if Nq_pad != Nq:
        out = out[:, :Nq, :]
    return out


# ------------------------------ fused MLP kernel ----------------------------- #

def _fused_mlp_ln_kernel(x_ref, w1_ref, b1_ref, w2_ref, b2_ref, g_ref, bt_ref,
                         o_ref, *, eps, mxu_dtype):
    f32 = jnp.float32
    x = x_ref[...].astype(f32)                          # (TR, D)

    def mm(a, b):
        return jnp.dot(a.astype(mxu_dtype), b.astype(mxu_dtype),
                       preferred_element_type=f32)

    h = jnp.maximum(mm(x, w1_ref[...]) + b1_ref[...], 0.0)   # Linear -> ReLU
    y = mm(h, w2_ref[...]) + b2_ref[...]                      # Linear
    y = y + x                                                 # residual
    mean = jnp.mean(y, axis=-1, keepdims=True)
    var = jnp.mean((y - mean) ** 2, axis=-1, keepdims=True)
    yn = (y - mean) * jax.lax.rsqrt(var + eps)
    o_ref[...] = (yn * g_ref[...] + bt_ref[...]).astype(o_ref.dtype)


def fused_mlp_ln(p, x, *, ln_g, ln_b, eps=1e-5, mxu_dtype=_MXU_DTYPE,
                 max_row_tile=512):
    """Fused (MLP -> residual -> LayerNorm) over token-major rows."""
    B, N, D = x.shape
    x2 = x.reshape(B * N, D)
    R = x2.shape[0]
    TR, R_pad = _choose_row_tile(R, max_row_tile)
    if R_pad != R:
        x2 = jnp.pad(x2, ((0, R_pad - R), (0, 0)))
    hidden = p["w1"].shape[1]
    out = pl.pallas_call(
        functools.partial(_fused_mlp_ln_kernel, eps=eps, mxu_dtype=mxu_dtype),
        out_shape=jax.ShapeDtypeStruct((R_pad, D), x.dtype),
        grid=(R_pad // TR,),
        in_specs=[
            pl.BlockSpec((TR, D), lambda i: (i, 0)),
            pl.BlockSpec(p["w1"].shape, lambda i: (0, 0)),
            pl.BlockSpec((1, hidden), lambda i: (0, 0)),
            pl.BlockSpec(p["w2"].shape, lambda i: (0, 0)),
            pl.BlockSpec((1, D), lambda i: (0, 0)),
            pl.BlockSpec((1, D), lambda i: (0, 0)),
            pl.BlockSpec((1, D), lambda i: (0, 0)),
        ],
        out_specs=pl.BlockSpec((TR, D), lambda i: (i, 0)),
        compiler_params=pltpu.CompilerParams(
            dimension_semantics=("parallel",),
            vmem_limit_bytes=_VMEM_LIMIT),
    )(x2, p["w1"], p["b1"].reshape(1, -1), p["w2"], p["b2"].reshape(1, -1),
      ln_g.reshape(1, -1), ln_b.reshape(1, -1))
    if R_pad != R:
        out = out[:R]
    return out.reshape(B, N, D)


# --------------------------- module-level forward ---------------------------- #

def two_way_block_forward(p, queries, keys, query_pe, key_pe, num_heads,
                          skip_first_layer_pe, mxu_dtype=_MXU_DTYPE):
    # (1) self-attention on sparse queries (+ norm1); k and v share `queries`.
    if skip_first_layer_pe:
        queries = fused_attention_ln(
            p["self_attn"], queries, queries,
            q_pe=None, kv_pe=None, add_residual=False,
            num_heads=num_heads, ln_g=p["norm1_g"], ln_b=p["norm1_b"],
            mxu_dtype=mxu_dtype)
    else:
        queries = fused_attention_ln(
            p["self_attn"], queries, queries,
            q_pe=query_pe, kv_pe=query_pe, add_residual=True,
            num_heads=num_heads, ln_g=p["norm1_g"], ln_b=p["norm1_b"],
            mxu_dtype=mxu_dtype)

    # (2) cross-attention tokens -> image (+ norm2); k and v share `keys`.
    queries = fused_attention_ln(
        p["cross_t2i"], queries, keys,
        q_pe=query_pe, kv_pe=key_pe, add_residual=True,
        num_heads=num_heads, ln_g=p["norm2_g"], ln_b=p["norm2_b"],
        mxu_dtype=mxu_dtype)

    # (3) MLP on queries (+ norm3).
    queries = fused_mlp_ln(p["mlp"], queries, ln_g=p["norm3_g"],
                           ln_b=p["norm3_b"], mxu_dtype=mxu_dtype)

    # (4) cross-attention image -> tokens (+ norm4); k and v share `queries`,
    #     residual lands on keys.
    keys = fused_attention_ln(
        p["cross_i2t"], keys, queries,
        q_pe=key_pe, kv_pe=query_pe, add_residual=True,
        num_heads=num_heads, ln_g=p["norm4_g"], ln_b=p["norm4_b"],
        mxu_dtype=mxu_dtype)
    return queries, keys


def two_way_transformer_forward(params, image_embedding, image_pe,
                                point_embedding, num_heads,
                                mxu_dtype=_MXU_DTYPE):
    """image_embedding/image_pe: (B, C, H, W); point_embedding: (B, N, C)."""
    bs, c, h, w = image_embedding.shape
    image_embedding = image_embedding.reshape(bs, c, h * w).transpose(0, 2, 1)
    image_pe = image_pe.reshape(bs, c, h * w).transpose(0, 2, 1)

    queries = point_embedding
    keys = image_embedding
    for i, layer_p in enumerate(params["layers"]):
        queries, keys = two_way_block_forward(
            layer_p, queries, keys, point_embedding, image_pe, num_heads,
            skip_first_layer_pe=(i == 0), mxu_dtype=mxu_dtype)

    # Final attention from points to image (+ final norm), fully fused.
    queries = fused_attention_ln(
        params["final_attn"], queries, keys,
        q_pe=point_embedding, kv_pe=image_pe, add_residual=True,
        num_heads=num_heads, ln_g=params["norm_final_g"],
        ln_b=params["norm_final_b"], mxu_dtype=mxu_dtype)
    return queries, keys


# ------------------------------ parameter init ------------------------------- #
# Weights are stored pre-transposed as (in_dim, out_dim) so kernels never
# transpose; the 1/sqrt(head_dim) attention scale is folded into q_w / q_b.

def _init_linear(key, in_dim, out_dim, scale=0.05):
    kw, kb = jax.random.split(key)
    w = jax.random.normal(kw, (in_dim, out_dim), jnp.float32) * scale
    b = jax.random.normal(kb, (out_dim,), jnp.float32) * scale
    return w, b


def _init_attention(key, embedding_dim, num_heads, downsample_rate=1,
                    kv_in_dim=None):
    kv_in_dim = kv_in_dim if kv_in_dim is not None else embedding_dim
    internal = embedding_dim // downsample_rate
    assert internal % num_heads == 0
    dh = internal // num_heads
    qk_scale = 1.0 / math.sqrt(dh)
    ks = jax.random.split(key, 4)
    q_w, q_b = _init_linear(ks[0], embedding_dim, internal)
    q_w, q_b = q_w * qk_scale, q_b * qk_scale          # fold SDPA scale
    k_w, k_b = _init_linear(ks[1], kv_in_dim, internal)
    v_w, v_b = _init_linear(ks[2], kv_in_dim, internal)
    out_w, out_b = _init_linear(ks[3], internal, embedding_dim)
    return dict(q_w=q_w, q_b=q_b, k_w=k_w, k_b=k_b, v_w=v_w, v_b=v_b,
                out_w=out_w, out_b=out_b)


def _init_block(key, embedding_dim, num_heads, mlp_dim, attention_downsample_rate):
    ks = jax.random.split(key, 6)
    w1, b1 = _init_linear(ks[4], embedding_dim, mlp_dim)
    w2, b2 = _init_linear(ks[5], mlp_dim, embedding_dim)
    ones = jnp.ones((embedding_dim,), jnp.float32)
    zeros = jnp.zeros((embedding_dim,), jnp.float32)
    return dict(
        self_attn=_init_attention(ks[0], embedding_dim, num_heads, 1),
        cross_t2i=_init_attention(ks[1], embedding_dim, num_heads,
                                  attention_downsample_rate),
        cross_i2t=_init_attention(ks[2], embedding_dim, num_heads,
                                  attention_downsample_rate),
        mlp=dict(w1=w1, b1=b1, w2=w2, b2=b2),
        norm1_g=ones, norm1_b=zeros,
        norm2_g=ones, norm2_b=zeros,
        norm3_g=ones, norm3_b=zeros,
        norm4_g=ones, norm4_b=zeros,
    )


def init_two_way_transformer(key, depth, embedding_dim, num_heads, mlp_dim,
                             attention_downsample_rate=2):
    keys = jax.random.split(key, depth + 1)
    layers = [_init_block(keys[i], embedding_dim, num_heads, mlp_dim,
                          attention_downsample_rate) for i in range(depth)]
    return dict(
        layers=layers,
        final_attn=_init_attention(keys[-1], embedding_dim, num_heads,
                                   attention_downsample_rate),
        norm_final_g=jnp.ones((embedding_dim,), jnp.float32),
        norm_final_b=jnp.zeros((embedding_dim,), jnp.float32),
    )


# ----------------------------------- main ------------------------------------ #

if __name__ == "__main__":
    depth = 2
    embedding_dim = 32
    num_heads = 2          # internal dims (32 and 16) both divisible by 2
    mlp_dim = 64
    B, H, W = 2, 8, 8
    N_points = 8

    root = jax.random.PRNGKey(0)
    k_params, k_img, k_pe, k_pts = jax.random.split(root, 4)

    params = init_two_way_transformer(k_params, depth, embedding_dim,
                                      num_heads, mlp_dim)

    image_embedding = jax.random.normal(k_img, (B, embedding_dim, H, W), jnp.float32)
    image_pe = jax.random.normal(k_pe, (B, embedding_dim, H, W), jnp.float32)
    point_embedding = jax.random.normal(k_pts, (B, N_points, embedding_dim), jnp.float32)

    fwd = jax.jit(functools.partial(two_way_transformer_forward,
                                    num_heads=num_heads))
    queries, keys = fwd(params, image_embedding, image_pe, point_embedding)
    jax.block_until_ready((queries, keys))

    assert queries.shape == (B, N_points, embedding_dim)
    assert keys.shape == (B, H * W, embedding_dim)
    assert bool(jnp.all(jnp.isfinite(queries))) and bool(jnp.all(jnp.isfinite(keys)))
    print("KERNEL_OK")
</pallas_src>

<mosaic_0001>
module attributes {stable_mosaic.version = 11 : i64} {
  func.func @_fused_attn_ln_kernel(%arg0: i32, %arg1: i32, %arg2: i32, %arg3: memref<1x8x32xf32, #tpu.memory_space<vmem>>, %arg4: memref<1x8x32xbf16, #tpu.memory_space<vmem>>, %arg5: memref<32x32xf32, #tpu.memory_space<vmem>>, %arg6: memref<1x32xf32, #tpu.memory_space<vmem>>, %arg7: memref<32x32xf32, #tpu.memory_space<vmem>>, %arg8: memref<1x32xf32, #tpu.memory_space<vmem>>, %arg9: memref<32x32xf32, #tpu.memory_space<vmem>>, %arg10: memref<1x32xf32, #tpu.memory_space<vmem>>, %arg11: memref<32x32xf32, #tpu.memory_space<vmem>>, %arg12: memref<1x32xf32, #tpu.memory_space<vmem>>, %arg13: memref<1x32xf32, #tpu.memory_space<vmem>>, %arg14: memref<1x32xf32, #tpu.memory_space<vmem>>, %arg15: memref<1x8x32xf32, #tpu.memory_space<vmem>>, %arg16: memref<8x32xbf16, #tpu.memory_space<vmem>>, %arg17: memref<8x2xf32, #tpu.memory_space<vmem>>, %arg18: memref<8x2xf32, #tpu.memory_space<vmem>>, %arg19: memref<8x32xf32, #tpu.memory_space<vmem>>) attributes {dimension_semantics = [#tpu.dimension_semantics<parallel>, #tpu.dimension_semantics<parallel>, #tpu.dimension_semantics<arbitrary>], iteration_bounds = array<i64: 2, 1, 1>, scalar_prefetch = 0 : i64, scratch_operands = 4 : i64, tpu.core_type = #tpu.core_type<tc>, window_params = [{transform_indices = @transform_0, window_bounds = array<i64: 1, 8, 32>}, {transform_indices = @transform_1, window_bounds = array<i64: 1, 8, 32>}, {pipeline_mode = #tpu.pipeline_mode<synchronous>, transform_indices = @transform_2, window_bounds = array<i64: 32, 32>}, {pipeline_mode = #tpu.pipeline_mode<synchronous>, transform_indices = @transform_3, window_bounds = array<i64: 1, 32>}, {pipeline_mode = #tpu.pipeline_mode<synchronous>, transform_indices = @transform_4, window_bounds = array<i64: 32, 32>}, {pipeline_mode = #tpu.pipeline_mode<synchronous>, transform_indices = @transform_5, window_bounds = array<i64: 1, 32>}, {pipeline_mode = #tpu.pipeline_mode<synchronous>, transform_indices = @transform_6, window_bounds = array<i64: 32, 32>}, {pipeline_mode = #tpu.pipeline_mode<synchronous>, transform_indices = @transform_7, window_bounds = array<i64: 1, 32>}, {pipeline_mode = #tpu.pipeline_mode<synchronous>, transform_indices = @transform_8, window_bounds = array<i64: 32, 32>}, {pipeline_mode = #tpu.pipeline_mode<synchronous>, transform_indices = @transform_9, window_bounds = array<i64: 1, 32>}, {pipeline_mode = #tpu.pipeline_mode<synchronous>, transform_indices = @transform_10, window_bounds = array<i64: 1, 32>}, {pipeline_mode = #tpu.pipeline_mode<synchronous>, transform_indices = @transform_11, window_bounds = array<i64: 1, 32>}, {transform_indices = @transform_12, window_bounds = array<i64: 1, 8, 32>}]} {
    %c0_i32 = arith.constant 0 : i32
    %0 = arith.cmpi eq, %arg2, %c0_i32 : i32
    %1 = arith.extui %0 : i1 to i32
    %c0_i32_0 = arith.constant 0 : i32
    %2 = arith.cmpi ne, %1, %c0_i32_0 : i32
    scf.if %2 {
      %c0_46 = arith.constant 0 : index
      %c0_47 = arith.constant 0 : index
      %c0_48 = arith.constant 0 : index
      %77 = vector.load %arg3[%c0_46, %c0_47, %c0_48] : memref<1x8x32xf32, #tpu.memory_space<vmem>>, vector<1x8x32xf32>
      %78 = vector.shape_cast %77 : vector<1x8x32xf32> to vector<8x32xf32>
      %c0_49 = arith.constant 0 : index
      %c0_50 = arith.constant 0 : index
      %79 = vector.load %arg5[%c0_49, %c0_50] : memref<32x32xf32, #tpu.memory_space<vmem>>, vector<32x32xf32>
      %80 = arith.truncf %78 : vector<8x32xf32> to vector<8x32xbf16>
      %81 = arith.truncf %79 : vector<32x32xf32> to vector<32x32xbf16>
      %cst_51 = arith.constant dense<0.000000e+00> : vector<8x32xf32>
      %82 = tpu.matmul %80, %81, %cst_51 {dimension_numbers = #tpu.dot_dimension_numbers<[1], [0], [0], [1], [0, 0, 1, 1], [], []>} : vector<8x32xbf16>, vector<32x32xbf16>, vector<8x32xf32> -> vector<8x32xf32>
      %c0_52 = arith.constant 0 : index
      %c0_53 = arith.constant 0 : index
      %83 = vector.load %arg6[%c0_52, %c0_53] : memref<1x32xf32, #tpu.memory_space<vmem>>, vector<1x32xf32>
      %84 = vector.broadcast %83 : vector<1x32xf32> to vector<8x32xf32>
      %85 = arith.addf %82, %84 : vector<8x32xf32>
      %86 = arith.truncf %85 : vector<8x32xf32> to vector<8x32xbf16>
      %c0_54 = arith.constant 0 : index
      %c0_55 = arith.constant 0 : index
      %87 = vector.load %arg16[%c0_54, %c0_55] : memref<8x32xbf16, #tpu.memory_space<vmem>>, vector<8x32xbf16>
      tpu.vector_store %arg16[%c0_54, %c0_55], %86 {strides = array<i32>} : memref<8x32xbf16, #tpu.memory_space<vmem>>, vector<8x32xbf16>,
      %cst_56 = arith.constant 0xFF800000 : f32
      %88 = vector.broadcast %cst_56 : f32 to vector<8x2xf32>
      %c0_57 = arith.constant 0 : index
      %c0_58 = arith.constant 0 : index
      %89 = vector.load %arg17[%c0_57, %c0_58] : memref<8x2xf32, #tpu.memory_space<vmem>>, vector<8x2xf32>
      tpu.vector_store %arg17[%c0_57, %c0_58], %88 {strides = array<i32>} : memref<8x2xf32, #tpu.memory_space<vmem>>, vector<8x2xf32>,
      %cst_59 = arith.constant 0.000000e+00 : f32
      %90 = vector.broadcast %cst_59 : f32 to vector<8x2xf32>
      %c0_60 = arith.constant 0 : index
      %c0_61 = arith.constant 0 : index
      %91 = vector.load %arg18[%c0_60, %c0_61] : memref<8x2xf32, #tpu.memory_space<vmem>>, vector<8x2xf32>
      tpu.vector_store %arg18[%c0_60, %c0_61], %90 {strides = array<i32>} : memref<8x2xf32, #tpu.memory_space<vmem>>, vector<8x2xf32>,
      %cst_62 = arith.constant 0.000000e+00 : f32
      %92 = vector.broadcast %cst_62 : f32 to vector<8x32xf32>
      %c0_63 = arith.constant 0 : index
      %c0_64 = arith.constant 0 : index
      %93 = vector.load %arg19[%c0_63, %c0_64] : memref<8x32xf32, #tpu.memory_space<vmem>>, vector<8x32xf32>
      tpu.vector_store %arg19[%c0_63, %c0_64], %92 {strides = array<i32>} : memref<8x32xf32, #tpu.memory_space<vmem>>, vector<8x32xf32>,
    } else {
    }
    %c0 = arith.constant 0 : index
    %c0_1 = arith.constant 0 : index
    %c0_2 = arith.constant 0 : index
    %3 = vector.load %arg4[%c0, %c0_1, %c0_2] : memref<1x8x32xbf16, #tpu.memory_space<vmem>>, vector<1x8x32xbf16>
    %4 = vector.shape_cast %3 : vector<1x8x32xbf16> to vector<8x32xbf16>
    %c0_3 = arith.constant 0 : index
    %c0_4 = arith.constant 0 : index
    %5 = vector.load %arg7[%c0_3, %c0_4] : memref<32x32xf32, #tpu.memory_space<vmem>>, vector<32x32xf32>
    %6 = arith.truncf %5 : vector<32x32xf32> to vector<32x32xbf16>
    %cst = arith.constant dense<0.000000e+00> : vector<8x32xf32>
    %7 = tpu.matmul %4, %6, %cst {dimension_numbers = #tpu.dot_dimension_numbers<[1], [0], [0], [1], [0, 0, 1, 1], [], []>} : vector<8x32xbf16>, vector<32x32xbf16>, vector<8x32xf32> -> vector<8x32xf32>
    %c0_5 = arith.constant 0 : index
    %c0_6 = arith.constant 0 : index
    %8 = vector.load %arg8[%c0_5, %c0_6] : memref<1x32xf32, #tpu.memory_space<vmem>>, vector<1x32xf32>
    %9 = vector.broadcast %8 : vector<1x32xf32> to vector<8x32xf32>
    %10 = arith.addf %7, %9 : vector<8x32xf32>
    %11 = arith.truncf %10 : vector<8x32xf32> to vector<8x32xbf16>
    %c0_7 = arith.constant 0 : index
    %c0_8 = arith.constant 0 : index
    %12 = vector.load %arg9[%c0_7, %c0_8] : memref<32x32xf32, #tpu.memory_space<vmem>>, vector<32x32xf32>
    %13 = arith.truncf %12 : vector<32x32xf32> to vector<32x32xbf16>
    %cst_9 = arith.constant dense<0.000000e+00> : vector<8x32xf32>
    %14 = tpu.matmul %4, %13, %cst_9 {dimension_numbers = #tpu.dot_dimension_numbers<[1], [0], [0], [1], [0, 0, 1, 1], [], []>} : vector<8x32xbf16>, vector<32x32xbf16>, vector<8x32xf32> -> vector<8x32xf32>
    %c0_10 = arith.constant 0 : index
    %c0_11 = arith.constant 0 : index
    %15 = vector.load %arg10[%c0_10, %c0_11] : memref<1x32xf32, #tpu.memory_space<vmem>>, vector<1x32xf32>
    %16 = vector.broadcast %15 : vector<1x32xf32> to vector<8x32xf32>
    %17 = arith.addf %14, %16 : vector<8x32xf32>
    %18 = arith.truncf %17 : vector<8x32xf32> to vector<8x32xbf16>
    %c0_12 = arith.constant 0 : index
    %c0_13 = arith.constant 0 : index
    %19 = vector.load %arg16[%c0_12, %c0_13] : memref<8x32xbf16, #tpu.memory_space<vmem>>, vector<8x32xbf16>
    %20 = vector.extract_strided_slice %19 {offsets = [0, 0], sizes = [8, 16], strides = [1, 1]} : vector<8x32xbf16> to vector<8x16xbf16>
    %21 = vector.extract_strided_slice %11 {offsets = [0, 0], sizes = [8, 16], strides = [1, 1]} : vector<8x32xbf16> to vector<8x16xbf16>
    %cst_14 = arith.constant dense<0.000000e+00> : vector<8x8xf32>
    %22 = tpu.matmul %20, %21, %cst_14 {dimension_numbers = #tpu.dot_dimension_numbers<[1], [1], [0], [0], [0, 0, 1, 0], [], []>} : vector<8x16xbf16>, vector<8x16xbf16>, vector<8x8xf32> -> vector<8x8xf32>
    %c0_15 = arith.constant 0 : index
    %c0_16 = arith.constant 0 : index
    %23 = vector.load %arg17[%c0_15, %c0_16] : memref<8x2xf32, #tpu.memory_space<vmem>>, vector<8x1xf32>
    %cst_17 = arith.constant dense<0xFF800000> : vector<8xf32>
    %24 = vector.multi_reduction <maximumf>, %22, %cst_17 [1] : vector<8x8xf32> to vector<8xf32>
    %25 = vector.shape_cast %24 : vector<8xf32> to vector<8x1xf32>
    %26 = arith.maximumf %23, %25 : vector<8x1xf32>
    %27 = arith.subf %23, %26 : vector<8x1xf32>
    %28 = math.exp %27 : vector<8x1xf32>
    %29 = vector.broadcast %26 : vector<8x1xf32> to vector<8x8xf32>
    %30 = arith.subf %22, %29 : vector<8x8xf32>
    %31 = math.exp %30 : vector<8x8xf32>
    %c0_18 = arith.constant 0 : index
    %c0_19 = arith.constant 0 : index
    %32 = vector.load %arg18[%c0_18, %c0_19] : memref<8x2xf32, #tpu.memory_space<vmem>>, vector<8x1xf32>
    %33 = arith.mulf %28, %32 : vector<8x1xf32>
    %cst_20 = arith.constant dense<0.000000e+00> : vector<8xf32>
    %34 = vector.multi_reduction <add>, %31, %cst_20 [1] : vector<8x8xf32> to vector<8xf32>
    %35 = vector.shape_cast %34 : vector<8xf32> to vector<8x1xf32>
    %36 = arith.addf %33, %35 : vector<8x1xf32>
    %c0_21 = arith.constant 0 : index
    %c0_22 = arith.constant 0 : index
    %37 = vector.load %arg18[%c0_21, %c0_22] : memref<8x2xf32, #tpu.memory_space<vmem>>, vector<8x1xf32>
    tpu.vector_store %arg18[%c0_21, %c0_22], %36 {strides = array<i32>} : memref<8x2xf32, #tpu.memory_space<vmem>>, vector<8x1xf32>,
    %c0_23 = arith.constant 0 : index
    %c0_24 = arith.constant 0 : index
    %38 = vector.load %arg19[%c0_23, %c0_24] : memref<8x32xf32, #tpu.memory_space<vmem>>, vector<8x16xf32>
    %39 = vector.broadcast %28 : vector<8x1xf32> to vector<8x16xf32>
    %40 = arith.mulf %39, %38 : vector<8x16xf32>
    %41 = arith.truncf %31 : vector<8x8xf32> to vector<8x8xbf16>
    %42 = vector.extract_strided_slice %18 {offsets = [0, 0], sizes = [8, 16], strides = [1, 1]} : vector<8x32xbf16> to vector<8x16xbf16>
    %cst_25 = arith.constant dense<0.000000e+00> : vector<8x16xf32>
    %43 = tpu.matmul %41, %42, %cst_25 {dimension_numbers = #tpu.dot_dimension_numbers<[1], [0], [0], [1], [0, 0, 1, 1], [], []>} : vector<8x8xbf16>, vector<8x16xbf16>, vector<8x16xf32> -> vector<8x16xf32>
    %44 = arith.addf %40, %43 : vector<8x16xf32>
    %c0_26 = arith.constant 0 : index
    %c0_27 = arith.constant 0 : index
    %45 = vector.load %arg19[%c0_26, %c0_27] : memref<8x32xf32, #tpu.memory_space<vmem>>, vector<8x16xf32>
    tpu.vector_store %arg19[%c0_26, %c0_27], %44 {strides = array<i32>} : memref<8x32xf32, #tpu.memory_space<vmem>>, vector<8x16xf32>,
    %c0_28 = arith.constant 0 : index
    %c0_29 = arith.constant 0 : index
    %46 = vector.load %arg17[%c0_28, %c0_29] : memref<8x2xf32, #tpu.memory_space<vmem>>, vector<8x1xf32>
    tpu.vector_store %arg17[%c0_28, %c0_29], %26 {strides = array<i32>} : memref<8x2xf32, #tpu.memory_space<vmem>>, vector<8x1xf32>,
    %47 = vector.extract_strided_slice %19 {offsets = [0, 16], sizes = [8, 16], strides = [1, 1]} : vector<8x32xbf16> to vector<8x16xbf16>
    %48 = vector.extract_strided_slice %11 {offsets = [0, 16], sizes = [8, 16], strides = [1, 1]} : vector<8x32xbf16> to vector<8x16xbf16>
    %cst_30 = arith.constant dense<0.000000e+00> : vector<8x8xf32>
    %49 = tpu.matmul %47, %48, %cst_30 {dimension_numbers = #tpu.dot_dimension_numbers<[1], [1], [0], [0], [0, 0, 1, 0], [], []>} : vector<8x16xbf16>, vector<8x16xbf16>, vector<8x8xf32> -> vector<8x8xf32>
    %c0_31 = arith.constant 0 : index
    %c1 = arith.constant 1 : index
    %50 = vector.load %arg17[%c0_31, %c1] : memref<8x2xf32, #tpu.memory_space<vmem>>, vector<8x1xf32>
    %cst_32 = arith.constant dense<0xFF800000> : vector<8xf32>
    %51 = vector.multi_reduction <maximumf>, %49, %cst_32 [1] : vector<8x8xf32> to vector<8xf32>
    %52 = vector.shape_cast %51 : vector<8xf32> to vector<8x1xf32>
    %53 = arith.maximumf %50, %52 : vector<8x1xf32>
    %54 = arith.subf %50, %53 : vector<8x1xf32>
    %55 = math.exp %54 : vector<8x1xf32>
    %56 = vector.broadcast %53 : vector<8x1xf32> to vector<8x8xf32>
    %57 = arith.subf %49, %56 : vector<8x8xf32>
    %58 = math.exp %57 : vector<8x8xf32>
    %c0_33 = arith.constant 0 : index
    %c1_34 = arith.constant 1 : index
    %59 = vector.load %arg18[%c0_33, %c1_34] : memref<8x2xf32, #tpu.memory_space<vmem>>, vector<8x1xf32>
    %60 = arith.mulf %55, %59 : vector<8x1xf32>
    %cst_35 = arith.constant dense<0.000000e+00> : vector<8xf32>
    %61 = vector.multi_reduction <add>, %58, %cst_35 [1] : vector<8x8xf32> to vector<8xf32>
    %62 = vector.shape_cast %61 : vector<8xf32> to vector<8x1xf32>
    %63 = arith.addf %60, %62 : vector<8x1xf32>
    %c0_36 = arith.constant 0 : index
    %c1_37 = arith.constant 1 : index
    %64 = vector.load %arg18[%c0_36, %c1_37] : memref<8x2xf32, #tpu.memory_space<vmem>>, vector<8x1xf32>
    tpu.vector_store %arg18[%c0_36, %c1_37], %63 {strides = array<i32>} : memref<8x2xf32, #tpu.memory_space<vmem>>, vector<8x1xf32>,
    %c0_38 = arith.constant 0 : index
    %c16 = arith.constant 16 : index
    %65 = vector.load %arg19[%c0_38, %c16] : memref<8x32xf32, #tpu.memory_space<vmem>>, vector<8x16xf32>
    %66 = vector.broadcast %55 : vector<8x1xf32> to vector<8x16xf32>
    %67 = arith.mulf %66, %65 : vector<8x16xf32>
    %68 = arith.truncf %58 : vector<8x8xf32> to vector<8x8xbf16>
    %69 = vector.extract_strided_slice %18 {offsets = [0, 16], sizes = [8, 16], strides = [1, 1]} : vector<8x32xbf16> to vector<8x16xbf16>
    %cst_39 = arith.constant dense<0.000000e+00> : vector<8x16xf32>
    %70 = tpu.matmul %68, %69, %cst_39 {dimension_numbers = #tpu.dot_dimension_numbers<[1], [0], [0], [1], [0, 0, 1, 1], [], []>} : vector<8x8xbf16>, vector<8x16xbf16>, vector<8x16xf32> -> vector<8x16xf32>
    %71 = arith.addf %67, %70 : vector<8x16xf32>
    %c0_40 = arith.constant 0 : index
    %c16_41 = arith.constant 16 : index
    %72 = vector.load %arg19[%c0_40, %c16_41] : memref<8x32xf32, #tpu.memory_space<vmem>>, vector<8x16xf32>
    tpu.vector_store %arg19[%c0_40, %c16_41], %71 {strides = array<i32>} : memref<8x32xf32, #tpu.memory_space<vmem>>, vector<8x16xf32>,
    %c0_42 = arith.constant 0 : index
    %c1_43 = arith.constant 1 : index
    %73 = vector.load %arg17[%c0_42, %c1_43] : memref<8x2xf32, #tpu.memory_space<vmem>>, vector<8x1xf32>
    tpu.vector_store %arg17[%c0_42, %c1_43], %53 {strides = array<i32>} : memref<8x2xf32, #tpu.memory_space<vmem>>, vector<8x1xf32>,
    %c0_i32_44 = arith.constant 0 : i32
    %74 = arith.cmpi eq, %arg2, %c0_i32_44 : i32
    %75 = arith.extui %74 : i1 to i32
    %c0_i32_45 = arith.constant 0 : i32
    %76 = arith.cmpi ne, %75, %c0_i32_45 : i32
    scf.if %76 {
      %c0_46 = arith.constant 0 : index
      %c0_47 = arith.constant 0 : index
      %77 = vector.load %arg18[%c0_46, %c0_47] : memref<8x2xf32, #tpu.memory_space<vmem>>, vector<8x2xf32>
      %78 = tpu.reciprocal %77 {approx = true} : vector<8x2xf32> -> vector<8x2xf32>
      %c0_48 = arith.constant 0 : index
      %c0_49 = arith.constant 0 : index
      %79 = vector.load %arg19[%c0_48, %c0_49] : memref<8x32xf32, #tpu.memory_space<vmem>>, vector<8x16xf32>
      %80 = vector.extract_strided_slice %78 {offsets = [0, 0], sizes = [8, 1], strides = [1, 1]} : vector<8x2xf32> to vector<8x1xf32>
      %81 = vector.broadcast %80 : vector<8x1xf32> to vector<8x16xf32>
      %82 = arith.mulf %79, %81 : vector<8x16xf32>
      %c0_50 = arith.constant 0 : index
      %c0_51 = arith.constant 0 : index
      %83 = vector.load %arg19[%c0_50, %c0_51] : memref<8x32xf32, #tpu.memory_space<vmem>>, vector<8x16xf32>
      tpu.vector_store %arg19[%c0_50, %c0_51], %82 {strides = array<i32>} : memref<8x32xf32, #tpu.memory_space<vmem>>, vector<8x16xf32>,
      %c0_52 = arith.constant 0 : index
      %c16_53 = arith.constant 16 : index
      %84 = vector.load %arg19[%c0_52, %c16_53] : memref<8x32xf32, #tpu.memory_space<vmem>>, vector<8x16xf32>
      %85 = vector.extract_strided_slice %78 {offsets = [0, 1], sizes = [8, 1], strides = [1, 1]} : vector<8x2xf32> to vector<8x1xf32>
      %86 = vector.broadcast %85 : vector<8x1xf32> to vector<8x16xf32>
      %87 = arith.mulf %84, %86 : vector<8x16xf32>
      %c0_54 = arith.constant 0 : index
      %c16_55 = arith.constant 16 : index
      %88 = vector.load %arg19[%c0_54, %c16_55] : memref<8x32xf32, #tpu.memory_space<vmem>>, vector<8x16xf32>
      tpu.vector_store %arg19[%c0_54, %c16_55], %87 {strides = array<i32>} : memref<8x32xf32, #tpu.memory_space<vmem>>, vector<8x16xf32>,
      %c0_56 = arith.constant 0 : index
      %c0_57 = arith.constant 0 : index
      %89 = vector.load %arg19[%c0_56, %c0_57] : memref<8x32xf32, #tpu.memory_space<vmem>>, vector<8x32xf32>
      %c0_58 = arith.constant 0 : index
      %c0_59 = arith.constant 0 : index
      %90 = vector.load %arg11[%c0_58, %c0_59] : memref<32x32xf32, #tpu.memory_space<vmem>>, vector<32x32xf32>
      %91 = arith.truncf %89 : vector<8x32xf32> to vector<8x32xbf16>
      %92 = arith.truncf %90 : vector<32x32xf32> to vector<32x32xbf16>
      %cst_60 = arith.constant dense<0.000000e+00> : vector<8x32xf32>
      %93 = tpu.matmul %91, %92, %cst_60 {dimension_numbers = #tpu.dot_dimension_numbers<[1], [0], [0], [1], [0, 0, 1, 1], [], []>} : vector<8x32xbf16>, vector<32x32xbf16>, vector<8x32xf32> -> vector<8x32xf32>
      %c0_61 = arith.constant 0 : index
      %c0_62 = arith.constant 0 : index
      %94 = vector.load %arg12[%c0_61, %c0_62] : memref<1x32xf32, #tpu.memory_space<vmem>>, vector<1x32xf32>
      %95 = vector.broadcast %94 : vector<1x32xf32> to vector<8x32xf32>
      %96 = arith.addf %93, %95 : vector<8x32xf32>
      %cst_63 = arith.constant dense<0.000000e+00> : vector<8xf32>
      %97 = vector.multi_reduction <add>, %96, %cst_63 [1] : vector<8x32xf32> to vector<8xf32>
      %98 = vector.shape_cast %97 : vector<8xf32> to vector<8x1xf32>
      %cst_64 = arith.constant 3.200000e+01 : f32
      %99 = vector.broadcast %cst_64 : f32 to vector<8x1xf32>
      %100 = arith.divf %98, %99 : vector<8x1xf32>
      %101 = vector.broadcast %100 : vector<8x1xf32> to vector<8x32xf32>
      %102 = arith.subf %96, %101 : vector<8x32xf32>
      %103 = arith.mulf %102, %102 : vector<8x32xf32>
      %cst_65 = arith.constant dense<0.000000e+00> : vector<8xf32>
      %104 = vector.multi_reduction <add>, %103, %cst_65 [1] : vector<8x32xf32> to vector<8xf32>
      %105 = vector.shape_cast %104 : vector<8xf32> to vector<8x1xf32>
      %cst_66 = arith.constant 3.200000e+01 : f32
      %106 = vector.broadcast %cst_66 : f32 to vector<8x1xf32>
      %107 = arith.divf %105, %106 : vector<8x1xf32>
      %108 = vector.broadcast %100 : vector<8x1xf32> to vector<8x32xf32>
      %109 = arith.subf %96, %108 : vector<8x32xf32>
      %cst_67 = arith.constant 9.99999974E-6 : f32
      %110 = vector.broadcast %cst_67 : f32 to vector<8x1xf32>
      %111 = arith.addf %107, %110 : vector<8x1xf32>
      %112 = math.rsqrt %111 : vector<8x1xf32>
      %113 = vector.broadcast %112 : vector<8x1xf32> to vector<8x32xf32>
      %114 = arith.mulf %109, %113 : vector<8x32xf32>
      %c0_68 = arith.constant 0 : index
      %c0_69 = arith.constant 0 : index
      %115 = vector.load %arg13[%c0_68, %c0_69] : memref<1x32xf32, #tpu.memory_space<vmem>>, vector<1x32xf32>
      %116 = vector.broadcast %115 : vector<1x32xf32> to vector<8x32xf32>
      %117 = arith.mulf %114, %116 : vector<8x32xf32>
      %c0_70 = arith.constant 0 : index
      %c0_71 = arith.constant 0 : index
      %118 = vector.load %arg14[%c0_70, %c0_71] : memref<1x32xf32, #tpu.memory_space<vmem>>, vector<1x32xf32>
      %119 = vector.broadcast %118 : vector<1x32xf32> to vector<8x32xf32>
      %120 = arith.addf %117, %119 : vector<8x32xf32>
      %c0_72 = arith.constant 0 : index
      %c0_73 = arith.constant 0 : index
      %c0_74 = arith.constant 0 : index
      %121 = vector.load %arg15[%c0_72, %c0_73, %c0_74] : memref<1x8x32xf32, #tpu.memory_space<vmem>>, vector<1x8x32xf32>
      %122 = vector.shape_cast %121 : vector<1x8x32xf32> to vector<8x32xf32>
      %123 = vector.shape_cast %120 : vector<8x32xf32> to vector<1x8x32xf32>
      tpu.vector_store %arg15[%c0_72, %c0_73, %c0_74], %123 {strides = array<i32>} : memref<1x8x32xf32, #tpu.memory_space<vmem>>, vector<1x8x32xf32>,
    } else {
    }
    return
  }
  func.func @transform_0(%arg0: i32, %arg1: i32, %arg2: i32) -> (i32, i32, i32) {
    %c0_i32 = arith.constant 0 : i32
    %c0_i32_0 = arith.constant 0 : i32
    return %arg0, %arg1, %c0_i32 : i32, i32, i32
  }
  func.func @transform_1(%arg0: i32, %arg1: i32, %arg2: i32) -> (i32, i32, i32) {
    %c0_i32 = arith.constant 0 : i32
    %c0_i32_0 = arith.constant 0 : i32
    return %arg0, %arg2, %c0_i32 : i32, i32, i32
  }
  func.func @transform_2(%arg0: i32, %arg1: i32, %arg2: i32) -> (i32, i32) {
    %c0_i32 = arith.constant 0 : i32
    %c0_i32_0 = arith.constant 0 : i32
    %c0_i32_1 = arith.constant 0 : i32
    return %c0_i32, %c0_i32_0 : i32, i32
  }
  func.func @transform_3(%arg0: i32, %arg1: i32, %arg2: i32) -> (i32, i32) {
    %c0_i32 = arith.constant 0 : i32
    %c0_i32_0 = arith.constant 0 : i32
    %c0_i32_1 = arith.constant 0 : i32
    return %c0_i32, %c0_i32_0 : i32, i32
  }
  func.func @transform_4(%arg0: i32, %arg1: i32, %arg2: i32) -> (i32, i32) {
    %c0_i32 = arith.constant 0 : i32
    %c0_i32_0 = arith.constant 0 : i32
    %c0_i32_1 = arith.constant 0 : i32
    return %c0_i32, %c0_i32_0 : i32, i32
  }
  func.func @transform_5(%arg0: i32, %arg1: i32, %arg2: i32) -> (i32, i32) {
    %c0_i32 = arith.constant 0 : i32
    %c0_i32_0 = arith.constant 0 : i32
    %c0_i32_1 = arith.constant 0 : i32
    return %c0_i32, %c0_i32_0 : i32, i32
  }
  func.func @transform_6(%arg0: i32, %arg1: i32, %arg2: i32) -> (i32, i32) {
    %c0_i32 = arith.constant 0 : i32
    %c0_i32_0 = arith.constant 0 : i32
    %c0_i32_1 = arith.constant 0 : i32
    return %c0_i32, %c0_i32_0 : i32, i32
  }
  func.func @transform_7(%arg0: i32, %arg1: i32, %arg2: i32) -> (i32, i32) {
    %c0_i32 = arith.constant 0 : i32
    %c0_i32_0 = arith.constant 0 : i32
    %c0_i32_1 = arith.constant 0 : i32
    return %c0_i32, %c0_i32_0 : i32, i32
  }
  func.func @transform_8(%arg0: i32, %arg1: i32, %arg2: i32) -> (i32, i32) {
    %c0_i32 = arith.constant 0 : i32
    %c0_i32_0 = arith.constant 0 : i32
    %c0_i32_1 = arith.constant 0 : i32
    return %c0_i32, %c0_i32_0 : i32, i32
  }
  func.func @transform_9(%arg0: i32, %arg1: i32, %arg2: i32) -> (i32, i32) {
    %c0_i32 = arith.constant 0 : i32
    %c0_i32_0 = arith.constant 0 : i32
    %c0_i32_1 = arith.constant 0 : i32
    return %c0_i32, %c0_i32_0 : i32, i32
  }
  func.func @transform_10(%arg0: i32, %arg1: i32, %arg2: i32) -> (i32, i32) {
    %c0_i32 = arith.constant 0 : i32
    %c0_i32_0 = arith.constant 0 : i32
    %c0_i32_1 = arith.constant 0 : i32
    return %c0_i32, %c0_i32_0 : i32, i32
  }
  func.func @transform_11(%arg0: i32, %arg1: i32, %arg2: i32) -> (i32, i32) {
    %c0_i32 = arith.constant 0 : i32
    %c0_i32_0 = arith.constant 0 : i32
    %c0_i32_1 = arith.constant 0 : i32
    return %c0_i32, %c0_i32_0 : i32, i32
  }
  func.func @transform_12(%arg0: i32, %arg1: i32, %arg2: i32) -> (i32, i32, i32) {
    %c0_i32 = arith.constant 0 : i32
    %c0_i32_0 = arith.constant 0 : i32
    return %arg0, %arg1, %c0_i32 : i32, i32, i32
  }
}

module attributes {stable_mosaic.version = 11 : i64} {
  func.func @_fused_attn_ln_kernel(%arg0: i32, %arg1: i32, %arg2: i32, %arg3: memref<1x8x32xf32, #tpu.memory_space<vmem>>, %arg4: memref<1x8x32xf32, #tpu.memory_space<vmem>>, %arg5: memref<1x64x32xbf16, #tpu.memory_space<vmem>>, %arg6: memref<1x64x32xbf16, #tpu.memory_space<vmem>>, %arg7: memref<32x16xf32, #tpu.memory_space<vmem>>, %arg8: memref<1x16xf32, #tpu.memory_space<vmem>>, %arg9: memref<32x16xf32, #tpu.memory_space<vmem>>, %arg10: memref<1x16xf32, #tpu.memory_space<vmem>>, %arg11: memref<32x16xf32, #tpu.memory_space<vmem>>, %arg12: memref<1x16xf32, #tpu.memory_space<vmem>>, %arg13: memref<16x32xf32, #tpu.memory_space<vmem>>, %arg14: memref<1x32xf32, #tpu.memory_space<vmem>>, %arg15: memref<1x32xf32, #tpu.memory_space<vmem>>, %arg16: memref<1x32xf32, #tpu.memory_space<vmem>>, %arg17: memref<1x8x32xf32, #tpu.memory_space<vmem>>, %arg18: memref<8x16xbf16, #tpu.memory_space<vmem>>, %arg19: memref<8x2xf32, #tpu.memory_space<vmem>>, %arg20: memref<8x2xf32, #tpu.memory_space<vmem>>, %arg21: memref<8x16xf32, #tpu.memory_space<vmem>>) attributes {dimension_semantics = [#tpu.dimension_semantics<parallel>, #tpu.dimension_semantics<parallel>, #tpu.dimension_semantics<arbitrary>], iteration_bounds = array<i64: 2, 1, 1>, scalar_prefetch = 0 : i64, scratch_operands = 4 : i64, tpu.core_type = #tpu.core_type<tc>, window_params = [{transform_indices = @transform_0, window_bounds = array<i64: 1, 8, 32>}, {transform_indices = @transform_1, window_bounds = array<i64: 1, 8, 32>}, {transform_indices = @transform_2, window_bounds = array<i64: 1, 64, 32>}, {transform_indices = @transform_3, window_bounds = array<i64: 1, 64, 32>}, {pipeline_mode = #tpu.pipeline_mode<synchronous>, transform_indices = @transform_4, window_bounds = array<i64: 32, 16>}, {pipeline_mode = #tpu.pipeline_mode<synchronous>, transform_indices = @transform_5, window_bounds = array<i64: 1, 16>}, {pipeline_mode = #tpu.pipeline_mode<synchronous>, transform_indices = @transform_6, window_bounds = array<i64: 32, 16>}, {pipeline_mode = #tpu.pipeline_mode<synchronous>, transform_indices = @transform_7, window_bounds = array<i64: 1, 16>}, {pipeline_mode = #tpu.pipeline_mode<synchronous>, transform_indices = @transform_8, window_bounds = array<i64: 32, 16>}, {pipeline_mode = #tpu.pipeline_mode<synchronous>, transform_indices = @transform_9, window_bounds = array<i64: 1, 16>}, {pipeline_mode = #tpu.pipeline_mode<synchronous>, transform_indices = @transform_10, window_bounds = array<i64: 16, 32>}, {pipeline_mode = #tpu.pipeline_mode<synchronous>, transform_indices = @transform_11, window_bounds = array<i64: 1, 32>}, {pipeline_mode = #tpu.pipeline_mode<synchronous>, transform_indices = @transform_12, window_bounds = array<i64: 1, 32>}, {pipeline_mode = #tpu.pipeline_mode<synchronous>, transform_indices = @transform_13, window_bounds = array<i64: 1, 32>}, {transform_indices = @transform_14, window_bounds = array<i64: 1, 8, 32>}]} {
    %c0_i32 = arith.constant 0 : i32
    %0 = arith.cmpi eq, %arg2, %c0_i32 : i32
    %1 = arith.extui %0 : i1 to i32
    %c0_i32_0 = arith.constant 0 : i32
    %2 = arith.cmpi ne, %1, %c0_i32_0 : i32
    scf.if %2 {
      %c0_49 = arith.constant 0 : index
      %c0_50 = arith.constant 0 : index
      %c0_51 = arith.constant 0 : index
      %80 = vector.load %arg3[%c0_49, %c0_50, %c0_51] : memref<1x8x32xf32, #tpu.memory_space<vmem>>, vector<1x8x32xf32>
      %81 = vector.shape_cast %80 : vector<1x8x32xf32> to vector<8x32xf32>
      %c0_52 = arith.constant 0 : index
      %c0_53 = arith.constant 0 : index
      %c0_54 = arith.constant 0 : index
      %82 = vector.load %arg4[%c0_52, %c0_53, %c0_54] : memref<1x8x32xf32, #tpu.memory_space<vmem>>, vector<1x8x32xf32>
      %83 = vector.shape_cast %82 : vector<1x8x32xf32> to vector<8x32xf32>
      %84 = arith.addf %81, %83 : vector<8x32xf32>
      %c0_55 = arith.constant 0 : index
      %c0_56 = arith.constant 0 : index
      %85 = vector.load %arg7[%c0_55, %c0_56] : memref<32x16xf32, #tpu.memory_space<vmem>>, vector<32x16xf32>
      %86 = arith.truncf %84 : vector<8x32xf32> to vector<8x32xbf16>
      %87 = arith.truncf %85 : vector<32x16xf32> to vector<32x16xbf16>
      %cst_57 = arith.constant dense<0.000000e+00> : vector<8x16xf32>
      %88 = tpu.matmul %86, %87, %cst_57 {dimension_numbers = #tpu.dot_dimension_numbers<[1], [0], [0], [1], [0, 0, 1, 1], [], []>} : vector<8x32xbf16>, vector<32x16xbf16>, vector<8x16xf32> -> vector<8x16xf32>
      %c0_58 = arith.constant 0 : index
      %c0_59 = arith.constant 0 : index
      %89 = vector.load %arg8[%c0_58, %c0_59] : memref<1x16xf32, #tpu.memory_space<vmem>>, vector<1x16xf32>
      %90 = vector.broadcast %89 : vector<1x16xf32> to vector<8x16xf32>
      %91 = arith.addf %88, %90 : vector<8x16xf32>
      %92 = arith.truncf %91 : vector<8x16xf32> to vector<8x16xbf16>
      %c0_60 = arith.constant 0 : index
      %c0_61 = arith.constant 0 : index
      %93 = vector.load %arg18[%c0_60, %c0_61] : memref<8x16xbf16, #tpu.memory_space<vmem>>, vector<8x16xbf16>
      tpu.vector_store %arg18[%c0_60, %c0_61], %92 {strides = array<i32>} : memref<8x16xbf16, #tpu.memory_space<vmem>>, vector<8x16xbf16>,
      %cst_62 = arith.constant 0xFF800000 : f32
      %94 = vector.broadcast %cst_62 : f32 to vector<8x2xf32>
      %c0_63 = arith.constant 0 : index
      %c0_64 = arith.constant 0 : index
      %95 = vector.load %arg19[%c0_63, %c0_64] : memref<8x2xf32, #tpu.memory_space<vmem>>, vector<8x2xf32>
      tpu.vector_store %arg19[%c0_63, %c0_64], %94 {strides = array<i32>} : memref<8x2xf32, #tpu.memory_space<vmem>>, vector<8x2xf32>,
      %cst_65 = arith.constant 0.000000e+00 : f32
      %96 = vector.broadcast %cst_65 : f32 to vector<8x2xf32>
      %c0_66 = arith.constant 0 : index
      %c0_67 = arith.constant 0 : index
      %97 = vector.load %arg20[%c0_66, %c0_67] : memref<8x2xf32, #tpu.memory_space<vmem>>, vector<8x2xf32>
      tpu.vector_store %arg20[%c0_66, %c0_67], %96 {strides = array<i32>} : memref<8x2xf32, #tpu.memory_space<vmem>>, vector<8x2xf32>,
      %cst_68 = arith.constant 0.000000e+00 : f32
      %98 = vector.broadcast %cst_68 : f32 to vector<8x16xf32>
      %c0_69 = arith.constant 0 : index
      %c0_70 = arith.constant 0 : index
      %99 = vector.load %arg21[%c0_69, %c0_70] : memref<8x16xf32, #tpu.memory_space<vmem>>, vector<8x16xf32>
      tpu.vector_store %arg21[%c0_69, %c0_70], %98 {strides = array<i32>} : memref<8x16xf32, #tpu.memory_space<vmem>>, vector<8x16xf32>,
    } else {
    }
    %c0 = arith.constant 0 : index
    %c0_1 = arith.constant 0 : index
    %c0_2 = arith.constant 0 : index
    %3 = vector.load %arg5[%c0, %c0_1, %c0_2] : memref<1x64x32xbf16, #tpu.memory_space<vmem>>, vector<1x64x32xbf16>
    %4 = vector.shape_cast %3 : vector<1x64x32xbf16> to vector<64x32xbf16>
    %c0_3 = arith.constant 0 : index
    %c0_4 = arith.constant 0 : index
    %c0_5 = arith.constant 0 : index
    %5 = vector.load %arg6[%c0_3, %c0_4, %c0_5] : memref<1x64x32xbf16, #tpu.memory_space<vmem>>, vector<1x64x32xbf16>
    %6 = vector.shape_cast %5 : vector<1x64x32xbf16> to vector<64x32xbf16>
    %7 = arith.addf %4, %6 : vector<64x32xbf16>
    %c0_6 = arith.constant 0 : index
    %c0_7 = arith.constant 0 : index
    %8 = vector.load %arg9[%c0_6, %c0_7] : memref<32x16xf32, #tpu.memory_space<vmem>>, vector<32x16xf32>
    %9 = arith.truncf %8 : vector<32x16xf32> to vector<32x16xbf16>
    %cst = arith.constant dense<0.000000e+00> : vector<64x16xf32>
    %10 = tpu.matmul %7, %9, %cst {dimension_numbers = #tpu.dot_dimension_numbers<[1], [0], [0], [1], [0, 0, 1, 1], [], []>} : vector<64x32xbf16>, vector<32x16xbf16>, vector<64x16xf32> -> vector<64x16xf32>
    %c0_8 = arith.constant 0 : index
    %c0_9 = arith.constant 0 : index
    %11 = vector.load %arg10[%c0_8, %c0_9] : memref<1x16xf32, #tpu.memory_space<vmem>>, vector<1x16xf32>
    %12 = vector.broadcast %11 : vector<1x16xf32> to vector<64x16xf32>
    %13 = arith.addf %10, %12 : vector<64x16xf32>
    %14 = arith.truncf %13 : vector<64x16xf32> to vector<64x16xbf16>
    %c0_10 = arith.constant 0 : index
    %c0_11 = arith.constant 0 : index
    %15 = vector.load %arg11[%c0_10, %c0_11] : memref<32x16xf32, #tpu.memory_space<vmem>>, vector<32x16xf32>
    %16 = arith.truncf %15 : vector<32x16xf32> to vector<32x16xbf16>
    %cst_12 = arith.constant dense<0.000000e+00> : vector<64x16xf32>
    %17 = tpu.matmul %4, %16, %cst_12 {dimension_numbers = #tpu.dot_dimension_numbers<[1], [0], [0], [1], [0, 0, 1, 1], [], []>} : vector<64x32xbf16>, vector<32x16xbf16>, vector<64x16xf32> -> vector<64x16xf32>
    %c0_13 = arith.constant 0 : index
    %c0_14 = arith.constant 0 : index
    %18 = vector.load %arg12[%c0_13, %c0_14] : memref<1x16xf32, #tpu.memory_space<vmem>>, vector<1x16xf32>
    %19 = vector.broadcast %18 : vector<1x16xf32> to vector<64x16xf32>
    %20 = arith.addf %17, %19 : vector<64x16xf32>
    %21 = arith.truncf %20 : vector<64x16xf32> to vector<64x16xbf16>
    %c0_15 = arith.constant 0 : index
    %c0_16 = arith.constant 0 : index
    %22 = vector.load %arg18[%c0_15, %c0_16] : memref<8x16xbf16, #tpu.memory_space<vmem>>, vector<8x16xbf16>
    %23 = vector.extract_strided_slice %22 {offsets = [0, 0], sizes = [8, 8], strides = [1, 1]} : vector<8x16xbf16> to vector<8x8xbf16>
    %24 = vector.extract_strided_slice %14 {offsets = [0, 0], sizes = [64, 8], strides = [1, 1]} : vector<64x16xbf16> to vector<64x8xbf16>
    %cst_17 = arith.constant dense<0.000000e+00> : vector<8x64xf32>
    %25 = tpu.matmul %23, %24, %cst_17 {dimension_numbers = #tpu.dot_dimension_numbers<[1], [1], [0], [0], [0, 0, 1, 0], [], []>} : vector<8x8xbf16>, vector<64x8xbf16>, vector<8x64xf32> -> vector<8x64xf32>
    %c0_18 = arith.constant 0 : index
    %c0_19 = arith.constant 0 : index
    %26 = vector.load %arg19[%c0_18, %c0_19] : memref<8x2xf32, #tpu.memory_space<vmem>>, vector<8x1xf32>
    %cst_20 = arith.constant dense<0xFF800000> : vector<8xf32>
    %27 = vector.multi_reduction <maximumf>, %25, %cst_20 [1] : vector<8x64xf32> to vector<8xf32>
    %28 = vector.shape_cast %27 : vector<8xf32> to vector<8x1xf32>
    %29 = arith.maximumf %26, %28 : vector<8x1xf32>
    %30 = arith.subf %26, %29 : vector<8x1xf32>
    %31 = math.exp %30 : vector<8x1xf32>
    %32 = vector.broadcast %29 : vector<8x1xf32> to vector<8x64xf32>
    %33 = arith.subf %25, %32 : vector<8x64xf32>
    %34 = math.exp %33 : vector<8x64xf32>
    %c0_21 = arith.constant 0 : index
    %c0_22 = arith.constant 0 : index
    %35 = vector.load %arg20[%c0_21, %c0_22] : memref<8x2xf32, #tpu.memory_space<vmem>>, vector<8x1xf32>
    %36 = arith.mulf %31, %35 : vector<8x1xf32>
    %cst_23 = arith.constant dense<0.000000e+00> : vector<8xf32>
    %37 = vector.multi_reduction <add>, %34, %cst_23 [1] : vector<8x64xf32> to vector<8xf32>
    %38 = vector.shape_cast %37 : vector<8xf32> to vector<8x1xf32>
    %39 = arith.addf %36, %38 : vector<8x1xf32>
    %c0_24 = arith.constant 0 : index
    %c0_25 = arith.constant 0 : index
    %40 = vector.load %arg20[%c0_24, %c0_25] : memref<8x2xf32, #tpu.memory_space<vmem>>, vector<8x1xf32>
    tpu.vector_store %arg20[%c0_24, %c0_25], %39 {strides = array<i32>} : memref<8x2xf32, #tpu.memory_space<vmem>>, vector<8x1xf32>,
    %c0_26 = arith.constant 0 : index
    %c0_27 = arith.constant 0 : index
    %41 = vector.load %arg21[%c0_26, %c0_27] : memref<8x16xf32, #tpu.memory_space<vmem>>, vector<8x8xf32>
    %42 = vector.broadcast %31 : vector<8x1xf32> to vector<8x8xf32>
    %43 = arith.mulf %42, %41 : vector<8x8xf32>
    %44 = arith.truncf %34 : vector<8x64xf32> to vector<8x64xbf16>
    %45 = vector.extract_strided_slice %21 {offsets = [0, 0], sizes = [64, 8], strides = [1, 1]} : vector<64x16xbf16> to vector<64x8xbf16>
    %cst_28 = arith.constant dense<0.000000e+00> : vector<8x8xf32>
    %46 = tpu.matmul %44, %45, %cst_28 {dimension_numbers = #tpu.dot_dimension_numbers<[1], [0], [0], [1], [0, 0, 1, 1], [], []>} : vector<8x64xbf16>, vector<64x8xbf16>, vector<8x8xf32> -> vector<8x8xf32>
    %47 = arith.addf %43, %46 : vector<8x8xf32>
    %c0_29 = arith.constant 0 : index
    %c0_30 = arith.constant 0 : index
    %48 = vector.load %arg21[%c0_29, %c0_30] : memref<8x16xf32, #tpu.memory_space<vmem>>, vector<8x8xf32>
    tpu.vector_store %arg21[%c0_29, %c0_30], %47 {strides = array<i32>} : memref<8x16xf32, #tpu.memory_space<vmem>>, vector<8x8xf32>,
    %c0_31 = arith.constant 0 : index
    %c0_32 = arith.constant 0 : index
    %49 = vector.load %arg19[%c0_31, %c0_32] : memref<8x2xf32, #tpu.memory_space<vmem>>, vector<8x1xf32>
    tpu.vector_store %arg19[%c0_31, %c0_32], %29 {strides = array<i32>} : memref<8x2xf32, #tpu.memory_space<vmem>>, vector<8x1xf32>,
    %50 = vector.extract_strided_slice %22 {offsets = [0, 8], sizes = [8, 8], strides = [1, 1]} : vector<8x16xbf16> to vector<8x8xbf16>
    %51 = vector.extract_strided_slice %14 {offsets = [0, 8], sizes = [64, 8], strides = [1, 1]} : vector<64x16xbf16> to vector<64x8xbf16>
    %cst_33 = arith.constant dense<0.000000e+00> : vector<8x64xf32>
    %52 = tpu.matmul %50, %51, %cst_33 {dimension_numbers = #tpu.dot_dimension_numbers<[1], [1], [0], [0], [0, 0, 1, 0], [], []>} : vector<8x8xbf16>, vector<64x8xbf16>, vector<8x64xf32> -> vector<8x64xf32>
    %c0_34 = arith.constant 0 : index
    %c1 = arith.constant 1 : index
    %53 = vector.load %arg19[%c0_34, %c1] : memref<8x2xf32, #tpu.memory_space<vmem>>, vector<8x1xf32>
    %cst_35 = arith.constant dense<0xFF800000> : vector<8xf32>
    %54 = vector.multi_reduction <maximumf>, %52, %cst_35 [1] : vector<8x64xf32> to vector<8xf32>
    %55 = vector.shape_cast %54 : vector<8xf32> to vector<8x1xf32>
    %56 = arith.maximumf %53, %55 : vector<8x1xf32>
    %57 = arith.subf %53, %56 : vector<8x1xf32>
    %58 = math.exp %57 : vector<8x1xf32>
    %59 = vector.broadcast %56 : vector<8x1xf32> to vector<8x64xf32>
    %60 = arith.subf %52, %59 : vector<8x64xf32>
    %61 = math.exp %60 : vector<8x64xf32>
    %c0_36 = arith.constant 0 : index
    %c1_37 = arith.constant 1 : index
    %62 = vector.load %arg20[%c0_36, %c1_37] : memref<8x2xf32, #tpu.memory_space<vmem>>, vector<8x1xf32>
    %63 = arith.mulf %58, %62 : vector<8x1xf32>
    %cst_38 = arith.constant dense<0.000000e+00> : vector<8xf32>
    %64 = vector.multi_reduction <add>, %61, %cst_38 [1] : vector<8x64xf32> to vector<8xf32>
    %65 = vector.shape_cast %64 : vector<8xf32> to vector<8x1xf32>
    %66 = arith.addf %63, %65 : vector<8x1xf32>
    %c0_39 = arith.constant 0 : index
    %c1_40 = arith.constant 1 : index
    %67 = vector.load %arg20[%c0_39, %c1_40] : memref<8x2xf32, #tpu.memory_space<vmem>>, vector<8x1xf32>
    tpu.vector_store %arg20[%c0_39, %c1_40], %66 {strides = array<i32>} : memref<8x2xf32, #tpu.memory_space<vmem>>, vector<8x1xf32>,
    %c0_41 = arith.constant 0 : index
    %c8 = arith.constant 8 : index
    %68 = vector.load %arg21[%c0_41, %c8] : memref<8x16xf32, #tpu.memory_space<vmem>>, vector<8x8xf32>
    %69 = vector.broadcast %58 : vector<8x1xf32> to vector<8x8xf32>
    %70 = arith.mulf %69, %68 : vector<8x8xf32>
    %71 = arith.truncf %61 : vector<8x64xf32> to vector<8x64xbf16>
    %72 = vector.extract_strided_slice %21 {offsets = [0, 8], sizes = [64, 8], strides = [1, 1]} : vector<64x16xbf16> to vector<64x8xbf16>
    %cst_42 = arith.constant dense<0.000000e+00> : vector<8x8xf32>
    %73 = tpu.matmul %71, %72, %cst_42 {dimension_numbers = #tpu.dot_dimension_numbers<[1], [0], [0], [1], [0, 0, 1, 1], [], []>} : vector<8x64xbf16>, vector<64x8xbf16>, vector<8x8xf32> -> vector<8x8xf32>
    %74 = arith.addf %70, %73 : vector<8x8xf32>
    %c0_43 = arith.constant 0 : index
    %c8_44 = arith.constant 8 : index
    %75 = vector.load %arg21[%c0_43, %c8_44] : memref<8x16xf32, #tpu.memory_space<vmem>>, vector<8x8xf32>
    tpu.vector_store %arg21[%c0_43, %c8_44], %74 {strides = array<i32>} : memref<8x16xf32, #tpu.memory_space<vmem>>, vector<8x8xf32>,
    %c0_45 = arith.constant 0 : index
    %c1_46 = arith.constant 1 : index
    %76 = vector.load %arg19[%c0_45, %c1_46] : memref<8x2xf32, #tpu.memory_space<vmem>>, vector<8x1xf32>
    tpu.vector_store %arg19[%c0_45, %c1_46], %56 {strides = array<i32>} : memref<8x2xf32, #tpu.memory_space<vmem>>, vector<8x1xf32>,
    %c0_i32_47 = arith.constant 0 : i32
    %77 = arith.cmpi eq, %arg2, %c0_i32_47 : i32
    %78 = arith.extui %77 : i1 to i32
    %c0_i32_48 = arith.constant 0 : i32
    %79 = arith.cmpi ne, %78, %c0_i32_48 : i32
    scf.if %79 {
      %c0_49 = arith.constant 0 : index
      %c0_50 = arith.constant 0 : index
      %80 = vector.load %arg20[%c0_49, %c0_50] : memref<8x2xf32, #tpu.memory_space<vmem>>, vector<8x2xf32>
      %81 = tpu.reciprocal %80 {approx = true} : vector<8x2xf32> -> vector<8x2xf32>
      %c0_51 = arith.constant 0 : index
      %c0_52 = arith.constant 0 : index
      %82 = vector.load %arg21[%c0_51, %c0_52] : memref<8x16xf32, #tpu.memory_space<vmem>>, vector<8x8xf32>
      %83 = vector.extract_strided_slice %81 {offsets = [0, 0], sizes = [8, 1], strides = [1, 1]} : vector<8x2xf32> to vector<8x1xf32>
      %84 = vector.broadcast %83 : vector<8x1xf32> to vector<8x8xf32>
      %85 = arith.mulf %82, %84 : vector<8x8xf32>
      %c0_53 = arith.constant 0 : index
      %c0_54 = arith.constant 0 : index
      %86 = vector.load %arg21[%c0_53, %c0_54] : memref<8x16xf32, #tpu.memory_space<vmem>>, vector<8x8xf32>
      tpu.vector_store %arg21[%c0_53, %c0_54], %85 {strides = array<i32>} : memref<8x16xf32, #tpu.memory_space<vmem>>, vector<8x8xf32>,
      %c0_55 = arith.constant 0 : index
      %c8_56 = arith.constant 8 : index
      %87 = vector.load %arg21[%c0_55, %c8_56] : memref<8x16xf32, #tpu.memory_space<vmem>>, vector<8x8xf32>
      %88 = vector.extract_strided_slice %81 {offsets = [0, 1], sizes = [8, 1], strides = [1, 1]} : vector<8x2xf32> to vector<8x1xf32>
      %89 = vector.broadcast %88 : vector<8x1xf32> to vector<8x8xf32>
      %90 = arith.mulf %87, %89 : vector<8x8xf32>
      %c0_57 = arith.constant 0 : index
      %c8_58 = arith.constant 8 : index
      %91 = vector.load %arg21[%c0_57, %c8_58] : memref<8x16xf32, #tpu.memory_space<vmem>>, vector<8x8xf32>
      tpu.vector_store %arg21[%c0_57, %c8_58], %90 {strides = array<i32>} : memref<8x16xf32, #tpu.memory_space<vmem>>, vector<8x8xf32>,
      %c0_59 = arith.constant 0 : index
      %c0_60 = arith.constant 0 : index
      %92 = vector.load %arg21[%c0_59, %c0_60] : memref<8x16xf32, #tpu.memory_space<vmem>>, vector<8x16xf32>
      %c0_61 = arith.constant 0 : index
      %c0_62 = arith.constant 0 : index
      %93 = vector.load %arg13[%c0_61, %c0_62] : memref<16x32xf32, #tpu.memory_space<vmem>>, vector<16x32xf32>
      %94 = arith.truncf %92 : vector<8x16xf32> to vector<8x16xbf16>
      %95 = arith.truncf %93 : vector<16x32xf32> to vector<16x32xbf16>
      %cst_63 = arith.constant dense<0.000000e+00> : vector<8x32xf32>
      %96 = tpu.matmul %94, %95, %cst_63 {dimension_numbers = #tpu.dot_dimension_numbers<[1], [0], [0], [1], [0, 0, 1, 1], [], []>} : vector<8x16xbf16>, vector<16x32xbf16>, vector<8x32xf32> -> vector<8x32xf32>
      %c0_64 = arith.constant 0 : index
      %c0_65 = arith.constant 0 : index
      %97 = vector.load %arg14[%c0_64, %c0_65] : memref<1x32xf32, #tpu.memory_space<vmem>>, vector<1x32xf32>
      %98 = vector.broadcast %97 : vector<1x32xf32> to vector<8x32xf32>
      %99 = arith.addf %96, %98 : vector<8x32xf32>
      %c0_66 = arith.constant 0 : index
      %c0_67 = arith.constant 0 : index
      %c0_68 = arith.constant 0 : index
      %100 = vector.load %arg3[%c0_66, %c0_67, %c0_68] : memref<1x8x32xf32, #tpu.memory_space<vmem>>, vector<1x8x32xf32>
      %101 = vector.shape_cast %100 : vector<1x8x32xf32> to vector<8x32xf32>
      %102 = arith.addf %99, %101 : vector<8x32xf32>
      %cst_69 = arith.constant dense<0.000000e+00> : vector<8xf32>
      %103 = vector.multi_reduction <add>, %102, %cst_69 [1] : vector<8x32xf32> to vector<8xf32>
      %104 = vector.shape_cast %103 : vector<8xf32> to vector<8x1xf32>
      %cst_70 = arith.constant 3.200000e+01 : f32
      %105 = vector.broadcast %cst_70 : f32 to vector<8x1xf32>
      %106 = arith.divf %104, %105 : vector<8x1xf32>
      %107 = vector.broadcast %106 : vector<8x1xf32> to vector<8x32xf32>
      %108 = arith.subf %102, %107 : vector<8x32xf32>
      %109 = arith.mulf %108, %108 : vector<8x32xf32>
      %cst_71 = arith.constant dense<0.000000e+00> : vector<8xf32>
      %110 = vector.multi_reduction <add>, %109, %cst_71 [1] : vector<8x32xf32> to vector<8xf32>
      %111 = vector.shape_cast %110 : vector<8xf32> to vector<8x1xf32>
      %cst_72 = arith.constant 3.200000e+01 : f32
      %112 = vector.broadcast %cst_72 : f32 to vector<8x1xf32>
      %113 = arith.divf %111, %112 : vector<8x1xf32>
      %114 = vector.broadcast %106 : vector<8x1xf32> to vector<8x32xf32>
      %115 = arith.subf %102, %114 : vector<8x32xf32>
      %cst_73 = arith.constant 9.99999974E-6 : f32
      %116 = vector.broadcast %cst_73 : f32 to vector<8x1xf32>
      %117 = arith.addf %113, %116 : vector<8x1xf32>
      %118 = math.rsqrt %117 : vector<8x1xf32>
      %119 = vector.broadcast %118 : vector<8x1xf32> to vector<8x32xf32>
      %120 = arith.mulf %115, %119 : vector<8x32xf32>
      %c0_74 = arith.constant 0 : index
      %c0_75 = arith.constant 0 : index
      %121 = vector.load %arg15[%c0_74, %c0_75] : memref<1x32xf32, #tpu.memory_space<vmem>>, vector<1x32xf32>
      %122 = vector.broadcast %121 : vector<1x32xf32> to vector<8x32xf32>
      %123 = arith.mulf %120, %122 : vector<8x32xf32>
      %c0_76 = arith.constant 0 : index
      %c0_77 = arith.constant 0 : index
      %124 = vector.load %arg16[%c0_76, %c0_77] : memref<1x32xf32, #tpu.memory_space<vmem>>, vector<1x32xf32>
      %125 = vector.broadcast %124 : vector<1x32xf32> to vector<8x32xf32>
      %126 = arith.addf %123, %125 : vector<8x32xf32>
      %c0_78 = arith.constant 0 : index
      %c0_79 = arith.constant 0 : index
      %c0_80 = arith.constant 0 : index
      %127 = vector.load %arg17[%c0_78, %c0_79, %c0_80] : memref<1x8x32xf32, #tpu.memory_space<vmem>>, vector<1x8x32xf32>
      %128 = vector.shape_cast %127 : vector<1x8x32xf32> to vector<8x32xf32>
      %129 = vector.shape_cast %126 : vector<8x32xf32> to vector<1x8x32xf32>
      tpu.vector_store %arg17[%c0_78, %c0_79, %c0_80], %129 {strides = array<i32>} : memref<1x8x32xf32, #tpu.memory_space<vmem>>, vector<1x8x32xf32>,
    } else {
    }
    return
  }
  func.func @transform_0(%arg0: i32, %arg1: i32, %arg2: i32) -> (i32, i32, i32) {
    %c0_i32 = arith.constant 0 : i32
    %c0_i32_0 = arith.constant 0 : i32
    return %arg0, %arg1, %c0_i32 : i32, i32, i32
  }
  func.func @transform_1(%arg0: i32, %arg1: i32, %arg2: i32) -> (i32, i32, i32) {
    %c0_i32 = arith.constant 0 : i32
    %c0_i32_0 = arith.constant 0 : i32
    return %arg0, %arg1, %c0_i32 : i32, i32, i32
  }
  func.func @transform_2(%arg0: i32, %arg1: i32, %arg2: i32) -> (i32, i32, i32) {
    %c0_i32 = arith.constant 0 : i32
    %c0_i32_0 = arith.constant 0 : i32
    return %arg0, %arg2, %c0_i32 : i32, i32, i32
  }
  func.func @transform_3(%arg0: i32, %arg1: i32, %arg2: i32) -> (i32, i32, i32) {
    %c0_i32 = arith.constant 0 : i32
    %c0_i32_0 = arith.constant 0 : i32
    return %arg0, %arg2, %c0_i32 : i32, i32, i32
  }
  func.func @transform_4(%arg0: i32, %arg1: i32, %arg2: i32) -> (i32, i32) {
    %c0_i32 = arith.constant 0 : i32
    %c0_i32_0 = arith.constant 0 : i32
    %c0_i32_1 = arith.constant 0 : i32
    return %c0_i32, %c0_i32_0 : i32, i32
  }
  func.func @transform_5(%arg0: i32, %arg1: i32, %arg2: i32) -> (i32, i32) {
    %c0_i32 = arith.constant 0 : i32
    %c0_i32_0 = arith.constant 0 : i32
    %c0_i32_1 = arith.constant 0 : i32
    return %c0_i32, %c0_i32_0 : i32, i32
  }
  func.func @transform_6(%arg0: i32, %arg1: i32, %arg2: i32) -> (i32, i32) {
    %c0_i32 = arith.constant 0 : i32
    %c0_i32_0 = arith.constant 0 : i32
    %c0_i32_1 = arith.constant 0 : i32
    return %c0_i32, %c0_i32_0 : i32, i32
  }
  func.func @transform_7(%arg0: i32, %arg1: i32, %arg2: i32) -> (i32, i32) {
    %c0_i32 = arith.constant 0 : i32
    %c0_i32_0 = arith.constant 0 : i32
    %c0_i32_1 = arith.constant 0 : i32
    return %c0_i32, %c0_i32_0 : i32, i32
  }
  func.func @transform_8(%arg0: i32, %arg1: i32, %arg2: i32) -> (i32, i32) {
    %c0_i32 = arith.constant 0 : i32
    %c0_i32_0 = arith.constant 0 : i32
    %c0_i32_1 = arith.constant 0 : i32
    return %c0_i32, %c0_i32_0 : i32, i32
  }
  func.func @transform_9(%arg0: i32, %arg1: i32, %arg2: i32) -> (i32, i32) {
    %c0_i32 = arith.constant 0 : i32
    %c0_i32_0 = arith.constant 0 : i32
    %c0_i32_1 = arith.constant 0 : i32
    return %c0_i32, %c0_i32_0 : i32, i32
  }
  func.func @transform_10(%arg0: i32, %arg1: i32, %arg2: i32) -> (i32, i32) {
    %c0_i32 = arith.constant 0 : i32
    %c0_i32_0 = arith.constant 0 : i32
    %c0_i32_1 = arith.constant 0 : i32
    return %c0_i32, %c0_i32_0 : i32, i32
  }
  func.func @transform_11(%arg0: i32, %arg1: i32, %arg2: i32) -> (i32, i32) {
    %c0_i32 = arith.constant 0 : i32
    %c0_i32_0 = arith.constant 0 : i32
    %c0_i32_1 = arith.constant 0 : i32
    return %c0_i32, %c0_i32_0 : i32, i32
  }
  func.func @transform_12(%arg0: i32, %arg1: i32, %arg2: i32) -> (i32, i32) {
    %c0_i32 = arith.constant 0 : i32
    %c0_i32_0 = arith.constant 0 : i32
    %c0_i32_1 = arith.constant 0 : i32
    return %c0_i32, %c0_i32_0 : i32, i32
  }
  func.func @transform_13(%arg0: i32, %arg1: i32, %arg2: i32) -> (i32, i32) {
    %c0_i32 = arith.constant 0 : i32
    %c0_i32_0 = arith.constant 0 : i32
    %c0_i32_1 = arith.constant 0 : i32
    return %c0_i32, %c0_i32_0 : i32, i32
  }
  func.func @transform_14(%arg0: i32, %arg1: i32, %arg2: i32) -> (i32, i32, i32) {
    %c0_i32 = arith.constant 0 : i32
    %c0_i32_0 = arith.constant 0 : i32
    return %arg0, %arg1, %c0_i32 : i32, i32, i32
  }
}

module attributes {stable_mosaic.version = 11 : i64} {
  func.func @_fused_mlp_ln_kernel(%arg0: i32, %arg1: memref<16x32xf32, #tpu.memory_space<vmem>>, %arg2: memref<32x64xf32, #tpu.memory_space<vmem>>, %arg3: memref<1x64xf32, #tpu.memory_space<vmem>>, %arg4: memref<64x32xf32, #tpu.memory_space<vmem>>, %arg5: memref<1x32xf32, #tpu.memory_space<vmem>>, %arg6: memref<1x32xf32, #tpu.memory_space<vmem>>, %arg7: memref<1x32xf32, #tpu.memory_space<vmem>>, %arg8: memref<16x32xf32, #tpu.memory_space<vmem>>) attributes {dimension_semantics = [#tpu.dimension_semantics<parallel>], iteration_bounds = array<i64: 1>, scalar_prefetch = 0 : i64, scratch_operands = 0 : i64, tpu.core_type = #tpu.core_type<tc>, window_params = [{transform_indices = @transform_0, window_bounds = array<i64: 16, 32>}, {pipeline_mode = #tpu.pipeline_mode<synchronous>, transform_indices = @transform_1, window_bounds = array<i64: 32, 64>}, {pipeline_mode = #tpu.pipeline_mode<synchronous>, transform_indices = @transform_2, window_bounds = array<i64: 1, 64>}, {pipeline_mode = #tpu.pipeline_mode<synchronous>, transform_indices = @transform_3, window_bounds = array<i64: 64, 32>}, {pipeline_mode = #tpu.pipeline_mode<synchronous>, transform_indices = @transform_4, window_bounds = array<i64: 1, 32>}, {pipeline_mode = #tpu.pipeline_mode<synchronous>, transform_indices = @transform_5, window_bounds = array<i64: 1, 32>}, {pipeline_mode = #tpu.pipeline_mode<synchronous>, transform_indices = @transform_6, window_bounds = array<i64: 1, 32>}, {transform_indices = @transform_7, window_bounds = array<i64: 16, 32>}]} {
    %c0 = arith.constant 0 : index
    %c0_0 = arith.constant 0 : index
    %0 = vector.load %arg1[%c0, %c0_0] : memref<16x32xf32, #tpu.memory_space<vmem>>, vector<16x32xf32>
    %c0_1 = arith.constant 0 : index
    %c0_2 = arith.constant 0 : index
    %1 = vector.load %arg2[%c0_1, %c0_2] : memref<32x64xf32, #tpu.memory_space<vmem>>, vector<32x64xf32>
    %2 = arith.truncf %0 : vector<16x32xf32> to vector<16x32xbf16>
    %3 = arith.truncf %1 : vector<32x64xf32> to vector<32x64xbf16>
    %cst = arith.constant dense<0.000000e+00> : vector<16x64xf32>
    %4 = tpu.matmul %2, %3, %cst {dimension_numbers = #tpu.dot_dimension_numbers<[1], [0], [0], [1], [0, 0, 1, 1], [], []>} : vector<16x32xbf16>, vector<32x64xbf16>, vector<16x64xf32> -> vector<16x64xf32>
    %c0_3 = arith.constant 0 : index
    %c0_4 = arith.constant 0 : index
    %5 = vector.load %arg3[%c0_3, %c0_4] : memref<1x64xf32, #tpu.memory_space<vmem>>, vector<1x64xf32>
    %6 = vector.broadcast %5 : vector<1x64xf32> to vector<16x64xf32>
    %7 = arith.addf %4, %6 : vector<16x64xf32>
    %cst_5 = arith.constant 0.000000e+00 : f32
    %8 = vector.broadcast %cst_5 : f32 to vector<16x64xf32>
    %9 = arith.maximumf %7, %8 : vector<16x64xf32>
    %c0_6 = arith.constant 0 : index
    %c0_7 = arith.constant 0 : index
    %10 = vector.load %arg4[%c0_6, %c0_7] : memref<64x32xf32, #tpu.memory_space<vmem>>, vector<64x32xf32>
    %11 = arith.truncf %9 : vector<16x64xf32> to vector<16x64xbf16>
    %12 = arith.truncf %10 : vector<64x32xf32> to vector<64x32xbf16>
    %cst_8 = arith.constant dense<0.000000e+00> : vector<16x32xf32>
    %13 = tpu.matmul %11, %12, %cst_8 {dimension_numbers = #tpu.dot_dimension_numbers<[1], [0], [0], [1], [0, 0, 1, 1], [], []>} : vector<16x64xbf16>, vector<64x32xbf16>, vector<16x32xf32> -> vector<16x32xf32>
    %c0_9 = arith.constant 0 : index
    %c0_10 = arith.constant 0 : index
    %14 = vector.load %arg5[%c0_9, %c0_10] : memref<1x32xf32, #tpu.memory_space<vmem>>, vector<1x32xf32>
    %15 = vector.broadcast %14 : vector<1x32xf32> to vector<16x32xf32>
    %16 = arith.addf %13, %15 : vector<16x32xf32>
    %17 = arith.addf %16, %0 : vector<16x32xf32>
    %cst_11 = arith.constant dense<0.000000e+00> : vector<16xf32>
    %18 = vector.multi_reduction <add>, %17, %cst_11 [1] : vector<16x32xf32> to vector<16xf32>
    %19 = vector.shape_cast %18 : vector<16xf32> to vector<16x1xf32>
    %cst_12 = arith.constant 3.200000e+01 : f32
    %20 = vector.broadcast %cst_12 : f32 to vector<16x1xf32>
    %21 = arith.divf %19, %20 : vector<16x1xf32>
    %22 = vector.broadcast %21 : vector<16x1xf32> to vector<16x32xf32>
    %23 = arith.subf %17, %22 : vector<16x32xf32>
    %24 = arith.mulf %23, %23 : vector<16x32xf32>
    %cst_13 = arith.constant dense<0.000000e+00> : vector<16xf32>
    %25 = vector.multi_reduction <add>, %24, %cst_13 [1] : vector<16x32xf32> to vector<16xf32>
    %26 = vector.shape_cast %25 : vector<16xf32> to vector<16x1xf32>
    %cst_14 = arith.constant 3.200000e+01 : f32
    %27 = vector.broadcast %cst_14 : f32 to vector<16x1xf32>
    %28 = arith.divf %26, %27 : vector<16x1xf32>
    %29 = vector.broadcast %21 : vector<16x1xf32> to vector<16x32xf32>
    %30 = arith.subf %17, %29 : vector<16x32xf32>
    %cst_15 = arith.constant 9.99999974E-6 : f32
    %31 = vector.broadcast %cst_15 : f32 to vector<16x1xf32>
    %32 = arith.addf %28, %31 : vector<16x1xf32>
    %33 = math.rsqrt %32 : vector<16x1xf32>
    %34 = vector.broadcast %33 : vector<16x1xf32> to vector<16x32xf32>
    %35 = arith.mulf %30, %34 : vector<16x32xf32>
    %c0_16 = arith.constant 0 : index
    %c0_17 = arith.constant 0 : index
    %36 = vector.load %arg6[%c0_16, %c0_17] : memref<1x32xf32, #tpu.memory_space<vmem>>, vector<1x32xf32>
    %37 = vector.broadcast %36 : vector<1x32xf32> to vector<16x32xf32>
    %38 = arith.mulf %35, %37 : vector<16x32xf32>
    %c0_18 = arith.constant 0 : index
    %c0_19 = arith.constant 0 : index
    %39 = vector.load %arg7[%c0_18, %c0_19] : memref<1x32xf32, #tpu.memory_space<vmem>>, vector<1x32xf32>
    %40 = vector.broadcast %39 : vector<1x32xf32> to vector<16x32xf32>
    %41 = arith.addf %38, %40 : vector<16x32xf32>
    %c0_20 = arith.constant 0 : index
    %c0_21 = arith.constant 0 : index
    %42 = vector.load %arg8[%c0_20, %c0_21] : memref<16x32xf32, #tpu.memory_space<vmem>>, vector<16x32xf32>
    tpu.vector_store %arg8[%c0_20, %c0_21], %41 {strides = array<i32>} : memref<16x32xf32, #tpu.memory_space<vmem>>, vector<16x32xf32>,
    return
  }
  func.func @transform_0(%arg0: i32) -> (i32, i32) {
    %c0_i32 = arith.constant 0 : i32
    %c0_i32_0 = arith.constant 0 : i32
    return %arg0, %c0_i32 : i32, i32
  }
  func.func @transform_1(%arg0: i32) -> (i32, i32) {
    %c0_i32 = arith.constant 0 : i32
    %c0_i32_0 = arith.constant 0 : i32
    %c0_i32_1 = arith.constant 0 : i32
    return %c0_i32, %c0_i32_0 : i32, i32
  }
  func.func @transform_2(%arg0: i32) -> (i32, i32) {
    %c0_i32 = arith.constant 0 : i32
    %c0_i32_0 = arith.constant 0 : i32
    %c0_i32_1 = arith.constant 0 : i32
    return %c0_i32, %c0_i32_0 : i32, i32
  }
  func.func @transform_3(%arg0: i32) -> (i32, i32) {
    %c0_i32 = arith.constant 0 : i32
    %c0_i32_0 = arith.constant 0 : i32
    %c0_i32_1 = arith.constant 0 : i32
    return %c0_i32, %c0_i32_0 : i32, i32
  }
  func.func @transform_4(%arg0: i32) -> (i32, i32) {
    %c0_i32 = arith.constant 0 : i32
    %c0_i32_0 = arith.constant 0 : i32
    %c0_i32_1 = arith.constant 0 : i32
    return %c0_i32, %c0_i32_0 : i32, i32
  }
  func.func @transform_5(%arg0: i32) -> (i32, i32) {
    %c0_i32 = arith.constant 0 : i32
    %c0_i32_0 = arith.constant 0 : i32
    %c0_i32_1 = arith.constant 0 : i32
    return %c0_i32, %c0_i32_0 : i32, i32
  }
  func.func @transform_6(%arg0: i32) -> (i32, i32) {
    %c0_i32 = arith.constant 0 : i32
    %c0_i32_0 = arith.constant 0 : i32
    %c0_i32_1 = arith.constant 0 : i32
    return %c0_i32, %c0_i32_0 : i32, i32
  }
  func.func @transform_7(%arg0: i32) -> (i32, i32) {
    %c0_i32 = arith.constant 0 : i32
    %c0_i32_0 = arith.constant 0 : i32
    return %arg0, %c0_i32 : i32, i32
  }
}

module attributes {stable_mosaic.version = 11 : i64} {
  func.func @_fused_attn_ln_kernel(%arg0: i32, %arg1: i32, %arg2: i32, %arg3: memref<1x8x32xf32, #tpu.memory_space<vmem>>, %arg4: memref<1x8x32xf32, #tpu.memory_space<vmem>>, %arg5: memref<1x8x32xbf16, #tpu.memory_space<vmem>>, %arg6: memref<1x8x32xbf16, #tpu.memory_space<vmem>>, %arg7: memref<32x32xf32, #tpu.memory_space<vmem>>, %arg8: memref<1x32xf32, #tpu.memory_space<vmem>>, %arg9: memref<32x32xf32, #tpu.memory_space<vmem>>, %arg10: memref<1x32xf32, #tpu.memory_space<vmem>>, %arg11: memref<32x32xf32, #tpu.memory_space<vmem>>, %arg12: memref<1x32xf32, #tpu.memory_space<vmem>>, %arg13: memref<32x32xf32, #tpu.memory_space<vmem>>, %arg14: memref<1x32xf32, #tpu.memory_space<vmem>>, %arg15: memref<1x32xf32, #tpu.memory_space<vmem>>, %arg16: memref<1x32xf32, #tpu.memory_space<vmem>>, %arg17: memref<1x8x32xf32, #tpu.memory_space<vmem>>, %arg18: memref<8x32xbf16, #tpu.memory_space<vmem>>, %arg19: memref<8x2xf32, #tpu.memory_space<vmem>>, %arg20: memref<8x2xf32, #tpu.memory_space<vmem>>, %arg21: memref<8x32xf32, #tpu.memory_space<vmem>>) attributes {dimension_semantics = [#tpu.dimension_semantics<parallel>, #tpu.dimension_semantics<parallel>, #tpu.dimension_semantics<arbitrary>], iteration_bounds = array<i64: 2, 1, 1>, scalar_prefetch = 0 : i64, scratch_operands = 4 : i64, tpu.core_type = #tpu.core_type<tc>, window_params = [{transform_indices = @transform_0, window_bounds = array<i64: 1, 8, 32>}, {transform_indices = @transform_1, window_bounds = array<i64: 1, 8, 32>}, {transform_indices = @transform_2, window_bounds = array<i64: 1, 8, 32>}, {transform_indices = @transform_3, window_bounds = array<i64: 1, 8, 32>}, {pipeline_mode = #tpu.pipeline_mode<synchronous>, transform_indices = @transform_4, window_bounds = array<i64: 32, 32>}, {pipeline_mode = #tpu.pipeline_mode<synchronous>, transform_indices = @transform_5, window_bounds = array<i64: 1, 32>}, {pipeline_mode = #tpu.pipeline_mode<synchronous>, transform_indices = @transform_6, window_bounds = array<i64: 32, 32>}, {pipeline_mode = #tpu.pipeline_mode<synchronous>, transform_indices = @transform_7, window_bounds = array<i64: 1, 32>}, {pipeline_mode = #tpu.pipeline_mode<synchronous>, transform_indices = @transform_8, window_bounds = array<i64: 32, 32>}, {pipeline_mode = #tpu.pipeline_mode<synchronous>, transform_indices = @transform_9, window_bounds = array<i64: 1, 32>}, {pipeline_mode = #tpu.pipeline_mode<synchronous>, transform_indices = @transform_10, window_bounds = array<i64: 32, 32>}, {pipeline_mode = #tpu.pipeline_mode<synchronous>, transform_indices = @transform_11, window_bounds = array<i64: 1, 32>}, {pipeline_mode = #tpu.pipeline_mode<synchronous>, transform_indices = @transform_12, window_bounds = array<i64: 1, 32>}, {pipeline_mode = #tpu.pipeline_mode<synchronous>, transform_indices = @transform_13, window_bounds = array<i64: 1, 32>}, {transform_indices = @transform_14, window_bounds = array<i64: 1, 8, 32>}]} {
    %c0_i32 = arith.constant 0 : i32
    %0 = arith.cmpi eq, %arg2, %c0_i32 : i32
    %1 = arith.extui %0 : i1 to i32
    %c0_i32_0 = arith.constant 0 : i32
    %2 = arith.cmpi ne, %1, %c0_i32_0 : i32
    scf.if %2 {
      %c0_49 = arith.constant 0 : index
      %c0_50 = arith.constant 0 : index
      %c0_51 = arith.constant 0 : index
      %80 = vector.load %arg3[%c0_49, %c0_50, %c0_51] : memref<1x8x32xf32, #tpu.memory_space<vmem>>, vector<1x8x32xf32>
      %81 = vector.shape_cast %80 : vector<1x8x32xf32> to vector<8x32xf32>
      %c0_52 = arith.constant 0 : index
      %c0_53 = arith.constant 0 : index
      %c0_54 = arith.constant 0 : index
      %82 = vector.load %arg4[%c0_52, %c0_53, %c0_54] : memref<1x8x32xf32, #tpu.memory_space<vmem>>, vector<1x8x32xf32>
      %83 = vector.shape_cast %82 : vector<1x8x32xf32> to vector<8x32xf32>
      %84 = arith.addf %81, %83 : vector<8x32xf32>
      %c0_55 = arith.constant 0 : index
      %c0_56 = arith.constant 0 : index
      %85 = vector.load %arg7[%c0_55, %c0_56] : memref<32x32xf32, #tpu.memory_space<vmem>>, vector<32x32xf32>
      %86 = arith.truncf %84 : vector<8x32xf32> to vector<8x32xbf16>
      %87 = arith.truncf %85 : vector<32x32xf32> to vector<32x32xbf16>
      %cst_57 = arith.constant dense<0.000000e+00> : vector<8x32xf32>
      %88 = tpu.matmul %86, %87, %cst_57 {dimension_numbers = #tpu.dot_dimension_numbers<[1], [0], [0], [1], [0, 0, 1, 1], [], []>} : vector<8x32xbf16>, vector<32x32xbf16>, vector<8x32xf32> -> vector<8x32xf32>
      %c0_58 = arith.constant 0 : index
      %c0_59 = arith.constant 0 : index
      %89 = vector.load %arg8[%c0_58, %c0_59] : memref<1x32xf32, #tpu.memory_space<vmem>>, vector<1x32xf32>
      %90 = vector.broadcast %89 : vector<1x32xf32> to vector<8x32xf32>
      %91 = arith.addf %88, %90 : vector<8x32xf32>
      %92 = arith.truncf %91 : vector<8x32xf32> to vector<8x32xbf16>
      %c0_60 = arith.constant 0 : index
      %c0_61 = arith.constant 0 : index
      %93 = vector.load %arg18[%c0_60, %c0_61] : memref<8x32xbf16, #tpu.memory_space<vmem>>, vector<8x32xbf16>
      tpu.vector_store %arg18[%c0_60, %c0_61], %92 {strides = array<i32>} : memref<8x32xbf16, #tpu.memory_space<vmem>>, vector<8x32xbf16>,
      %cst_62 = arith.constant 0xFF800000 : f32
      %94 = vector.broadcast %cst_62 : f32 to vector<8x2xf32>
      %c0_63 = arith.constant 0 : index
      %c0_64 = arith.constant 0 : index
      %95 = vector.load %arg19[%c0_63, %c0_64] : memref<8x2xf32, #tpu.memory_space<vmem>>, vector<8x2xf32>
      tpu.vector_store %arg19[%c0_63, %c0_64], %94 {strides = array<i32>} : memref<8x2xf32, #tpu.memory_space<vmem>>, vector<8x2xf32>,
      %cst_65 = arith.constant 0.000000e+00 : f32
      %96 = vector.broadcast %cst_65 : f32 to vector<8x2xf32>
      %c0_66 = arith.constant 0 : index
      %c0_67 = arith.constant 0 : index
      %97 = vector.load %arg20[%c0_66, %c0_67] : memref<8x2xf32, #tpu.memory_space<vmem>>, vector<8x2xf32>
      tpu.vector_store %arg20[%c0_66, %c0_67], %96 {strides = array<i32>} : memref<8x2xf32, #tpu.memory_space<vmem>>, vector<8x2xf32>,
      %cst_68 = arith.constant 0.000000e+00 : f32
      %98 = vector.broadcast %cst_68 : f32 to vector<8x32xf32>
      %c0_69 = arith.constant 0 : index
      %c0_70 = arith.constant 0 : index
      %99 = vector.load %arg21[%c0_69, %c0_70] : memref<8x32xf32, #tpu.memory_space<vmem>>, vector<8x32xf32>
      tpu.vector_store %arg21[%c0_69, %c0_70], %98 {strides = array<i32>} : memref<8x32xf32, #tpu.memory_space<vmem>>, vector<8x32xf32>,
    } else {
    }
    %c0 = arith.constant 0 : index
    %c0_1 = arith.constant 0 : index
    %c0_2 = arith.constant 0 : index
    %3 = vector.load %arg5[%c0, %c0_1, %c0_2] : memref<1x8x32xbf16, #tpu.memory_space<vmem>>, vector<1x8x32xbf16>
    %4 = vector.shape_cast %3 : vector<1x8x32xbf16> to vector<8x32xbf16>
    %c0_3 = arith.constant 0 : index
    %c0_4 = arith.constant 0 : index
    %c0_5 = arith.constant 0 : index
    %5 = vector.load %arg6[%c0_3, %c0_4, %c0_5] : memref<1x8x32xbf16, #tpu.memory_space<vmem>>, vector<1x8x32xbf16>
    %6 = vector.shape_cast %5 : vector<1x8x32xbf16> to vector<8x32xbf16>
    %7 = arith.addf %4, %6 : vector<8x32xbf16>
    %c0_6 = arith.constant 0 : index
    %c0_7 = arith.constant 0 : index
    %8 = vector.load %arg9[%c0_6, %c0_7] : memref<32x32xf32, #tpu.memory_space<vmem>>, vector<32x32xf32>
    %9 = arith.truncf %8 : vector<32x32xf32> to vector<32x32xbf16>
    %cst = arith.constant dense<0.000000e+00> : vector<8x32xf32>
    %10 = tpu.matmul %7, %9, %cst {dimension_numbers = #tpu.dot_dimension_numbers<[1], [0], [0], [1], [0, 0, 1, 1], [], []>} : vector<8x32xbf16>, vector<32x32xbf16>, vector<8x32xf32> -> vector<8x32xf32>
    %c0_8 = arith.constant 0 : index
    %c0_9 = arith.constant 0 : index
    %11 = vector.load %arg10[%c0_8, %c0_9] : memref<1x32xf32, #tpu.memory_space<vmem>>, vector<1x32xf32>
    %12 = vector.broadcast %11 : vector<1x32xf32> to vector<8x32xf32>
    %13 = arith.addf %10, %12 : vector<8x32xf32>
    %14 = arith.truncf %13 : vector<8x32xf32> to vector<8x32xbf16>
    %c0_10 = arith.constant 0 : index
    %c0_11 = arith.constant 0 : index
    %15 = vector.load %arg11[%c0_10, %c0_11] : memref<32x32xf32, #tpu.memory_space<vmem>>, vector<32x32xf32>
    %16 = arith.truncf %15 : vector<32x32xf32> to vector<32x32xbf16>
    %cst_12 = arith.constant dense<0.000000e+00> : vector<8x32xf32>
    %17 = tpu.matmul %4, %16, %cst_12 {dimension_numbers = #tpu.dot_dimension_numbers<[1], [0], [0], [1], [0, 0, 1, 1], [], []>} : vector<8x32xbf16>, vector<32x32xbf16>, vector<8x32xf32> -> vector<8x32xf32>
    %c0_13 = arith.constant 0 : index
    %c0_14 = arith.constant 0 : index
    %18 = vector.load %arg12[%c0_13, %c0_14] : memref<1x32xf32, #tpu.memory_space<vmem>>, vector<1x32xf32>
    %19 = vector.broadcast %18 : vector<1x32xf32> to vector<8x32xf32>
    %20 = arith.addf %17, %19 : vector<8x32xf32>
    %21 = arith.truncf %20 : vector<8x32xf32> to vector<8x32xbf16>
    %c0_15 = arith.constant 0 : index
    %c0_16 = arith.constant 0 : index
    %22 = vector.load %arg18[%c0_15, %c0_16] : memref<8x32xbf16, #tpu.memory_space<vmem>>, vector<8x32xbf16>
    %23 = vector.extract_strided_slice %22 {offsets = [0, 0], sizes = [8, 16], strides = [1, 1]} : vector<8x32xbf16> to vector<8x16xbf16>
    %24 = vector.extract_strided_slice %14 {offsets = [0, 0], sizes = [8, 16], strides = [1, 1]} : vector<8x32xbf16> to vector<8x16xbf16>
    %cst_17 = arith.constant dense<0.000000e+00> : vector<8x8xf32>
    %25 = tpu.matmul %23, %24, %cst_17 {dimension_numbers = #tpu.dot_dimension_numbers<[1], [1], [0], [0], [0, 0, 1, 0], [], []>} : vector<8x16xbf16>, vector<8x16xbf16>, vector<8x8xf32> -> vector<8x8xf32>
    %c0_18 = arith.constant 0 : index
    %c0_19 = arith.constant 0 : index
    %26 = vector.load %arg19[%c0_18, %c0_19] : memref<8x2xf32, #tpu.memory_space<vmem>>, vector<8x1xf32>
    %cst_20 = arith.constant dense<0xFF800000> : vector<8xf32>
    %27 = vector.multi_reduction <maximumf>, %25, %cst_20 [1] : vector<8x8xf32> to vector<8xf32>
    %28 = vector.shape_cast %27 : vector<8xf32> to vector<8x1xf32>
    %29 = arith.maximumf %26, %28 : vector<8x1xf32>
    %30 = arith.subf %26, %29 : vector<8x1xf32>
    %31 = math.exp %30 : vector<8x1xf32>
    %32 = vector.broadcast %29 : vector<8x1xf32> to vector<8x8xf32>
    %33 = arith.subf %25, %32 : vector<8x8xf32>
    %34 = math.exp %33 : vector<8x8xf32>
    %c0_21 = arith.constant 0 : index
    %c0_22 = arith.constant 0 : index
    %35 = vector.load %arg20[%c0_21, %c0_22] : memref<8x2xf32, #tpu.memory_space<vmem>>, vector<8x1xf32>
    %36 = arith.mulf %31, %35 : vector<8x1xf32>
    %cst_23 = arith.constant dense<0.000000e+00> : vector<8xf32>
    %37 = vector.multi_reduction <add>, %34, %cst_23 [1] : vector<8x8xf32> to vector<8xf32>
    %38 = vector.shape_cast %37 : vector<8xf32> to vector<8x1xf32>
    %39 = arith.addf %36, %38 : vector<8x1xf32>
    %c0_24 = arith.constant 0 : index
    %c0_25 = arith.constant 0 : index
    %40 = vector.load %arg20[%c0_24, %c0_25] : memref<8x2xf32, #tpu.memory_space<vmem>>, vector<8x1xf32>
    tpu.vector_store %arg20[%c0_24, %c0_25], %39 {strides = array<i32>} : memref<8x2xf32, #tpu.memory_space<vmem>>, vector<8x1xf32>,
    %c0_26 = arith.constant 0 : index
    %c0_27 = arith.constant 0 : index
    %41 = vector.load %arg21[%c0_26, %c0_27] : memref<8x32xf32, #tpu.memory_space<vmem>>, vector<8x16xf32>
    %42 = vector.broadcast %31 : vector<8x1xf32> to vector<8x16xf32>
    %43 = arith.mulf %42, %41 : vector<8x16xf32>
    %44 = arith.truncf %34 : vector<8x8xf32> to vector<8x8xbf16>
    %45 = vector.extract_strided_slice %21 {offsets = [0, 0], sizes = [8, 16], strides = [1, 1]} : vector<8x32xbf16> to vector<8x16xbf16>
    %cst_28 = arith.constant dense<0.000000e+00> : vector<8x16xf32>
    %46 = tpu.matmul %44, %45, %cst_28 {dimension_numbers = #tpu.dot_dimension_numbers<[1], [0], [0], [1], [0, 0, 1, 1], [], []>} : vector<8x8xbf16>, vector<8x16xbf16>, vector<8x16xf32> -> vector<8x16xf32>
    %47 = arith.addf %43, %46 : vector<8x16xf32>
    %c0_29 = arith.constant 0 : index
    %c0_30 = arith.constant 0 : index
    %48 = vector.load %arg21[%c0_29, %c0_30] : memref<8x32xf32, #tpu.memory_space<vmem>>, vector<8x16xf32>
    tpu.vector_store %arg21[%c0_29, %c0_30], %47 {strides = array<i32>} : memref<8x32xf32, #tpu.memory_space<vmem>>, vector<8x16xf32>,
    %c0_31 = arith.constant 0 : index
    %c0_32 = arith.constant 0 : index
    %49 = vector.load %arg19[%c0_31, %c0_32] : memref<8x2xf32, #tpu.memory_space<vmem>>, vector<8x1xf32>
    tpu.vector_store %arg19[%c0_31, %c0_32], %29 {strides = array<i32>} : memref<8x2xf32, #tpu.memory_space<vmem>>, vector<8x1xf32>,
    %50 = vector.extract_strided_slice %22 {offsets = [0, 16], sizes = [8, 16], strides = [1, 1]} : vector<8x32xbf16> to vector<8x16xbf16>
    %51 = vector.extract_strided_slice %14 {offsets = [0, 16], sizes = [8, 16], strides = [1, 1]} : vector<8x32xbf16> to vector<8x16xbf16>
    %cst_33 = arith.constant dense<0.000000e+00> : vector<8x8xf32>
    %52 = tpu.matmul %50, %51, %cst_33 {dimension_numbers = #tpu.dot_dimension_numbers<[1], [1], [0], [0], [0, 0, 1, 0], [], []>} : vector<8x16xbf16>, vector<8x16xbf16>, vector<8x8xf32> -> vector<8x8xf32>
    %c0_34 = arith.constant 0 : index
    %c1 = arith.constant 1 : index
    %53 = vector.load %arg19[%c0_34, %c1] : memref<8x2xf32, #tpu.memory_space<vmem>>, vector<8x1xf32>
    %cst_35 = arith.constant dense<0xFF800000> : vector<8xf32>
    %54 = vector.multi_reduction <maximumf>, %52, %cst_35 [1] : vector<8x8xf32> to vector<8xf32>
    %55 = vector.shape_cast %54 : vector<8xf32> to vector<8x1xf32>
    %56 = arith.maximumf %53, %55 : vector<8x1xf32>
    %57 = arith.subf %53, %56 : vector<8x1xf32>
    %58 = math.exp %57 : vector<8x1xf32>
    %59 = vector.broadcast %56 : vector<8x1xf32> to vector<8x8xf32>
    %60 = arith.subf %52, %59 : vector<8x8xf32>
    %61 = math.exp %60 : vector<8x8xf32>
    %c0_36 = arith.constant 0 : index
    %c1_37 = arith.constant 1 : index
    %62 = vector.load %arg20[%c0_36, %c1_37] : memref<8x2xf32, #tpu.memory_space<vmem>>, vector<8x1xf32>
    %63 = arith.mulf %58, %62 : vector<8x1xf32>
    %cst_38 = arith.constant dense<0.000000e+00> : vector<8xf32>
    %64 = vector.multi_reduction <add>, %61, %cst_38 [1] : vector<8x8xf32> to vector<8xf32>
    %65 = vector.shape_cast %64 : vector<8xf32> to vector<8x1xf32>
    %66 = arith.addf %63, %65 : vector<8x1xf32>
    %c0_39 = arith.constant 0 : index
    %c1_40 = arith.constant 1 : index
    %67 = vector.load %arg20[%c0_39, %c1_40] : memref<8x2xf32, #tpu.memory_space<vmem>>, vector<8x1xf32>
    tpu.vector_store %arg20[%c0_39, %c1_40], %66 {strides = array<i32>} : memref<8x2xf32, #tpu.memory_space<vmem>>, vector<8x1xf32>,
    %c0_41 = arith.constant 0 : index
    %c16 = arith.constant 16 : index
    %68 = vector.load %arg21[%c0_41, %c16] : memref<8x32xf32, #tpu.memory_space<vmem>>, vector<8x16xf32>
    %69 = vector.broadcast %58 : vector<8x1xf32> to vector<8x16xf32>
    %70 = arith.mulf %69, %68 : vector<8x16xf32>
    %71 = arith.truncf %61 : vector<8x8xf32> to vector<8x8xbf16>
    %72 = vector.extract_strided_slice %21 {offsets = [0, 16], sizes = [8, 16], strides = [1, 1]} : vector<8x32xbf16> to vector<8x16xbf16>
    %cst_42 = arith.constant dense<0.000000e+00> : vector<8x16xf32>
    %73 = tpu.matmul %71, %72, %cst_42 {dimension_numbers = #tpu.dot_dimension_numbers<[1], [0], [0], [1], [0, 0, 1, 1], [], []>} : vector<8x8xbf16>, vector<8x16xbf16>, vector<8x16xf32> -> vector<8x16xf32>
    %74 = arith.addf %70, %73 : vector<8x16xf32>
    %c0_43 = arith.constant 0 : index
    %c16_44 = arith.constant 16 : index
    %75 = vector.load %arg21[%c0_43, %c16_44] : memref<8x32xf32, #tpu.memory_space<vmem>>, vector<8x16xf32>
    tpu.vector_store %arg21[%c0_43, %c16_44], %74 {strides = array<i32>} : memref<8x32xf32, #tpu.memory_space<vmem>>, vector<8x16xf32>,
    %c0_45 = arith.constant 0 : index
    %c1_46 = arith.constant 1 : index
    %76 = vector.load %arg19[%c0_45, %c1_46] : memref<8x2xf32, #tpu.memory_space<vmem>>, vector<8x1xf32>
    tpu.vector_store %arg19[%c0_45, %c1_46], %56 {strides = array<i32>} : memref<8x2xf32, #tpu.memory_space<vmem>>, vector<8x1xf32>,
    %c0_i32_47 = arith.constant 0 : i32
    %77 = arith.cmpi eq, %arg2, %c0_i32_47 : i32
    %78 = arith.extui %77 : i1 to i32
    %c0_i32_48 = arith.constant 0 : i32
    %79 = arith.cmpi ne, %78, %c0_i32_48 : i32
    scf.if %79 {
      %c0_49 = arith.constant 0 : index
      %c0_50 = arith.constant 0 : index
      %80 = vector.load %arg20[%c0_49, %c0_50] : memref<8x2xf32, #tpu.memory_space<vmem>>, vector<8x2xf32>
      %81 = tpu.reciprocal %80 {approx = true} : vector<8x2xf32> -> vector<8x2xf32>
      %c0_51 = arith.constant 0 : index
      %c0_52 = arith.constant 0 : index
      %82 = vector.load %arg21[%c0_51, %c0_52] : memref<8x32xf32, #tpu.memory_space<vmem>>, vector<8x16xf32>
      %83 = vector.extract_strided_slice %81 {offsets = [0, 0], sizes = [8, 1], strides = [1, 1]} : vector<8x2xf32> to vector<8x1xf32>
      %84 = vector.broadcast %83 : vector<8x1xf32> to vector<8x16xf32>
      %85 = arith.mulf %82, %84 : vector<8x16xf32>
      %c0_53 = arith.constant 0 : index
      %c0_54 = arith.constant 0 : index
      %86 = vector.load %arg21[%c0_53, %c0_54] : memref<8x32xf32, #tpu.memory_space<vmem>>, vector<8x16xf32>
      tpu.vector_store %arg21[%c0_53, %c0_54], %85 {strides = array<i32>} : memref<8x32xf32, #tpu.memory_space<vmem>>, vector<8x16xf32>,
      %c0_55 = arith.constant 0 : index
      %c16_56 = arith.constant 16 : index
      %87 = vector.load %arg21[%c0_55, %c16_56] : memref<8x32xf32, #tpu.memory_space<vmem>>, vector<8x16xf32>
      %88 = vector.extract_strided_slice %81 {offsets = [0, 1], sizes = [8, 1], strides = [1, 1]} : vector<8x2xf32> to vector<8x1xf32>
      %89 = vector.broadcast %88 : vector<8x1xf32> to vector<8x16xf32>
      %90 = arith.mulf %87, %89 : vector<8x16xf32>
      %c0_57 = arith.constant 0 : index
      %c16_58 = arith.constant 16 : index
      %91 = vector.load %arg21[%c0_57, %c16_58] : memref<8x32xf32, #tpu.memory_space<vmem>>, vector<8x16xf32>
      tpu.vector_store %arg21[%c0_57, %c16_58], %90 {strides = array<i32>} : memref<8x32xf32, #tpu.memory_space<vmem>>, vector<8x16xf32>,
      %c0_59 = arith.constant 0 : index
      %c0_60 = arith.constant 0 : index
      %92 = vector.load %arg21[%c0_59, %c0_60] : memref<8x32xf32, #tpu.memory_space<vmem>>, vector<8x32xf32>
      %c0_61 = arith.constant 0 : index
      %c0_62 = arith.constant 0 : index
      %93 = vector.load %arg13[%c0_61, %c0_62] : memref<32x32xf32, #tpu.memory_space<vmem>>, vector<32x32xf32>
      %94 = arith.truncf %92 : vector<8x32xf32> to vector<8x32xbf16>
      %95 = arith.truncf %93 : vector<32x32xf32> to vector<32x32xbf16>
      %cst_63 = arith.constant dense<0.000000e+00> : vector<8x32xf32>
      %96 = tpu.matmul %94, %95, %cst_63 {dimension_numbers = #tpu.dot_dimension_numbers<[1], [0], [0], [1], [0, 0, 1, 1], [], []>} : vector<8x32xbf16>, vector<32x32xbf16>, vector<8x32xf32> -> vector<8x32xf32>
      %c0_64 = arith.constant 0 : index
      %c0_65 = arith.constant 0 : index
      %97 = vector.load %arg14[%c0_64, %c0_65] : memref<1x32xf32, #tpu.memory_space<vmem>>, vector<1x32xf32>
      %98 = vector.broadcast %97 : vector<1x32xf32> to vector<8x32xf32>
      %99 = arith.addf %96, %98 : vector<8x32xf32>
      %c0_66 = arith.constant 0 : index
      %c0_67 = arith.constant 0 : index
      %c0_68 = arith.constant 0 : index
      %100 = vector.load %arg3[%c0_66, %c0_67, %c0_68] : memref<1x8x32xf32, #tpu.memory_space<vmem>>, vector<1x8x32xf32>
      %101 = vector.shape_cast %100 : vector<1x8x32xf32> to vector<8x32xf32>
      %102 = arith.addf %99, %101 : vector<8x32xf32>
      %cst_69 = arith.constant dense<0.000000e+00> : vector<8xf32>
      %103 = vector.multi_reduction <add>, %102, %cst_69 [1] : vector<8x32xf32> to vector<8xf32>
      %104 = vector.shape_cast %103 : vector<8xf32> to vector<8x1xf32>
      %cst_70 = arith.constant 3.200000e+01 : f32
      %105 = vector.broadcast %cst_70 : f32 to vector<8x1xf32>
      %106 = arith.divf %104, %105 : vector<8x1xf32>
      %107 = vector.broadcast %106 : vector<8x1xf32> to vector<8x32xf32>
      %108 = arith.subf %102, %107 : vector<8x32xf32>
      %109 = arith.mulf %108, %108 : vector<8x32xf32>
      %cst_71 = arith.constant dense<0.000000e+00> : vector<8xf32>
      %110 = vector.multi_reduction <add>, %109, %cst_71 [1] : vector<8x32xf32> to vector<8xf32>
      %111 = vector.shape_cast %110 : vector<8xf32> to vector<8x1xf32>
      %cst_72 = arith.constant 3.200000e+01 : f32
      %112 = vector.broadcast %cst_72 : f32 to vector<8x1xf32>
      %113 = arith.divf %111, %112 : vector<8x1xf32>
      %114 = vector.broadcast %106 : vector<8x1xf32> to vector<8x32xf32>
      %115 = arith.subf %102, %114 : vector<8x32xf32>
      %cst_73 = arith.constant 9.99999974E-6 : f32
      %116 = vector.broadcast %cst_73 : f32 to vector<8x1xf32>
      %117 = arith.addf %113, %116 : vector<8x1xf32>
      %118 = math.rsqrt %117 : vector<8x1xf32>
      %119 = vector.broadcast %118 : vector<8x1xf32> to vector<8x32xf32>
      %120 = arith.mulf %115, %119 : vector<8x32xf32>
      %c0_74 = arith.constant 0 : index
      %c0_75 = arith.constant 0 : index
      %121 = vector.load %arg15[%c0_74, %c0_75] : memref<1x32xf32, #tpu.memory_space<vmem>>, vector<1x32xf32>
      %122 = vector.broadcast %121 : vector<1x32xf32> to vector<8x32xf32>
      %123 = arith.mulf %120, %122 : vector<8x32xf32>
      %c0_76 = arith.constant 0 : index
      %c0_77 = arith.constant 0 : index
      %124 = vector.load %arg16[%c0_76, %c0_77] : memref<1x32xf32, #tpu.memory_space<vmem>>, vector<1x32xf32>
      %125 = vector.broadcast %124 : vector<1x32xf32> to vector<8x32xf32>
      %126 = arith.addf %123, %125 : vector<8x32xf32>
      %c0_78 = arith.constant 0 : index
      %c0_79 = arith.constant 0 : index
      %c0_80 = arith.constant 0 : index
      %127 = vector.load %arg17[%c0_78, %c0_79, %c0_80] : memref<1x8x32xf32, #tpu.memory_space<vmem>>, vector<1x8x32xf32>
      %128 = vector.shape_cast %127 : vector<1x8x32xf32> to vector<8x32xf32>
      %129 = vector.shape_cast %126 : vector<8x32xf32> to vector<1x8x32xf32>
      tpu.vector_store %arg17[%c0_78, %c0_79, %c0_80], %129 {strides = array<i32>} : memref<1x8x32xf32, #tpu.memory_space<vmem>>, vector<1x8x32xf32>,
    } else {
    }
    return
  }
  func.func @transform_0(%arg0: i32, %arg1: i32, %arg2: i32) -> (i32, i32, i32) {
    %c0_i32 = arith.constant 0 : i32
    %c0_i32_0 = arith.constant 0 : i32
    return %arg0, %arg1, %c0_i32 : i32, i32, i32
  }
  func.func @transform_1(%arg0: i32, %arg1: i32, %arg2: i32) -> (i32, i32, i32) {
    %c0_i32 = arith.constant 0 : i32
    %c0_i32_0 = arith.constant 0 : i32
    return %arg0, %arg1, %c0_i32 : i32, i32, i32
  }
  func.func @transform_2(%arg0: i32, %arg1: i32, %arg2: i32) -> (i32, i32, i32) {
    %c0_i32 = arith.constant 0 : i32
    %c0_i32_0 = arith.constant 0 : i32
    return %arg0, %arg2, %c0_i32 : i32, i32, i32
  }
  func.func @transform_3(%arg0: i32, %arg1: i32, %arg2: i32) -> (i32, i32, i32) {
    %c0_i32 = arith.constant 0 : i32
    %c0_i32_0 = arith.constant 0 : i32
    return %arg0, %arg2, %c0_i32 : i32, i32, i32
  }
  func.func @transform_4(%arg0: i32, %arg1: i32, %arg2: i32) -> (i32, i32) {
    %c0_i32 = arith.constant 0 : i32
    %c0_i32_0 = arith.constant 0 : i32
    %c0_i32_1 = arith.constant 0 : i32
    return %c0_i32, %c0_i32_0 : i32, i32
  }
  func.func @transform_5(%arg0: i32, %arg1: i32, %arg2: i32) -> (i32, i32) {
    %c0_i32 = arith.constant 0 : i32
    %c0_i32_0 = arith.constant 0 : i32
    %c0_i32_1 = arith.constant 0 : i32
    return %c0_i32, %c0_i32_0 : i32, i32
  }
  func.func @transform_6(%arg0: i32, %arg1: i32, %arg2: i32) -> (i32, i32) {
    %c0_i32 = arith.constant 0 : i32
    %c0_i32_0 = arith.constant 0 : i32
    %c0_i32_1 = arith.constant 0 : i32
    return %c0_i32, %c0_i32_0 : i32, i32
  }
  func.func @transform_7(%arg0: i32, %arg1: i32, %arg2: i32) -> (i32, i32) {
    %c0_i32 = arith.constant 0 : i32
    %c0_i32_0 = arith.constant 0 : i32
    %c0_i32_1 = arith.constant 0 : i32
    return %c0_i32, %c0_i32_0 : i32, i32
  }
  func.func @transform_8(%arg0: i32, %arg1: i32, %arg2: i32) -> (i32, i32) {
    %c0_i32 = arith.constant 0 : i32
    %c0_i32_0 = arith.constant 0 : i32
    %c0_i32_1 = arith.constant 0 : i32
    return %c0_i32, %c0_i32_0 : i32, i32
  }
  func.func @transform_9(%arg0: i32, %arg1: i32, %arg2: i32) -> (i32, i32) {
    %c0_i32 = arith.constant 0 : i32
    %c0_i32_0 = arith.constant 0 : i32
    %c0_i32_1 = arith.constant 0 : i32
    return %c0_i32, %c0_i32_0 : i32, i32
  }
  func.func @transform_10(%arg0: i32, %arg1: i32, %arg2: i32) -> (i32, i32) {
    %c0_i32 = arith.constant 0 : i32
    %c0_i32_0 = arith.constant 0 : i32
    %c0_i32_1 = arith.constant 0 : i32
    return %c0_i32, %c0_i32_0 : i32, i32
  }
  func.func @transform_11(%arg0: i32, %arg1: i32, %arg2: i32) -> (i32, i32) {
    %c0_i32 = arith.constant 0 : i32
    %c0_i32_0 = arith.constant 0 : i32
    %c0_i32_1 = arith.constant 0 : i32
    return %c0_i32, %c0_i32_0 : i32, i32
  }
  func.func @transform_12(%arg0: i32, %arg1: i32, %arg2: i32) -> (i32, i32) {
    %c0_i32 = arith.constant 0 : i32
    %c0_i32_0 = arith.constant 0 : i32
    %c0_i32_1 = arith.constant 0 : i32
    return %c0_i32, %c0_i32_0 : i32, i32
  }
  func.func @transform_13(%arg0: i32, %arg1: i32, %arg2: i32) -> (i32, i32) {
    %c0_i32 = arith.constant 0 : i32
    %c0_i32_0 = arith.constant 0 : i32
    %c0_i32_1 = arith.constant 0 : i32
    return %c0_i32, %c0_i32_0 : i32, i32
  }
  func.func @transform_14(%arg0: i32, %arg1: i32, %arg2: i32) -> (i32, i32, i32) {
    %c0_i32 = arith.constant 0 : i32
    %c0_i32_0 = arith.constant 0 : i32
    return %arg0, %arg1, %c0_i32 : i32, i32, i32
  }
}

module attributes {stable_mosaic.version = 11 : i64} {
  func.func @_fused_attn_ln_kernel(%arg0: i32, %arg1: i32, %arg2: i32, %arg3: memref<1x64x32xf32, #tpu.memory_space<vmem>>, %arg4: memref<1x64x32xf32, #tpu.memory_space<vmem>>, %arg5: memref<1x8x32xbf16, #tpu.memory_space<vmem>>, %arg6: memref<1x8x32xbf16, #tpu.memory_space<vmem>>, %arg7: memref<32x16xf32, #tpu.memory_space<vmem>>, %arg8: memref<1x16xf32, #tpu.memory_space<vmem>>, %arg9: memref<32x16xf32, #tpu.memory_space<vmem>>, %arg10: memref<1x16xf32, #tpu.memory_space<vmem>>, %arg11: memref<32x16xf32, #tpu.memory_space<vmem>>, %arg12: memref<1x16xf32, #tpu.memory_space<vmem>>, %arg13: memref<16x32xf32, #tpu.memory_space<vmem>>, %arg14: memref<1x32xf32, #tpu.memory_space<vmem>>, %arg15: memref<1x32xf32, #tpu.memory_space<vmem>>, %arg16: memref<1x32xf32, #tpu.memory_space<vmem>>, %arg17: memref<1x64x32xf32, #tpu.memory_space<vmem>>, %arg18: memref<64x16xbf16, #tpu.memory_space<vmem>>, %arg19: memref<64x2xf32, #tpu.memory_space<vmem>>, %arg20: memref<64x2xf32, #tpu.memory_space<vmem>>, %arg21: memref<64x16xf32, #tpu.memory_space<vmem>>) attributes {dimension_semantics = [#tpu.dimension_semantics<parallel>, #tpu.dimension_semantics<parallel>, #tpu.dimension_semantics<arbitrary>], iteration_bounds = array<i64: 2, 1, 1>, scalar_prefetch = 0 : i64, scratch_operands = 4 : i64, tpu.core_type = #tpu.core_type<tc>, window_params = [{transform_indices = @transform_0, window_bounds = array<i64: 1, 64, 32>}, {transform_indices = @transform_1, window_bounds = array<i64: 1, 64, 32>}, {transform_indices = @transform_2, window_bounds = array<i64: 1, 8, 32>}, {transform_indices = @transform_3, window_bounds = array<i64: 1, 8, 32>}, {pipeline_mode = #tpu.pipeline_mode<synchronous>, transform_indices = @transform_4, window_bounds = array<i64: 32, 16>}, {pipeline_mode = #tpu.pipeline_mode<synchronous>, transform_indices = @transform_5, window_bounds = array<i64: 1, 16>}, {pipeline_mode = #tpu.pipeline_mode<synchronous>, transform_indices = @transform_6, window_bounds = array<i64: 32, 16>}, {pipeline_mode = #tpu.pipeline_mode<synchronous>, transform_indices = @transform_7, window_bounds = array<i64: 1, 16>}, {pipeline_mode = #tpu.pipeline_mode<synchronous>, transform_indices = @transform_8, window_bounds = array<i64: 32, 16>}, {pipeline_mode = #tpu.pipeline_mode<synchronous>, transform_indices = @transform_9, window_bounds = array<i64: 1, 16>}, {pipeline_mode = #tpu.pipeline_mode<synchronous>, transform_indices = @transform_10, window_bounds = array<i64: 16, 32>}, {pipeline_mode = #tpu.pipeline_mode<synchronous>, transform_indices = @transform_11, window_bounds = array<i64: 1, 32>}, {pipeline_mode = #tpu.pipeline_mode<synchronous>, transform_indices = @transform_12, window_bounds = array<i64: 1, 32>}, {pipeline_mode = #tpu.pipeline_mode<synchronous>, transform_indices = @transform_13, window_bounds = array<i64: 1, 32>}, {transform_indices = @transform_14, window_bounds = array<i64: 1, 64, 32>}]} {
    %c0_i32 = arith.constant 0 : i32
    %0 = arith.cmpi eq, %arg2, %c0_i32 : i32
    %1 = arith.extui %0 : i1 to i32
    %c0_i32_0 = arith.constant 0 : i32
    %2 = arith.cmpi ne, %1, %c0_i32_0 : i32
    scf.if %2 {
      %c0_49 = arith.constant 0 : index
      %c0_50 = arith.constant 0 : index
      %c0_51 = arith.constant 0 : index
      %80 = vector.load %arg3[%c0_49, %c0_50, %c0_51] : memref<1x64x32xf32, #tpu.memory_space<vmem>>, vector<1x64x32xf32>
      %81 = vector.shape_cast %80 : vector<1x64x32xf32> to vector<64x32xf32>
      %c0_52 = arith.constant 0 : index
      %c0_53 = arith.constant 0 : index
      %c0_54 = arith.constant 0 : index
      %82 = vector.load %arg4[%c0_52, %c0_53, %c0_54] : memref<1x64x32xf32, #tpu.memory_space<vmem>>, vector<1x64x32xf32>
      %83 = vector.shape_cast %82 : vector<1x64x32xf32> to vector<64x32xf32>
      %84 = arith.addf %81, %83 : vector<64x32xf32>
      %c0_55 = arith.constant 0 : index
      %c0_56 = arith.constant 0 : index
      %85 = vector.load %arg7[%c0_55, %c0_56] : memref<32x16xf32, #tpu.memory_space<vmem>>, vector<32x16xf32>
      %86 = arith.truncf %84 : vector<64x32xf32> to vector<64x32xbf16>
      %87 = arith.truncf %85 : vector<32x16xf32> to vector<32x16xbf16>
      %cst_57 = arith.constant dense<0.000000e+00> : vector<64x16xf32>
      %88 = tpu.matmul %86, %87, %cst_57 {dimension_numbers = #tpu.dot_dimension_numbers<[1], [0], [0], [1], [0, 0, 1, 1], [], []>} : vector<64x32xbf16>, vector<32x16xbf16>, vector<64x16xf32> -> vector<64x16xf32>
      %c0_58 = arith.constant 0 : index
      %c0_59 = arith.constant 0 : index
      %89 = vector.load %arg8[%c0_58, %c0_59] : memref<1x16xf32, #tpu.memory_space<vmem>>, vector<1x16xf32>
      %90 = vector.broadcast %89 : vector<1x16xf32> to vector<64x16xf32>
      %91 = arith.addf %88, %90 : vector<64x16xf32>
      %92 = arith.truncf %91 : vector<64x16xf32> to vector<64x16xbf16>
      %c0_60 = arith.constant 0 : index
      %c0_61 = arith.constant 0 : index
      %93 = vector.load %arg18[%c0_60, %c0_61] : memref<64x16xbf16, #tpu.memory_space<vmem>>, vector<64x16xbf16>
      tpu.vector_store %arg18[%c0_60, %c0_61], %92 {strides = array<i32>} : memref<64x16xbf16, #tpu.memory_space<vmem>>, vector<64x16xbf16>,
      %cst_62 = arith.constant 0xFF800000 : f32
      %94 = vector.broadcast %cst_62 : f32 to vector<64x2xf32>
      %c0_63 = arith.constant 0 : index
      %c0_64 = arith.constant 0 : index
      %95 = vector.load %arg19[%c0_63, %c0_64] : memref<64x2xf32, #tpu.memory_space<vmem>>, vector<64x2xf32>
      tpu.vector_store %arg19[%c0_63, %c0_64], %94 {strides = array<i32>} : memref<64x2xf32, #tpu.memory_space<vmem>>, vector<64x2xf32>,
      %cst_65 = arith.constant 0.000000e+00 : f32
      %96 = vector.broadcast %cst_65 : f32 to vector<64x2xf32>
      %c0_66 = arith.constant 0 : index
      %c0_67 = arith.constant 0 : index
      %97 = vector.load %arg20[%c0_66, %c0_67] : memref<64x2xf32, #tpu.memory_space<vmem>>, vector<64x2xf32>
      tpu.vector_store %arg20[%c0_66, %c0_67], %96 {strides = array<i32>} : memref<64x2xf32, #tpu.memory_space<vmem>>, vector<64x2xf32>,
      %cst_68 = arith.constant 0.000000e+00 : f32
      %98 = vector.broadcast %cst_68 : f32 to vector<64x16xf32>
      %c0_69 = arith.constant 0 : index
      %c0_70 = arith.constant 0 : index
      %99 = vector.load %arg21[%c0_69, %c0_70] : memref<64x16xf32, #tpu.memory_space<vmem>>, vector<64x16xf32>
      tpu.vector_store %arg21[%c0_69, %c0_70], %98 {strides = array<i32>} : memref<64x16xf32, #tpu.memory_space<vmem>>, vector<64x16xf32>,
    } else {
    }
    %c0 = arith.constant 0 : index
    %c0_1 = arith.constant 0 : index
    %c0_2 = arith.constant 0 : index
    %3 = vector.load %arg5[%c0, %c0_1, %c0_2] : memref<1x8x32xbf16, #tpu.memory_space<vmem>>, vector<1x8x32xbf16>
    %4 = vector.shape_cast %3 : vector<1x8x32xbf16> to vector<8x32xbf16>
    %c0_3 = arith.constant 0 : index
    %c0_4 = arith.constant 0 : index
    %c0_5 = arith.constant 0 : index
    %5 = vector.load %arg6[%c0_3, %c0_4, %c0_5] : memref<1x8x32xbf16, #tpu.memory_space<vmem>>, vector<1x8x32xbf16>
    %6 = vector.shape_cast %5 : vector<1x8x32xbf16> to vector<8x32xbf16>
    %7 = arith.addf %4, %6 : vector<8x32xbf16>
    %c0_6 = arith.constant 0 : index
    %c0_7 = arith.constant 0 : index
    %8 = vector.load %arg9[%c0_6, %c0_7] : memref<32x16xf32, #tpu.memory_space<vmem>>, vector<32x16xf32>
    %9 = arith.truncf %8 : vector<32x16xf32> to vector<32x16xbf16>
    %cst = arith.constant dense<0.000000e+00> : vector<8x16xf32>
    %10 = tpu.matmul %7, %9, %cst {dimension_numbers = #tpu.dot_dimension_numbers<[1], [0], [0], [1], [0, 0, 1, 1], [], []>} : vector<8x32xbf16>, vector<32x16xbf16>, vector<8x16xf32> -> vector<8x16xf32>
    %c0_8 = arith.constant 0 : index
    %c0_9 = arith.constant 0 : index
    %11 = vector.load %arg10[%c0_8, %c0_9] : memref<1x16xf32, #tpu.memory_space<vmem>>, vector<1x16xf32>
    %12 = vector.broadcast %11 : vector<1x16xf32> to vector<8x16xf32>
    %13 = arith.addf %10, %12 : vector<8x16xf32>
    %14 = arith.truncf %13 : vector<8x16xf32> to vector<8x16xbf16>
    %c0_10 = arith.constant 0 : index
    %c0_11 = arith.constant 0 : index
    %15 = vector.load %arg11[%c0_10, %c0_11] : memref<32x16xf32, #tpu.memory_space<vmem>>, vector<32x16xf32>
    %16 = arith.truncf %15 : vector<32x16xf32> to vector<32x16xbf16>
    %cst_12 = arith.constant dense<0.000000e+00> : vector<8x16xf32>
    %17 = tpu.matmul %4, %16, %cst_12 {dimension_numbers = #tpu.dot_dimension_numbers<[1], [0], [0], [1], [0, 0, 1, 1], [], []>} : vector<8x32xbf16>, vector<32x16xbf16>, vector<8x16xf32> -> vector<8x16xf32>
    %c0_13 = arith.constant 0 : index
    %c0_14 = arith.constant 0 : index
    %18 = vector.load %arg12[%c0_13, %c0_14] : memref<1x16xf32, #tpu.memory_space<vmem>>, vector<1x16xf32>
    %19 = vector.broadcast %18 : vector<1x16xf32> to vector<8x16xf32>
    %20 = arith.addf %17, %19 : vector<8x16xf32>
    %21 = arith.truncf %20 : vector<8x16xf32> to vector<8x16xbf16>
    %c0_15 = arith.constant 0 : index
    %c0_16 = arith.constant 0 : index
    %22 = vector.load %arg18[%c0_15, %c0_16] : memref<64x16xbf16, #tpu.memory_space<vmem>>, vector<64x16xbf16>
    %23 = vector.extract_strided_slice %22 {offsets = [0, 0], sizes = [64, 8], strides = [1, 1]} : vector<64x16xbf16> to vector<64x8xbf16>
    %24 = vector.extract_strided_slice %14 {offsets = [0, 0], sizes = [8, 8], strides = [1, 1]} : vector<8x16xbf16> to vector<8x8xbf16>
    %cst_17 = arith.constant dense<0.000000e+00> : vector<64x8xf32>
    %25 = tpu.matmul %23, %24, %cst_17 {dimension_numbers = #tpu.dot_dimension_numbers<[1], [1], [0], [0], [0, 0, 1, 0], [], []>} : vector<64x8xbf16>, vector<8x8xbf16>, vector<64x8xf32> -> vector<64x8xf32>
    %c0_18 = arith.constant 0 : index
    %c0_19 = arith.constant 0 : index
    %26 = vector.load %arg19[%c0_18, %c0_19] : memref<64x2xf32, #tpu.memory_space<vmem>>, vector<64x1xf32>
    %cst_20 = arith.constant dense<0xFF800000> : vector<64xf32>
    %27 = vector.multi_reduction <maximumf>, %25, %cst_20 [1] : vector<64x8xf32> to vector<64xf32>
    %28 = vector.shape_cast %27 : vector<64xf32> to vector<64x1xf32>
    %29 = arith.maximumf %26, %28 : vector<64x1xf32>
    %30 = arith.subf %26, %29 : vector<64x1xf32>
    %31 = math.exp %30 : vector<64x1xf32>
    %32 = vector.broadcast %29 : vector<64x1xf32> to vector<64x8xf32>
    %33 = arith.subf %25, %32 : vector<64x8xf32>
    %34 = math.exp %33 : vector<64x8xf32>
    %c0_21 = arith.constant 0 : index
    %c0_22 = arith.constant 0 : index
    %35 = vector.load %arg20[%c0_21, %c0_22] : memref<64x2xf32, #tpu.memory_space<vmem>>, vector<64x1xf32>
    %36 = arith.mulf %31, %35 : vector<64x1xf32>
    %cst_23 = arith.constant dense<0.000000e+00> : vector<64xf32>
    %37 = vector.multi_reduction <add>, %34, %cst_23 [1] : vector<64x8xf32> to vector<64xf32>
    %38 = vector.shape_cast %37 : vector<64xf32> to vector<64x1xf32>
    %39 = arith.addf %36, %38 : vector<64x1xf32>
    %c0_24 = arith.constant 0 : index
    %c0_25 = arith.constant 0 : index
    %40 = vector.load %arg20[%c0_24, %c0_25] : memref<64x2xf32, #tpu.memory_space<vmem>>, vector<64x1xf32>
    tpu.vector_store %arg20[%c0_24, %c0_25], %39 {strides = array<i32>} : memref<64x2xf32, #tpu.memory_space<vmem>>, vector<64x1xf32>,
    %c0_26 = arith.constant 0 : index
    %c0_27 = arith.constant 0 : index
    %41 = vector.load %arg21[%c0_26, %c0_27] : memref<64x16xf32, #tpu.memory_space<vmem>>, vector<64x8xf32>
    %42 = vector.broadcast %31 : vector<64x1xf32> to vector<64x8xf32>
    %43 = arith.mulf %42, %41 : vector<64x8xf32>
    %44 = arith.truncf %34 : vector<64x8xf32> to vector<64x8xbf16>
    %45 = vector.extract_strided_slice %21 {offsets = [0, 0], sizes = [8, 8], strides = [1, 1]} : vector<8x16xbf16> to vector<8x8xbf16>
    %cst_28 = arith.constant dense<0.000000e+00> : vector<64x8xf32>
    %46 = tpu.matmul %44, %45, %cst_28 {dimension_numbers = #tpu.dot_dimension_numbers<[1], [0], [0], [1], [0, 0, 1, 1], [], []>} : vector<64x8xbf16>, vector<8x8xbf16>, vector<64x8xf32> -> vector<64x8xf32>
    %47 = arith.addf %43, %46 : vector<64x8xf32>
    %c0_29 = arith.constant 0 : index
    %c0_30 = arith.constant 0 : index
    %48 = vector.load %arg21[%c0_29, %c0_30] : memref<64x16xf32, #tpu.memory_space<vmem>>, vector<64x8xf32>
    tpu.vector_store %arg21[%c0_29, %c0_30], %47 {strides = array<i32>} : memref<64x16xf32, #tpu.memory_space<vmem>>, vector<64x8xf32>,
    %c0_31 = arith.constant 0 : index
    %c0_32 = arith.constant 0 : index
    %49 = vector.load %arg19[%c0_31, %c0_32] : memref<64x2xf32, #tpu.memory_space<vmem>>, vector<64x1xf32>
    tpu.vector_store %arg19[%c0_31, %c0_32], %29 {strides = array<i32>} : memref<64x2xf32, #tpu.memory_space<vmem>>, vector<64x1xf32>,
    %50 = vector.extract_strided_slice %22 {offsets = [0, 8], sizes = [64, 8], strides = [1, 1]} : vector<64x16xbf16> to vector<64x8xbf16>
    %51 = vector.extract_strided_slice %14 {offsets = [0, 8], sizes = [8, 8], strides = [1, 1]} : vector<8x16xbf16> to vector<8x8xbf16>
    %cst_33 = arith.constant dense<0.000000e+00> : vector<64x8xf32>
    %52 = tpu.matmul %50, %51, %cst_33 {dimension_numbers = #tpu.dot_dimension_numbers<[1], [1], [0], [0], [0, 0, 1, 0], [], []>} : vector<64x8xbf16>, vector<8x8xbf16>, vector<64x8xf32> -> vector<64x8xf32>
    %c0_34 = arith.constant 0 : index
    %c1 = arith.constant 1 : index
    %53 = vector.load %arg19[%c0_34, %c1] : memref<64x2xf32, #tpu.memory_space<vmem>>, vector<64x1xf32>
    %cst_35 = arith.constant dense<0xFF800000> : vector<64xf32>
    %54 = vector.multi_reduction <maximumf>, %52, %cst_35 [1] : vector<64x8xf32> to vector<64xf32>
    %55 = vector.shape_cast %54 : vector<64xf32> to vector<64x1xf32>
    %56 = arith.maximumf %53, %55 : vector<64x1xf32>
    %57 = arith.subf %53, %56 : vector<64x1xf32>
    %58 = math.exp %57 : vector<64x1xf32>
    %59 = vector.broadcast %56 : vector<64x1xf32> to vector<64x8xf32>
    %60 = arith.subf %52, %59 : vector<64x8xf32>
    %61 = math.exp %60 : vector<64x8xf32>
    %c0_36 = arith.constant 0 : index
    %c1_37 = arith.constant 1 : index
    %62 = vector.load %arg20[%c0_36, %c1_37] : memref<64x2xf32, #tpu.memory_space<vmem>>, vector<64x1xf32>
    %63 = arith.mulf %58, %62 : vector<64x1xf32>
    %cst_38 = arith.constant dense<0.000000e+00> : vector<64xf32>
    %64 = vector.multi_reduction <add>, %61, %cst_38 [1] : vector<64x8xf32> to vector<64xf32>
    %65 = vector.shape_cast %64 : vector<64xf32> to vector<64x1xf32>
    %66 = arith.addf %63, %65 : vector<64x1xf32>
    %c0_39 = arith.constant 0 : index
    %c1_40 = arith.constant 1 : index
    %67 = vector.load %arg20[%c0_39, %c1_40] : memref<64x2xf32, #tpu.memory_space<vmem>>, vector<64x1xf32>
    tpu.vector_store %arg20[%c0_39, %c1_40], %66 {strides = array<i32>} : memref<64x2xf32, #tpu.memory_space<vmem>>, vector<64x1xf32>,
    %c0_41 = arith.constant 0 : index
    %c8 = arith.constant 8 : index
    %68 = vector.load %arg21[%c0_41, %c8] : memref<64x16xf32, #tpu.memory_space<vmem>>, vector<64x8xf32>
    %69 = vector.broadcast %58 : vector<64x1xf32> to vector<64x8xf32>
    %70 = arith.mulf %69, %68 : vector<64x8xf32>
    %71 = arith.truncf %61 : vector<64x8xf32> to vector<64x8xbf16>
    %72 = vector.extract_strided_slice %21 {offsets = [0, 8], sizes = [8, 8], strides = [1, 1]} : vector<8x16xbf16> to vector<8x8xbf16>
    %cst_42 = arith.constant dense<0.000000e+00> : vector<64x8xf32>
    %73 = tpu.matmul %71, %72, %cst_42 {dimension_numbers = #tpu.dot_dimension_numbers<[1], [0], [0], [1], [0, 0, 1, 1], [], []>} : vector<64x8xbf16>, vector<8x8xbf16>, vector<64x8xf32> -> vector<64x8xf32>
    %74 = arith.addf %70, %73 : vector<64x8xf32>
    %c0_43 = arith.constant 0 : index
    %c8_44 = arith.constant 8 : index
    %75 = vector.load %arg21[%c0_43, %c8_44] : memref<64x16xf32, #tpu.memory_space<vmem>>, vector<64x8xf32>
    tpu.vector_store %arg21[%c0_43, %c8_44], %74 {strides = array<i32>} : memref<64x16xf32, #tpu.memory_space<vmem>>, vector<64x8xf32>,
    %c0_45 = arith.constant 0 : index
    %c1_46 = arith.constant 1 : index
    %76 = vector.load %arg19[%c0_45, %c1_46] : memref<64x2xf32, #tpu.memory_space<vmem>>, vector<64x1xf32>
    tpu.vector_store %arg19[%c0_45, %c1_46], %56 {strides = array<i32>} : memref<64x2xf32, #tpu.memory_space<vmem>>, vector<64x1xf32>,
    %c0_i32_47 = arith.constant 0 : i32
    %77 = arith.cmpi eq, %arg2, %c0_i32_47 : i32
    %78 = arith.extui %77 : i1 to i32
    %c0_i32_48 = arith.constant 0 : i32
    %79 = arith.cmpi ne, %78, %c0_i32_48 : i32
    scf.if %79 {
      %c0_49 = arith.constant 0 : index
      %c0_50 = arith.constant 0 : index
      %80 = vector.load %arg20[%c0_49, %c0_50] : memref<64x2xf32, #tpu.memory_space<vmem>>, vector<64x2xf32>
      %81 = tpu.reciprocal %80 {approx = true} : vector<64x2xf32> -> vector<64x2xf32>
      %c0_51 = arith.constant 0 : index
      %c0_52 = arith.constant 0 : index
      %82 = vector.load %arg21[%c0_51, %c0_52] : memref<64x16xf32, #tpu.memory_space<vmem>>, vector<64x8xf32>
      %83 = vector.extract_strided_slice %81 {offsets = [0, 0], sizes = [64, 1], strides = [1, 1]} : vector<64x2xf32> to vector<64x1xf32>
      %84 = vector.broadcast %83 : vector<64x1xf32> to vector<64x8xf32>
      %85 = arith.mulf %82, %84 : vector<64x8xf32>
      %c0_53 = arith.constant 0 : index
      %c0_54 = arith.constant 0 : index
      %86 = vector.load %arg21[%c0_53, %c0_54] : memref<64x16xf32, #tpu.memory_space<vmem>>, vector<64x8xf32>
      tpu.vector_store %arg21[%c0_53, %c0_54], %85 {strides = array<i32>} : memref<64x16xf32, #tpu.memory_space<vmem>>, vector<64x8xf32>,
      %c0_55 = arith.constant 0 : index
      %c8_56 = arith.constant 8 : index
      %87 = vector.load %arg21[%c0_55, %c8_56] : memref<64x16xf32, #tpu.memory_space<vmem>>, vector<64x8xf32>
      %88 = vector.extract_strided_slice %81 {offsets = [0, 1], sizes = [64, 1], strides = [1, 1]} : vector<64x2xf32> to vector<64x1xf32>
      %89 = vector.broadcast %88 : vector<64x1xf32> to vector<64x8xf32>
      %90 = arith.mulf %87, %89 : vector<64x8xf32>
      %c0_57 = arith.constant 0 : index
      %c8_58 = arith.constant 8 : index
      %91 = vector.load %arg21[%c0_57, %c8_58] : memref<64x16xf32, #tpu.memory_space<vmem>>, vector<64x8xf32>
      tpu.vector_store %arg21[%c0_57, %c8_58], %90 {strides = array<i32>} : memref<64x16xf32, #tpu.memory_space<vmem>>, vector<64x8xf32>,
      %c0_59 = arith.constant 0 : index
      %c0_60 = arith.constant 0 : index
      %92 = vector.load %arg21[%c0_59, %c0_60] : memref<64x16xf32, #tpu.memory_space<vmem>>, vector<64x16xf32>
      %c0_61 = arith.constant 0 : index
      %c0_62 = arith.constant 0 : index
      %93 = vector.load %arg13[%c0_61, %c0_62] : memref<16x32xf32, #tpu.memory_space<vmem>>, vector<16x32xf32>
      %94 = arith.truncf %92 : vector<64x16xf32> to vector<64x16xbf16>
      %95 = arith.truncf %93 : vector<16x32xf32> to vector<16x32xbf16>
      %cst_63 = arith.constant dense<0.000000e+00> : vector<64x32xf32>
      %96 = tpu.matmul %94, %95, %cst_63 {dimension_numbers = #tpu.dot_dimension_numbers<[1], [0], [0], [1], [0, 0, 1, 1], [], []>} : vector<64x16xbf16>, vector<16x32xbf16>, vector<64x32xf32> -> vector<64x32xf32>
      %c0_64 = arith.constant 0 : index
      %c0_65 = arith.constant 0 : index
      %97 = vector.load %arg14[%c0_64, %c0_65] : memref<1x32xf32, #tpu.memory_space<vmem>>, vector<1x32xf32>
      %98 = vector.broadcast %97 : vector<1x32xf32> to vector<64x32xf32>
      %99 = arith.addf %96, %98 : vector<64x32xf32>
      %c0_66 = arith.constant 0 : index
      %c0_67 = arith.constant 0 : index
      %c0_68 = arith.constant 0 : index
      %100 = vector.load %arg3[%c0_66, %c0_67, %c0_68] : memref<1x64x32xf32, #tpu.memory_space<vmem>>, vector<1x64x32xf32>
      %101 = vector.shape_cast %100 : vector<1x64x32xf32> to vector<64x32xf32>
      %102 = arith.addf %99, %101 : vector<64x32xf32>
      %cst_69 = arith.constant dense<0.000000e+00> : vector<64xf32>
      %103 = vector.multi_reduction <add>, %102, %cst_69 [1] : vector<64x32xf32> to vector<64xf32>
      %104 = vector.shape_cast %103 : vector<64xf32> to vector<64x1xf32>
      %cst_70 = arith.constant 3.200000e+01 : f32
      %105 = vector.broadcast %cst_70 : f32 to vector<64x1xf32>
      %106 = arith.divf %104, %105 : vector<64x1xf32>
      %107 = vector.broadcast %106 : vector<64x1xf32> to vector<64x32xf32>
      %108 = arith.subf %102, %107 : vector<64x32xf32>
      %109 = arith.mulf %108, %108 : vector<64x32xf32>
      %cst_71 = arith.constant dense<0.000000e+00> : vector<64xf32>
      %110 = vector.multi_reduction <add>, %109, %cst_71 [1] : vector<64x32xf32> to vector<64xf32>
      %111 = vector.shape_cast %110 : vector<64xf32> to vector<64x1xf32>
      %cst_72 = arith.constant 3.200000e+01 : f32
      %112 = vector.broadcast %cst_72 : f32 to vector<64x1xf32>
      %113 = arith.divf %111, %112 : vector<64x1xf32>
      %114 = vector.broadcast %106 : vector<64x1xf32> to vector<64x32xf32>
      %115 = arith.subf %102, %114 : vector<64x32xf32>
      %cst_73 = arith.constant 9.99999974E-6 : f32
      %116 = vector.broadcast %cst_73 : f32 to vector<64x1xf32>
      %117 = arith.addf %113, %116 : vector<64x1xf32>
      %118 = math.rsqrt %117 : vector<64x1xf32>
      %119 = vector.broadcast %118 : vector<64x1xf32> to vector<64x32xf32>
      %120 = arith.mulf %115, %119 : vector<64x32xf32>
      %c0_74 = arith.constant 0 : index
      %c0_75 = arith.constant 0 : index
      %121 = vector.load %arg15[%c0_74, %c0_75] : memref<1x32xf32, #tpu.memory_space<vmem>>, vector<1x32xf32>
      %122 = vector.broadcast %121 : vector<1x32xf32> to vector<64x32xf32>
      %123 = arith.mulf %120, %122 : vector<64x32xf32>
      %c0_76 = arith.constant 0 : index
      %c0_77 = arith.constant 0 : index
      %124 = vector.load %arg16[%c0_76, %c0_77] : memref<1x32xf32, #tpu.memory_space<vmem>>, vector<1x32xf32>
      %125 = vector.broadcast %124 : vector<1x32xf32> to vector<64x32xf32>
      %126 = arith.addf %123, %125 : vector<64x32xf32>
      %c0_78 = arith.constant 0 : index
      %c0_79 = arith.constant 0 : index
      %c0_80 = arith.constant 0 : index
      %127 = vector.load %arg17[%c0_78, %c0_79, %c0_80] : memref<1x64x32xf32, #tpu.memory_space<vmem>>, vector<1x64x32xf32>
      %128 = vector.shape_cast %127 : vector<1x64x32xf32> to vector<64x32xf32>
      %129 = vector.shape_cast %126 : vector<64x32xf32> to vector<1x64x32xf32>
      tpu.vector_store %arg17[%c0_78, %c0_79, %c0_80], %129 {strides = array<i32>} : memref<1x64x32xf32, #tpu.memory_space<vmem>>, vector<1x64x32xf32>,
    } else {
    }
    return
  }
  func.func @transform_0(%arg0: i32, %arg1: i32, %arg2: i32) -> (i32, i32, i32) {
    %c0_i32 = arith.constant 0 : i32
    %c0_i32_0 = arith.constant 0 : i32
    return %arg0, %arg1, %c0_i32 : i32, i32, i32
  }
  func.func @transform_1(%arg0: i32, %arg1: i32, %arg2: i32) -> (i32, i32, i32) {
    %c0_i32 = arith.constant 0 : i32
    %c0_i32_0 = arith.constant 0 : i32
    return %arg0, %arg1, %c0_i32 : i32, i32, i32
  }
  func.func @transform_2(%arg0: i32, %arg1: i32, %arg2: i32) -> (i32, i32, i32) {
    %c0_i32 = arith.constant 0 : i32
    %c0_i32_0 = arith.constant 0 : i32
    return %arg0, %arg2, %c0_i32 : i32, i32, i32
  }
  func.func @transform_3(%arg0: i32, %arg1: i32, %arg2: i32) -> (i32, i32, i32) {
    %c0_i32 = arith.constant 0 : i32
    %c0_i32_0 = arith.constant 0 : i32
    return %arg0, %arg2, %c0_i32 : i32, i32, i32
  }
  func.func @transform_4(%arg0: i32, %arg1: i32, %arg2: i32) -> (i32, i32) {
    %c0_i32 = arith.constant 0 : i32
    %c0_i32_0 = arith.constant 0 : i32
    %c0_i32_1 = arith.constant 0 : i32
    return %c0_i32, %c0_i32_0 : i32, i32
  }
  func.func @transform_5(%arg0: i32, %arg1: i32, %arg2: i32) -> (i32, i32) {
    %c0_i32 = arith.constant 0 : i32
    %c0_i32_0 = arith.constant 0 : i32
    %c0_i32_1 = arith.constant 0 : i32
    return %c0_i32, %c0_i32_0 : i32, i32
  }
  func.func @transform_6(%arg0: i32, %arg1: i32, %arg2: i32) -> (i32, i32) {
    %c0_i32 = arith.constant 0 : i32
    %c0_i32_0 = arith.constant 0 : i32
    %c0_i32_1 = arith.constant 0 : i32
    return %c0_i32, %c0_i32_0 : i32, i32
  }
  func.func @transform_7(%arg0: i32, %arg1: i32, %arg2: i32) -> (i32, i32) {
    %c0_i32 = arith.constant 0 : i32
    %c0_i32_0 = arith.constant 0 : i32
    %c0_i32_1 = arith.constant 0 : i32
    return %c0_i32, %c0_i32_0 : i32, i32
  }
  func.func @transform_8(%arg0: i32, %arg1: i32, %arg2: i32) -> (i32, i32) {
    %c0_i32 = arith.constant 0 : i32
    %c0_i32_0 = arith.constant 0 : i32
    %c0_i32_1 = arith.constant 0 : i32
    return %c0_i32, %c0_i32_0 : i32, i32
  }
  func.func @transform_9(%arg0: i32, %arg1: i32, %arg2: i32) -> (i32, i32) {
    %c0_i32 = arith.constant 0 : i32
    %c0_i32_0 = arith.constant 0 : i32
    %c0_i32_1 = arith.constant 0 : i32
    return %c0_i32, %c0_i32_0 : i32, i32
  }
  func.func @transform_10(%arg0: i32, %arg1: i32, %arg2: i32) -> (i32, i32) {
    %c0_i32 = arith.constant 0 : i32
    %c0_i32_0 = arith.constant 0 : i32
    %c0_i32_1 = arith.constant 0 : i32
    return %c0_i32, %c0_i32_0 : i32, i32
  }
  func.func @transform_11(%arg0: i32, %arg1: i32, %arg2: i32) -> (i32, i32) {
    %c0_i32 = arith.constant 0 : i32
    %c0_i32_0 = arith.constant 0 : i32
    %c0_i32_1 = arith.constant 0 : i32
    return %c0_i32, %c0_i32_0 : i32, i32
  }
  func.func @transform_12(%arg0: i32, %arg1: i32, %arg2: i32) -> (i32, i32) {
    %c0_i32 = arith.constant 0 : i32
    %c0_i32_0 = arith.constant 0 : i32
    %c0_i32_1 = arith.constant 0 : i32
    return %c0_i32, %c0_i32_0 : i32, i32
  }
  func.func @transform_13(%arg0: i32, %arg1: i32, %arg2: i32) -> (i32, i32) {
    %c0_i32 = arith.constant 0 : i32
    %c0_i32_0 = arith.constant 0 : i32
    %c0_i32_1 = arith.constant 0 : i32
    return %c0_i32, %c0_i32_0 : i32, i32
  }
  func.func @transform_14(%arg0: i32, %arg1: i32, %arg2: i32) -> (i32, i32, i32) {
    %c0_i32 = arith.constant 0 : i32
    %c0_i32_0 = arith.constant 0 : i32
    return %arg0, %arg1, %c0_i32 : i32, i32, i32
  }
}

module attributes {stable_mosaic.version = 11 : i64} {
  func.func @_fused_attn_ln_kernel(%arg0: i32, %arg1: i32, %arg2: i32, %arg3: memref<1x8x32xf32, #tpu.memory_space<vmem>>, %arg4: memref<1x8x32xf32, #tpu.memory_space<vmem>>, %arg5: memref<1x64x32xbf16, #tpu.memory_space<vmem>>, %arg6: memref<1x64x32xbf16, #tpu.memory_space<vmem>>, %arg7: memref<32x16xf32, #tpu.memory_space<vmem>>, %arg8: memref<1x16xf32, #tpu.memory_space<vmem>>, %arg9: memref<32x16xf32, #tpu.memory_space<vmem>>, %arg10: memref<1x16xf32, #tpu.memory_space<vmem>>, %arg11: memref<32x16xf32, #tpu.memory_space<vmem>>, %arg12: memref<1x16xf32, #tpu.memory_space<vmem>>, %arg13: memref<16x32xf32, #tpu.memory_space<vmem>>, %arg14: memref<1x32xf32, #tpu.memory_space<vmem>>, %arg15: memref<1x32xf32, #tpu.memory_space<vmem>>, %arg16: memref<1x32xf32, #tpu.memory_space<vmem>>, %arg17: memref<1x8x32xf32, #tpu.memory_space<vmem>>, %arg18: memref<8x16xbf16, #tpu.memory_space<vmem>>, %arg19: memref<8x2xf32, #tpu.memory_space<vmem>>, %arg20: memref<8x2xf32, #tpu.memory_space<vmem>>, %arg21: memref<8x16xf32, #tpu.memory_space<vmem>>) attributes {dimension_semantics = [#tpu.dimension_semantics<parallel>, #tpu.dimension_semantics<parallel>, #tpu.dimension_semantics<arbitrary>], iteration_bounds = array<i64: 2, 1, 1>, scalar_prefetch = 0 : i64, scratch_operands = 4 : i64, tpu.core_type = #tpu.core_type<tc>, window_params = [{transform_indices = @transform_0, window_bounds = array<i64: 1, 8, 32>}, {transform_indices = @transform_1, window_bounds = array<i64: 1, 8, 32>}, {transform_indices = @transform_2, window_bounds = array<i64: 1, 64, 32>}, {transform_indices = @transform_3, window_bounds = array<i64: 1, 64, 32>}, {pipeline_mode = #tpu.pipeline_mode<synchronous>, transform_indices = @transform_4, window_bounds = array<i64: 32, 16>}, {pipeline_mode = #tpu.pipeline_mode<synchronous>, transform_indices = @transform_5, window_bounds = array<i64: 1, 16>}, {pipeline_mode = #tpu.pipeline_mode<synchronous>, transform_indices = @transform_6, window_bounds = array<i64: 32, 16>}, {pipeline_mode = #tpu.pipeline_mode<synchronous>, transform_indices = @transform_7, window_bounds = array<i64: 1, 16>}, {pipeline_mode = #tpu.pipeline_mode<synchronous>, transform_indices = @transform_8, window_bounds = array<i64: 32, 16>}, {pipeline_mode = #tpu.pipeline_mode<synchronous>, transform_indices = @transform_9, window_bounds = array<i64: 1, 16>}, {pipeline_mode = #tpu.pipeline_mode<synchronous>, transform_indices = @transform_10, window_bounds = array<i64: 16, 32>}, {pipeline_mode = #tpu.pipeline_mode<synchronous>, transform_indices = @transform_11, window_bounds = array<i64: 1, 32>}, {pipeline_mode = #tpu.pipeline_mode<synchronous>, transform_indices = @transform_12, window_bounds = array<i64: 1, 32>}, {pipeline_mode = #tpu.pipeline_mode<synchronous>, transform_indices = @transform_13, window_bounds = array<i64: 1, 32>}, {transform_indices = @transform_14, window_bounds = array<i64: 1, 8, 32>}]} {
    %c0_i32 = arith.constant 0 : i32
    %0 = arith.cmpi eq, %arg2, %c0_i32 : i32
    %1 = arith.extui %0 : i1 to i32
    %c0_i32_0 = arith.constant 0 : i32
    %2 = arith.cmpi ne, %1, %c0_i32_0 : i32
    scf.if %2 {
      %c0_49 = arith.constant 0 : index
      %c0_50 = arith.constant 0 : index
      %c0_51 = arith.constant 0 : index
      %80 = vector.load %arg3[%c0_49, %c0_50, %c0_51] : memref<1x8x32xf32, #tpu.memory_space<vmem>>, vector<1x8x32xf32>
      %81 = vector.shape_cast %80 : vector<1x8x32xf32> to vector<8x32xf32>
      %c0_52 = arith.constant 0 : index
      %c0_53 = arith.constant 0 : index
      %c0_54 = arith.constant 0 : index
      %82 = vector.load %arg4[%c0_52, %c0_53, %c0_54] : memref<1x8x32xf32, #tpu.memory_space<vmem>>, vector<1x8x32xf32>
      %83 = vector.shape_cast %82 : vector<1x8x32xf32> to vector<8x32xf32>
      %84 = arith.addf %81, %83 : vector<8x32xf32>
      %c0_55 = arith.constant 0 : index
      %c0_56 = arith.constant 0 : index
      %85 = vector.load %arg7[%c0_55, %c0_56] : memref<32x16xf32, #tpu.memory_space<vmem>>, vector<32x16xf32>
      %86 = arith.truncf %84 : vector<8x32xf32> to vector<8x32xbf16>
      %87 = arith.truncf %85 : vector<32x16xf32> to vector<32x16xbf16>
      %cst_57 = arith.constant dense<0.000000e+00> : vector<8x16xf32>
      %88 = tpu.matmul %86, %87, %cst_57 {dimension_numbers = #tpu.dot_dimension_numbers<[1], [0], [0], [1], [0, 0, 1, 1], [], []>} : vector<8x32xbf16>, vector<32x16xbf16>, vector<8x16xf32> -> vector<8x16xf32>
      %c0_58 = arith.constant 0 : index
      %c0_59 = arith.constant 0 : index
      %89 = vector.load %arg8[%c0_58, %c0_59] : memref<1x16xf32, #tpu.memory_space<vmem>>, vector<1x16xf32>
      %90 = vector.broadcast %89 : vector<1x16xf32> to vector<8x16xf32>
      %91 = arith.addf %88, %90 : vector<8x16xf32>
      %92 = arith.truncf %91 : vector<8x16xf32> to vector<8x16xbf16>
      %c0_60 = arith.constant 0 : index
      %c0_61 = arith.constant 0 : index
      %93 = vector.load %arg18[%c0_60, %c0_61] : memref<8x16xbf16, #tpu.memory_space<vmem>>, vector<8x16xbf16>
      tpu.vector_store %arg18[%c0_60, %c0_61], %92 {strides = array<i32>} : memref<8x16xbf16, #tpu.memory_space<vmem>>, vector<8x16xbf16>,
      %cst_62 = arith.constant 0xFF800000 : f32
      %94 = vector.broadcast %cst_62 : f32 to vector<8x2xf32>
      %c0_63 = arith.constant 0 : index
      %c0_64 = arith.constant 0 : index
      %95 = vector.load %arg19[%c0_63, %c0_64] : memref<8x2xf32, #tpu.memory_space<vmem>>, vector<8x2xf32>
      tpu.vector_store %arg19[%c0_63, %c0_64], %94 {strides = array<i32>} : memref<8x2xf32, #tpu.memory_space<vmem>>, vector<8x2xf32>,
      %cst_65 = arith.constant 0.000000e+00 : f32
      %96 = vector.broadcast %cst_65 : f32 to vector<8x2xf32>
      %c0_66 = arith.constant 0 : index
      %c0_67 = arith.constant 0 : index
      %97 = vector.load %arg20[%c0_66, %c0_67] : memref<8x2xf32, #tpu.memory_space<vmem>>, vector<8x2xf32>
      tpu.vector_store %arg20[%c0_66, %c0_67], %96 {strides = array<i32>} : memref<8x2xf32, #tpu.memory_space<vmem>>, vector<8x2xf32>,
      %cst_68 = arith.constant 0.000000e+00 : f32
      %98 = vector.broadcast %cst_68 : f32 to vector<8x16xf32>
      %c0_69 = arith.constant 0 : index
      %c0_70 = arith.constant 0 : index
      %99 = vector.load %arg21[%c0_69, %c0_70] : memref<8x16xf32, #tpu.memory_space<vmem>>, vector<8x16xf32>
      tpu.vector_store %arg21[%c0_69, %c0_70], %98 {strides = array<i32>} : memref<8x16xf32, #tpu.memory_space<vmem>>, vector<8x16xf32>,
    } else {
    }
    %c0 = arith.constant 0 : index
    %c0_1 = arith.constant 0 : index
    %c0_2 = arith.constant 0 : index
    %3 = vector.load %arg5[%c0, %c0_1, %c0_2] : memref<1x64x32xbf16, #tpu.memory_space<vmem>>, vector<1x64x32xbf16>
    %4 = vector.shape_cast %3 : vector<1x64x32xbf16> to vector<64x32xbf16>
    %c0_3 = arith.constant 0 : index
    %c0_4 = arith.constant 0 : index
    %c0_5 = arith.constant 0 : index
    %5 = vector.load %arg6[%c0_3, %c0_4, %c0_5] : memref<1x64x32xbf16, #tpu.memory_space<vmem>>, vector<1x64x32xbf16>
    %6 = vector.shape_cast %5 : vector<1x64x32xbf16> to vector<64x32xbf16>
    %7 = arith.addf %4, %6 : vector<64x32xbf16>
    %c0_6 = arith.constant 0 : index
    %c0_7 = arith.constant 0 : index
    %8 = vector.load %arg9[%c0_6, %c0_7] : memref<32x16xf32, #tpu.memory_space<vmem>>, vector<32x16xf32>
    %9 = arith.truncf %8 : vector<32x16xf32> to vector<32x16xbf16>
    %cst = arith.constant dense<0.000000e+00> : vector<64x16xf32>
    %10 = tpu.matmul %7, %9, %cst {dimension_numbers = #tpu.dot_dimension_numbers<[1], [0], [0], [1], [0, 0, 1, 1], [], []>} : vector<64x32xbf16>, vector<32x16xbf16>, vector<64x16xf32> -> vector<64x16xf32>
    %c0_8 = arith.constant 0 : index
    %c0_9 = arith.constant 0 : index
    %11 = vector.load %arg10[%c0_8, %c0_9] : memref<1x16xf32, #tpu.memory_space<vmem>>, vector<1x16xf32>
    %12 = vector.broadcast %11 : vector<1x16xf32> to vector<64x16xf32>
    %13 = arith.addf %10, %12 : vector<64x16xf32>
    %14 = arith.truncf %13 : vector<64x16xf32> to vector<64x16xbf16>
    %c0_10 = arith.constant 0 : index
    %c0_11 = arith.constant 0 : index
    %15 = vector.load %arg11[%c0_10, %c0_11] : memref<32x16xf32, #tpu.memory_space<vmem>>, vector<32x16xf32>
    %16 = arith.truncf %15 : vector<32x16xf32> to vector<32x16xbf16>
    %cst_12 = arith.constant dense<0.000000e+00> : vector<64x16xf32>
    %17 = tpu.matmul %4, %16, %cst_12 {dimension_numbers = #tpu.dot_dimension_numbers<[1], [0], [0], [1], [0, 0, 1, 1], [], []>} : vector<64x32xbf16>, vector<32x16xbf16>, vector<64x16xf32> -> vector<64x16xf32>
    %c0_13 = arith.constant 0 : index
    %c0_14 = arith.constant 0 : index
    %18 = vector.load %arg12[%c0_13, %c0_14] : memref<1x16xf32, #tpu.memory_space<vmem>>, vector<1x16xf32>
    %19 = vector.broadcast %18 : vector<1x16xf32> to vector<64x16xf32>
    %20 = arith.addf %17, %19 : vector<64x16xf32>
    %21 = arith.truncf %20 : vector<64x16xf32> to vector<64x16xbf16>
    %c0_15 = arith.constant 0 : index
    %c0_16 = arith.constant 0 : index
    %22 = vector.load %arg18[%c0_15, %c0_16] : memref<8x16xbf16, #tpu.memory_space<vmem>>, vector<8x16xbf16>
    %23 = vector.extract_strided_slice %22 {offsets = [0, 0], sizes = [8, 8], strides = [1, 1]} : vector<8x16xbf16> to vector<8x8xbf16>
    %24 = vector.extract_strided_slice %14 {offsets = [0, 0], sizes = [64, 8], strides = [1, 1]} : vector<64x16xbf16> to vector<64x8xbf16>
    %cst_17 = arith.constant dense<0.000000e+00> : vector<8x64xf32>
    %25 = tpu.matmul %23, %24, %cst_17 {dimension_numbers = #tpu.dot_dimension_numbers<[1], [1], [0], [0], [0, 0, 1, 0], [], []>} : vector<8x8xbf16>, vector<64x8xbf16>, vector<8x64xf32> -> vector<8x64xf32>
    %c0_18 = arith.constant 0 : index
    %c0_19 = arith.constant 0 : index
    %26 = vector.load %arg19[%c0_18, %c0_19] : memref<8x2xf32, #tpu.memory_space<vmem>>, vector<8x1xf32>
    %cst_20 = arith.constant dense<0xFF800000> : vector<8xf32>
    %27 = vector.multi_reduction <maximumf>, %25, %cst_20 [1] : vector<8x64xf32> to vector<8xf32>
    %28 = vector.shape_cast %27 : vector<8xf32> to vector<8x1xf32>
    %29 = arith.maximumf %26, %28 : vector<8x1xf32>
    %30 = arith.subf %26, %29 : vector<8x1xf32>
    %31 = math.exp %30 : vector<8x1xf32>
    %32 = vector.broadcast %29 : vector<8x1xf32> to vector<8x64xf32>
    %33 = arith.subf %25, %32 : vector<8x64xf32>
    %34 = math.exp %33 : vector<8x64xf32>
    %c0_21 = arith.constant 0 : index
    %c0_22 = arith.constant 0 : index
    %35 = vector.load %arg20[%c0_21, %c0_22] : memref<8x2xf32, #tpu.memory_space<vmem>>, vector<8x1xf32>
    %36 = arith.mulf %31, %35 : vector<8x1xf32>
    %cst_23 = arith.constant dense<0.000000e+00> : vector<8xf32>
    %37 = vector.multi_reduction <add>, %34, %cst_23 [1] : vector<8x64xf32> to vector<8xf32>
    %38 = vector.shape_cast %37 : vector<8xf32> to vector<8x1xf32>
    %39 = arith.addf %36, %38 : vector<8x1xf32>
    %c0_24 = arith.constant 0 : index
    %c0_25 = arith.constant 0 : index
    %40 = vector.load %arg20[%c0_24, %c0_25] : memref<8x2xf32, #tpu.memory_space<vmem>>, vector<8x1xf32>
    tpu.vector_store %arg20[%c0_24, %c0_25], %39 {strides = array<i32>} : memref<8x2xf32, #tpu.memory_space<vmem>>, vector<8x1xf32>,
    %c0_26 = arith.constant 0 : index
    %c0_27 = arith.constant 0 : index
    %41 = vector.load %arg21[%c0_26, %c0_27] : memref<8x16xf32, #tpu.memory_space<vmem>>, vector<8x8xf32>
    %42 = vector.broadcast %31 : vector<8x1xf32> to vector<8x8xf32>
    %43 = arith.mulf %42, %41 : vector<8x8xf32>
    %44 = arith.truncf %34 : vector<8x64xf32> to vector<8x64xbf16>
    %45 = vector.extract_strided_slice %21 {offsets = [0, 0], sizes = [64, 8], strides = [1, 1]} : vector<64x16xbf16> to vector<64x8xbf16>
    %cst_28 = arith.constant dense<0.000000e+00> : vector<8x8xf32>
    %46 = tpu.matmul %44, %45, %cst_28 {dimension_numbers = #tpu.dot_dimension_numbers<[1], [0], [0], [1], [0, 0, 1, 1], [], []>} : vector<8x64xbf16>, vector<64x8xbf16>, vector<8x8xf32> -> vector<8x8xf32>
    %47 = arith.addf %43, %46 : vector<8x8xf32>
    %c0_29 = arith.constant 0 : index
    %c0_30 = arith.constant 0 : index
    %48 = vector.load %arg21[%c0_29, %c0_30] : memref<8x16xf32, #tpu.memory_space<vmem>>, vector<8x8xf32>
    tpu.vector_store %arg21[%c0_29, %c0_30], %47 {strides = array<i32>} : memref<8x16xf32, #tpu.memory_space<vmem>>, vector<8x8xf32>,
    %c0_31 = arith.constant 0 : index
    %c0_32 = arith.constant 0 : index
    %49 = vector.load %arg19[%c0_31, %c0_32] : memref<8x2xf32, #tpu.memory_space<vmem>>, vector<8x1xf32>
    tpu.vector_store %arg19[%c0_31, %c0_32], %29 {strides = array<i32>} : memref<8x2xf32, #tpu.memory_space<vmem>>, vector<8x1xf32>,
    %50 = vector.extract_strided_slice %22 {offsets = [0, 8], sizes = [8, 8], strides = [1, 1]} : vector<8x16xbf16> to vector<8x8xbf16>
    %51 = vector.extract_strided_slice %14 {offsets = [0, 8], sizes = [64, 8], strides = [1, 1]} : vector<64x16xbf16> to vector<64x8xbf16>
    %cst_33 = arith.constant dense<0.000000e+00> : vector<8x64xf32>
    %52 = tpu.matmul %50, %51, %cst_33 {dimension_numbers = #tpu.dot_dimension_numbers<[1], [1], [0], [0], [0, 0, 1, 0], [], []>} : vector<8x8xbf16>, vector<64x8xbf16>, vector<8x64xf32> -> vector<8x64xf32>
    %c0_34 = arith.constant 0 : index
    %c1 = arith.constant 1 : index
    %53 = vector.load %arg19[%c0_34, %c1] : memref<8x2xf32, #tpu.memory_space<vmem>>, vector<8x1xf32>
    %cst_35 = arith.constant dense<0xFF800000> : vector<8xf32>
    %54 = vector.multi_reduction <maximumf>, %52, %cst_35 [1] : vector<8x64xf32> to vector<8xf32>
    %55 = vector.shape_cast %54 : vector<8xf32> to vector<8x1xf32>
    %56 = arith.maximumf %53, %55 : vector<8x1xf32>
    %57 = arith.subf %53, %56 : vector<8x1xf32>
    %58 = math.exp %57 : vector<8x1xf32>
    %59 = vector.broadcast %56 : vector<8x1xf32> to vector<8x64xf32>
    %60 = arith.subf %52, %59 : vector<8x64xf32>
    %61 = math.exp %60 : vector<8x64xf32>
    %c0_36 = arith.constant 0 : index
    %c1_37 = arith.constant 1 : index
    %62 = vector.load %arg20[%c0_36, %c1_37] : memref<8x2xf32, #tpu.memory_space<vmem>>, vector<8x1xf32>
    %63 = arith.mulf %58, %62 : vector<8x1xf32>
    %cst_38 = arith.constant dense<0.000000e+00> : vector<8xf32>
    %64 = vector.multi_reduction <add>, %61, %cst_38 [1] : vector<8x64xf32> to vector<8xf32>
    %65 = vector.shape_cast %64 : vector<8xf32> to vector<8x1xf32>
    %66 = arith.addf %63, %65 : vector<8x1xf32>
    %c0_39 = arith.constant 0 : index
    %c1_40 = arith.constant 1 : index
    %67 = vector.load %arg20[%c0_39, %c1_40] : memref<8x2xf32, #tpu.memory_space<vmem>>, vector<8x1xf32>
    tpu.vector_store %arg20[%c0_39, %c1_40], %66 {strides = array<i32>} : memref<8x2xf32, #tpu.memory_space<vmem>>, vector<8x1xf32>,
    %c0_41 = arith.constant 0 : index
    %c8 = arith.constant 8 : index
    %68 = vector.load %arg21[%c0_41, %c8] : memref<8x16xf32, #tpu.memory_space<vmem>>, vector<8x8xf32>
    %69 = vector.broadcast %58 : vector<8x1xf32> to vector<8x8xf32>
    %70 = arith.mulf %69, %68 : vector<8x8xf32>
    %71 = arith.truncf %61 : vector<8x64xf32> to vector<8x64xbf16>
    %72 = vector.extract_strided_slice %21 {offsets = [0, 8], sizes = [64, 8], strides = [1, 1]} : vector<64x16xbf16> to vector<64x8xbf16>
    %cst_42 = arith.constant dense<0.000000e+00> : vector<8x8xf32>
    %73 = tpu.matmul %71, %72, %cst_42 {dimension_numbers = #tpu.dot_dimension_numbers<[1], [0], [0], [1], [0, 0, 1, 1], [], []>} : vector<8x64xbf16>, vector<64x8xbf16>, vector<8x8xf32> -> vector<8x8xf32>
    %74 = arith.addf %70, %73 : vector<8x8xf32>
    %c0_43 = arith.constant 0 : index
    %c8_44 = arith.constant 8 : index
    %75 = vector.load %arg21[%c0_43, %c8_44] : memref<8x16xf32, #tpu.memory_space<vmem>>, vector<8x8xf32>
    tpu.vector_store %arg21[%c0_43, %c8_44], %74 {strides = array<i32>} : memref<8x16xf32, #tpu.memory_space<vmem>>, vector<8x8xf32>,
    %c0_45 = arith.constant 0 : index
    %c1_46 = arith.constant 1 : index
    %76 = vector.load %arg19[%c0_45, %c1_46] : memref<8x2xf32, #tpu.memory_space<vmem>>, vector<8x1xf32>
    tpu.vector_store %arg19[%c0_45, %c1_46], %56 {strides = array<i32>} : memref<8x2xf32, #tpu.memory_space<vmem>>, vector<8x1xf32>,
    %c0_i32_47 = arith.constant 0 : i32
    %77 = arith.cmpi eq, %arg2, %c0_i32_47 : i32
    %78 = arith.extui %77 : i1 to i32
    %c0_i32_48 = arith.constant 0 : i32
    %79 = arith.cmpi ne, %78, %c0_i32_48 : i32
    scf.if %79 {
      %c0_49 = arith.constant 0 : index
      %c0_50 = arith.constant 0 : index
      %80 = vector.load %arg20[%c0_49, %c0_50] : memref<8x2xf32, #tpu.memory_space<vmem>>, vector<8x2xf32>
      %81 = tpu.reciprocal %80 {approx = true} : vector<8x2xf32> -> vector<8x2xf32>
      %c0_51 = arith.constant 0 : index
      %c0_52 = arith.constant 0 : index
      %82 = vector.load %arg21[%c0_51, %c0_52] : memref<8x16xf32, #tpu.memory_space<vmem>>, vector<8x8xf32>
      %83 = vector.extract_strided_slice %81 {offsets = [0, 0], sizes = [8, 1], strides = [1, 1]} : vector<8x2xf32> to vector<8x1xf32>
      %84 = vector.broadcast %83 : vector<8x1xf32> to vector<8x8xf32>
      %85 = arith.mulf %82, %84 : vector<8x8xf32>
      %c0_53 = arith.constant 0 : index
      %c0_54 = arith.constant 0 : index
      %86 = vector.load %arg21[%c0_53, %c0_54] : memref<8x16xf32, #tpu.memory_space<vmem>>, vector<8x8xf32>
      tpu.vector_store %arg21[%c0_53, %c0_54], %85 {strides = array<i32>} : memref<8x16xf32, #tpu.memory_space<vmem>>, vector<8x8xf32>,
      %c0_55 = arith.constant 0 : index
      %c8_56 = arith.constant 8 : index
      %87 = vector.load %arg21[%c0_55, %c8_56] : memref<8x16xf32, #tpu.memory_space<vmem>>, vector<8x8xf32>
      %88 = vector.extract_strided_slice %81 {offsets = [0, 1], sizes = [8, 1], strides = [1, 1]} : vector<8x2xf32> to vector<8x1xf32>
      %89 = vector.broadcast %88 : vector<8x1xf32> to vector<8x8xf32>
      %90 = arith.mulf %87, %89 : vector<8x8xf32>
      %c0_57 = arith.constant 0 : index
      %c8_58 = arith.constant 8 : index
      %91 = vector.load %arg21[%c0_57, %c8_58] : memref<8x16xf32, #tpu.memory_space<vmem>>, vector<8x8xf32>
      tpu.vector_store %arg21[%c0_57, %c8_58], %90 {strides = array<i32>} : memref<8x16xf32, #tpu.memory_space<vmem>>, vector<8x8xf32>,
      %c0_59 = arith.constant 0 : index
      %c0_60 = arith.constant 0 : index
      %92 = vector.load %arg21[%c0_59, %c0_60] : memref<8x16xf32, #tpu.memory_space<vmem>>, vector<8x16xf32>
      %c0_61 = arith.constant 0 : index
      %c0_62 = arith.constant 0 : index
      %93 = vector.load %arg13[%c0_61, %c0_62] : memref<16x32xf32, #tpu.memory_space<vmem>>, vector<16x32xf32>
      %94 = arith.truncf %92 : vector<8x16xf32> to vector<8x16xbf16>
      %95 = arith.truncf %93 : vector<16x32xf32> to vector<16x32xbf16>
      %cst_63 = arith.constant dense<0.000000e+00> : vector<8x32xf32>
      %96 = tpu.matmul %94, %95, %cst_63 {dimension_numbers = #tpu.dot_dimension_numbers<[1], [0], [0], [1], [0, 0, 1, 1], [], []>} : vector<8x16xbf16>, vector<16x32xbf16>, vector<8x32xf32> -> vector<8x32xf32>
      %c0_64 = arith.constant 0 : index
      %c0_65 = arith.constant 0 : index
      %97 = vector.load %arg14[%c0_64, %c0_65] : memref<1x32xf32, #tpu.memory_space<vmem>>, vector<1x32xf32>
      %98 = vector.broadcast %97 : vector<1x32xf32> to vector<8x32xf32>
      %99 = arith.addf %96, %98 : vector<8x32xf32>
      %c0_66 = arith.constant 0 : index
      %c0_67 = arith.constant 0 : index
      %c0_68 = arith.constant 0 : index
      %100 = vector.load %arg3[%c0_66, %c0_67, %c0_68] : memref<1x8x32xf32, #tpu.memory_space<vmem>>, vector<1x8x32xf32>
      %101 = vector.shape_cast %100 : vector<1x8x32xf32> to vector<8x32xf32>
      %102 = arith.addf %99, %101 : vector<8x32xf32>
      %cst_69 = arith.constant dense<0.000000e+00> : vector<8xf32>
      %103 = vector.multi_reduction <add>, %102, %cst_69 [1] : vector<8x32xf32> to vector<8xf32>
      %104 = vector.shape_cast %103 : vector<8xf32> to vector<8x1xf32>
      %cst_70 = arith.constant 3.200000e+01 : f32
      %105 = vector.broadcast %cst_70 : f32 to vector<8x1xf32>
      %106 = arith.divf %104, %105 : vector<8x1xf32>
      %107 = vector.broadcast %106 : vector<8x1xf32> to vector<8x32xf32>
      %108 = arith.subf %102, %107 : vector<8x32xf32>
      %109 = arith.mulf %108, %108 : vector<8x32xf32>
      %cst_71 = arith.constant dense<0.000000e+00> : vector<8xf32>
      %110 = vector.multi_reduction <add>, %109, %cst_71 [1] : vector<8x32xf32> to vector<8xf32>
      %111 = vector.shape_cast %110 : vector<8xf32> to vector<8x1xf32>
      %cst_72 = arith.constant 3.200000e+01 : f32
      %112 = vector.broadcast %cst_72 : f32 to vector<8x1xf32>
      %113 = arith.divf %111, %112 : vector<8x1xf32>
      %114 = vector.broadcast %106 : vector<8x1xf32> to vector<8x32xf32>
      %115 = arith.subf %102, %114 : vector<8x32xf32>
      %cst_73 = arith.constant 9.99999974E-6 : f32
      %116 = vector.broadcast %cst_73 : f32 to vector<8x1xf32>
      %117 = arith.addf %113, %116 : vector<8x1xf32>
      %118 = math.rsqrt %117 : vector<8x1xf32>
      %119 = vector.broadcast %118 : vector<8x1xf32> to vector<8x32xf32>
      %120 = arith.mulf %115, %119 : vector<8x32xf32>
      %c0_74 = arith.constant 0 : index
      %c0_75 = arith.constant 0 : index
      %121 = vector.load %arg15[%c0_74, %c0_75] : memref<1x32xf32, #tpu.memory_space<vmem>>, vector<1x32xf32>
      %122 = vector.broadcast %121 : vector<1x32xf32> to vector<8x32xf32>
      %123 = arith.mulf %120, %122 : vector<8x32xf32>
      %c0_76 = arith.constant 0 : index
      %c0_77 = arith.constant 0 : index
      %124 = vector.load %arg16[%c0_76, %c0_77] : memref<1x32xf32, #tpu.memory_space<vmem>>, vector<1x32xf32>
      %125 = vector.broadcast %124 : vector<1x32xf32> to vector<8x32xf32>
      %126 = arith.addf %123, %125 : vector<8x32xf32>
      %c0_78 = arith.constant 0 : index
      %c0_79 = arith.constant 0 : index
      %c0_80 = arith.constant 0 : index
      %127 = vector.load %arg17[%c0_78, %c0_79, %c0_80] : memref<1x8x32xf32, #tpu.memory_space<vmem>>, vector<1x8x32xf32>
      %128 = vector.shape_cast %127 : vector<1x8x32xf32> to vector<8x32xf32>
      %129 = vector.shape_cast %126 : vector<8x32xf32> to vector<1x8x32xf32>
      tpu.vector_store %arg17[%c0_78, %c0_79, %c0_80], %129 {strides = array<i32>} : memref<1x8x32xf32, #tpu.memory_space<vmem>>, vector<1x8x32xf32>,
    } else {
    }
    return
  }
  func.func @transform_0(%arg0: i32, %arg1: i32, %arg2: i32) -> (i32, i32, i32) {
    %c0_i32 = arith.constant 0 : i32
    %c0_i32_0 = arith.constant 0 : i32
    return %arg0, %arg1, %c0_i32 : i32, i32, i32
  }
  func.func @transform_1(%arg0: i32, %arg1: i32, %arg2: i32) -> (i32, i32, i32) {
    %c0_i32 = arith.constant 0 : i32
    %c0_i32_0 = arith.constant 0 : i32
    return %arg0, %arg1, %c0_i32 : i32, i32, i32
  }
  func.func @transform_2(%arg0: i32, %arg1: i32, %arg2: i32) -> (i32, i32, i32) {
    %c0_i32 = arith.constant 0 : i32
    %c0_i32_0 = arith.constant 0 : i32
    return %arg0, %arg2, %c0_i32 : i32, i32, i32
  }
  func.func @transform_3(%arg0: i32, %arg1: i32, %arg2: i32) -> (i32, i32, i32) {
    %c0_i32 = arith.constant 0 : i32
    %c0_i32_0 = arith.constant 0 : i32
    return %arg0, %arg2, %c0_i32 : i32, i32, i32
  }
  func.func @transform_4(%arg0: i32, %arg1: i32, %arg2: i32) -> (i32, i32) {
    %c0_i32 = arith.constant 0 : i32
    %c0_i32_0 = arith.constant 0 : i32
    %c0_i32_1 = arith.constant 0 : i32
    return %c0_i32, %c0_i32_0 : i32, i32
  }
  func.func @transform_5(%arg0: i32, %arg1: i32, %arg2: i32) -> (i32, i32) {
    %c0_i32 = arith.constant 0 : i32
    %c0_i32_0 = arith.constant 0 : i32
    %c0_i32_1 = arith.constant 0 : i32
    return %c0_i32, %c0_i32_0 : i32, i32
  }
  func.func @transform_6(%arg0: i32, %arg1: i32, %arg2: i32) -> (i32, i32) {
    %c0_i32 = arith.constant 0 : i32
    %c0_i32_0 = arith.constant 0 : i32
    %c0_i32_1 = arith.constant 0 : i32
    return %c0_i32, %c0_i32_0 : i32, i32
  }
  func.func @transform_7(%arg0: i32, %arg1: i32, %arg2: i32) -> (i32, i32) {
    %c0_i32 = arith.constant 0 : i32
    %c0_i32_0 = arith.constant 0 : i32
    %c0_i32_1 = arith.constant 0 : i32
    return %c0_i32, %c0_i32_0 : i32, i32
  }
  func.func @transform_8(%arg0: i32, %arg1: i32, %arg2: i32) -> (i32, i32) {
    %c0_i32 = arith.constant 0 : i32
    %c0_i32_0 = arith.constant 0 : i32
    %c0_i32_1 = arith.constant 0 : i32
    return %c0_i32, %c0_i32_0 : i32, i32
  }
  func.func @transform_9(%arg0: i32, %arg1: i32, %arg2: i32) -> (i32, i32) {
    %c0_i32 = arith.constant 0 : i32
    %c0_i32_0 = arith.constant 0 : i32
    %c0_i32_1 = arith.constant 0 : i32
    return %c0_i32, %c0_i32_0 : i32, i32
  }
  func.func @transform_10(%arg0: i32, %arg1: i32, %arg2: i32) -> (i32, i32) {
    %c0_i32 = arith.constant 0 : i32
    %c0_i32_0 = arith.constant 0 : i32
    %c0_i32_1 = arith.constant 0 : i32
    return %c0_i32, %c0_i32_0 : i32, i32
  }
  func.func @transform_11(%arg0: i32, %arg1: i32, %arg2: i32) -> (i32, i32) {
    %c0_i32 = arith.constant 0 : i32
    %c0_i32_0 = arith.constant 0 : i32
    %c0_i32_1 = arith.constant 0 : i32
    return %c0_i32, %c0_i32_0 : i32, i32
  }
  func.func @transform_12(%arg0: i32, %arg1: i32, %arg2: i32) -> (i32, i32) {
    %c0_i32 = arith.constant 0 : i32
    %c0_i32_0 = arith.constant 0 : i32
    %c0_i32_1 = arith.constant 0 : i32
    return %c0_i32, %c0_i32_0 : i32, i32
  }
  func.func @transform_13(%arg0: i32, %arg1: i32, %arg2: i32) -> (i32, i32) {
    %c0_i32 = arith.constant 0 : i32
    %c0_i32_0 = arith.constant 0 : i32
    %c0_i32_1 = arith.constant 0 : i32
    return %c0_i32, %c0_i32_0 : i32, i32
  }
  func.func @transform_14(%arg0: i32, %arg1: i32, %arg2: i32) -> (i32, i32, i32) {
    %c0_i32 = arith.constant 0 : i32
    %c0_i32_0 = arith.constant 0 : i32
    return %arg0, %arg1, %c0_i32 : i32, i32, i32
  }
}

</mosaic_0001>

<bundles_post_ra>
// kernel: two_way_transformer_forward.11
= control target key start
LH: loop header
LB: loop body
LE: loop exit
PB: predicated region body
PF: predicated region fallthrough
CT: control target
= control target key end

     0   :  { %v248_v0 = vmov 0.0   ;;  %vm249_vm0 = vmmov 0   ;;  %vm43_vm1 = vcmask 261120   ;;  %vm110_vm2 = vcmask 523264   ;;  %s357_s1 = inlined_call_operand.vmem [shape: f32[32,64], index: 1, kind: input, shape index: {}]   ;;  %s358_s3 = inlined_call_operand.vmem [shape: f32[64,32], index: 3, kind: input, shape index: {}]   ;;  %s359_s0 = inlined_call_operand.vmem [shape: f32[16,32], index: 0, kind: input, shape index: {}]   ;;  %s360_s2 = inlined_call_operand.vmem [shape: f32[1,64], index: 2, kind: input, shape index: {}]   ;;  %s361_s4 = inlined_call_operand.vmem [shape: f32[1,32], index: 4, kind: input, shape index: {}]   ;;  %s362_s5 = inlined_call_operand.vmem [shape: f32[1,32], index: 5, kind: input, shape index: {}]   ;;  %s363_s6 = inlined_call_operand.vmem [shape: f32[1,32], index: 6, kind: input, shape index: {}]   ;;  %s364_s7 = inlined_call_operand.vmem [shape: f32[16,32], index: 7, kind: output, shape index: {}]  }
   0x1   :  { %222 = vmatprep.subr.bf16.mxu0 %v248_v0  ;;  %v31_v1 = vld [vmem:[%s357_s1 + $0x10] sm:$0xff]  ;;  %v32_v2 = vld [vmem:[%s357_s1 + $0x18] sm:$0xff]  ;;  %v29_v3 = vld [vmem:[%s357_s1] sm:$0xff]  ;;  %226 = vmatprep.mubr.msk.bf16.mxu0 %vm249_vm0, %v248_v0 }
   0x2   :  { %v35_v4 = vpack.c.bf16 %v32_v2, %v31_v1  ;;  %v30_v5 = vld [vmem:[%s357_s1 + $0x8] sm:$0xff]  ;;  %230 = vmatprep.subr.bf16.mxu1 %v248_v0  ;;  %238 = vmatprep.mubr.msk.bf16.mxu1 %vm249_vm0, %v248_v0  ;;  %v96_v6 = vld [vmem:[%s358_s3 + $0x30] sm:$0xff]  ;;  %v97_v7 = vld [vmem:[%s358_s3 + $0x38] sm:$0xff] }
   0x3   :  { %v34_v8 = vpack.c.bf16 %v30_v5, %v29_v3  ;;  %v27_v9 = vld [vmem:[%s359_s0] sm:$0xff]  ;;  %v28_v10 = vld [vmem:[%s359_s0 + $0x8] sm:$0xff]  ;;  %v102_v11 = vpack.c.bf16 %v97_v7, %v96_v6  ;;  %v92_v16 = vld [vmem:[%s358_s3 + $0x10] sm:$0xff] }
   0x4   :  { %223 = vmatpush3.bf16.msra.mxu0 %v35_v4  ;;  %v33_v12 = vpack.c.bf16 %v28_v10, %v27_v9  ;;  %v94_v13 = vld [vmem:[%s358_s3 + $0x20] sm:$0xff]  ;;  %v95_v14 = vld [vmem:[%s358_s3 + $0x28] sm:$0xff]  ;;  %v93_v17 = vld [vmem:[%s358_s3 + $0x18] sm:$0xff] }
   0x5   :  { %224 = vmatprep.subr.bf16.mxu0 %v248_v0  ;;  %231 = vmatpush3.bf16.msra.mxu1 %v102_v11  ;;  %v101_v15 = vpack.c.bf16 %v95_v14, %v94_v13  ;;  %v100_v18 = vpack.c.bf16 %v93_v17, %v92_v16  ;;  %v90_v19 = vld [vmem:[%s358_s3] sm:$0xff]  ;;  %v91_v20 = vld [vmem:[%s358_s3 + $0x8] sm:$0xff] }
   0x6   :  { %232 = vmatprep.subr.bf16.mxu1 %v248_v0  ;;  %v99_v21 = vpack.c.bf16 %v91_v20, %v90_v19  ;;  %v208_v22 = vld [vmem:[%s360_s2] ss:$0 sm:$0xff] }
   0x7   :  { %v210_v32 = vld [vmem:[%s361_s4] ss:$0 sm:$0xff] }
   0x8   :  { %225 = vmatpush3.bf16.msra.mxu0 %v34_v8  ;;  %v212_v60 = vld [vmem:[%s362_s5] ss:$0 sm:$0xff] }
   0x9   :  { %233 = vmatpush3.bf16.msra.mxu1 %v101_v15  ;;  %v213_v62 = vld [vmem:[%s363_s6] ss:$0 sm:$0xff] }
   0xa   :  { %234 = vmatprep.subr.bf16.mxu1 %v248_v0 }
   0xb   :  { %227 = vmatmul.mubr.msk.bf16.vlgmr.msra.gmra.mxu0 %vm43_vm1, %v33_v12 }
   0xd   :  { %235 = vmatpush3.bf16.msra.mxu1 %v100_v18 }
   0xe   :  { %236 = vmatprep.subr.bf16.mxu1 %v248_v0 }
  0x11   :  { %237 = vmatpush3.bf16.msra.mxu1 %v99_v21 }
  0xcb   :  { %v81_v23 = vpop.f32.mrf.mxu0 }
  0xcc   :  { %v82_v25 = vadd.f32 %v208_v22, %v81_v23 }
  0xcd   :  { %v228_v24 = vpop.f32.mrf.mxu0 }
  0xce   :  { %v88_v29 = vmax.f32 %v82_v25, 0.0 }
  0xcf   :  { %v84_v26 = vpop.f32.mrf.mxu0 }
  0xd0   :  { %v85_v27 = vadd.f32 %v208_v22, %v84_v26 }
  0xd1   :  { %v229_v28 = vpop.f32.mrf.mxu0 }
  0xd2   :  { %v89_v30 = vmax.f32 %v85_v27, 0.0 }
  0xd4   :  { %v98_v31 = vpack.c.bf16 %v89_v30, %v88_v29 }
  0xd6   :  { %239 = vmatmul.mubr.msk.bf16.vlgmr.msra.gmra.mxu1 %vm110_vm2, %v98_v31 }
 0x196   :  { %v148_v33 = vpop.f32.mrf.mxu1 }
 0x197   :  { %v149_v34 = vadd.f32 %v210_v32, %v148_v33 }
 0x198   :  { %v240_v35 = vpop.f32.mrf.mxu1 }
 0x199   :  { %v155_v36 = vadd.f32 %v149_v34, %v27_v9 }
 0x19a   :  { %v151_v37 = vpop.f32.mrf.mxu1 }
 0x19b   :  { %v152_v38 = vadd.f32 %v210_v32, %v151_v37  ;;  %v157_v39 = vsel %vm43_vm1, %v155_v36, 0.0 }
 0x19c   :  { %158 = vadd.xlane.f32.xlu0 %v157_v39  ;;  %v241_v40 = vpop.f32.mrf.mxu1 }
 0x19d   :  { %v156_v41 = vadd.f32 %v152_v38, %v28_v10 }
 0x19f   :  { %v160_v42 = vsel %vm43_vm1, %v156_v41, 0.0 }
 0x1a0   :  { %161 = vadd.xlane.f32.xlu0 %v160_v42 }
 0x225   :  { %v159_v43 = vpop.xlane.xlu0 %158 }
 0x226   :  { %v164_v44 = vmul.f32 0.03125, %v159_v43 }
 0x228   :  { %v166_v45 = vsub.f32 %v155_v36, %v164_v44 }
 0x229   :  { %v162_v46 = vpop.xlane.xlu0 %161 }
 0x22a   :  { %v165_v47 = vmul.f32 0.03125, %v162_v46  ;;  %v168_v48 = vmul.f32 %v166_v45, %v166_v45 }
 0x22c   :  { %v167_v49 = vsub.f32 %v156_v41, %v165_v47  ;;  %v170_v50 = vsel %vm43_vm1, %v168_v48, 0.0 }
 0x22d   :  { %171 = vadd.xlane.f32.xlu1 %v170_v50 }
 0x22e   :  { %v169_v51 = vmul.f32 %v167_v49, %v167_v49 }
 0x230   :  { %v173_v52 = vsel %vm43_vm1, %v169_v51, 0.0 }
 0x231   :  { %174 = vadd.xlane.f32.xlu1 %v173_v52 }
 0x2b6   :  { %v172_v53 = vpop.xlane.xlu1 %171 }
 0x2b7   :  { %v176_v54 = vmul.f32 0.03125, %v172_v53 }
 0x2b9   :  { %v178_v55 = vadd.f32 1e-05, %v176_v54 }
 0x2ba   :  { %v175_v56 = vpop.xlane.xlu1 %174 }
 0x2bb   :  { %244 = vrsqrt.f32 %v178_v55  ;;  %v177_v57 = vmul.f32 0.03125, %v175_v56 }
 0x2bd   :  { %v179_v58 = vadd.f32 1e-05, %v177_v57 }
 0x2bf   :  { %246 = vrsqrt.f32 %v179_v58 }
 0x2c8   :  { %v245_v59 = vpop.eup %244 }
 0x2c9   :  { %v182_v61 = vmul.f32 %v245_v59, %v166_v45 }
 0x2cb   :  { %v191_v63 = vmul.f32 %v212_v60, %v182_v61 }
 0x2cc   :  { %v247_v0 = vpop.eup %246 }
 0x2cd   :  { %v200_v1 = vadd.f32 %v213_v62, %v191_v63  ;;  %v183_v2 = vmul.f32 %v247_v0, %v167_v49 }
 0x2cf   :  { %202 = vst.msk [vmem:[%s364_s7] sm:$0xff] %vm43_vm1, %v200_v1  ;;  %v192_v3 = vmul.f32 %v212_v60, %v183_v2 }
 0x2d1   :  { %v201_v4 = vadd.f32 %v213_v62, %v192_v3 }
 0x2d3   :  { %203 = vst.msk [vmem:[%s364_s7 + $0x8] sm:$0xff] %vm43_vm1, %v201_v4 }

// kernel: two_way_transformer_forward.9
= control target key start
LH: loop header
LB: loop body
LE: loop exit
PB: predicated region body
PF: predicated region fallthrough
CT: control target
= control target key end

     0   :  { %s1378_s21 = smov 0   ;;  %s1380_s22 = smov 0   ;;  %s1550_s0 = inlined_call_operand.vmem [shape: f32[2,8,32], index: 0, kind: input, shape index: {}]   ;;  %s1551_s1 = inlined_call_operand.vmem [shape: bf16[2,8,32], index: 1, kind: input, shape index: {}]   ;;  %s1552_s2 = inlined_call_operand.vmem [shape: f32[32,32], index: 2, kind: input, shape index: {}]   ;;  %s1553_s3 = inlined_call_operand.vmem [shape: f32[1,32], index: 3, kind: input, shape index: {}]   ;;  %s1554_s4 = inlined_call_operand.vmem [shape: f32[32,32], index: 4, kind: input, shape index: {}]   ;;  %s1555_s5 = inlined_call_operand.vmem [shape: f32[1,32], index: 5, kind: input, shape index: {}]   ;;  %s1556_s6 = inlined_call_operand.vmem [shape: f32[32,32], index: 6, kind: input, shape index: {}]   ;;  %s1557_s7 = inlined_call_operand.vmem [shape: f32[1,32], index: 7, kind: input, shape index: {}]   ;;  %s1558_s8 = inlined_call_operand.vmem [shape: f32[32,32], index: 8, kind: input, shape index: {}]   ;;  %s1559_s9 = inlined_call_operand.vmem [shape: f32[1,32], index: 9, kind: input, shape index: {}]   ;;  %s1560_s10 = inlined_call_operand.vmem [shape: f32[1,32], index: 10, kind: input, shape index: {}]   ;;  %s1561_s11 = inlined_call_operand.vmem [shape: f32[1,32], index: 11, kind: input, shape index: {}]   ;;  %s1562_s12 = inlined_call_operand.vmem [shape: f32[2,8,32], index: 12, kind: output, shape index: {}]  }
   0x1   :  { %s1382_s23 = smov 0  }
   0x2 LB: > { %s41_s24 = sadd.s32 1, %s1300_s22  ;;  %p1138_p0 = scmp.ge.s32.totalorder %s1304_s23, 1  ;;  %s1304_s23 = sphi %s1382_s23, %s22_s23   ;;  %s1300_s22 = sphi %s1380_s22, %s1564_s22   ;;  %s1296_s21 = sphi %s1378_s21, %s1563_s21  }
   0x3   : > { %p43_p1 = scmp.ge.s32.totalorder %s41_s24, 2  ;;  %p401_p2 = scmp.lt.s32.totalorder %s1304_s23, 3 }
   0x5   : > { %s1566_s24 = smov (%p43_p1, %s41_s24), 0  ;;  %p402_p3 = pnand %p1138_p0, %p401_p2 }
   0x6   : > { %p454_p4 = scmp.lt.s32.totalorder (!%p402_p3), %s1296_s21, 1  ;;  %s1308_s25 = smov (!%p402_p3), 112  }
   0x7   : > { %405 = sbr.rel (%p402_p3) target bundleno = 1669 (0x685), region = 68  ;;  %s1312_s19 = smov (!%p402_p3), 16  }
   0xc   : > { %v483_v0 = vld [vmem:[%s1552_s2 + $0x10] sm:$0xff]  ;;  %v484_v1 = vld [vmem:[%s1552_s2 + $0x18] sm:$0xff]  ;;  %v1306_v3 = vmov 0.0   ;;  %v481_v6 = vld [vmem:[%s1552_s2] sm:$0xff]  ;;  %vm495_vm0 = vcmask 261120   ;;  %vm1307_vm1 = vmmov 0  }
   0xd   : > { %v549_v2 = vld [vmem:[%s1554_s4 + $0x10] sm:$0xff]  ;;  %1179 = vmatprep.subr.bf16.mxu0 %v1306_v3  ;;  %1187 = vmatprep.subr.bf16.mxu1 %v1306_v3  ;;  %v487_v4 = vpack.c.bf16 %v484_v1, %v483_v0  ;;  %v550_v5 = vld [vmem:[%s1554_s4 + $0x18] sm:$0xff]  ;;  %v482_v7 = vld [vmem:[%s1552_s2 + $0x8] sm:$0xff]  ;;  %s1568_s21 = smov (!%p454_p4, %s1296_s21), 1  ;;  %545 = vst.msk [vmem:[#allocation5] sm:$0xff] %vm495_vm0, %v1306_v3  ;;  %vm540_vm2 = vcmask 257024  }
   0xe   : > { %v552_v8 = vpack.c.bf16 %v550_v5, %v549_v2  ;;  %v547_v9 = vld [vmem:[%s1554_s4] sm:$0xff]  ;;  %v548_v10 = vld [vmem:[%s1554_s4 + $0x8] sm:$0xff]  ;;  %1183 = vmatprep.mubr.msk.bf16.mxu0 %vm1307_vm1, %v1306_v3  ;;  %1191 = vmatprep.mubr.msk.bf16.mxu1 %vm1307_vm1, %v1306_v3  ;;  %v486_v11 = vpack.c.bf16 %v482_v7, %v481_v6  ;;  %s1139_s27 = sshll.u32 %s1568_s21, 3  ;;  %s1140_s28 = sshll.u32 %s1568_s21, 2  ;;  %vm660_vm3 = vcmask 130048   ;;  %v607_v33 = vld [vmem:[%s1556_s6 + $0x10] sm:$0xff] }
   0xf   : > { %1180 = vmatpush3.bf16.msra.mxu0 %v487_v4  ;;  %v551_v12 = vpack.c.bf16 %v548_v10, %v547_v9  ;;  %s460_s13 = scalar_lea.vmem %s1550_s0, %s1139_s27  ;;  %s467_s16 = scalar_lea.vmem %s1551_s1, %s1140_s28  ;;  %v1142_v16 = vld [vmem:[%s1553_s3] ss:$0 sm:$0xff]  ;;  %v608_v34 = vld [vmem:[%s1556_s6 + $0x18] sm:$0xff]  ;;  %v606_v37 = vld [vmem:[%s1556_s6 + $0x8] sm:$0xff]  ;;  %vm542_vm4 = vcmask 15360   ;;  %v1309_v42 = vmov -inf  }
  0x10   : > { %1188 = vmatpush3.bf16.msra.mxu1 %v552_v8  ;;  %1181 = vmatprep.subr.bf16.mxu0 %v1306_v3  ;;  %v480_v13 = vld [vmem:[%s460_s13] sm:$0xff]  ;;  %v610_v36 = vpack.c.bf16 %v608_v34, %v607_v33  ;;  %543 = vst.msk [vmem:[#allocation3] sm:$0xff] %vm542_vm4, %v1309_v42  ;;  %544 = vst.msk [vmem:[#allocation4] sm:$0xff] %vm542_vm4, %v1306_v3  ;;  %vm708_vm5 = vcmask 64512   ;;  %v1310_v48 = vmov 0   ;;  %vm743_vm6 = vcmask 1043456   ;;  %s474_s28 = scalar_lea.vmem %s1562_s12, %s1139_s27 }
  0x11   : > { %1189 = vmatprep.subr.bf16.mxu1 %v1306_v3  ;;  %v485_v14 = vpack.c.bf16 %v480_v13, %v480_v13  ;;  %v546_v15 = vld [vmem:[%s467_s16] sm:$0xf]  ;;  %1266 = vset.pattern.permute.xlu0 %v1310_v48  ;;  %v1311_v62 = vmov 1   ;;  %vm730_vm7 = vcmask 7168   ;;  %vm866_vm8 = vcmask 15368   ;;  %v956_v48 = vld [vmem:[%s1558_s8 + $0x10] sm:$0xff] }
  0x12   : > { %v1144_v17 = vld [vmem:[%s1555_s5] ss:$0 sm:$0xff]  ;;  %1267 = vset.pattern.permute.xlu1 %v1311_v62  ;;  %vm930_vm9 = vcmask 261248  }
  0x13   : > { %1182 = vmatpush3.bf16.msra.mxu0 %v486_v11  ;;  %v605_v35 = vld [vmem:[%s1556_s6] sm:$0xff] }
  0x14   : > { %1190 = vmatpush3.bf16.msra.mxu1 %v551_v12  ;;  %1195 = vmatprep.subr.bf16.mxu0 %v1306_v3  ;;  %v609_v38 = vpack.c.bf16 %v606_v37, %v605_v35  ;;  %v1146_v49 = vld [vmem:[%s1557_s7] ss:$0 sm:$0xff] }
  0x15   : > { %1203 = vmatprep.subr.bf16.mxu1 %v1306_v3 }
  0x16   : > { %1184 = vmatmul.mubr.msk.bf16.vlgmr.msra.gmra.mxu0 %vm495_vm0, %v485_v14 }
  0x17   : > { %1192 = vmatmul.mubr.msk.bf16.vlgmr.msra.gmra.mxu1 %vm495_vm0, %v546_v15  ;;  %1199 = vmatprep.mubr.msk.bf16.mxu0 %vm1307_vm1, %v1306_v3  ;;  %v707_v63 = vld [vmem:[#allocation3] sm:$0xff] }
  0x18   : > { %1205 = vmatprep.mubr.msk.bf16.mxu1 %vm1307_vm1, %v1306_v3  ;;  %1196 = vmatpush3.bf16.msra.mxu0 %v610_v36 }
  0x19   : > { %1197 = vmatprep.subr.bf16.mxu0 %v1306_v3 }
  0x1c   : > { %1198 = vmatpush3.bf16.msra.mxu0 %v609_v38 }
  0x1d   : > { %1209 = vmatprep.subr.bf16.mxu0 %v1306_v3 }
  0x1f   : > { %1200 = vmatmul.mubr.msk.bf16.vlgmr.msra.gmra.mxu0 %vm495_vm0, %v546_v15 }
  0x20   : > { %1211 = vmatprep.mubr.msk.bf16.mxu0 %vm1307_vm1, %v1306_v3 }
  0xd6   : > { %v533_v18 = vpop.f32.mrf.mxu0 }
  0xd7   : > { %v534_v19 = vadd.f32 %v1142_v16, %v533_v18  ;;  %v598_v20 = vpop.f32.mrf.mxu1 }
  0xd8   : > { %v599_v21 = vadd.f32 %v1144_v17, %v598_v20  ;;  %v1185_v22 = vpop.f32.mrf.mxu0 }
  0xd9   : > { %v539_v23 = vpack.c.bf16 %v534_v19, %v534_v19  ;;  %v1193_v24 = vpop.f32.mrf.mxu1 }
  0xda   : > { %v604_v25 = vpack.c.bf16 %v599_v21, %v599_v21  ;;  %v536_v26 = vpop.f32.mrf.mxu0 }
  0xdb   : > { %541 = vst.msk [vmem:[#allocation2] sm:$0xf] %vm540_vm2, %v539_v23  ;;  %v601_v27 = vpop.f32.mrf.mxu1  ;;  %v724_v26 = vld [vmem:[#allocation4] sm:$0xff] }
  0xdc   : > { %v665_v28 = vsel %vm660_vm3, %v604_v25, 0  ;;  %796 = vrot.lane.b32.xlu0 %v604_v25, %s1308_s25  ;;  %v1186_v29 = vpop.f32.mrf.mxu0 }
  0xdd   : > { %v1194_v30 = vpop.f32.mrf.mxu1  ;;  %1204 = vmatpush3.bf16.xpose.msra.mxu1 %v665_v28 }
  0xde   : > { %1215 = vmatprep.subr.bf16.mxu1 %v1306_v3  ;;  %v732_v30 = vld [vmem:[#allocation5] sm:$0xff] }
  0xdf   : > { %v652_v50 = vpop.f32.mrf.mxu0 }
  0xe0   : > { %v653_v51 = vadd.f32 %v1146_v49, %v652_v50  ;;  %v957_v49 = vld [vmem:[%s1558_s8 + $0x18] sm:$0xff]  ;;  %v954_v50 = vld [vmem:[%s1558_s8] sm:$0xff] }
  0xe1   : > { %v1201_v52 = vpop.f32.mrf.mxu0 }
  0xe2   : > { %v659_v31 = vld [vmem:[#allocation2] sm:$0xf]  ;;  %v658_v53 = vpack.c.bf16 %v653_v51, %v653_v51  ;;  %v960_v51 = vpack.c.bf16 %v957_v49, %v956_v48  ;;  %v955_v52 = vld [vmem:[%s1558_s8 + $0x8] sm:$0xff] }
  0xe3   : > { %v1150_v32 = vcombine.low %v659_v31, %v659_v31  ;;  %v655_v54 = vpop.f32.mrf.mxu0 }
  0xe4   : > { %1206 = vmatmul.mubr.msk.bf16.vlgmr.msra.gmra.mxu1 %vm660_vm3, %v659_v31  ;;  %v745_v55 = vsel %vm743_vm6, %v658_v53, 0 }
  0xe5   : > { %793 = vrot.lane.b32.xlu0 %v1150_v32, %s1308_s25  ;;  %1217 = vmatprep.mubr.msk.bf16.mxu1 %vm1307_vm1, %v1306_v3  ;;  %v1202_v56 = vpop.f32.mrf.mxu0 }
  0xe6   : > { %1210 = vmatpush3.bf16.msra.mxu0 %v745_v55 }
  0xe7   : > { %1221 = vmatprep.subr.bf16.mxu0 %v1306_v3 }
 0x14e   : > { %v797_v39 = vpop.permute.xlu0 %796 }
 0x14f   : > { %v802_v40 = vsel %vm660_vm3, %v797_v39, 0 }
 0x150   : > { %1216 = vmatpush3.bf16.xpose.msra.mxu1 %v802_v40 }
 0x151   : > { %1227 = vmatprep.subr.bf16.mxu1 %v1306_v3 }
 0x157   : > { %v794_v41 = vpop.permute.xlu0 %793 }
 0x158   : > { %1218 = vmatmul.mubr.msk.bf16.vlgmr.msra.gmra.mxu1 %vm660_vm3, %v794_v41 }
 0x159   : > { %1231 = vmatprep.mubr.msk.bf16.mxu1 %vm1307_vm1, %v1306_v3  ;;  %1228 = vmatpush3.bf16.msra.mxu1 %v960_v51 }
 0x15a   : > { %1229 = vmatprep.subr.bf16.mxu1 %v1306_v3 }
 0x1a4   : > { %v701_v43 = vpop.f32.mrf.mxu1 }
 0x1a5   : > { %v709_v44 = vsel %vm708_vm5, %v701_v43, -inf }
 0x1a6   : > { %710 = vmax.xlane.f32.xlu1 %v709_v44  ;;  %v1207_v45 = vpop.f32.mrf.mxu1 }
 0x1a8   : > { %v704_v46 = vpop.f32.mrf.mxu1 }
 0x1aa   : > { %v1208_v47 = vpop.f32.mrf.mxu1 }
 0x218   : > { %v838_v57 = vpop.f32.mrf.mxu1 }
 0x219   : > { %v845_v58 = vsel %vm708_vm5, %v838_v57, -inf }
 0x21a   : > { %846 = vmax.xlane.f32.xlu1 %v845_v58  ;;  %v1219_v59 = vpop.f32.mrf.mxu1 }
 0x21c   : > { %v841_v60 = vpop.f32.mrf.mxu1 }
 0x21e   : > { %v1220_v61 = vpop.f32.mrf.mxu1 }
 0x22f   : > { %v711_v0 = vpop.xlane.xlu1 %710 }
 0x230   : > { %v712_v1 = vmax.f32 %v707_v63, %v711_v0 }
 0x232   : > { %v713_v2 = vsub.f32 %v707_v63, %v712_v1  ;;  %789 = vst.msk [vmem:[#allocation3] sm:$0xff] %vm730_vm7, %v712_v1  ;;  %718 = vperm.xlu0 %1266, %v712_v1  }
 0x234   : > { %v714_v16 = vmul.f32 1.442695, %v713_v2 }
 0x236   : > { %877 = vrot.lane.b32.xlu0 %v658_v53, %s1308_s25  ;;  %v959_v53 = vpack.c.bf16 %v955_v52, %v954_v50 }
 0x238   : > { %1230 = vmatpush3.bf16.msra.mxu1 %v959_v53 }
 0x239   : > { %v844_v4 = vld [vmem:[#allocation3] sm:$0xff] }
 0x2a3   : > { %v847_v5 = vpop.xlane.xlu1 %846 }
 0x2a4   : > { %v848_v6 = vmax.f32 %v844_v4, %v847_v5 }
 0x2a6   : > { %v849_v7 = vsub.f32 %v844_v4, %v848_v6  ;;  %932 = vst.msk [vmem:[#allocation3] sm:$0xff] %vm866_vm8, %v848_v6  ;;  %854 = vperm.xlu1 %1267, %v848_v6  }
 0x2a8   : > { %v850_v22 = vmul.f32 1.442695, %v849_v7 }
 0x2ad   : > { %v719_v8 = vpop.permute.xlu0 %718 }
 0x2ae   : > { %v721_v9 = vsub.f32 %v701_v43, %v719_v8 }
 0x2b0   : > { %v722_v10 = vmul.f32 1.442695, %v721_v9 }
 0x2b1   : > { %v878_v11 = vpop.permute.xlu0 %877 }
 0x2b2   : > { %1270 = vpow2.f32 %v722_v10  ;;  %v883_v15 = vsel %vm743_vm6, %v878_v11, 0 }
 0x2b3   : > { %1272 = vpow2.f32 %v714_v16 }
 0x2bf   : > { %v1271_v12 = vpop.eup %1270 }
 0x2c0   : > { %v726_v13 = vsel %vm708_vm5, %v1271_v12, 0.0  ;;  %v739_v14 = vpack.c.bf16 %v1271_v12, %v1271_v12  ;;  %v1273_v17 = vpop.eup %1272 }
 0x2c1   : > { %727 = vadd.xlane.f32.xlu0 %v726_v13  ;;  %v725_v27 = vmul.f32 %v1273_v17, %v724_v26 }
 0x2c2   : > { %1212 = vmatmul.mubr.msk.bf16.vlgmr.msra.gmra.mxu0 %vm708_vm5, %v739_v14 }
 0x2c3   : > { %1222 = vmatpush3.bf16.msra.mxu0 %v883_v15  ;;  %1223 = vmatprep.mubr.msk.bf16.mxu0 %vm1307_vm1, %v1306_v3  ;;  %v1153_v3 = vld [vmem:[%s1559_s9] ss:$0 sm:$0xff] }
 0x2d7   : > { %735 = vperm.xlu0 %1266, %v1273_v17  }
 0x321   : > { %v855_v18 = vpop.permute.xlu1 %854 }
 0x322   : > { %v857_v19 = vsub.f32 %v838_v57, %v855_v18 }
 0x324   : > { %v858_v20 = vmul.f32 1.442695, %v857_v19  ;;  %v1155_v19 = vld [vmem:[%s1560_s10] ss:$0 sm:$0xff] }
 0x326   : > { %1274 = vpow2.f32 %v858_v20 }
 0x327   : > { %1276 = vpow2.f32 %v850_v22 }
 0x333   : > { %v1275_v21 = vpop.eup %1274 }
 0x334   : > { %v862_v23 = vsel %vm708_vm5, %v1275_v21, 0.0  ;;  %v875_v24 = vpack.c.bf16 %v1275_v21, %v1275_v21  ;;  %v1277_v25 = vpop.eup %1276  ;;  %v1156_v21 = vld [vmem:[%s1561_s11] ss:$0 sm:$0xff] }
 0x335   : > { %863 = vadd.xlane.f32.xlu1 %v862_v23 }
 0x336   : > { %1224 = vmatmul.mubr.msk.bf16.vlgmr.msra.gmra.mxu0 %vm708_vm5, %v875_v24 }
 0x346   : > { %871 = vperm.xlu1 %1267, %v1277_v25  }
 0x34a   : > { %v728_v28 = vpop.xlane.xlu0 %727 }
 0x34b   : > { %v729_v29 = vadd.f32 %v728_v28, %v725_v27 }
 0x34d   : > { %731 = vst.msk [vmem:[#allocation4] sm:$0xff] %vm730_vm7, %v729_v29 }
 0x352   : > { %v736_v31 = vpop.permute.xlu0 %735 }
 0x353   : > { %v738_v32 = vmul.f32 %v736_v31, %v732_v30 }
 0x354   : > { %v860_v38 = vld [vmem:[#allocation4] sm:$0xff] }
 0x355   : > { %v861_v39 = vmul.f32 %v1277_v25, %v860_v38 }
 0x382   : > { %v781_v33 = vpop.f32.mrf.mxu0 }
 0x383   : > { %v787_v34 = vadd.f32 %v781_v33, %v738_v32 }
 0x384   : > { %v1213_v35 = vpop.f32.mrf.mxu0 }
 0x385   : > { %788 = vst.msk [vmem:[#allocation5] sm:$0xff] %vm660_vm3, %v787_v34 }
 0x386   : > { %v784_v36 = vpop.f32.mrf.mxu0 }
 0x388   : > { %v1214_v37 = vpop.f32.mrf.mxu0 }
 0x38c   : > { %v868_v55 = vld [vmem:[#allocation5] sm:$0xff] }
 0x3be   : > { %v864_v40 = vpop.xlane.xlu1 %863 }
 0x3bf   : > { %v865_v41 = vadd.f32 %v864_v40, %v861_v39 }
 0x3c1   : > { %867 = vst.msk [vmem:[#allocation4] sm:$0xff] %vm866_vm8, %v865_v41 }
 0x3c2   : > { %v872_v54 = vpop.permute.xlu1 %871 }
 0x3c3   : > { %v874_v56 = vmul.f32 %v872_v54, %v868_v55 }
 0x3c8   : > { %v936_v42 = vld [vmem:[#allocation4] sm:$0xff] }
 0x3c9   : > { %1278 = vrcp.f32 %v936_v42 }
 0x3d6   : > { %v1279_v43 = vpop.eup %1278 }
 0x3d7   : > { %948 = vperm.xlu1 %1267, %v1279_v43  }
 0x3f6   : > { %v919_v44 = vpop.f32.mrf.mxu0 }
 0x3f7   : > { %926 = vrot.lane.b32.xlu0 %v919_v44, %s1312_s19 }
 0x3f8   : > { %v1225_v45 = vpop.f32.mrf.mxu0 }
 0x3fa   : > { %v922_v46 = vpop.f32.mrf.mxu0 }
 0x3fb   : > { %941 = vperm.xlu0 %1266, %v1279_v43  }
 0x3fc   : > { %v1226_v47 = vpop.f32.mrf.mxu0 }
 0x3ff   : > { %1268 = vset.pattern.permute.xlu0 %v1311_v62 }
 0x452   : > { %v949_v62 = vpop.permute.xlu1 %948 }
 0x469   : > { %v927_v57 = vpop.permute.xlu0 %926 }
 0x46a   : > { %v929_v58 = vadd.f32 %v927_v57, %v874_v56 }
 0x46c   : > { %931 = vst.msk [vmem:[#allocation5] sm:$0xff] %vm930_vm9, %v929_v58 }
 0x473   : > { %v938_v59 = vld [vmem:[#allocation5] sm:$0xff] }
 0x476   : > { %v942_v60 = vpop.permute.xlu0 %941 }
 0x477   : > { %v944_v61 = vmul.f32 %v942_v60, %v938_v59 }
 0x479   : > { %945 = vst.msk [vmem:[#allocation5] sm:$0xff] %vm660_vm3, %v944_v61 }
 0x480   : > { %v946_v63 = vld [vmem:[#allocation5] sm:$0xff] }
 0x481   : > { %v951_v0 = vmul.f32 %v949_v62, %v946_v63 }
 0x483   : > { %952 = vst.msk [vmem:[#allocation5] sm:$0xff] %vm930_vm9, %v951_v0 }
 0x48a   : > { %v953_v1 = vld [vmem:[#allocation5] sm:$0xff] }
 0x48b   : > { %v958_v2 = vpack.c.bf16 %v953_v1, %v953_v1 }
 0x48d   : > { %1232 = vmatmul.mubr.msk.bf16.vlgmr.msra.gmra.mxu1 %vm495_vm0, %v958_v2 }
 0x54d   : > { %v1005_v4 = vpop.f32.mrf.mxu1 }
 0x54e   : > { %v1006_v5 = vadd.f32 %v1153_v3, %v1005_v4 }
 0x54f   : > { %v1233_v6 = vpop.f32.mrf.mxu1 }
 0x550   : > { %v1011_v7 = vsel %vm495_vm0, %v1006_v5, 0.0 }
 0x551   : > { %1012 = vadd.xlane.f32.xlu0 %v1011_v7  ;;  %v1008_v8 = vpop.f32.mrf.mxu1 }
 0x553   : > { %v1234_v9 = vpop.f32.mrf.mxu1 }
 0x5da   : > { %v1013_v10 = vpop.xlane.xlu0 %1012 }
 0x5db   : > { %v1015_v11 = vmul.f32 0.03125, %v1013_v10 }
 0x5dd   : > { %v1016_v12 = vsub.f32 %v1006_v5, %v1015_v11 }
 0x5df   : > { %v1017_v13 = vmul.f32 %v1016_v12, %v1016_v12 }
 0x5e1   : > { %v1018_v14 = vsel %vm495_vm0, %v1017_v13, 0.0 }
 0x5e2   : > { %1019 = vadd.xlane.f32.xlu1 %v1018_v14 }
 0x66b   : > { %v1020_v15 = vpop.xlane.xlu1 %1019 }
 0x66c   : > { %v1021_v16 = vmul.f32 0.03125, %v1020_v15 }
 0x66e   : > { %v1022_v17 = vadd.f32 1e-05, %v1021_v16 }
 0x670   : > { %1280 = vrsqrt.f32 %v1022_v17 }
 0x67d   : > { %v1281_v18 = vpop.eup %1280 }
 0x67e   : > { %v1024_v20 = vmul.f32 %v1281_v18, %v1016_v12 }
 0x680   : > { %v1032_v22 = vmul.f32 %v1155_v19, %v1024_v20 }
 0x682   : > { %v1040_v23 = vadd.f32 %v1156_v21, %v1032_v22 }
 0x684   : > { %1041 = vst.msk [vmem:[%s474_s28] sm:$0xff] %vm495_vm0, %v1040_v23 }
 0x685 PF: > { %s22_s23 = sadd.s32 1, %s1304_s23   ;;  %s1563_s21 = smov %s1300_s22 }
 0x686   : > { %p19_p5 = scmp.ge.s32.totalorder %s22_s23, 4   ;;  %s1564_s22 = smov %s1566_s24 }
 0x688   :  { %21 = sbr.rel (!%p19_p5) target bundleno = 2 (0x2), region = 109 }

// kernel: two_way_transformer_forward.10
= control target key start
LH: loop header
LB: loop body
LE: loop exit
PB: predicated region body
PF: predicated region fallthrough
CT: control target
= control target key end

     0   :  { %s1799_s29 = smov 0   ;;  %s1801_s30 = smov 0   ;;  %s2043_s0 = inlined_call_operand.vmem [shape: f32[2,8,32], index: 0, kind: input, shape index: {}]   ;;  %s2044_s1 = inlined_call_operand.vmem [shape: f32[2,8,32], index: 1, kind: input, shape index: {}]   ;;  %s2045_s2 = inlined_call_operand.vmem [shape: bf16[2,64,32], index: 2, kind: input, shape index: {}]   ;;  %s2046_s3 = inlined_call_operand.vmem [shape: bf16[2,64,32], index: 3, kind: input, shape index: {}]   ;;  %s2047_s4 = inlined_call_operand.vmem [shape: f32[32,16], index: 4, kind: input, shape index: {}]   ;;  %s2048_s5 = inlined_call_operand.vmem [shape: f32[1,16], index: 5, kind: input, shape index: {}]   ;;  %s2049_s6 = inlined_call_operand.vmem [shape: f32[32,16], index: 6, kind: input, shape index: {}]   ;;  %s2050_s7 = inlined_call_operand.vmem [shape: f32[1,16], index: 7, kind: input, shape index: {}]   ;;  %s2051_s8 = inlined_call_operand.vmem [shape: f32[32,16], index: 8, kind: input, shape index: {}]   ;;  %s2052_s9 = inlined_call_operand.vmem [shape: f32[1,16], index: 9, kind: input, shape index: {}]   ;;  %s2053_s10 = inlined_call_operand.vmem [shape: f32[16,32], index: 10, kind: input, shape index: {}]   ;;  %s2054_s11 = inlined_call_operand.vmem [shape: f32[1,32], index: 11, kind: input, shape index: {}]   ;;  %s2055_s12 = inlined_call_operand.vmem [shape: f32[1,32], index: 12, kind: input, shape index: {}]   ;;  %s2056_s13 = inlined_call_operand.vmem [shape: f32[1,32], index: 13, kind: input, shape index: {}]   ;;  %s2057_s14 = inlined_call_operand.vmem [shape: f32[2,8,32], index: 14, kind: output, shape index: {}]  }
   0x1   :  { %s1803_s15 = smov 0  }
   0x2 LB: > { %s43_s16 = sadd.s32 1, %s1711_s30  ;;  %p1476_p0 = scmp.ge.s32.totalorder %s1715_s15, 1  ;;  %s1715_s15 = sphi %s1803_s15, %s24_s15   ;;  %s1711_s30 = sphi %s1801_s30, %s2059_s30   ;;  %s1707_s29 = sphi %s1799_s29, %s2058_s29  }
   0x3   : > { %p45_p1 = scmp.ge.s32.totalorder %s43_s16, 2  ;;  %p485_p2 = scmp.lt.s32.totalorder %s1715_s15, 3 }
   0x5   : > { %s2061_s16 = smov (%p45_p1, %s43_s16), 0  ;;  %p486_p3 = pnand %p1476_p0, %p485_p2 }
   0x6   : > { %p560_p4 = scmp.lt.s32.totalorder (!%p486_p3), %s1707_s29, 1  ;;  %s1719_s27 = smov (!%p486_p3), 120  }
   0x7   : > { %489 = sbr.rel (%p486_p3) target bundleno = 2101 (0x835), region = 76  ;;  %s1723_s26 = smov (!%p486_p3), 8  }
   0xc   : > { %v701_v0 = vld [vmem:[%s2049_s6 + $0x10] sm:$0xff]  ;;  %v702_v1 = vld [vmem:[%s2049_s6 + $0x18] sm:$0xff]  ;;  %v699_v2 = vld [vmem:[%s2049_s6] sm:$0xff]  ;;  %v1717_v5 = vmov 0.0   ;;  %s2063_s29 = smov (!%p560_p4, %s1707_s29), 1  ;;  %vm1718_vm0 = vmmov 0  }
   0xd   : > { %v704_v3 = vpack.c.bf16 %v702_v1, %v701_v0  ;;  %v700_v4 = vld [vmem:[%s2049_s6 + $0x8] sm:$0xff]  ;;  %1554 = vmatprep.subr.bf16.mxu0 %v1717_v5  ;;  %v611_v6 = vld [vmem:[%s2047_s4 + $0x10] sm:$0xff]  ;;  %v612_v7 = vld [vmem:[%s2047_s4 + $0x18] sm:$0xff]  ;;  %1558 = vmatprep.mubr.msk.bf16.mxu0 %vm1718_vm0, %v1717_v5  ;;  %s1515_s21 = sshll.u32 %s2063_s29, 5  ;;  %s1844_s22 = sshll.u32 %s2063_s29, 3  ;;  %vm623_vm1 = vcmask 261120  }
   0xe   : > { %v703_v8 = vpack.c.bf16 %v700_v4, %v699_v2  ;;  %v615_v9 = vpack.c.bf16 %v612_v7, %v611_v6  ;;  %v609_v10 = vld [vmem:[%s2047_s4] sm:$0xff]  ;;  %v610_v11 = vld [vmem:[%s2047_s4 + $0x8] sm:$0xff]  ;;  %s582_s25 = scalar_lea.vmem %s2045_s2, %s1515_s21  ;;  %s1852_s28 = scalar_lea.vmem %s2046_s3, %s1515_s21  ;;  %vm668_vm2 = vcmask 125952   ;;  %vm929_vm3 = vcmask 64512  }
   0xf   : > { %1562 = vmatprep.subr.bf16.mxu1 %v704_v3  ;;  %v614_v12 = vpack.c.bf16 %v610_v11, %v609_v10  ;;  %v675_v13 = vld [vmem:[%s582_s25] sm:$0xf]  ;;  %v676_v14 = vld [vmem:[%s582_s25 + $0x4] sm:$0xf]  ;;  %v1857_v18 = vld [vmem:[%s582_s25 + $0x8] sm:$0xf]  ;;  %s566_s18 = scalar_lea.vmem %s2043_s0, %s1844_s22  ;;  %s573_s21 = scalar_lea.vmem %s2044_s1, %s1844_s22 }
  0x10   : > { %1563 = vmatpush3.bf16.msra.mxu1 %v704_v3  ;;  %1555 = vmatpush3.bf16.msra.mxu0 %v615_v9  ;;  %v683_v15 = vld [vmem:[%s1852_s28] sm:$0xf]  ;;  %v684_v16 = vld [vmem:[%s1852_s28 + $0x4] sm:$0xf]  ;;  %v1859_v19 = vld [vmem:[%s582_s25 + $0xc] sm:$0xf]  ;;  %v1496_v42 = vcombine.low %v675_v13, %v676_v14 }
  0x11   : > { %1564 = vmatprep.subr.bf16.mxu1 %v703_v8  ;;  %1556 = vmatprep.subr.bf16.mxu0 %v1717_v5  ;;  %v691_v17 = vadd.bf16 %v683_v15, %v675_v13  ;;  %v692_v20 = vadd.bf16 %v684_v16, %v676_v14  ;;  %v685_v21 = vld [vmem:[%s1852_s28 + $0x8] sm:$0xf]  ;;  %v686_v22 = vld [vmem:[%s1852_s28 + $0xc] sm:$0xf]  ;;  %v1497_v23 = vcombine.low %v1857_v18, %v1859_v19  ;;  %v1865_v24 = vld [vmem:[%s582_s25 + $0x10] sm:$0xf] }
  0x12   : > { %v693_v25 = vadd.bf16 %v685_v21, %v1857_v18  ;;  %v694_v26 = vadd.bf16 %v686_v22, %v1859_v19  ;;  %v1877_v27 = vld [vmem:[%s582_s25 + $0x14] sm:$0xf]  ;;  %v687_v28 = vld [vmem:[%s1852_s28 + $0x10] sm:$0xf]  ;;  %v1884_v33 = vld [vmem:[%s582_s25 + $0x18] sm:$0xf] }
  0x13   : > { %v688_v29 = vld [vmem:[%s1852_s28 + $0x14] sm:$0xf]  ;;  %v1487_v30 = vcombine.low %v691_v17, %v692_v20  ;;  %v695_v31 = vadd.bf16 %v687_v28, %v1865_v24  ;;  %v1886_v34 = vld [vmem:[%s582_s25 + $0x1c] sm:$0xf]  ;;  %v689_v35 = vld [vmem:[%s1852_s28 + $0x18] sm:$0xf] }
  0x14   : > { %1565 = vmatpush3.bf16.msra.mxu1 %v703_v8  ;;  %1557 = vmatpush3.bf16.msra.mxu0 %v614_v12  ;;  %v696_v32 = vadd.bf16 %v688_v29, %v1877_v27  ;;  %v1488_v36 = vcombine.low %v693_v25, %v694_v26  ;;  %v690_v37 = vld [vmem:[%s1852_s28 + $0x1c] sm:$0xf]  ;;  %v1890_v38 = vld [vmem:[%s566_s18] sm:$0xff]  ;;  %v697_v43 = vadd.bf16 %v689_v35, %v1884_v33  ;;  %v816_v20 = vld [vmem:[%s2051_s8 + $0x10] sm:$0xff]  ;;  %vm670_vm4 = vcmask 15360  }
  0x15   : > { %1586 = vmatprep.subr.bf16.mxu1 %v1717_v5  ;;  %v607_v39 = vld [vmem:[%s573_s21] sm:$0xff]  ;;  %1566 = vmatprep.mubr.msk.bf16.mxu1 %vm623_vm1, %v1487_v30  ;;  %v698_v44 = vadd.bf16 %v690_v37, %v1886_v34  ;;  %v817_v21 = vld [vmem:[%s2051_s8 + $0x18] sm:$0xff]  ;;  %v815_v26 = vld [vmem:[%s2051_s8 + $0x8] sm:$0xff]  ;;  %v1720_v28 = vmov -inf   ;;  %672 = vst.msk [vmem:[#allocation4] sm:$0xff] %vm670_vm4, %v1717_v5  ;;  %v1498_v30 = vcombine.low %v1865_v24, %v1877_v27  ;;  %vm986_vm5 = vcmask 523264  }
  0x16   : > { %v1489_v40 = vcombine.low %v695_v31, %v696_v32  ;;  %v608_v41 = vadd.f32 %v607_v39, %v1890_v38  ;;  %v1484_v48 = vld [vmem:[%s2048_s5] ss:$0 sm:$0xff]  ;;  %v819_v25 = vpack.c.bf16 %v817_v21, %v816_v20  ;;  %671 = vst.msk [vmem:[#allocation3] sm:$0xff] %vm670_vm4, %v1720_v28  ;;  %v1499_v31 = vcombine.low %v1884_v33, %v1886_v34 }
  0x17   : > { %1567 = vmatmul.mubr.msk.bf16.vlgmr.msra.gmra.mxu1 %vm623_vm1, %v1488_v36  ;;  %v1490_v46 = vcombine.low %v697_v43, %v698_v44  ;;  %v1486_v60 = vld [vmem:[%s2050_s7] ss:$0 sm:$0xff]  ;;  %v1721_v19 = vmov 0   ;;  %vm1008_vm6 = vcmask 7168   ;;  %v1722_v21 = vmov 1  }
  0x18   : > { %1570 = vmatprep.mubr.msk.bf16.mxu1 %vm623_vm1, %v1489_v40  ;;  %v613_v45 = vpack.c.bf16 %v608_v41, %v608_v41  ;;  %v814_v22 = vld [vmem:[%s2051_s8] sm:$0xff]  ;;  %1574 = vmatprep.subr.bf16.mxu0 %v819_v25  ;;  %vm1158_vm7 = vcmask 15368   ;;  %vm673_vm8 = vcmask 130048   ;;  %vm1232_vm9 = vcmask 130112  }
  0x19   : > { %v818_v29 = vpack.c.bf16 %v815_v26, %v814_v22  ;;  %1671 = vset.pattern.permute.xlu0 %v1721_v19  ;;  %v1495_v34 = vld [vmem:[%s2052_s9] ss:$0 sm:$0xff]  ;;  %1674 = vset.pattern.permute.xlu1 %v1722_v21  ;;  %674 = vst.msk [vmem:[#allocation5] sm:$0xff] %vm673_vm8, %v1717_v5 }
  0x1a   : > { %1559 = vmatmul.mubr.msk.bf16.vlgmr.msra.gmra.mxu0 %vm623_vm1, %v613_v45 }
  0x1b   : > { %1578 = vmatprep.mubr.msk.bf16.mxu0 %vm623_vm1, %v1496_v42  ;;  %1575 = vmatpush3.bf16.msra.mxu0 %v819_v25 }
  0x1c   : > { %1576 = vmatprep.subr.bf16.mxu0 %v818_v29 }
  0x1f   : > { %1571 = vmatmul.mubr.msk.bf16.gmra.mxu1 %vm623_vm1, %v1490_v46  ;;  %1577 = vmatpush3.bf16.msra.mxu0 %v818_v29 }
  0x20   : > { %1594 = vmatprep.mubr.msk.bf16.mxu1 %vm1718_vm0, %v1717_v5  ;;  %1598 = vmatprep.subr.bf16.mxu0 %v1717_v5 }
  0x22   : > { %1579 = vmatmul.mubr.msk.bf16.vlgmr.msra.gmra.mxu0 %vm623_vm1, %v1497_v23 }
  0x23   : > { %1582 = vmatprep.mubr.msk.bf16.mxu0 %vm623_vm1, %v1498_v30 }
  0x2a   : > { %1583 = vmatmul.mubr.msk.bf16.gmra.mxu0 %vm623_vm1, %v1499_v31 }
  0x2b   : > { %1606 = vmatprep.mubr.msk.bf16.mxu0 %vm1718_vm0, %v1717_v5 }
  0xd7   : > { %v1568_v47 = vpop.f32.mrf.mxu1 }
  0xd8   : > { %v788_v8 = vadd.f32 %v1568_v47, %v1486_v60 }
  0xd9   : > { %v779_v49 = vpop.f32.mrf.mxu1 }
  0xda   : > { %v661_v50 = vpop.f32.mrf.mxu0  ;;  %v780_v11 = vadd.f32 %v1486_v60, %v779_v49 }
  0xdb   : > { %v1569_v51 = vpop.f32.mrf.mxu1  ;;  %v662_v52 = vadd.f32 %v1484_v48, %v661_v50 }
  0xdc   : > { %v1560_v53 = vpop.f32.mrf.mxu0  ;;  %v791_v6 = vadd.f32 %v1569_v51, %v1486_v60 }
  0xdd   : > { %v782_v54 = vpop.f32.mrf.mxu1  ;;  %v667_v55 = vpack.c.bf16 %v662_v52, %v662_v52 }
  0xde   : > { %v664_v56 = vpop.f32.mrf.mxu0  ;;  %v811_v9 = vpack.c.bf16 %v791_v6, %v788_v8  ;;  %v783_v10 = vadd.f32 %v1486_v60, %v782_v54 }
  0xdf   : > { %v1572_v57 = vpop.f32.mrf.mxu1  ;;  %669 = vst.msk [vmem:[#allocation2] sm:$0xf] %vm668_vm2, %v667_v55  ;;  %v985_v55 = vld [vmem:[#allocation3] sm:$0xff] }
  0xe0   : > { %v1561_v58 = vpop.f32.mrf.mxu0  ;;  %v804_v62 = vadd.f32 %v1572_v57, %v1486_v60  ;;  %v810_v14 = vpack.c.bf16 %v783_v10, %v780_v11  ;;  %v937_v16 = vsel %vm929_vm3, %v811_v9, 0 }
  0xe1   : > { %v795_v59 = vpop.f32.mrf.mxu1 }
  0xe2   : > { %v796_v3 = vadd.f32 %v1486_v60, %v795_v59  ;;  %v934_v17 = vsel %vm929_vm3, %v810_v14, 0  ;;  %v1580_v23 = vpop.f32.mrf.mxu0 }
  0xe3   : > { %v1573_v61 = vpop.f32.mrf.mxu1  ;;  %v902_v48 = vadd.f32 %v1580_v23, %v1495_v34 }
  0xe4   : > { %v807_v63 = vadd.f32 %v1573_v61, %v1486_v60  ;;  %v893_v36 = vpop.f32.mrf.mxu0 }
  0xe5   : > { %v798_v0 = vpop.f32.mrf.mxu1  ;;  %v894_v51 = vadd.f32 %v1495_v34, %v893_v36 }
  0xe6   : > { %v799_v1 = vadd.f32 %v1486_v60, %v798_v0  ;;  %v813_v2 = vpack.c.bf16 %v807_v63, %v804_v62  ;;  %v928_v13 = vld [vmem:[#allocation2] sm:$0xf]  ;;  %v1581_v37 = vpop.f32.mrf.mxu0 }
  0xe7   : > { %v1506_v15 = vcombine.low %v928_v13, %v928_v13  ;;  %v905_v49 = vadd.f32 %v1581_v37, %v1495_v34 }
  0xe8   : > { %1079 = vrot.lane.b32.xlu1 %v813_v2, %s1719_s27  ;;  %v943_v4 = vsel %vm929_vm3, %v813_v2, 0  ;;  %v812_v7 = vpack.c.bf16 %v799_v1, %v796_v3  ;;  %v896_v33 = vpop.f32.mrf.mxu0 }
  0xe9   : > { %1587 = vmatpush3.bf16.xpose.msra.mxu1 %v943_v4  ;;  %v1960_v52 = vpack.c.bf16 %v905_v49, %v902_v48  ;;  %v897_v53 = vadd.f32 %v1495_v34, %v896_v33 }
  0xea   : > { %1588 = vmatprep.subr.bf16.mxu1 %v1717_v5  ;;  %v940_v12 = vsel %vm929_vm3, %v812_v7, 0  ;;  %v1584_v39 = vpop.f32.mrf.mxu0 }
  0xeb   : > { %v918_v41 = vadd.f32 %v1584_v39, %v1495_v34  ;;  %v924_v54 = vpack.c.bf16 %v897_v53, %v894_v51 }
  0xec   : > { %1077 = vrot.lane.b32.xlu1 %v812_v7, %s1719_s27  ;;  %v909_v40 = vpop.f32.mrf.mxu0 }
  0xed   : > { %v910_v43 = vadd.f32 %v1495_v34, %v909_v40 }
  0xee   : > { %v1585_v42 = vpop.f32.mrf.mxu0 }
  0xef   : > { %v921_v44 = vadd.f32 %v1585_v42, %v1495_v34 }
  0xf0   : > { %1075 = vrot.lane.b32.xlu1 %v811_v9, %s1719_s27  ;;  %v912_v45 = vpop.f32.mrf.mxu0 }
  0xf1   : > { %1589 = vmatpush3.bf16.xpose.msra.mxu1 %v940_v12  ;;  %v1956_v46 = vpack.c.bf16 %v921_v44, %v918_v41  ;;  %v913_v47 = vadd.f32 %v1495_v34, %v912_v45  ;;  %v1002_v41 = vld [vmem:[#allocation4] sm:$0xff]  ;;  %v1010_v45 = vld [vmem:[#allocation5] sm:$0xff] }
  0xf2   : > { %1590 = vmatprep.subr.bf16.mxu1 %v1717_v5 }
  0xf3   : > { %v926_v50 = vpack.c.bf16 %v913_v47, %v910_v43  ;;  %1599 = vmatpush3.bf16.msra.mxu0 %v1956_v46 }
  0xf4   : > { %1073 = vrot.lane.b32.xlu1 %v810_v14, %s1719_s27  ;;  %1600 = vmatprep.subr.bf16.mxu0 %v1717_v5 }
  0xf7   : > { %1601 = vmatpush3.bf16.msra.mxu0 %v926_v50 }
  0xf8   : > { %1067 = vrot.lane.b32.xlu1 %v1506_v15, %s1719_s27  ;;  %1602 = vmatprep.subr.bf16.mxu0 %v1717_v5 }
  0xf9   : > { %1591 = vmatpush3.bf16.xpose.msra.mxu1 %v937_v16 }
  0xfa   : > { %1592 = vmatprep.subr.bf16.mxu1 %v1717_v5 }
  0xfb   : > { %1603 = vmatpush3.bf16.msra.mxu0 %v1960_v52 }
  0xfc   : > { %1604 = vmatprep.subr.bf16.mxu0 %v1717_v5 }
  0xff   : > { %1605 = vmatpush3.bf16.msra.mxu0 %v924_v54 }
 0x100   : > { %1610 = vmatprep.subr.bf16.mxu0 %v1717_v5 }
 0x101   : > { %1593 = vmatpush3.bf16.xpose.msra.mxu1 %v934_v17 }
 0x102   : > { %1622 = vmatprep.subr.bf16.mxu1 %v1717_v5 }
 0x108   : > { %1595 = vmatmul.mubr.msk.bf16.vlgmr.msra.gmra.mxu1 %vm929_vm3, %v928_v13 }
 0x109   : > { %1630 = vmatprep.mubr.msk.bf16.mxu1 %vm1718_vm0, %v1717_v5 }
 0x15a   : > { %v1080_v63 = vpop.permute.xlu1 %1079 }
 0x15b   : > { %v1094_v1 = vsel %vm929_vm3, %v1080_v63, 0 }
 0x15e   : > { %v1078_v2 = vpop.permute.xlu1 %1077 }
 0x15f   : > { %v1091_v3 = vsel %vm929_vm3, %v1078_v2, 0 }
 0x162   : > { %v1076_v4 = vpop.permute.xlu1 %1075 }
 0x163   : > { %v1088_v6 = vsel %vm929_vm3, %v1076_v4, 0 }
 0x166   : > { %v1074_v7 = vpop.permute.xlu1 %1073 }
 0x167   : > { %v1085_v8 = vsel %vm929_vm3, %v1074_v7, 0 }
 0x16a   : > { %v1068_v9 = vpop.permute.xlu1 %1067 }
 0x1c8   : > { %v979_v32 = vpop.f32.mrf.mxu1 }
 0x1c9   : > { %v987_v24 = vsel %vm986_vm5, %v979_v32, -inf }
 0x1ca   : > { %988 = vmax.xlane.f32.xlu0 %v987_v24  ;;  %v1596_v27 = vpop.f32.mrf.mxu1 }
 0x1cc   : > { %v982_v35 = vpop.f32.mrf.mxu1 }
 0x1ce   : > { %v1597_v18 = vpop.f32.mrf.mxu1 }
 0x253   : > { %v989_v56 = vpop.xlane.xlu0 %988 }
 0x254   : > { %v990_v57 = vmax.f32 %v985_v55, %v989_v56 }
 0x256   : > { %v991_v58 = vsub.f32 %v985_v55, %v990_v57  ;;  %1063 = vst.msk [vmem:[#allocation3] sm:$0xff] %vm1008_vm6, %v990_v57  ;;  %996 = vperm.xlu0 %1671, %v990_v57   ;;  %v1256_v57 = vld [vmem:[%s2053_s10] sm:$0xff] }
 0x258   : > { %v992_v30 = vmul.f32 1.442695, %v991_v58  ;;  %v1257_v58 = vld [vmem:[%s2053_s10 + $0x8] sm:$0xff] }
 0x25a   : > { %1672 = vset.pattern.permute.xlu0 %v1722_v21 }
 0x25d   : > { %v1136_v22 = vld [vmem:[#allocation3] sm:$0xff] }
 0x2d1   : > { %v997_v59 = vpop.permute.xlu0 %996 }
 0x2d2   : > { %v999_v60 = vsub.f32 %v979_v32, %v997_v59  ;;  %v1259_v59 = vpack.c.bf16 %v1257_v58, %v1256_v57 }
 0x2d4   : > { %v1000_v61 = vmul.f32 1.442695, %v999_v60 }
 0x2d6   : > { %1681 = vpow2.f32 %v1000_v61 }
 0x2d7   : > { %1683 = vpow2.f32 %v992_v30 }
 0x2e3   : > { %v1682_v62 = vpop.eup %1681 }
 0x2e4   : > { %v1017_v0 = vpack.c.bf16 %v1682_v62, %v1682_v62  ;;  %v1004_v29 = vsel %vm986_vm5, %v1682_v62, 0.0  ;;  %v1684_v31 = vpop.eup %1683 }
 0x2e5   : > { %v1003_v42 = vmul.f32 %v1684_v31, %v1002_v41 }
 0x2e6   : > { %1607 = vmatmul.mubr.msk.bf16.vlgmr.msra.gmra.mxu0 %vm986_vm5, %v1017_v0 }
 0x2e7   : > { %1611 = vmatpush3.bf16.xpose.msra.mxu0 %v1094_v1  ;;  %1618 = vmatprep.mubr.msk.bf16.mxu0 %vm1718_vm0, %v1717_v5 }
 0x2e8   : > { %1612 = vmatprep.subr.bf16.mxu0 %v1717_v5 }
 0x2ef   : > { %1613 = vmatpush3.bf16.xpose.msra.mxu0 %v1091_v3 }
 0x2f0   : > { %1614 = vmatprep.subr.bf16.mxu0 %v1717_v5 }
 0x2f7   : > { %1615 = vmatpush3.bf16.xpose.msra.mxu0 %v1088_v6 }
 0x2f8   : > { %1616 = vmatprep.subr.bf16.mxu0 %v1717_v5 }
 0x2ff   : > { %1617 = vmatpush3.bf16.xpose.msra.mxu0 %v1085_v8 }
 0x306   : > { %1619 = vmatmul.mubr.msk.bf16.vlgmr.msra.gmra.mxu0 %vm929_vm3, %v1068_v9 }
 0x3a6   : > { %v1978_v10 = vpop.f32.mrf.mxu0 }
 0x3a8   : > { %v1608_v11 = vpop.f32.mrf.mxu0 }
 0x3aa   : > { %v1058_v12 = vpop.f32.mrf.mxu0 }
 0x3ac   : > { %v1609_v13 = vpop.f32.mrf.mxu0 }
 0x3c6   : > { %v1130_v14 = vpop.f32.mrf.mxu0 }
 0x3c7   : > { %v1137_v15 = vsel %vm986_vm5, %v1130_v14, -inf }
 0x3c8   : > { %1138 = vmax.xlane.f32.xlu1 %v1137_v15  ;;  %v1620_v16 = vpop.f32.mrf.mxu0 }
 0x3ca   : > { %v1133_v17 = vpop.f32.mrf.mxu0 }
 0x3cc   : > { %v1621_v20 = vpop.f32.mrf.mxu0 }
 0x3d9   : > { %1176 = vrot.lane.b32.xlu1 %v926_v50, %s1719_s27 }
 0x451   : > { %v1139_v25 = vpop.xlane.xlu1 %1138 }
 0x452   : > { %v1140_v26 = vmax.f32 %v1136_v22, %v1139_v25 }
 0x454   : > { %v1141_v28 = vsub.f32 %v1136_v22, %v1140_v26  ;;  %1234 = vst.msk [vmem:[#allocation3] sm:$0xff] %vm1158_vm7, %v1140_v26  ;;  %1146 = vperm.xlu0 %1672, %v1140_v26  }
 0x455   : > { %v1177_v18 = vpop.permute.xlu1 %1176 }
 0x456   : > { %v1142_v33 = vmul.f32 1.442695, %v1141_v28 }
 0x458   : > { %1178 = vrot.lane.b32.xlu0 %v1956_v46, %s1719_s27 }
 0x459   : > { %1673 = vset.pattern.permute.xlu0 %v1721_v19 }
 0x45c   : > { %1174 = vrot.lane.b32.xlu0 %v1960_v52, %s1719_s27 }
 0x460   : > { %1172 = vrot.lane.b32.xlu0 %v924_v54, %s1719_s27  ;;  %s600_s27 = scalar_lea.vmem %s2057_s14, %s1844_s22 }
 0x47f   : > { %1005 = vadd.xlane.f32.xlu0 %v1004_v29 }
 0x495   : > { %1013 = vperm.xlu0 %1673, %v1684_v31  }
 0x499   : > { %1677 = vset.pattern.permute.xlu0 %v1722_v21 }
 0x4cf   : > { %v1147_v32 = vpop.permute.xlu0 %1146 }
 0x4d0   : > { %v1149_v24 = vsub.f32 %v1130_v14, %v1147_v32 }
 0x4d2   : > { %v1150_v27 = vmul.f32 1.442695, %v1149_v24  ;;  %v1512_v24 = vld [vmem:[%s2056_s13] ss:$0 sm:$0xff] }
 0x4d3   : > { %v1179_v35 = vpop.permute.xlu0 %1178 }
 0x4d4   : > { %1685 = vpow2.f32 %v1150_v27  ;;  %1623 = vmatpush3.bf16.msra.mxu1 %v1179_v35 }
 0x4d5   : > { %1624 = vmatprep.subr.bf16.mxu1 %v1717_v5  ;;  %1687 = vpow2.f32 %v1142_v33 }
 0x4d7   : > { %v1175_v23 = vpop.permute.xlu0 %1174 }
 0x4d8   : > { %1625 = vmatpush3.bf16.msra.mxu1 %v1177_v18 }
 0x4d9   : > { %1626 = vmatprep.subr.bf16.mxu1 %v1717_v5 }
 0x4db   : > { %v1173_v36 = vpop.permute.xlu0 %1172 }
 0x4dc   : > { %1627 = vmatpush3.bf16.msra.mxu1 %v1175_v23 }
 0x4dd   : > { %1628 = vmatprep.subr.bf16.mxu1 %v1717_v5 }
 0x4e0   : > { %1629 = vmatpush3.bf16.msra.mxu1 %v1173_v36 }
 0x4e1   : > { %v1686_v37 = vpop.eup %1685  ;;  %1634 = vmatprep.subr.bf16.mxu1 %v1717_v5 }
 0x4e2   : > { %v1154_v34 = vsel %vm986_vm5, %v1686_v37, 0.0  ;;  %v1167_v39 = vpack.c.bf16 %v1686_v37, %v1686_v37  ;;  %v1688_v40 = vpop.eup %1687 }
 0x4e3   : > { %1155 = vadd.xlane.f32.xlu1 %v1154_v34 }
 0x4e4   : > { %1631 = vmatmul.mubr.msk.bf16.vlgmr.msra.gmra.mxu1 %vm986_vm5, %v1167_v39 }
 0x4e5   : > { %1636 = vmatprep.mubr.msk.bf16.mxu1 %vm1718_vm0, %v1717_v5  ;;  %1635 = vmatpush3.bf16.msra.mxu1 %v1259_v59 }
 0x4f4   : > { %1163 = vperm.xlu1 %1674, %v1688_v40  }
 0x4f8   : > { %1675 = vset.pattern.permute.xlu1 %v1721_v19 }
 0x508   : > { %v1006_v43 = vpop.xlane.xlu0 %1005 }
 0x509   : > { %v1007_v44 = vadd.f32 %v1006_v43, %v1003_v42 }
 0x50b   : > { %1009 = vst.msk [vmem:[#allocation4] sm:$0xff] %vm1008_vm6, %v1007_v44 }
 0x510   : > { %v1014_v46 = vpop.permute.xlu0 %1013 }
 0x511   : > { %v1016_v47 = vmul.f32 %v1014_v46, %v1010_v45 }
 0x512   : > { %v1152_v49 = vld [vmem:[#allocation4] sm:$0xff] }
 0x513   : > { %v1061_v48 = vadd.f32 %v1978_v10, %v1016_v47  ;;  %v1153_v5 = vmul.f32 %v1688_v40, %v1152_v49  ;;  %v1509_v10 = vld [vmem:[%s2054_s11] ss:$0 sm:$0xff] }
 0x515   : > { %1062 = vst.msk [vmem:[#allocation5] sm:$0xff] %vm929_vm3, %v1061_v48 }
 0x51c   : > { %v1160_v61 = vld [vmem:[#allocation5] sm:$0xff] }
 0x56c   : > { %v1156_v50 = vpop.xlane.xlu1 %1155 }
 0x56d   : > { %v1157_v51 = vadd.f32 %v1156_v50, %v1153_v5 }
 0x56f   : > { %1159 = vst.msk [vmem:[#allocation4] sm:$0xff] %vm1158_vm7, %v1157_v51 }
 0x570   : > { %v1164_v60 = vpop.permute.xlu1 %1163 }
 0x571   : > { %v1166_v62 = vmul.f32 %v1164_v60, %v1160_v61 }
 0x576   : > { %v1238_v19 = vld [vmem:[#allocation4] sm:$0xff] }
 0x577   : > { %1689 = vrcp.f32 %v1238_v19 }
 0x584   : > { %v1690_v54 = vpop.eup %1689 }
 0x5a4   : > { %v1221_v52 = vpop.f32.mrf.mxu1 }
 0x5a5   : > { %1228 = vrot.lane.b32.xlu1 %v1221_v52, %s1723_s26 }
 0x5a6   : > { %v1632_v53 = vpop.f32.mrf.mxu1 }
 0x5a8   : > { %v1224_v55 = vpop.f32.mrf.mxu1 }
 0x5a9   : > { %1243 = vperm.xlu1 %1675, %v1690_v54  }
 0x5aa   : > { %v1633_v56 = vpop.f32.mrf.mxu1 }
 0x5ad   : > { %1676 = vset.pattern.permute.xlu1 %v1722_v21 }
 0x5ae   : > { %1250 = vperm.xlu1 %1676, %v1690_v54  }
 0x617   : > { %v1229_v63 = vpop.permute.xlu1 %1228 }
 0x618   : > { %v1231_v0 = vadd.f32 %v1229_v63, %v1166_v62 }
 0x61a   : > { %1233 = vst.msk [vmem:[#allocation5] sm:$0xff] %vm1232_vm9, %v1231_v0 }
 0x621   : > { %v1240_v1 = vld [vmem:[#allocation5] sm:$0xff] }
 0x624   : > { %v1244_v2 = vpop.permute.xlu1 %1243 }
 0x625   : > { %v1246_v3 = vmul.f32 %v1244_v2, %v1240_v1 }
 0x627   : > { %1247 = vst.msk [vmem:[#allocation5] sm:$0xff] %vm929_vm3, %v1246_v3 }
 0x629   : > { %v1251_v6 = vpop.permute.xlu1 %1250 }
 0x62e   : > { %v1248_v4 = vld [vmem:[#allocation5] sm:$0xff] }
 0x62f   : > { %v1253_v7 = vmul.f32 %v1251_v6, %v1248_v4 }
 0x631   : > { %1254 = vst.msk [vmem:[#allocation5] sm:$0xff] %vm1232_vm9, %v1253_v7 }
 0x638   : > { %v1255_v8 = vld [vmem:[#allocation5] sm:$0xff] }
 0x639   : > { %v1258_v9 = vpack.c.bf16 %v1255_v8, %v1255_v8 }
 0x63b   : > { %1637 = vmatmul.mubr.msk.bf16.vlgmr.msra.gmra.mxu1 %vm673_vm8, %v1258_v9 }
 0x6fb   : > { %v1305_v11 = vpop.f32.mrf.mxu1 }
 0x6fc   : > { %v1306_v12 = vadd.f32 %v1509_v10, %v1305_v11 }
 0x6fd   : > { %v1638_v13 = vpop.f32.mrf.mxu1 }
 0x6fe   : > { %v1312_v14 = vadd.f32 %v1306_v12, %v1890_v38  ;;  %v1511_v38 = vld [vmem:[%s2055_s12] ss:$0 sm:$0xff] }
 0x6ff   : > { %v1308_v15 = vpop.f32.mrf.mxu1 }
 0x700   : > { %v1313_v16 = vsel %vm623_vm1, %v1312_v14, 0.0 }
 0x701   : > { %1314 = vadd.xlane.f32.xlu1 %v1313_v16  ;;  %v1639_v17 = vpop.f32.mrf.mxu1 }
 0x78a   : > { %v1315_v20 = vpop.xlane.xlu1 %1314 }
 0x78b   : > { %v1317_v21 = vmul.f32 0.03125, %v1315_v20 }
 0x78d   : > { %v1318_v22 = vsub.f32 %v1312_v14, %v1317_v21 }
 0x78f   : > { %v1319_v25 = vmul.f32 %v1318_v22, %v1318_v22 }
 0x791   : > { %v1320_v26 = vsel %vm623_vm1, %v1319_v25, 0.0 }
 0x792   : > { %1321 = vadd.xlane.f32.xlu0 %v1320_v26 }
 0x81b   : > { %v1322_v28 = vpop.xlane.xlu0 %1321 }
 0x81c   : > { %v1323_v29 = vmul.f32 0.03125, %v1322_v28 }
 0x81e   : > { %v1324_v30 = vadd.f32 1e-05, %v1323_v29 }
 0x820   : > { %1691 = vrsqrt.f32 %v1324_v30 }
 0x82d   : > { %v1692_v31 = vpop.eup %1691 }
 0x82e   : > { %v1326_v32 = vmul.f32 %v1692_v31, %v1318_v22 }
 0x830   : > { %v1334_v27 = vmul.f32 %v1511_v38, %v1326_v32 }
 0x832   : > { %v1342_v35 = vadd.f32 %v1512_v24, %v1334_v27 }
 0x834   : > { %1343 = vst.msk [vmem:[%s600_s27] sm:$0xff] %vm623_vm1, %v1342_v35 }
 0x835 PF: > { %s24_s15 = sadd.s32 1, %s1715_s15   ;;  %s2058_s29 = smov %s1711_s30 }
 0x836   : > { %p21_p5 = scmp.ge.s32.totalorder %s24_s15, 4   ;;  %s2059_s30 = smov %s2061_s16 }
 0x838   :  { %23 = sbr.rel (!%p21_p5) target bundleno = 2 (0x2), region = 123 }

// kernel: two_way_transformer_forward.13
= control target key start
LH: loop header
LB: loop body
LE: loop exit
PB: predicated region body
PF: predicated region fallthrough
CT: control target
= control target key end

     0   :  { %s1539_s29 = smov 0   ;;  %s1541_s30 = smov 0   ;;  %s1718_s0 = inlined_call_operand.vmem [shape: f32[2,8,32], index: 0, kind: input, shape index: {}]   ;;  %s1719_s1 = inlined_call_operand.vmem [shape: f32[2,8,32], index: 1, kind: input, shape index: {}]   ;;  %s1720_s2 = inlined_call_operand.vmem [shape: bf16[2,8,32], index: 2, kind: input, shape index: {}]   ;;  %s1721_s3 = inlined_call_operand.vmem [shape: bf16[2,8,32], index: 3, kind: input, shape index: {}]   ;;  %s1722_s4 = inlined_call_operand.vmem [shape: f32[32,32], index: 4, kind: input, shape index: {}]   ;;  %s1723_s5 = inlined_call_operand.vmem [shape: f32[1,32], index: 5, kind: input, shape index: {}]   ;;  %s1724_s6 = inlined_call_operand.vmem [shape: f32[32,32], index: 6, kind: input, shape index: {}]   ;;  %s1725_s7 = inlined_call_operand.vmem [shape: f32[1,32], index: 7, kind: input, shape index: {}]   ;;  %s1726_s8 = inlined_call_operand.vmem [shape: f32[32,32], index: 8, kind: input, shape index: {}]   ;;  %s1727_s9 = inlined_call_operand.vmem [shape: f32[1,32], index: 9, kind: input, shape index: {}]   ;;  %s1728_s10 = inlined_call_operand.vmem [shape: f32[32,32], index: 10, kind: input, shape index: {}]   ;;  %s1729_s11 = inlined_call_operand.vmem [shape: f32[1,32], index: 11, kind: input, shape index: {}]   ;;  %s1730_s12 = inlined_call_operand.vmem [shape: f32[1,32], index: 12, kind: input, shape index: {}]   ;;  %s1731_s13 = inlined_call_operand.vmem [shape: f32[1,32], index: 13, kind: input, shape index: {}]   ;;  %s1732_s14 = inlined_call_operand.vmem [shape: f32[2,8,32], index: 14, kind: output, shape index: {}]  }
   0x1   :  { %1733 = sst [smem:[#allocation6_spill]] %s1722_s4  ;;  %s1543_s15 = smov 0  }
   0x2 LB: > { %s43_s16 = sadd.s32 1, %s1451_s30  ;;  %p1287_p0 = scmp.ge.s32.totalorder %s1455_s15, 1  ;;  %s1455_s15 = sphi %s1543_s15, %s24_s15   ;;  %s1451_s30 = sphi %s1541_s30, %s1736_s30   ;;  %s1447_s29 = sphi %s1539_s29, %s1735_s29  }
   0x3   : > { %p45_p1 = scmp.ge.s32.totalorder %s43_s16, 2  ;;  %p479_p2 = scmp.lt.s32.totalorder %s1455_s15, 3 }
   0x5   : > { %s1738_s16 = smov (%p45_p1, %s43_s16), 0  ;;  %p480_p3 = pnand %p1287_p0, %p479_p2 }
   0x6   : > { %s1734_s4 = sld [smem:[#allocation6_spill]] (!%p480_p3)  ;;  %p550_p4 = scmp.lt.s32.totalorder (!%p480_p3), %s1447_s29, 1 }
   0x7   : > { %483 = sbr.rel (%p480_p3) target bundleno = 1673 (0x689), region = 76  ;;  %s1463_s23 = smov (!%p480_p3), 16  }
   0xc   : > { %v663_v0 = vld [vmem:[%s1724_s6 + $0x10] sm:$0xff]  ;;  %v664_v1 = vld [vmem:[%s1724_s6 + $0x18] sm:$0xff]  ;;  %v1457_v3 = vmov 0.0   ;;  %v661_v6 = vld [vmem:[%s1724_s6] sm:$0xff]  ;;  %vm607_vm0 = vcmask 261120   ;;  %vm1458_vm1 = vmmov 0  }
   0xd   : > { %v595_v2 = vld [vmem:[%s1734_s4 + $0x10] sm:$0xff]  ;;  %1338 = vmatprep.subr.bf16.mxu1 %v1457_v3  ;;  %1330 = vmatprep.subr.bf16.mxu0 %v1457_v3  ;;  %v666_v4 = vpack.c.bf16 %v664_v1, %v663_v0  ;;  %v596_v5 = vld [vmem:[%s1734_s4 + $0x18] sm:$0xff]  ;;  %v662_v7 = vld [vmem:[%s1724_s6 + $0x8] sm:$0xff]  ;;  %s1740_s29 = smov (!%p550_p4, %s1447_s29), 1  ;;  %657 = vst.msk [vmem:[#allocation5] sm:$0xff] %vm607_vm0, %v1457_v3  ;;  %vm777_vm2 = vcmask 130048  }
   0xe   : > { %v599_v8 = vpack.c.bf16 %v596_v5, %v595_v2  ;;  %v593_v9 = vld [vmem:[%s1734_s4] sm:$0xff]  ;;  %v594_v10 = vld [vmem:[%s1734_s4 + $0x8] sm:$0xff]  ;;  %1342 = vmatprep.mubr.msk.bf16.mxu1 %vm1458_vm1, %v1457_v3  ;;  %1334 = vmatprep.mubr.msk.bf16.mxu0 %vm1458_vm1, %v1457_v3  ;;  %v665_v11 = vpack.c.bf16 %v662_v7, %v661_v6  ;;  %s1290_s21 = sshll.u32 %s1740_s29, 2  ;;  %s1591_s22 = sshll.u32 %s1740_s29, 3  ;;  %vm652_vm3 = vcmask 257024   ;;  %v721_v37 = vld [vmem:[%s1726_s8 + $0x10] sm:$0xff] }
   0xf   : > { %1339 = vmatpush3.bf16.msra.mxu1 %v666_v4  ;;  %v598_v12 = vpack.c.bf16 %v594_v10, %v593_v9  ;;  %s570_s25 = scalar_lea.vmem %s1720_s2, %s1290_s21  ;;  %s577_s28 = scalar_lea.vmem %s1721_s3, %s1290_s21  ;;  %v1295_v20 = vld [vmem:[%s1725_s7] ss:$0 sm:$0xff]  ;;  %v722_v38 = vld [vmem:[%s1726_s8 + $0x18] sm:$0xff]  ;;  %v720_v41 = vld [vmem:[%s1726_s8 + $0x8] sm:$0xff]  ;;  %vm654_vm4 = vcmask 15360   ;;  %v1460_v46 = vmov -inf  }
  0x10   : > { %1331 = vmatpush3.bf16.msra.mxu0 %v599_v8  ;;  %1340 = vmatprep.subr.bf16.mxu1 %v1457_v3  ;;  %v658_v13 = vld [vmem:[%s570_s25] sm:$0xf]  ;;  %s556_s19 = scalar_lea.vmem %s1718_s0, %s1591_s22  ;;  %s563_s4 = scalar_lea.vmem %s1719_s1, %s1591_s22  ;;  %v724_v40 = vpack.c.bf16 %v722_v38, %v721_v37  ;;  %655 = vst.msk [vmem:[#allocation3] sm:$0xff] %vm654_vm4, %v1460_v46  ;;  %656 = vst.msk [vmem:[#allocation4] sm:$0xff] %vm654_vm4, %v1457_v3  ;;  %vm825_vm5 = vcmask 64512   ;;  %v1461_v52 = vmov 0  }
  0x11   : > { %1332 = vmatprep.subr.bf16.mxu0 %v1457_v3  ;;  %v659_v14 = vld [vmem:[%s577_s28] sm:$0xf]  ;;  %s1459_s25 = smov 112   ;;  %1417 = vset.pattern.permute.xlu0 %v1461_v52  ;;  %vm860_vm6 = vcmask 1043456   ;;  %v1462_v2 = vmov 1   ;;  %vm847_vm7 = vcmask 7168   ;;  %s584_s27 = scalar_lea.vmem %s1732_s14, %s1591_s22 }
  0x12   : > { %v660_v15 = vadd.bf16 %v659_v14, %v658_v13  ;;  %v1608_v16 = vld [vmem:[%s556_s19] sm:$0xff]  ;;  %1418 = vset.pattern.permute.xlu1 %v1462_v2  ;;  %vm983_vm8 = vcmask 15368   ;;  %vm1047_vm9 = vcmask 261248  }
  0x13   : > { %1341 = vmatpush3.bf16.msra.mxu1 %v665_v11  ;;  %v591_v17 = vld [vmem:[%s563_s4] sm:$0xff] }
  0x14   : > { %1333 = vmatpush3.bf16.msra.mxu0 %v598_v12  ;;  %v592_v18 = vadd.f32 %v591_v17, %v1608_v16  ;;  %1354 = vmatprep.subr.bf16.mxu1 %v1457_v3  ;;  %v1293_v22 = vld [vmem:[%s1723_s5] ss:$0 sm:$0xff] }
  0x15   : > { %1346 = vmatprep.subr.bf16.mxu0 %v1457_v3  ;;  %v719_v39 = vld [vmem:[%s1726_s8] sm:$0xff] }
  0x16   : > { %1343 = vmatmul.mubr.msk.bf16.vlgmr.msra.gmra.mxu1 %vm607_vm0, %v660_v15  ;;  %v597_v19 = vpack.c.bf16 %v592_v18, %v592_v18  ;;  %v723_v42 = vpack.c.bf16 %v720_v41, %v719_v39  ;;  %v1297_v53 = vld [vmem:[%s1727_s9] ss:$0 sm:$0xff] }
  0x17   : > { %1356 = vmatprep.mubr.msk.bf16.mxu1 %vm1458_vm1, %v1457_v3  ;;  %v824_v4 = vld [vmem:[#allocation3] sm:$0xff] }
  0x18   : > { %1335 = vmatmul.mubr.msk.bf16.vlgmr.msra.gmra.mxu0 %vm607_vm0, %v597_v19 }
  0x19   : > { %1350 = vmatprep.mubr.msk.bf16.mxu0 %vm1458_vm1, %v1457_v3  ;;  %1347 = vmatpush3.bf16.msra.mxu0 %v724_v40 }
  0x1a   : > { %1348 = vmatprep.subr.bf16.mxu0 %v1457_v3 }
  0x1d   : > { %1349 = vmatpush3.bf16.msra.mxu0 %v723_v42 }
  0x1e   : > { %1360 = vmatprep.subr.bf16.mxu0 %v1457_v3 }
  0x20   : > { %1351 = vmatmul.mubr.msk.bf16.vlgmr.msra.gmra.mxu0 %vm607_vm0, %v658_v13 }
  0x21   : > { %1362 = vmatprep.mubr.msk.bf16.mxu0 %vm1458_vm1, %v1457_v3 }
  0xd6   : > { %v712_v21 = vpop.f32.mrf.mxu1 }
  0xd7   : > { %v713_v23 = vadd.f32 %v1295_v20, %v712_v21 }
  0xd8   : > { %v645_v24 = vpop.f32.mrf.mxu0  ;;  %v1344_v25 = vpop.f32.mrf.mxu1 }
  0xd9   : > { %v718_v26 = vpack.c.bf16 %v713_v23, %v713_v23  ;;  %v646_v27 = vadd.f32 %v1293_v22, %v645_v24 }
  0xda   : > { %v1336_v28 = vpop.f32.mrf.mxu0  ;;  %v715_v29 = vpop.f32.mrf.mxu1 }
  0xdb   : > { %v782_v30 = vsel %vm777_vm2, %v718_v26, 0  ;;  %v651_v31 = vpack.c.bf16 %v646_v27, %v646_v27  ;;  %913 = vrot.lane.b32.xlu0 %v718_v26, %s1459_s25 }
  0xdc   : > { %v648_v32 = vpop.f32.mrf.mxu0  ;;  %v1345_v33 = vpop.f32.mrf.mxu1  ;;  %1355 = vmatpush3.bf16.xpose.msra.mxu1 %v782_v30 }
  0xdd   : > { %653 = vst.msk [vmem:[#allocation2] sm:$0xf] %vm652_vm3, %v651_v31  ;;  %1366 = vmatprep.subr.bf16.mxu1 %v1457_v3  ;;  %v841_v31 = vld [vmem:[#allocation4] sm:$0xff] }
  0xde   : > { %v1337_v34 = vpop.f32.mrf.mxu0 }
  0xe0   : > { %v769_v54 = vpop.f32.mrf.mxu0 }
  0xe1   : > { %v770_v55 = vadd.f32 %v1297_v53, %v769_v54  ;;  %v1073_v53 = vld [vmem:[%s1728_s10 + $0x10] sm:$0xff]  ;;  %v1074_v54 = vld [vmem:[%s1728_s10 + $0x18] sm:$0xff] }
  0xe2   : > { %v1352_v56 = vpop.f32.mrf.mxu0 }
  0xe3   : > { %v775_v57 = vpack.c.bf16 %v770_v55, %v770_v55  ;;  %v1071_v55 = vld [vmem:[%s1728_s10] sm:$0xff]  ;;  %v1077_v56 = vpack.c.bf16 %v1074_v54, %v1073_v53 }
  0xe4   : > { %v776_v35 = vld [vmem:[#allocation2] sm:$0xf]  ;;  %v772_v58 = vpop.f32.mrf.mxu0 }
  0xe5   : > { %1357 = vmatmul.mubr.msk.bf16.vlgmr.msra.gmra.mxu1 %vm777_vm2, %v776_v35  ;;  %v1301_v36 = vcombine.low %v776_v35, %v776_v35  ;;  %v862_v59 = vsel %vm860_vm6, %v775_v57, 0  ;;  %v849_v35 = vld [vmem:[#allocation5] sm:$0xff] }
  0xe6   : > { %1368 = vmatprep.mubr.msk.bf16.mxu1 %vm1458_vm1, %v1457_v3  ;;  %v1353_v60 = vpop.f32.mrf.mxu0  ;;  %1361 = vmatpush3.bf16.msra.mxu0 %v862_v59 }
  0xe7   : > { %910 = vrot.lane.b32.xlu0 %v1301_v36, %s1459_s25  ;;  %1372 = vmatprep.subr.bf16.mxu0 %v1457_v3 }
 0x14d   : > { %v914_v43 = vpop.permute.xlu0 %913 }
 0x14e   : > { %v919_v44 = vsel %vm777_vm2, %v914_v43, 0 }
 0x14f   : > { %1367 = vmatpush3.bf16.xpose.msra.mxu1 %v919_v44 }
 0x150   : > { %1378 = vmatprep.subr.bf16.mxu1 %v1457_v3 }
 0x159   : > { %v911_v45 = vpop.permute.xlu0 %910 }
 0x15a   : > { %1369 = vmatmul.mubr.msk.bf16.vlgmr.msra.gmra.mxu1 %vm777_vm2, %v911_v45 }
 0x15b   : > { %1382 = vmatprep.mubr.msk.bf16.mxu1 %vm1458_vm1, %v1457_v3  ;;  %1379 = vmatpush3.bf16.msra.mxu1 %v1077_v56 }
 0x15c   : > { %1380 = vmatprep.subr.bf16.mxu1 %v1457_v3 }
 0x1a5   : > { %v818_v47 = vpop.f32.mrf.mxu1 }
 0x1a6   : > { %v826_v48 = vsel %vm825_vm5, %v818_v47, -inf }
 0x1a7   : > { %827 = vmax.xlane.f32.xlu1 %v826_v48  ;;  %v1358_v49 = vpop.f32.mrf.mxu1 }
 0x1a9   : > { %v821_v50 = vpop.f32.mrf.mxu1 }
 0x1ab   : > { %v1359_v51 = vpop.f32.mrf.mxu1 }
 0x21a   : > { %v955_v61 = vpop.f32.mrf.mxu1 }
 0x21b   : > { %v962_v62 = vsel %vm825_vm5, %v955_v61, -inf }
 0x21c   : > { %963 = vmax.xlane.f32.xlu1 %v962_v62  ;;  %v1370_v63 = vpop.f32.mrf.mxu1 }
 0x21e   : > { %v958_v0 = vpop.f32.mrf.mxu1 }
 0x220   : > { %v1371_v1 = vpop.f32.mrf.mxu1 }
 0x230   : > { %v828_v5 = vpop.xlane.xlu1 %827 }
 0x231   : > { %v829_v6 = vmax.f32 %v824_v4, %v828_v5 }
 0x233   : > { %v830_v7 = vsub.f32 %v824_v4, %v829_v6  ;;  %906 = vst.msk [vmem:[#allocation3] sm:$0xff] %vm847_vm7, %v829_v6  ;;  %835 = vperm.xlu0 %1417, %v829_v6  }
 0x235   : > { %v831_v21 = vmul.f32 1.442695, %v830_v7 }
 0x237   : > { %994 = vrot.lane.b32.xlu0 %v775_v57, %s1459_s25  ;;  %v1072_v57 = vld [vmem:[%s1728_s10 + $0x8] sm:$0xff] }
 0x238   : > { %v1076_v58 = vpack.c.bf16 %v1072_v57, %v1071_v55 }
 0x23a   : > { %v961_v8 = vld [vmem:[#allocation3] sm:$0xff]  ;;  %1381 = vmatpush3.bf16.msra.mxu1 %v1076_v58 }
 0x2a5   : > { %v964_v9 = vpop.xlane.xlu1 %963 }
 0x2a6   : > { %v965_v10 = vmax.f32 %v961_v8, %v964_v9 }
 0x2a8   : > { %v966_v11 = vsub.f32 %v961_v8, %v965_v10  ;;  %1049 = vst.msk [vmem:[#allocation3] sm:$0xff] %vm983_vm8, %v965_v10  ;;  %971 = vperm.xlu1 %1418, %v965_v10  }
 0x2aa   : > { %v967_v27 = vmul.f32 1.442695, %v966_v11 }
 0x2ae   : > { %v836_v12 = vpop.permute.xlu0 %835 }
 0x2af   : > { %v838_v13 = vsub.f32 %v818_v47, %v836_v12 }
 0x2b1   : > { %v839_v14 = vmul.f32 1.442695, %v838_v13 }
 0x2b2   : > { %v995_v15 = vpop.permute.xlu0 %994 }
 0x2b3   : > { %1421 = vpow2.f32 %v839_v14  ;;  %v1000_v20 = vsel %vm860_vm6, %v995_v15, 0 }
 0x2b4   : > { %1423 = vpow2.f32 %v831_v21 }
 0x2c0   : > { %v1422_v17 = vpop.eup %1421 }
 0x2c1   : > { %v843_v18 = vsel %vm825_vm5, %v1422_v17, 0.0  ;;  %v856_v19 = vpack.c.bf16 %v1422_v17, %v1422_v17  ;;  %v1424_v22 = vpop.eup %1423 }
 0x2c2   : > { %844 = vadd.xlane.f32.xlu0 %v843_v18  ;;  %v842_v32 = vmul.f32 %v1424_v22, %v841_v31 }
 0x2c3   : > { %1363 = vmatmul.mubr.msk.bf16.vlgmr.msra.gmra.mxu0 %vm825_vm5, %v856_v19 }
 0x2c4   : > { %1373 = vmatpush3.bf16.msra.mxu0 %v1000_v20  ;;  %1374 = vmatprep.mubr.msk.bf16.mxu0 %vm1458_vm1, %v1457_v3  ;;  %v1304_v3 = vld [vmem:[%s1729_s11] ss:$0 sm:$0xff] }
 0x2d8   : > { %852 = vperm.xlu0 %1417, %v1424_v22  }
 0x323   : > { %v972_v23 = vpop.permute.xlu1 %971 }
 0x324   : > { %v974_v24 = vsub.f32 %v955_v61, %v972_v23 }
 0x326   : > { %v975_v25 = vmul.f32 1.442695, %v974_v24 }
 0x328   : > { %1425 = vpow2.f32 %v975_v25 }
 0x329   : > { %1427 = vpow2.f32 %v967_v27  ;;  %v1307_v27 = vld [vmem:[%s1731_s13] ss:$0 sm:$0xff] }
 0x335   : > { %v1426_v26 = vpop.eup %1425 }
 0x336   : > { %v979_v28 = vsel %vm825_vm5, %v1426_v26, 0.0  ;;  %v992_v29 = vpack.c.bf16 %v1426_v26, %v1426_v26  ;;  %v1428_v30 = vpop.eup %1427 }
 0x337   : > { %980 = vadd.xlane.f32.xlu1 %v979_v28 }
 0x338   : > { %1375 = vmatmul.mubr.msk.bf16.vlgmr.msra.gmra.mxu0 %vm825_vm5, %v992_v29 }
 0x348   : > { %988 = vperm.xlu1 %1418, %v1428_v30  }
 0x34b   : > { %v845_v33 = vpop.xlane.xlu0 %844 }
 0x34c   : > { %v846_v34 = vadd.f32 %v845_v33, %v842_v32 }
 0x34e   : > { %848 = vst.msk [vmem:[#allocation4] sm:$0xff] %vm847_vm7, %v846_v34 }
 0x353   : > { %v853_v36 = vpop.permute.xlu0 %852 }
 0x354   : > { %v855_v37 = vmul.f32 %v853_v36, %v849_v35 }
 0x355   : > { %v977_v43 = vld [vmem:[#allocation4] sm:$0xff] }
 0x356   : > { %v978_v44 = vmul.f32 %v1428_v30, %v977_v43 }
 0x383   : > { %v898_v38 = vpop.f32.mrf.mxu0 }
 0x384   : > { %v904_v39 = vadd.f32 %v898_v38, %v855_v37 }
 0x385   : > { %v1364_v40 = vpop.f32.mrf.mxu0 }
 0x386   : > { %905 = vst.msk [vmem:[#allocation5] sm:$0xff] %vm777_vm2, %v904_v39 }
 0x387   : > { %v901_v41 = vpop.f32.mrf.mxu0 }
 0x389   : > { %v1365_v42 = vpop.f32.mrf.mxu0 }
 0x38d   : > { %v985_v60 = vld [vmem:[#allocation5] sm:$0xff] }
 0x3c0   : > { %v981_v45 = vpop.xlane.xlu1 %980 }
 0x3c1   : > { %v982_v46 = vadd.f32 %v981_v45, %v978_v44 }
 0x3c3   : > { %984 = vst.msk [vmem:[#allocation4] sm:$0xff] %vm983_vm8, %v982_v46 }
 0x3c4   : > { %v989_v59 = vpop.permute.xlu1 %988 }
 0x3c5   : > { %v991_v61 = vmul.f32 %v989_v59, %v985_v60 }
 0x3ca   : > { %v1053_v47 = vld [vmem:[#allocation4] sm:$0xff] }
 0x3cb   : > { %1429 = vrcp.f32 %v1053_v47 }
 0x3d8   : > { %v1430_v48 = vpop.eup %1429 }
 0x3d9   : > { %1065 = vperm.xlu1 %1418, %v1430_v48  }
 0x3f8   : > { %v1036_v49 = vpop.f32.mrf.mxu0 }
 0x3f9   : > { %1043 = vrot.lane.b32.xlu0 %v1036_v49, %s1463_s23 }
 0x3fa   : > { %v1376_v50 = vpop.f32.mrf.mxu0 }
 0x3fc   : > { %v1039_v51 = vpop.f32.mrf.mxu0 }
 0x3fd   : > { %1058 = vperm.xlu0 %1417, %v1430_v48  }
 0x3fe   : > { %v1377_v52 = vpop.f32.mrf.mxu0 }
 0x401   : > { %1419 = vset.pattern.permute.xlu0 %v1462_v2 }
 0x454   : > { %v1066_v4 = vpop.permute.xlu1 %1065 }
 0x46b   : > { %v1044_v62 = vpop.permute.xlu0 %1043 }
 0x46c   : > { %v1046_v63 = vadd.f32 %v1044_v62, %v991_v61 }
 0x46e   : > { %1048 = vst.msk [vmem:[#allocation5] sm:$0xff] %vm1047_vm9, %v1046_v63 }
 0x475   : > { %v1055_v0 = vld [vmem:[#allocation5] sm:$0xff] }
 0x478   : > { %v1059_v1 = vpop.permute.xlu0 %1058 }
 0x479   : > { %v1061_v2 = vmul.f32 %v1059_v1, %v1055_v0 }
 0x47b   : > { %1062 = vst.msk [vmem:[#allocation5] sm:$0xff] %vm777_vm2, %v1061_v2 }
 0x482   : > { %v1063_v5 = vld [vmem:[#allocation5] sm:$0xff] }
 0x483   : > { %v1068_v6 = vmul.f32 %v1066_v4, %v1063_v5 }
 0x485   : > { %1069 = vst.msk [vmem:[#allocation5] sm:$0xff] %vm1047_vm9, %v1068_v6 }
 0x48c   : > { %v1070_v7 = vld [vmem:[#allocation5] sm:$0xff] }
 0x48d   : > { %v1075_v8 = vpack.c.bf16 %v1070_v7, %v1070_v7 }
 0x48f   : > { %1383 = vmatmul.mubr.msk.bf16.vlgmr.msra.gmra.mxu1 %vm607_vm0, %v1075_v8 }
 0x54f   : > { %v1122_v9 = vpop.f32.mrf.mxu1 }
 0x550   : > { %v1123_v10 = vadd.f32 %v1304_v3, %v1122_v9 }
 0x551   : > { %v1384_v11 = vpop.f32.mrf.mxu1 }
 0x552   : > { %v1129_v12 = vadd.f32 %v1123_v10, %v1608_v16  ;;  %v1306_v16 = vld [vmem:[%s1730_s12] ss:$0 sm:$0xff] }
 0x553   : > { %v1125_v13 = vpop.f32.mrf.mxu1 }
 0x554   : > { %v1130_v14 = vsel %vm607_vm0, %v1129_v12, 0.0 }
 0x555   : > { %1131 = vadd.xlane.f32.xlu0 %v1130_v14  ;;  %v1385_v15 = vpop.f32.mrf.mxu1 }
 0x5de   : > { %v1132_v17 = vpop.xlane.xlu0 %1131 }
 0x5df   : > { %v1134_v18 = vmul.f32 0.03125, %v1132_v17 }
 0x5e1   : > { %v1135_v19 = vsub.f32 %v1129_v12, %v1134_v18 }
 0x5e3   : > { %v1136_v20 = vmul.f32 %v1135_v19, %v1135_v19 }
 0x5e5   : > { %v1137_v21 = vsel %vm607_vm0, %v1136_v20, 0.0 }
 0x5e6   : > { %1138 = vadd.xlane.f32.xlu1 %v1137_v21 }
 0x66f   : > { %v1139_v22 = vpop.xlane.xlu1 %1138 }
 0x670   : > { %v1140_v23 = vmul.f32 0.03125, %v1139_v22 }
 0x672   : > { %v1141_v24 = vadd.f32 1e-05, %v1140_v23 }
 0x674   : > { %1431 = vrsqrt.f32 %v1141_v24 }
 0x681   : > { %v1432_v25 = vpop.eup %1431 }
 0x682   : > { %v1143_v26 = vmul.f32 %v1432_v25, %v1135_v19 }
 0x684   : > { %v1151_v28 = vmul.f32 %v1306_v16, %v1143_v26 }
 0x686   : > { %v1159_v29 = vadd.f32 %v1307_v27, %v1151_v28 }
 0x688   : > { %1160 = vst.msk [vmem:[%s584_s27] sm:$0xff] %vm607_vm0, %v1159_v29 }
 0x689 PF: > { %s24_s15 = sadd.s32 1, %s1455_s15   ;;  %s1735_s29 = smov %s1451_s30 }
 0x68a   : > { %p21_p5 = scmp.ge.s32.totalorder %s24_s15, 4   ;;  %s1736_s30 = smov %s1738_s16 }
 0x68c   :  { %23 = sbr.rel (!%p21_p5) target bundleno = 2 (0x2), region = 123 }

// kernel: two_way_transformer_forward.17
= control target key start
LH: loop header
LB: loop body
LE: loop exit
PB: predicated region body
PF: predicated region fallthrough
CT: control target
= control target key end

     0   :  { %s2202_s0 = inlined_call_operand.vmem [shape: f32[2,8,32], index: 0, kind: input, shape index: {}]   ;;  %s2203_s1 = inlined_call_operand.vmem [shape: f32[2,8,32], index: 1, kind: input, shape index: {}]   ;;  %s2204_s2 = inlined_call_operand.vmem [shape: bf16[2,64,32], index: 2, kind: input, shape index: {}]   ;;  %s2205_s3 = inlined_call_operand.vmem [shape: bf16[2,64,32], index: 3, kind: input, shape index: {}]   ;;  %s2206_s4 = inlined_call_operand.vmem [shape: f32[32,16], index: 4, kind: input, shape index: {}]   ;;  %s2207_s5 = inlined_call_operand.vmem [shape: f32[1,16], index: 5, kind: input, shape index: {}]   ;;  %s2208_s6 = inlined_call_operand.vmem [shape: f32[32,16], index: 6, kind: input, shape index: {}]   ;;  %s2209_s7 = inlined_call_operand.vmem [shape: f32[1,16], index: 7, kind: input, shape index: {}]   ;;  %s2210_s8 = inlined_call_operand.vmem [shape: f32[32,16], index: 8, kind: input, shape index: {}]   ;;  %s2211_s9 = inlined_call_operand.vmem [shape: f32[1,16], index: 9, kind: input, shape index: {}]   ;;  %s2212_s10 = inlined_call_operand.vmem [shape: f32[16,32], index: 10, kind: input, shape index: {}]   ;;  %s2213_s11 = inlined_call_operand.vmem [shape: f32[1,32], index: 11, kind: input, shape index: {}]   ;;  %s2214_s12 = inlined_call_operand.vmem [shape: f32[1,32], index: 12, kind: input, shape index: {}]   ;;  %s2215_s13 = inlined_call_operand.vmem [shape: f32[1,32], index: 13, kind: input, shape index: {}]   ;;  %s2216_s14 = inlined_call_operand.hbm [shape: f32[2,8,32], index: 14, kind: output, shape index: {}]  }
   0x1   :  { %2219 = sst [smem:[#allocation12_spill]] %s2202_s0 }
   0x2   :  { %2220 = sst [smem:[#allocation13_spill]] %s2203_s1 }
   0x3   :  { %2221 = sst [smem:[#allocation14_spill]] %s2204_s2 }
   0x4   :  { %2222 = sst [smem:[#allocation15_spill]] %s2208_s6 }
   0x5   :  { %19 = vsyncpa [#allocation7], 0 }
   0x6   :  { %21 = vsyncpa [#allocation7 + $0x1], 0  ;;  %s1893_s29 = smov 0   ;;  %s1895_s30 = smov 0  }
   0x7   :  { %s1897_s15 = smov 0   ;;  %s1899_s16 = smov 0  }
   0x8   :  { %s1901_s17 = smov 0   ;;  %s1903_s18 = smov 0  }
   0x9 LB: > { %2223 = sst [smem:[#allocation9_spill]] %s1804_s17  ;;  %s1478_s19 = sadd.s32 4294967295, %s1808_s18   ;;  %s1808_s18 = sphi %s1903_s18, %s27_s18   ;;  %s1804_s17 = sphi %s1901_s17, %s2234_s17   ;;  %s1800_s16 = sphi %s1899_s16, %s2233_s16   ;;  %s1796_s15 = sphi %s1897_s15, %s2237_s15   ;;  %s1792_s30 = sphi %s1895_s30, %s2236_s30   ;;  %s1788_s29 = sphi %s1893_s29, %s2235_s29  }
   0xa   : > { %s1479_s20 = sadd.s32 4294967294, %s1808_s18   ;;  %s46_s21 = sadd.s32 1, %s1804_s17 }
   0xb   : > { %s377_s22 = sadd.s32 1, %s1796_s15  ;;  %p48_p0 = scmp.ge.s32.totalorder %s46_s21, 2 }
   0xc   : > { %p387_p1 = scmp.ne.s32.totalorder %s1796_s15, %s1792_s30  ;;  %p388_p2 = scmp.eq.s32.totalorder %s1478_s19, 1 }
   0xd   : > { %p393_p3 = scmp.ne.s32.totalorder %s1792_s30, %s1788_s29  ;;  %s2239_s21 = smov (%p48_p0, %s46_s21), 0 }
   0xe   : > { %2224 = sst [smem:[#allocation10_spill]] %s2239_s21  ;;  %p1933_p4 = por %p388_p2, %p387_p1 }
   0xf   : > { %p394_p5 = scmp.eq.s32.totalorder %s1479_s20, 1  ;;  %s372_s24 = ssub.s32 %s1804_s17, %s2239_s21 }
  0x10   : > { %p1482_p6 = scmp.ge.s32.totalorder %s1808_s18, 1  ;;  %p375_p7 = scmp.eq.s32.totalorder %s372_s24, 0 }
  0x11   : > { %p1940_p8 = por %p394_p5, %p393_p3  ;;  %p488_p9 = scmp.lt.s32.totalorder %s1808_s18, 3 }
  0x12   : > { %s1946_s26 = scalar_select %p375_p7, %s1796_s15, %s377_s22  }
  0x13   : > { %p489_p10 = pnand %p1482_p6, %p488_p9 }
  0x14   : > { %2227 = sst [smem:[#allocation11_spill]] %s1946_s26  ;;  %p561_p11 = scmp.lt.s32.totalorder (!%p489_p10), %s1800_s16, 1 }
  0x15   : > { %492 = sbr.rel (%p489_p10) target bundleno = 2128 (0x850), region = 76  ;;  %s2228_s6 = sld [smem:[#allocation15_spill]] (!%p489_p10) }
  0x16   : > { %s2229_s2 = sld [smem:[#allocation14_spill]] (!%p489_p10)  ;;  %s558_s17 = sand.u32 (!%p489_p10), 1, %s1792_s30  }
  0x17   : > { %s2230_s0 = sld [smem:[#allocation12_spill]] (!%p489_p10)  ;;  %s1520_s28 = sshll.u32 (!%p489_p10), %s1800_s16, 7 }
  0x18   : > { %s2231_s1 = sld [smem:[#allocation13_spill]] (!%p489_p10) }
  0x1a   : > { %v1810_v5 = vmov 0.0   ;;  %v605_v6 = vld [vmem:[%s2206_s4 + $0x10] sm:$0xff]  ;;  %v606_v7 = vld [vmem:[%s2206_s4 + $0x18] sm:$0xff]  ;;  %s1969_s21 = scalar_select %p561_p11, %s1800_s16, 1  ;;  %v603_v10 = vld [vmem:[%s2206_s4] sm:$0xff]  ;;  %vm1811_vm0 = vmmov 0  }
  0x1b   : > { %v695_v0 = vld [vmem:[%s2228_s6 + $0x10] sm:$0xff]  ;;  %v696_v1 = vld [vmem:[%s2228_s6 + $0x18] sm:$0xff]  ;;  %v693_v2 = vld [vmem:[%s2228_s6] sm:$0xff]  ;;  %1562 = vmatprep.subr.bf16.mxu0 %v1810_v5  ;;  %v609_v9 = vpack.c.bf16 %v606_v7, %v605_v6  ;;  %1566 = vmatprep.mubr.msk.bf16.mxu0 %vm1811_vm0, %v1810_v5  ;;  %vm617_vm1 = vcmask 261120   ;;  %vm662_vm2 = vcmask 125952   ;;  %vm923_vm3 = vcmask 64512  }
  0x1c   : > { %v698_v3 = vpack.c.bf16 %v696_v1, %v695_v0  ;;  %v694_v4 = vld [vmem:[%s2228_s6 + $0x8] sm:$0xff]  ;;  %s1523_s26 = sshll.u32 %s1969_s21, 5  ;;  %s1484_s27 = sshll.u32 %s1969_s21, 3  ;;  %v1490_v48 = vld [vmem:[%s2207_s5] ss:$0 sm:$0xff]  ;;  %vm664_vm4 = vcmask 15360  }
  0x1d   : > { %v697_v8 = vpack.c.bf16 %v694_v4, %v693_v2  ;;  %v604_v11 = vld [vmem:[%s2206_s4 + $0x8] sm:$0xff]  ;;  %1563 = vmatpush3.bf16.msra.mxu0 %v609_v9  ;;  %s583_s20 = scalar_lea.vmem %s2229_s2, %s1523_s26  ;;  %s1987_s24 = scalar_lea.vmem %s2205_s3, %s1523_s26  ;;  %v1492_v60 = vld [vmem:[%s2209_s7] ss:$0 sm:$0xff]  ;;  %666 = vst.msk [vmem:[#allocation4] sm:$0xff] %vm664_vm4, %v1810_v5  ;;  %vm980_vm5 = vcmask 523264   ;;  %vm1002_vm6 = vcmask 7168  }
  0x1e   : > { %1570 = vmatprep.subr.bf16.mxu1 %v698_v3  ;;  %v608_v12 = vpack.c.bf16 %v604_v11, %v603_v10  ;;  %1564 = vmatprep.subr.bf16.mxu0 %v1810_v5  ;;  %v669_v13 = vld [vmem:[%s583_s20] sm:$0xf]  ;;  %v670_v14 = vld [vmem:[%s583_s20 + $0x4] sm:$0xf]  ;;  %v1992_v18 = vld [vmem:[%s583_s20 + $0x8] sm:$0xf]  ;;  %s567_s22 = scalar_lea.vmem %s2230_s0, %s1484_s27  ;;  %s574_s19 = scalar_lea.vmem %s2231_s1, %s1484_s27 }
  0x1f   : > { %1571 = vmatpush3.bf16.msra.mxu1 %v698_v3  ;;  %v677_v15 = vld [vmem:[%s1987_s24] sm:$0xf]  ;;  %v678_v16 = vld [vmem:[%s1987_s24 + $0x4] sm:$0xf]  ;;  %v1994_v19 = vld [vmem:[%s583_s20 + $0xc] sm:$0xf]  ;;  %v1502_v42 = vcombine.low %v669_v13, %v670_v14  ;;  %s1351_s1 = scalar_lea.hbm %s2216_s14, %s1520_s28 }
  0x20   : > { %1572 = vmatprep.subr.bf16.mxu1 %v697_v8  ;;  %v685_v17 = vadd.bf16 %v677_v15, %v669_v13  ;;  %v686_v20 = vadd.bf16 %v678_v16, %v670_v14  ;;  %v679_v21 = vld [vmem:[%s1987_s24 + $0x8] sm:$0xf]  ;;  %v680_v22 = vld [vmem:[%s1987_s24 + $0xc] sm:$0xf]  ;;  %v1503_v23 = vcombine.low %v1992_v18, %v1994_v19  ;;  %v2000_v24 = vld [vmem:[%s583_s20 + $0x10] sm:$0xf] }
  0x21   : > { %1565 = vmatpush3.bf16.msra.mxu0 %v608_v12  ;;  %v687_v25 = vadd.bf16 %v679_v21, %v1992_v18  ;;  %v688_v26 = vadd.bf16 %v680_v22, %v1994_v19  ;;  %v2010_v27 = vld [vmem:[%s583_s20 + $0x14] sm:$0xf]  ;;  %v681_v28 = vld [vmem:[%s1987_s24 + $0x10] sm:$0xf]  ;;  %v2017_v33 = vld [vmem:[%s583_s20 + $0x18] sm:$0xf] }
  0x22   : > { %v682_v29 = vld [vmem:[%s1987_s24 + $0x14] sm:$0xf]  ;;  %v1493_v30 = vcombine.low %v685_v17, %v686_v20  ;;  %v689_v31 = vadd.bf16 %v681_v28, %v2000_v24  ;;  %v2019_v34 = vld [vmem:[%s583_s20 + $0x1c] sm:$0xf]  ;;  %v683_v35 = vld [vmem:[%s1987_s24 + $0x18] sm:$0xf] }
  0x23   : > { %1573 = vmatpush3.bf16.msra.mxu1 %v697_v8  ;;  %v690_v32 = vadd.bf16 %v682_v29, %v2010_v27  ;;  %v1494_v36 = vcombine.low %v687_v25, %v688_v26  ;;  %v684_v37 = vld [vmem:[%s1987_s24 + $0x1c] sm:$0xf]  ;;  %v2023_v38 = vld [vmem:[%s567_s22] sm:$0xff]  ;;  %v691_v43 = vadd.bf16 %v683_v35, %v2017_v33  ;;  %s1812_s6 = smov 120   ;;  %v810_v20 = vld [vmem:[%s2210_s8 + $0x10] sm:$0xff]  ;;  %v1813_v28 = vmov -inf  }
  0x24   : > { %1594 = vmatprep.subr.bf16.mxu1 %v1810_v5  ;;  %v601_v39 = vld [vmem:[%s574_s19] sm:$0xff]  ;;  %1574 = vmatprep.mubr.msk.bf16.mxu1 %vm617_vm1, %v1493_v30  ;;  %v692_v44 = vadd.bf16 %v684_v37, %v2019_v34  ;;  %v811_v21 = vld [vmem:[%s2210_s8 + $0x18] sm:$0xff]  ;;  %v809_v26 = vld [vmem:[%s2210_s8 + $0x8] sm:$0xff]  ;;  %665 = vst.msk [vmem:[#allocation3] sm:$0xff] %vm664_vm4, %v1813_v28  ;;  %v1504_v30 = vcombine.low %v2000_v24, %v2010_v27  ;;  %v1814_v19 = vmov 0   ;;  %vm1152_vm7 = vcmask 15368  }
  0x25   : > { %v1495_v40 = vcombine.low %v689_v31, %v690_v32  ;;  %v602_v41 = vadd.f32 %v601_v39, %v2023_v38  ;;  %v808_v22 = vld [vmem:[%s2210_s8] sm:$0xff]  ;;  %v813_v25 = vpack.c.bf16 %v811_v21, %v810_v20  ;;  %v1505_v31 = vcombine.low %v2017_v33, %v2019_v34  ;;  %1710 = vset.pattern.permute.xlu0 %v1814_v19  ;;  %s1483_s24 = sshll.u32 %s558_s17, 3  ;;  %s1339_s2 = scalar_lea.sflag [#allocation7], %s558_s17 }
  0x26   : > { %1575 = vmatmul.mubr.msk.bf16.vlgmr.msra.gmra.mxu1 %vm617_vm1, %v1494_v36  ;;  %v1496_v46 = vcombine.low %v691_v43, %v692_v44  ;;  %v812_v29 = vpack.c.bf16 %v809_v26, %v808_v22  ;;  %v1501_v34 = vld [vmem:[%s2211_s9] ss:$0 sm:$0xff]  ;;  %v1815_v21 = vmov 1   ;;  %vm667_vm8 = vcmask 130048   ;;  %s560_s19 = scalar_lea.vmem [#allocation6], %s1483_s24 }
  0x27   : > { %1578 = vmatprep.mubr.msk.bf16.mxu1 %vm617_vm1, %v1495_v40  ;;  %v607_v45 = vpack.c.bf16 %v602_v41, %v602_v41  ;;  %1582 = vmatprep.subr.bf16.mxu0 %v813_v25  ;;  %668 = vst.msk [vmem:[#allocation5] sm:$0xff] %vm667_vm8, %v1810_v5  ;;  %vm1226_vm9 = vcmask 130112   ;;  %s1353_s27 = sshll.u32 %s560_s19, 4  ;;  %s1354_s27 = int_to_ptr.vmem [resolvable:$true] %s1353_s27 }
  0x28   : > { %1713 = vset.pattern.permute.xlu1 %v1815_v21  ;;  %s1732_s21 = scalar_lea.vmem %s1354_s27, 128 }
  0x29   : > { %1567 = vmatmul.mubr.msk.bf16.vlgmr.msra.gmra.mxu0 %vm617_vm1, %v607_v45  ;;  %p1733_p12 = scmp.ne.s32.totalorder %s1354_s27, %s1732_s21 }
  0x2a   : > { %1586 = vmatprep.mubr.msk.bf16.mxu0 %vm617_vm1, %v1502_v42  ;;  %1583 = vmatpush3.bf16.msra.mxu0 %v813_v25 }
  0x2b   : > { %1584 = vmatprep.subr.bf16.mxu0 %v812_v29  ;;  %p1734_p13 = pnand %p1733_p12, %p1933_p4 }
  0x2d   : > { %p1735_p0 = pneg %p1734_p13 }
  0x2e   : > { %1579 = vmatmul.mubr.msk.bf16.gmra.mxu1 %vm617_vm1, %v1496_v46  ;;  %1585 = vmatpush3.bf16.msra.mxu0 %v812_v29 }
  0x2f   : > { %1602 = vmatprep.mubr.msk.bf16.mxu1 %vm1811_vm0, %v1810_v5  ;;  %1606 = vmatprep.subr.bf16.mxu0 %v1810_v5 }
  0x31   : > { %1587 = vmatmul.mubr.msk.bf16.vlgmr.msra.gmra.mxu0 %vm617_vm1, %v1503_v23 }
  0x32   : > { %1590 = vmatprep.mubr.msk.bf16.mxu0 %vm617_vm1, %v1504_v30 }
  0x39   : > { %1591 = vmatmul.mubr.msk.bf16.gmra.mxu0 %vm617_vm1, %v1505_v31 }
  0x3a   : > { %1614 = vmatprep.mubr.msk.bf16.mxu0 %vm1811_vm0, %v1810_v5 }
  0xe6   : > { %v1576_v47 = vpop.f32.mrf.mxu1 }
  0xe7   : > { %v782_v8 = vadd.f32 %v1576_v47, %v1492_v60 }
  0xe8   : > { %v773_v49 = vpop.f32.mrf.mxu1 }
  0xe9   : > { %v655_v50 = vpop.f32.mrf.mxu0  ;;  %v774_v11 = vadd.f32 %v1492_v60, %v773_v49 }
  0xea   : > { %v1577_v51 = vpop.f32.mrf.mxu1  ;;  %v656_v52 = vadd.f32 %v1490_v48, %v655_v50 }
  0xeb   : > { %v1568_v53 = vpop.f32.mrf.mxu0  ;;  %v785_v6 = vadd.f32 %v1577_v51, %v1492_v60 }
  0xec   : > { %v776_v54 = vpop.f32.mrf.mxu1  ;;  %v661_v55 = vpack.c.bf16 %v656_v52, %v656_v52 }
  0xed   : > { %v658_v56 = vpop.f32.mrf.mxu0  ;;  %v805_v9 = vpack.c.bf16 %v785_v6, %v782_v8  ;;  %v777_v10 = vadd.f32 %v1492_v60, %v776_v54 }
  0xee   : > { %v1580_v57 = vpop.f32.mrf.mxu1  ;;  %663 = vst.msk [vmem:[#allocation2] sm:$0xf] %vm662_vm2, %v661_v55  ;;  %v979_v55 = vld [vmem:[#allocation3] sm:$0xff] }
  0xef   : > { %v1569_v58 = vpop.f32.mrf.mxu0  ;;  %v798_v62 = vadd.f32 %v1580_v57, %v1492_v60  ;;  %v804_v14 = vpack.c.bf16 %v777_v10, %v774_v11  ;;  %v931_v16 = vsel %vm923_vm3, %v805_v9, 0 }
  0xf0   : > { %v789_v59 = vpop.f32.mrf.mxu1 }
  0xf1   : > { %v790_v3 = vadd.f32 %v1492_v60, %v789_v59  ;;  %v928_v17 = vsel %vm923_vm3, %v804_v14, 0  ;;  %v1588_v23 = vpop.f32.mrf.mxu0 }
  0xf2   : > { %v1581_v61 = vpop.f32.mrf.mxu1  ;;  %v896_v48 = vadd.f32 %v1588_v23, %v1501_v34 }
  0xf3   : > { %v801_v63 = vadd.f32 %v1581_v61, %v1492_v60  ;;  %v887_v36 = vpop.f32.mrf.mxu0 }
  0xf4   : > { %v792_v0 = vpop.f32.mrf.mxu1  ;;  %v888_v51 = vadd.f32 %v1501_v34, %v887_v36 }
  0xf5   : > { %v793_v1 = vadd.f32 %v1492_v60, %v792_v0  ;;  %v807_v2 = vpack.c.bf16 %v801_v63, %v798_v62  ;;  %v922_v13 = vld [vmem:[#allocation2] sm:$0xf]  ;;  %v1589_v37 = vpop.f32.mrf.mxu0 }
  0xf6   : > { %v1512_v15 = vcombine.low %v922_v13, %v922_v13  ;;  %v899_v49 = vadd.f32 %v1589_v37, %v1501_v34 }
  0xf7   : > { %1073 = vrot.lane.b32.xlu1 %v807_v2, %s1812_s6  ;;  %v937_v4 = vsel %vm923_vm3, %v807_v2, 0  ;;  %v806_v7 = vpack.c.bf16 %v793_v1, %v790_v3  ;;  %v890_v33 = vpop.f32.mrf.mxu0 }
  0xf8   : > { %1595 = vmatpush3.bf16.xpose.msra.mxu1 %v937_v4  ;;  %v2093_v52 = vpack.c.bf16 %v899_v49, %v896_v48  ;;  %v891_v53 = vadd.f32 %v1501_v34, %v890_v33 }
  0xf9   : > { %1596 = vmatprep.subr.bf16.mxu1 %v1810_v5  ;;  %v934_v12 = vsel %vm923_vm3, %v806_v7, 0  ;;  %v1592_v39 = vpop.f32.mrf.mxu0 }
  0xfa   : > { %v912_v41 = vadd.f32 %v1592_v39, %v1501_v34  ;;  %v918_v54 = vpack.c.bf16 %v891_v53, %v888_v51 }
  0xfb   : > { %1071 = vrot.lane.b32.xlu1 %v806_v7, %s1812_s6  ;;  %v903_v40 = vpop.f32.mrf.mxu0 }
  0xfc   : > { %v904_v43 = vadd.f32 %v1501_v34, %v903_v40 }
  0xfd   : > { %v1593_v42 = vpop.f32.mrf.mxu0 }
  0xfe   : > { %v915_v44 = vadd.f32 %v1593_v42, %v1501_v34 }
  0xff   : > { %1069 = vrot.lane.b32.xlu1 %v805_v9, %s1812_s6  ;;  %v906_v45 = vpop.f32.mrf.mxu0 }
 0x100   : > { %1597 = vmatpush3.bf16.xpose.msra.mxu1 %v934_v12  ;;  %v2089_v46 = vpack.c.bf16 %v915_v44, %v912_v41  ;;  %v907_v47 = vadd.f32 %v1501_v34, %v906_v45  ;;  %v996_v41 = vld [vmem:[#allocation4] sm:$0xff]  ;;  %v1004_v45 = vld [vmem:[#allocation5] sm:$0xff] }
 0x101   : > { %1598 = vmatprep.subr.bf16.mxu1 %v1810_v5 }
 0x102   : > { %v920_v50 = vpack.c.bf16 %v907_v47, %v904_v43  ;;  %1607 = vmatpush3.bf16.msra.mxu0 %v2089_v46 }
 0x103   : > { %1067 = vrot.lane.b32.xlu1 %v804_v14, %s1812_s6  ;;  %1608 = vmatprep.subr.bf16.mxu0 %v1810_v5 }
 0x106   : > { %1609 = vmatpush3.bf16.msra.mxu0 %v920_v50 }
 0x107   : > { %1061 = vrot.lane.b32.xlu1 %v1512_v15, %s1812_s6  ;;  %1610 = vmatprep.subr.bf16.mxu0 %v1810_v5 }
 0x108   : > { %1599 = vmatpush3.bf16.xpose.msra.mxu1 %v931_v16 }
 0x109   : > { %1600 = vmatprep.subr.bf16.mxu1 %v1810_v5 }
 0x10a   : > { %1611 = vmatpush3.bf16.msra.mxu0 %v2093_v52 }
 0x10b   : > { %1612 = vmatprep.subr.bf16.mxu0 %v1810_v5 }
 0x10e   : > { %1613 = vmatpush3.bf16.msra.mxu0 %v918_v54 }
 0x10f   : > { %1618 = vmatprep.subr.bf16.mxu0 %v1810_v5 }
 0x110   : > { %1601 = vmatpush3.bf16.xpose.msra.mxu1 %v928_v17 }
 0x111   : > { %1630 = vmatprep.subr.bf16.mxu1 %v1810_v5 }
 0x117   : > { %1603 = vmatmul.mubr.msk.bf16.vlgmr.msra.gmra.mxu1 %vm923_vm3, %v922_v13 }
 0x118   : > { %1638 = vmatprep.mubr.msk.bf16.mxu1 %vm1811_vm0, %v1810_v5 }
 0x169   : > { %v1074_v63 = vpop.permute.xlu1 %1073 }
 0x16a   : > { %v1088_v1 = vsel %vm923_vm3, %v1074_v63, 0 }
 0x16d   : > { %v1072_v2 = vpop.permute.xlu1 %1071 }
 0x16e   : > { %v1085_v3 = vsel %vm923_vm3, %v1072_v2, 0 }
 0x171   : > { %v1070_v4 = vpop.permute.xlu1 %1069 }
 0x172   : > { %v1082_v6 = vsel %vm923_vm3, %v1070_v4, 0 }
 0x175   : > { %v1068_v7 = vpop.permute.xlu1 %1067 }
 0x176   : > { %v1079_v8 = vsel %vm923_vm3, %v1068_v7, 0 }
 0x179   : > { %v1062_v9 = vpop.permute.xlu1 %1061 }
 0x1d7   : > { %v973_v32 = vpop.f32.mrf.mxu1 }
 0x1d8   : > { %v981_v24 = vsel %vm980_vm5, %v973_v32, -inf }
 0x1d9   : > { %982 = vmax.xlane.f32.xlu0 %v981_v24  ;;  %v1604_v27 = vpop.f32.mrf.mxu1 }
 0x1db   : > { %v976_v35 = vpop.f32.mrf.mxu1 }
 0x1dd   : > { %v1605_v18 = vpop.f32.mrf.mxu1 }
 0x262   : > { %v983_v56 = vpop.xlane.xlu0 %982 }
 0x263   : > { %v984_v57 = vmax.f32 %v979_v55, %v983_v56 }
 0x265   : > { %v985_v58 = vsub.f32 %v979_v55, %v984_v57  ;;  %1057 = vst.msk [vmem:[#allocation3] sm:$0xff] %vm1002_vm6, %v984_v57  ;;  %990 = vperm.xlu0 %1710, %v984_v57   ;;  %v1250_v57 = vld [vmem:[%s2212_s10] sm:$0xff] }
 0x267   : > { %v986_v30 = vmul.f32 1.442695, %v985_v58  ;;  %v1251_v58 = vld [vmem:[%s2212_s10 + $0x8] sm:$0xff] }
 0x269   : > { %1711 = vset.pattern.permute.xlu0 %v1815_v21 }
 0x26c   : > { %v1130_v22 = vld [vmem:[#allocation3] sm:$0xff] }
 0x2e0   : > { %v991_v59 = vpop.permute.xlu0 %990 }
 0x2e1   : > { %v993_v60 = vsub.f32 %v973_v32, %v991_v59  ;;  %v1253_v59 = vpack.c.bf16 %v1251_v58, %v1250_v57 }
 0x2e3   : > { %v994_v61 = vmul.f32 1.442695, %v993_v60 }
 0x2e5   : > { %1720 = vpow2.f32 %v994_v61 }
 0x2e6   : > { %1722 = vpow2.f32 %v986_v30 }
 0x2f2   : > { %v1721_v62 = vpop.eup %1720 }
 0x2f3   : > { %v1011_v0 = vpack.c.bf16 %v1721_v62, %v1721_v62  ;;  %v998_v29 = vsel %vm980_vm5, %v1721_v62, 0.0  ;;  %v1723_v31 = vpop.eup %1722 }
 0x2f4   : > { %v997_v42 = vmul.f32 %v1723_v31, %v996_v41 }
 0x2f5   : > { %1615 = vmatmul.mubr.msk.bf16.vlgmr.msra.gmra.mxu0 %vm980_vm5, %v1011_v0 }
 0x2f6   : > { %1619 = vmatpush3.bf16.xpose.msra.mxu0 %v1088_v1  ;;  %1626 = vmatprep.mubr.msk.bf16.mxu0 %vm1811_vm0, %v1810_v5 }
 0x2f7   : > { %1620 = vmatprep.subr.bf16.mxu0 %v1810_v5 }
 0x2fe   : > { %1621 = vmatpush3.bf16.xpose.msra.mxu0 %v1085_v3 }
 0x2ff   : > { %1622 = vmatprep.subr.bf16.mxu0 %v1810_v5 }
 0x306   : > { %1623 = vmatpush3.bf16.xpose.msra.mxu0 %v1082_v6 }
 0x307   : > { %1624 = vmatprep.subr.bf16.mxu0 %v1810_v5 }
 0x30e   : > { %1625 = vmatpush3.bf16.xpose.msra.mxu0 %v1079_v8 }
 0x315   : > { %1627 = vmatmul.mubr.msk.bf16.vlgmr.msra.gmra.mxu0 %vm923_vm3, %v1062_v9 }
 0x3b5   : > { %v2111_v10 = vpop.f32.mrf.mxu0 }
 0x3b7   : > { %v1616_v11 = vpop.f32.mrf.mxu0 }
 0x3b9   : > { %v1052_v12 = vpop.f32.mrf.mxu0 }
 0x3bb   : > { %v1617_v13 = vpop.f32.mrf.mxu0 }
 0x3d5   : > { %v1124_v14 = vpop.f32.mrf.mxu0 }
 0x3d6   : > { %v1131_v15 = vsel %vm980_vm5, %v1124_v14, -inf }
 0x3d7   : > { %1132 = vmax.xlane.f32.xlu1 %v1131_v15  ;;  %v1628_v16 = vpop.f32.mrf.mxu0 }
 0x3d9   : > { %v1127_v17 = vpop.f32.mrf.mxu0 }
 0x3db   : > { %v1629_v20 = vpop.f32.mrf.mxu0 }
 0x3e8   : > { %1170 = vrot.lane.b32.xlu1 %v920_v50, %s1812_s6 }
 0x460   : > { %v1133_v25 = vpop.xlane.xlu1 %1132 }
 0x461   : > { %v1134_v26 = vmax.f32 %v1130_v22, %v1133_v25 }
 0x463   : > { %v1135_v28 = vsub.f32 %v1130_v22, %v1134_v26  ;;  %1228 = vst.msk [vmem:[#allocation3] sm:$0xff] %vm1152_vm7, %v1134_v26  ;;  %1140 = vperm.xlu0 %1711, %v1134_v26  }
 0x464   : > { %v1171_v18 = vpop.permute.xlu1 %1170 }
 0x465   : > { %v1136_v33 = vmul.f32 1.442695, %v1135_v28 }
 0x467   : > { %1172 = vrot.lane.b32.xlu0 %v2089_v46, %s1812_s6 }
 0x468   : > { %1712 = vset.pattern.permute.xlu0 %v1814_v19 }
 0x46b   : > { %1168 = vrot.lane.b32.xlu0 %v2093_v52, %s1812_s6 }
 0x46f   : > { %1166 = vrot.lane.b32.xlu0 %v918_v54, %s1812_s6  ;;  %s1816_s6 = smov 8  }
 0x48e   : > { %999 = vadd.xlane.f32.xlu0 %v998_v29 }
 0x4a4   : > { %1007 = vperm.xlu0 %1712, %v1723_v31   ;;  %v1517_v31 = vld [vmem:[%s2214_s12] ss:$0 sm:$0xff] }
 0x4a8   : > { %1716 = vset.pattern.permute.xlu0 %v1815_v21 }
 0x4de   : > { %v1141_v32 = vpop.permute.xlu0 %1140 }
 0x4df   : > { %v1143_v24 = vsub.f32 %v1124_v14, %v1141_v32 }
 0x4e1   : > { %v1144_v27 = vmul.f32 1.442695, %v1143_v24  ;;  %v1518_v24 = vld [vmem:[%s2215_s13] ss:$0 sm:$0xff] }
 0x4e2   : > { %v1173_v35 = vpop.permute.xlu0 %1172 }
 0x4e3   : > { %1724 = vpow2.f32 %v1144_v27  ;;  %1631 = vmatpush3.bf16.msra.mxu1 %v1173_v35 }
 0x4e4   : > { %1632 = vmatprep.subr.bf16.mxu1 %v1810_v5  ;;  %1726 = vpow2.f32 %v1136_v33 }
 0x4e6   : > { %v1169_v23 = vpop.permute.xlu0 %1168 }
 0x4e7   : > { %1633 = vmatpush3.bf16.msra.mxu1 %v1171_v18 }
 0x4e8   : > { %1634 = vmatprep.subr.bf16.mxu1 %v1810_v5 }
 0x4ea   : > { %v1167_v36 = vpop.permute.xlu0 %1166 }
 0x4eb   : > { %1635 = vmatpush3.bf16.msra.mxu1 %v1169_v23 }
 0x4ec   : > { %1636 = vmatprep.subr.bf16.mxu1 %v1810_v5 }
 0x4ef   : > { %1637 = vmatpush3.bf16.msra.mxu1 %v1167_v36 }
 0x4f0   : > { %v1725_v37 = vpop.eup %1724  ;;  %1642 = vmatprep.subr.bf16.mxu1 %v1810_v5 }
 0x4f1   : > { %v1148_v34 = vsel %vm980_vm5, %v1725_v37, 0.0  ;;  %v1161_v39 = vpack.c.bf16 %v1725_v37, %v1725_v37  ;;  %v1727_v40 = vpop.eup %1726 }
 0x4f2   : > { %1149 = vadd.xlane.f32.xlu1 %v1148_v34 }
 0x4f3   : > { %1639 = vmatmul.mubr.msk.bf16.vlgmr.msra.gmra.mxu1 %vm980_vm5, %v1161_v39 }
 0x4f4   : > { %1644 = vmatprep.mubr.msk.bf16.mxu1 %vm1811_vm0, %v1810_v5  ;;  %1643 = vmatpush3.bf16.msra.mxu1 %v1253_v59 }
 0x503   : > { %1157 = vperm.xlu1 %1713, %v1727_v40  }
 0x507   : > { %1714 = vset.pattern.permute.xlu1 %v1814_v19 }
 0x517   : > { %v1000_v43 = vpop.xlane.xlu0 %999 }
 0x518   : > { %v1001_v44 = vadd.f32 %v1000_v43, %v997_v42 }
 0x51a   : > { %1003 = vst.msk [vmem:[#allocation4] sm:$0xff] %vm1002_vm6, %v1001_v44 }
 0x51f   : > { %v1008_v46 = vpop.permute.xlu0 %1007 }
 0x520   : > { %v1010_v47 = vmul.f32 %v1008_v46, %v1004_v45 }
 0x521   : > { %v1146_v49 = vld [vmem:[#allocation4] sm:$0xff] }
 0x522   : > { %v1055_v48 = vadd.f32 %v2111_v10, %v1010_v47  ;;  %v1147_v5 = vmul.f32 %v1727_v40, %v1146_v49  ;;  %v1515_v10 = vld [vmem:[%s2213_s11] ss:$0 sm:$0xff] }
 0x524   : > { %1056 = vst.msk [vmem:[#allocation5] sm:$0xff] %vm923_vm3, %v1055_v48 }
 0x52b   : > { %v1154_v61 = vld [vmem:[#allocation5] sm:$0xff] }
 0x57b   : > { %v1150_v50 = vpop.xlane.xlu1 %1149 }
 0x57c   : > { %v1151_v51 = vadd.f32 %v1150_v50, %v1147_v5 }
 0x57e   : > { %1153 = vst.msk [vmem:[#allocation4] sm:$0xff] %vm1152_vm7, %v1151_v51 }
 0x57f   : > { %v1158_v60 = vpop.permute.xlu1 %1157 }
 0x580   : > { %v1160_v62 = vmul.f32 %v1158_v60, %v1154_v61 }
 0x585   : > { %v1232_v19 = vld [vmem:[#allocation4] sm:$0xff] }
 0x586   : > { %1728 = vrcp.f32 %v1232_v19 }
 0x593   : > { %v1729_v54 = vpop.eup %1728 }
 0x5b3   : > { %v1215_v52 = vpop.f32.mrf.mxu1 }
 0x5b4   : > { %1222 = vrot.lane.b32.xlu1 %v1215_v52, %s1816_s6  ;;  %s1817_s6 = smov [#allocation6]  }
 0x5b5   : > { %v1640_v53 = vpop.f32.mrf.mxu1  ;;  %s1736_s22 = sshll.u32 %s1817_s6, 4  ;;  %s1737_s22 = int_to_ptr.vmem [resolvable:$false] %s1736_s22 }
 0x5b6   : > { %s1738_s16 = scalar_lea.vmem %s1737_s22, 256  ;;  %p1739_p1 = scmp.lt.s32.totalorder %s1354_s27, %s1737_s22 }
 0x5b7   : > { %v1218_v55 = vpop.f32.mrf.mxu1  ;;  %p1740_p2 = scmp.lt.s32.totalorder %s1738_s16, %s1732_s21 }
 0x5b8   : > { %1237 = vperm.xlu1 %1714, %v1729_v54  }
 0x5b9   : > { %v1641_v56 = vpop.f32.mrf.mxu1  ;;  %p1741_p3 = por %p1740_p2, %p1739_p1 }
 0x5bb   : > { %p1742_p5 = pnand %p1741_p3, %p1735_p0 }
 0x5bc   : > { %1715 = vset.pattern.permute.xlu1 %v1815_v21 }
 0x5bd   : > { %1244 = vperm.xlu1 %1715, %v1729_v54  }
 0x626   : > { %v1223_v63 = vpop.permute.xlu1 %1222 }
 0x627   : > { %v1225_v0 = vadd.f32 %v1223_v63, %v1160_v62 }
 0x629   : > { %1227 = vst.msk [vmem:[#allocation5] sm:$0xff] %vm1226_vm9, %v1225_v0 }
 0x630   : > { %v1234_v1 = vld [vmem:[#allocation5] sm:$0xff] }
 0x633   : > { %v1238_v2 = vpop.permute.xlu1 %1237 }
 0x634   : > { %v1240_v3 = vmul.f32 %v1238_v2, %v1234_v1 }
 0x636   : > { %1241 = vst.msk [vmem:[#allocation5] sm:$0xff] %vm923_vm3, %v1240_v3 }
 0x638   : > { %v1245_v6 = vpop.permute.xlu1 %1244 }
 0x63d   : > { %v1242_v4 = vld [vmem:[#allocation5] sm:$0xff] }
 0x63e   : > { %v1247_v7 = vmul.f32 %v1245_v6, %v1242_v4 }
 0x640   : > { %1248 = vst.msk [vmem:[#allocation5] sm:$0xff] %vm1226_vm9, %v1247_v7 }
 0x647   : > { %v1249_v8 = vld [vmem:[#allocation5] sm:$0xff] }
 0x648   : > { %v1252_v9 = vpack.c.bf16 %v1249_v8, %v1249_v8 }
 0x64a   : > { %1645 = vmatmul.mubr.msk.bf16.vlgmr.msra.gmra.mxu1 %vm667_vm8, %v1252_v9 }
 0x70a   : > { %v1299_v11 = vpop.f32.mrf.mxu1 }
 0x70b   : > { %v1300_v12 = vadd.f32 %v1515_v10, %v1299_v11 }
 0x70c   : > { %v1646_v13 = vpop.f32.mrf.mxu1 }
 0x70d   : > { %v1306_v14 = vadd.f32 %v1300_v12, %v2023_v38 }
 0x70e   : > { %v1302_v15 = vpop.f32.mrf.mxu1 }
 0x70f   : > { %v1307_v16 = vsel %vm617_vm1, %v1306_v14, 0.0 }
 0x710   : > { %1308 = vadd.xlane.f32.xlu1 %v1307_v16  ;;  %v1647_v17 = vpop.f32.mrf.mxu1 }
 0x799   : > { %v1309_v20 = vpop.xlane.xlu1 %1308 }
 0x79a   : > { %v1311_v21 = vmul.f32 0.03125, %v1309_v20 }
 0x79c   : > { %v1312_v22 = vsub.f32 %v1306_v14, %v1311_v21 }
 0x79e   : > { %v1313_v25 = vmul.f32 %v1312_v22, %v1312_v22 }
 0x7a0   : > { %v1314_v26 = vsel %vm617_vm1, %v1313_v25, 0.0 }
 0x7a1   : > { %1315 = vadd.xlane.f32.xlu0 %v1314_v26 }
 0x82a   : > { %v1316_v28 = vpop.xlane.xlu0 %1315 }
 0x82b   : > { %v1317_v29 = vmul.f32 0.03125, %v1316_v28 }
 0x82d   : > { %v1318_v30 = vadd.f32 1e-05, %v1317_v29 }
 0x82f   : > { %1730 = vrsqrt.f32 %v1318_v30 }
 0x83c   : > { %v1731_v38 = vpop.eup %1730 }
 0x83d   : > { %v1320_v32 = vmul.f32 %v1731_v38, %v1312_v22 }
 0x83f   : > { %v1328_v27 = vmul.f32 %v1517_v31, %v1320_v32 }
 0x841   : > { %v1336_v35 = vadd.f32 %v1518_v24, %v1328_v27 }
 0x843   : > { %1337 = vst.msk [vmem:[%s560_s19] sm:$0xff] %vm617_vm1, %v1336_v35 }
 0x844   : > { %1745 = shalt.err (!%p1742_p5)
}
 0x845   : > { %s1746_s0 = scalar_lea.hbm %s1351_s1, 128  ;;  %s1750_s26 = scalar_lea.hbm %s2216_s14, 256 }
 0x846   : > { %p1747_p6 = scmp.ne.s32.totalorder %s1351_s1, %s1746_s0  ;;  %p1751_p10 = scmp.lt.s32.totalorder %s1351_s1, %s2216_s14 }
 0x847   : > { %p1752_p11 = scmp.lt.s32.totalorder %s1750_s26, %s1746_s0 }
 0x848   : > { %p1748_p7 = pnand %p1747_p6, %p1933_p4 }
 0x849   : > { %p1753_p12 = por %p1752_p11, %p1751_p10 }
 0x84a   : > { %p1749_p9 = pneg %p1748_p7 }
 0x84c   : > { %p1754_p13 = pnand %p1753_p12, %p1749_p9 }
 0x84e   : > { %1757 = shalt.err (!%p1754_p13)
}
 0x84f   : > { %1648 = dma.vmem_to_hbm [thread:$0]  (%p1933_p4), %s1354_s27, 128, %s1351_s1, %s1339_s2  }
 0x850 PF: > { %p1654_p0 = scmp.ge.s32.totalorder %s1808_s18, 2  ;;  %s1365_s20 = sand.u32 1, %s1788_s29  }
 0x851   : > { %s1366_s21 = scalar_lea.sflag [#allocation7], %s1365_s20 }
 0x852   : > { %p1651_p1 = pnand %p1654_p0, %p1940_p8 }
 0x854   : > { %p1652_p2 = pneg %p1651_p1 }
 0x856   : > { %1783 = dma.done.wait (%p1652_p2), %s1366_s21, 128  }
 0x857   : > { %1785 = vsyncadd (%p1652_p2), %s1366_s21, 4294967168  ;;  %s27_s18 = sadd.s32 1, %s1808_s18   ;;  %s2232_s6 = sld [smem:[#allocation11_spill]] }
 0x858   : > { %p24_p3 = scmp.ge.s32.totalorder %s27_s18, 4   ;;  %s2233_s16 = sld [smem:[#allocation9_spill]] }
 0x859   : > { %s2234_s17 = sld [smem:[#allocation10_spill]]  ;;  %s2235_s29 = smov %s1792_s30 }
 0x85a   : > { %s2236_s30 = smov %s1796_s15  ;;  %26 = sbr.rel (!%p24_p3) target bundleno = 9 (0x9), region = 128 }
 0x85d   : > { %s2237_s15 = smov %s2232_s6 }
 0x85f   :  { %1371 = vsyncpa [#allocation7], 1 }
 0x860   :  { %1373 = vsyncpa [#allocation7 + $0x1], 1 }

// kernel: two_way_transformer_forward.12
= control target key start
LH: loop header
LB: loop body
LE: loop exit
PB: predicated region body
PF: predicated region fallthrough
CT: control target
= control target key end

     0   :  { %s2826_s29 = smov 0   ;;  %s2828_s30 = smov 0   ;;  %s3557_s0 = inlined_call_operand.vmem [shape: f32[2,64,32], index: 0, kind: input, shape index: {}]   ;;  %s3558_s1 = inlined_call_operand.vmem [shape: f32[2,64,32], index: 1, kind: input, shape index: {}]   ;;  %s3559_s2 = inlined_call_operand.vmem [shape: bf16[2,8,32], index: 2, kind: input, shape index: {}]   ;;  %s3560_s3 = inlined_call_operand.vmem [shape: bf16[2,8,32], index: 3, kind: input, shape index: {}]   ;;  %s3561_s4 = inlined_call_operand.vmem [shape: f32[32,16], index: 4, kind: input, shape index: {}]   ;;  %s3562_s5 = inlined_call_operand.vmem [shape: f32[1,16], index: 5, kind: input, shape index: {}]   ;;  %s3563_s6 = inlined_call_operand.vmem [shape: f32[32,16], index: 6, kind: input, shape index: {}]   ;;  %s3564_s7 = inlined_call_operand.vmem [shape: f32[1,16], index: 7, kind: input, shape index: {}]   ;;  %s3565_s8 = inlined_call_operand.vmem [shape: f32[32,16], index: 8, kind: input, shape index: {}]   ;;  %s3566_s9 = inlined_call_operand.vmem [shape: f32[1,16], index: 9, kind: input, shape index: {}]   ;;  %s3567_s10 = inlined_call_operand.vmem [shape: f32[16,32], index: 10, kind: input, shape index: {}]   ;;  %s3568_s11 = inlined_call_operand.vmem [shape: f32[1,32], index: 11, kind: input, shape index: {}]   ;;  %s3569_s12 = inlined_call_operand.vmem [shape: f32[1,32], index: 12, kind: input, shape index: {}]   ;;  %s3570_s13 = inlined_call_operand.vmem [shape: f32[1,32], index: 13, kind: input, shape index: {}]   ;;  %s3571_s14 = inlined_call_operand.vmem [shape: f32[2,64,32], index: 14, kind: output, shape index: {}]  }
   0x1   :  { %s2830_s15 = smov 0  }
   0x2 LB: > { %s43_s16 = sadd.s32 1, %s2738_s30  ;;  %p2390_p0 = scmp.ge.s32.totalorder %s2742_s15, 1  ;;  %s2742_s15 = sphi %s2830_s15, %s24_s15   ;;  %s2738_s30 = sphi %s2828_s30, %s3593_s30   ;;  %s2734_s29 = sphi %s2826_s29, %s3592_s29  }
   0x3   : > { %p45_p1 = scmp.ge.s32.totalorder %s43_s16, 2  ;;  %p485_p2 = scmp.lt.s32.totalorder %s2742_s15, 3 }
   0x5   : > { %s3595_s16 = smov (%p45_p1, %s43_s16), 0  ;;  %p486_p3 = pnand %p2390_p0, %p485_p2 }
   0x6   : > { %p563_p4 = scmp.lt.s32.totalorder (!%p486_p3), %s2734_s29, 1  ;;  %s2746_s18 = smov (!%p486_p3), 120  }
   0x7   : > { %489 = sbr.rel (%p486_p3) target bundleno = 1769 (0x6e9), region = 76 }
   0xc   : > { %v637_v0 = vld [vmem:[%s3561_s4 + $0x10] sm:$0xff]  ;;  %v638_v1 = vld [vmem:[%s3561_s4 + $0x18] sm:$0xff]  ;;  %v635_v2 = vld [vmem:[%s3561_s4] sm:$0xff]  ;;  %s3597_s29 = smov (!%p563_p4, %s2734_s29), 1  ;;  %vm652_vm0 = vcmask 261120   ;;  %v3574_v24 = vmov 0.0  }
   0xd   : > { %v644_v3 = vpack.c.bf16 %v638_v1, %v637_v0  ;;  %v636_v4 = vld [vmem:[%s3561_s4 + $0x8] sm:$0xff]  ;;  %s2859_s25 = sshll.u32 %s3597_s29, 6  ;;  %v802_v17 = vld [vmem:[%s3563_s6 + $0x10] sm:$0xff]  ;;  %v803_v18 = vld [vmem:[%s3563_s6 + $0x18] sm:$0xff]  ;;  %s2395_s24 = sshll.u32 %s3597_s29, 2  ;;  %vm2745_vm1 = vmmov 0  }
   0xe   : > { %v643_v5 = vpack.c.bf16 %v636_v4, %v635_v2  ;;  %s2865_s28 = scalar_lea.vmem %s3557_s0, %s2859_s25  ;;  %s2871_s19 = scalar_lea.vmem %s3558_s1, %s2859_s25  ;;  %v805_v36 = vpack.c.bf16 %v803_v18, %v802_v17  ;;  %v800_v38 = vld [vmem:[%s3563_s6] sm:$0xff]  ;;  %v801_v39 = vld [vmem:[%s3563_s6 + $0x8] sm:$0xff]  ;;  %vm762_vm2 = vcmask 125952   ;;  %vm943_vm3 = vcmask 64512   ;;  %v860_v17 = vld [vmem:[%s3565_s8 + $0x10] sm:$0xff] }
   0xf   : > { %2493 = vmatprep.subr.bf16.mxu0 %v644_v3  ;;  %2571 = vmatprep.subr.bf16.mxu1 %v644_v3  ;;  %v611_v6 = vld [vmem:[%s2865_s28] sm:$0xff]  ;;  %v612_v7 = vld [vmem:[%s2865_s28 + $0x8] sm:$0xff]  ;;  %v613_v16 = vld [vmem:[%s2865_s28 + $0x10] sm:$0xff]  ;;  %s588_s20 = scalar_lea.vmem %s3559_s2, %s2395_s24  ;;  %s595_s23 = scalar_lea.vmem %s3560_s3, %s2395_s24  ;;  %v804_v40 = vpack.c.bf16 %v801_v39, %v800_v38  ;;  %vm771_vm4 = vcmask 15360   ;;  %vm1200_vm5 = vcmask 7168   ;;  %vm1281_vm6 = vcmask 1043456  }
  0x10   : > { %2494 = vmatpush3.bf16.msra.mxu0 %v644_v3  ;;  %2573 = vmatpush3.bf16.msra.mxu1 %v644_v3  ;;  %v619_v8 = vld [vmem:[%s2871_s19] sm:$0xff]  ;;  %v620_v9 = vld [vmem:[%s2871_s19 + $0x8] sm:$0xff]  ;;  %v614_v21 = vld [vmem:[%s2865_s28 + $0x18] sm:$0xff]  ;;  %780 = vst.msk [vmem:[#allocation4] sm:$0xff] %vm771_vm4, %v3574_v24  ;;  %vm1641_vm7 = vcmask 15368   ;;  %vm788_vm8 = vcmask 130048  }
  0x11   : > { %2495 = vmatprep.subr.bf16.mxu0 %v643_v5  ;;  %2572 = vmatprep.subr.bf16.mxu1 %v643_v5  ;;  %v627_v10 = vadd.f32 %v619_v8, %v611_v6  ;;  %v615_v11 = vld [vmem:[%s2865_s28 + $0x20] sm:$0xff]  ;;  %v616_v12 = vld [vmem:[%s2865_s28 + $0x28] sm:$0xff]  ;;  %v628_v13 = vadd.f32 %v620_v9, %v612_v7  ;;  %v621_v22 = vld [vmem:[%s2871_s19 + $0x10] sm:$0xff]  ;;  %781 = vst.msk [vmem:[#allocation4 + $0x8] sm:$0xff] %vm771_vm4, %v3574_v24  ;;  %vm1833_vm9 = vcmask 130112  }
  0x12   : > { %v623_v14 = vld [vmem:[%s2871_s19 + $0x20] sm:$0xff]  ;;  %v624_v15 = vld [vmem:[%s2871_s19 + $0x28] sm:$0xff]  ;;  %v622_v23 = vld [vmem:[%s2871_s19 + $0x18] sm:$0xff]  ;;  %v629_v26 = vadd.f32 %v621_v22, %v613_v16  ;;  %782 = vst.msk [vmem:[#allocation4 + $0x10] sm:$0xff] %vm771_vm4, %v3574_v24 }
  0x13   : > { %v631_v19 = vadd.f32 %v623_v14, %v615_v11  ;;  %v632_v20 = vadd.f32 %v624_v15, %v616_v12  ;;  %v639_v25 = vpack.c.bf16 %v628_v13, %v627_v10  ;;  %v630_v27 = vadd.f32 %v622_v23, %v614_v21  ;;  %v617_v28 = vld [vmem:[%s2865_s28 + $0x30] sm:$0xff]  ;;  %v618_v29 = vld [vmem:[%s2865_s28 + $0x38] sm:$0xff]  ;;  %v2914_v41 = vld [vmem:[%s588_s20] sm:$0xf]  ;;  %783 = vst.msk [vmem:[#allocation4 + $0x18] sm:$0xff] %vm771_vm4, %v3574_v24 }
  0x14   : > { %2496 = vmatpush3.bf16.msra.mxu0 %v643_v5  ;;  %2574 = vmatpush3.bf16.msra.mxu1 %v643_v5  ;;  %v625_v30 = vld [vmem:[%s2871_s19 + $0x30] sm:$0xff]  ;;  %v626_v32 = vld [vmem:[%s2871_s19 + $0x38] sm:$0xff]  ;;  %v798_v42 = vld [vmem:[%s595_s23] sm:$0xf]  ;;  %784 = vst.msk [vmem:[#allocation4 + $0x20] sm:$0xff] %vm771_vm4, %v3574_v24  ;;  %s3523_s19 = scalar_lea.vmem %s3571_s14, %s2859_s25 }
  0x15   : > { %2505 = vmatprep.subr.bf16.mxu1 %v3574_v24  ;;  %v641_v31 = vpack.c.bf16 %v632_v20, %v631_v19  ;;  %v633_v33 = vadd.f32 %v625_v30, %v617_v28  ;;  %2497 = vmatprep.mubr.msk.bf16.mxu0 %vm652_vm0, %v639_v25  ;;  %v640_v34 = vpack.c.bf16 %v630_v27, %v629_v26  ;;  %v2399_v44 = vld [vmem:[%s3562_s5] ss:$0 sm:$0xff]  ;;  %v861_v18 = vld [vmem:[%s3565_s8 + $0x18] sm:$0xff]  ;;  %v859_v21 = vld [vmem:[%s3565_s8 + $0x8] sm:$0xff] }
  0x16   : > { %v634_v35 = vadd.f32 %v626_v32, %v618_v29  ;;  %v799_v43 = vadd.bf16 %v798_v42, %v2914_v41  ;;  %v2412_v1 = vld [vmem:[%s3564_s7] ss:$0 sm:$0xff]  ;;  %v863_v20 = vpack.c.bf16 %v861_v18, %v860_v17  ;;  %785 = vst.msk [vmem:[#allocation4 + $0x28] sm:$0xff] %vm771_vm4, %v3574_v24  ;;  %786 = vst.msk [vmem:[#allocation4 + $0x30] sm:$0xff] %vm771_vm4, %v3574_v24 }
  0x17   : > { %2501 = vmatprep.mubr.msk.bf16.mxu1 %vm652_vm0, %v641_v31  ;;  %2498 = vmatmul.mubr.msk.bf16.vlgmr.msra.gmra.mxu0 %vm652_vm0, %v640_v34  ;;  %v858_v19 = vld [vmem:[%s3565_s8] sm:$0xff]  ;;  %787 = vst.msk [vmem:[#allocation4 + $0x38] sm:$0xff] %vm771_vm4, %v3574_v24 }
  0x18   : > { %v642_v37 = vpack.c.bf16 %v634_v35, %v633_v33  ;;  %v862_v22 = vpack.c.bf16 %v859_v21, %v858_v19  ;;  %v2747_v35 = vmov -inf  }
  0x19   : > { %772 = vst.msk [vmem:[#allocation3] sm:$0xff] %vm771_vm4, %v2747_v35  ;;  %773 = vst.msk [vmem:[#allocation3 + $0x8] sm:$0xff] %vm771_vm4, %v2747_v35 }
  0x1a   : > { %2502 = vmatmul.mubr.msk.bf16.vlgmr.msra.gmra.mxu1 %vm652_vm0, %v642_v37  ;;  %774 = vst.msk [vmem:[#allocation3 + $0x10] sm:$0xff] %vm771_vm4, %v2747_v35  ;;  %775 = vst.msk [vmem:[#allocation3 + $0x18] sm:$0xff] %vm771_vm4, %v2747_v35 }
  0x1b   : > { %2506 = vmatpush3.bf16.msra.mxu1 %v805_v36  ;;  %2509 = vmatprep.mubr.msk.bf16.mxu1 %vm2745_vm1, %v3574_v24  ;;  %776 = vst.msk [vmem:[#allocation3 + $0x20] sm:$0xff] %vm771_vm4, %v2747_v35  ;;  %777 = vst.msk [vmem:[#allocation3 + $0x28] sm:$0xff] %vm771_vm4, %v2747_v35 }
  0x1c   : > { %2507 = vmatprep.subr.bf16.mxu1 %v3574_v24  ;;  %778 = vst.msk [vmem:[#allocation3 + $0x30] sm:$0xff] %vm771_vm4, %v2747_v35  ;;  %779 = vst.msk [vmem:[#allocation3 + $0x38] sm:$0xff] %vm771_vm4, %v2747_v35 }
  0x1f   : > { %2508 = vmatpush3.bf16.msra.mxu1 %v804_v40 }
  0x20   : > { %2513 = vmatprep.subr.bf16.mxu1 %v3574_v24 }
  0x22   : > { %2510 = vmatmul.mubr.msk.bf16.vlgmr.msra.gmra.mxu1 %vm652_vm0, %v799_v43 }
  0x23   : > { %2517 = vmatprep.mubr.msk.bf16.mxu1 %vm2745_vm1, %v3574_v24  ;;  %2514 = vmatpush3.bf16.msra.mxu1 %v863_v20  ;;  %v3091_v20 = vld [vmem:[#allocation3 + $0x20] sm:$0xff] }
  0x24   : > { %2515 = vmatprep.subr.bf16.mxu1 %v3574_v24 }
  0x27   : > { %2516 = vmatpush3.bf16.msra.mxu1 %v862_v22 }
  0x2a   : > { %2518 = vmatmul.mubr.msk.bf16.vlgmr.msra.gmra.mxu1 %vm652_vm0, %v2914_v41 }
  0xd7   : > { %v2499_v45 = vpop.f32.mrf.mxu0 }
  0xd8   : > { %v708_v46 = vadd.f32 %v2499_v45, %v2399_v44 }
  0xd9   : > { %v699_v48 = vpop.f32.mrf.mxu0 }
  0xda   : > { %v2503_v47 = vpop.f32.mrf.mxu1  ;;  %v2450_v49 = vpack.c.bf16 %v708_v46, %v708_v46  ;;  %v700_v51 = vadd.f32 %v2399_v44, %v699_v48 }
  0xdb   : > { %v724_v50 = vadd.f32 %v2503_v47, %v2399_v44  ;;  %v2500_v53 = vpop.f32.mrf.mxu0  ;;  %v2748_v47 = vmov 0  }
  0xdc   : > { %v715_v52 = vpop.f32.mrf.mxu1  ;;  %765 = vst.msk [vmem:[#allocation2 + $0x8] sm:$0xf] %vm762_vm2, %v2450_v49  ;;  %v2448_v55 = vpack.c.bf16 %v700_v51, %v700_v51  ;;  %v711_v57 = vadd.f32 %v2500_v53, %v2399_v44  ;;  %2611 = vset.pattern.permute.xlu1 %v2748_v47  ;;  %2610 = vset.pattern.permute.xlu0 %v2748_v47 }
  0xdd   : > { %v2454_v54 = vpack.c.bf16 %v724_v50, %v724_v50  ;;  %v716_v56 = vadd.f32 %v2399_v44, %v715_v52  ;;  %v702_v59 = vpop.f32.mrf.mxu0 }
  0xde   : > { %v2504_v58 = vpop.f32.mrf.mxu1  ;;  %763 = vst.msk [vmem:[#allocation2] sm:$0xf] %vm762_vm2, %v2448_v55  ;;  %v2451_v61 = vpack.c.bf16 %v711_v57, %v711_v57  ;;  %v703_v63 = vadd.f32 %v2399_v44, %v702_v59 }
  0xdf   : > { %769 = vst.msk [vmem:[#allocation2 + $0x18] sm:$0xf] %vm762_vm2, %v2454_v54  ;;  %v2452_v60 = vpack.c.bf16 %v716_v56, %v716_v56  ;;  %v727_v62 = vadd.f32 %v2504_v58, %v2399_v44 }
  0xe0   : > { %v718_v0 = vpop.f32.mrf.mxu1  ;;  %766 = vst.msk [vmem:[#allocation2 + $0xc] sm:$0xf] %vm762_vm2, %v2451_v61  ;;  %v2449_v3 = vpack.c.bf16 %v703_v63, %v703_v63 }
  0xe1   : > { %767 = vst.msk [vmem:[#allocation2 + $0x10] sm:$0xf] %vm762_vm2, %v2452_v60  ;;  %v2455_v2 = vpack.c.bf16 %v727_v62, %v727_v62  ;;  %v719_v4 = vadd.f32 %v2399_v44, %v718_v0  ;;  %v3057_v0 = vld [vmem:[#allocation3] sm:$0xff] }
  0xe2   : > { %v851_v5 = vpop.f32.mrf.mxu1  ;;  %764 = vst.msk [vmem:[#allocation2 + $0x4] sm:$0xf] %vm762_vm2, %v2449_v3  ;;  %v3062_v3 = vld [vmem:[#allocation3 + $0x18] sm:$0xff] }
  0xe3   : > { %770 = vst.msk [vmem:[#allocation2 + $0x1c] sm:$0xf] %vm762_vm2, %v2455_v2  ;;  %v2453_v6 = vpack.c.bf16 %v719_v4, %v719_v4  ;;  %v852_v7 = vadd.f32 %v2412_v1, %v851_v5  ;;  %v3064_v4 = vld [vmem:[#allocation3 + $0x8] sm:$0xff] }
  0xe4   : > { %v2511_v8 = vpop.f32.mrf.mxu1 }
  0xe5   : > { %768 = vst.msk [vmem:[#allocation2 + $0x14] sm:$0xf] %vm762_vm2, %v2453_v6  ;;  %v857_v9 = vpack.c.bf16 %v852_v7, %v852_v7 }
  0xe6   : > { %v854_v10 = vpop.f32.mrf.mxu1 }
  0xe7   : > { %1383 = vrot.lane.b32.xlu0 %v857_v9, %s2746_s18  ;;  %2575 = vmatprep.subr.msk.bf16.mxu0 %vm943_vm3, %v857_v9  ;;  %v957_v11 = vsel %vm943_vm3, %v857_v9, 0  ;;  %v2620_v13 = vld [vmem:[#allocation2 + $0x8] sm:$0xff]  }
  0xe8   : > { %v2512_v12 = vpop.f32.mrf.mxu1  ;;  %2522 = vmatpush3.bf16.xpose.msra.mxu0 %v957_v11  ;;  %1376 = vrot.lane.b32.xlu1 %v2620_v13, %s2746_s18  ;;  %v3076_v11 = vld [vmem:[#allocation3 + $0x10] sm:$0xff] }
  0xe9   : > { %v2621_v14 = vld [vmem:[#allocation2] sm:$0xff]  }
  0xea   : > { %2523 = vmatprep.mubr.msk.bf16.mxu0 %vm943_vm3, %v2621_v14  ;;  %v2623_v16 = vld [vmem:[#allocation2 + $0x18] sm:$0xff]   ;;  %v908_v10 = vpop.f32.mrf.mxu1 }
  0xeb   : > { %1374 = vrot.lane.b32.xlu0 %v2621_v14, %s2746_s18 }
  0xec   : > { %v2622_v15 = vld [vmem:[#allocation2 + $0x10] sm:$0xff]   ;;  %v2519_v14 = vpop.f32.mrf.mxu1 }
  0xed   : > { %1378 = vrot.lane.b32.xlu1 %v2622_v15, %s2746_s18 }
  0xee   : > { %v911_v18 = vpop.f32.mrf.mxu1 }
  0xef   : > { %2524 = vmatmul.mubr.msk.bf16.vlgmr.msra.gmra.mxu0 %vm943_vm3, %v2620_v13  ;;  %1380 = vrot.lane.b32.xlu0 %v2623_v16, %s2746_s18 }
  0xf0   : > { %2527 = vmatprep.mubr.msk.bf16.mxu0 %vm943_vm3, %v2622_v15 }
  0xf7   : > { %2528 = vmatmul.mubr.msk.bf16.gmra.mxu0 %vm943_vm3, %v2623_v16  ;;  %v3086_v16 = vld [vmem:[#allocation3 + $0x38] sm:$0xff] }
 0x159   : > { %v1384_v23 = vpop.permute.xlu0 %1383 }
 0x15a   : > { %v1398_v25 = vsel %vm943_vm3, %v1384_v23, 0  ;;  %2577 = vmatprep.subr.msk.bf16.mxu0 %vm943_vm3, %v1384_v23  ;;  %v1377_v26 = vpop.permute.xlu1 %1376  ;;  %v2520_v23 = vpop.f32.mrf.mxu1 }
 0x15b   : > { %2542 = vmatpush3.bf16.xpose.msra.mxu0 %v1398_v25 }
 0x15d   : > { %v1375_v27 = vpop.permute.xlu0 %1374 }
 0x15e   : > { %2543 = vmatprep.mubr.msk.bf16.mxu0 %vm943_vm3, %v1375_v27 }
 0x15f   : > { %v1379_v28 = vpop.permute.xlu1 %1378 }
 0x161   : > { %v1381_v29 = vpop.permute.xlu0 %1380 }
 0x162   : > { %2544 = vmatmul.mubr.msk.bf16.vlgmr.msra.gmra.mxu0 %vm943_vm3, %v1377_v26  ;;  %v3102_v26 = vld [vmem:[#allocation3 + $0x28] sm:$0xff] }
 0x163   : > { %2547 = vmatprep.mubr.msk.bf16.mxu0 %vm943_vm3, %v1379_v28 }
 0x16a   : > { %2548 = vmatmul.mubr.msk.bf16.gmra.mxu0 %vm943_vm3, %v1381_v29 }
 0x1af   : > { %v2967_v30 = vpop.f32.mrf.mxu0 }
 0x1b0   : > { %v1038_v40 = vsel %vm943_vm3, %v2967_v30, -inf }
 0x1b1   : > { %v2969_v31 = vpop.f32.mrf.mxu0 }
 0x1b2   : > { %v1032_v32 = vsel %vm943_vm3, %v2969_v31, -inf }
 0x1b3   : > { %1033 = vmax.xlane.f32.xlu1 %v1032_v32  ;;  %v2973_v33 = vpop.f32.mrf.mxu0  ;;  %v3111_v32 = vld [vmem:[#allocation3 + $0x30] sm:$0xff] }
 0x1b4   : > { %v1041_v36 = vsel %vm943_vm3, %v2973_v33, -inf }
 0x1b5   : > { %v2975_v34 = vpop.f32.mrf.mxu0 }
 0x1b6   : > { %v1035_v37 = vsel %vm943_vm3, %v2975_v34, -inf }
 0x1b7   : > { %1042 = vmax.xlane.f32.xlu1 %v1041_v36  ;;  %1036 = vmax.xlane.f32.xlu0 %v1035_v37  ;;  %v3005_v38 = vpop.f32.mrf.mxu0 }
 0x1b8   : > { %v1050_v46 = vsel %vm943_vm3, %v3005_v38, -inf }
 0x1b9   : > { %v3007_v39 = vpop.f32.mrf.mxu0 }
 0x1ba   : > { %v1044_v44 = vsel %vm943_vm3, %v3007_v39, -inf }
 0x1bb   : > { %1039 = vmax.xlane.f32.xlu0 %v1038_v40  ;;  %v3011_v41 = vpop.f32.mrf.mxu0  ;;  %v3572_v40 = vmov 1  }
 0x1bc   : > { %v1053_v42 = vsel %vm943_vm3, %v3011_v41, -inf }
 0x1bd   : > { %1054 = vmax.xlane.f32.xlu1 %v1053_v42  ;;  %v3015_v43 = vpop.f32.mrf.mxu0 }
 0x1be   : > { %v1047_v45 = vsel %vm943_vm3, %v3015_v43, -inf }
 0x1bf   : > { %1045 = vmax.xlane.f32.xlu0 %v1044_v44 }
 0x1c1   : > { %1048 = vmax.xlane.f32.xlu1 %v1047_v45 }
 0x1c3   : > { %1051 = vmax.xlane.f32.xlu0 %v1050_v46  ;;  %v2414_v46 = vld [vmem:[%s3566_s9] ss:$0 sm:$0xff] }
 0x222   : > { %v3025_v48 = vpop.f32.mrf.mxu0 }
 0x223   : > { %v1479_v54 = vsel %vm943_vm3, %v3025_v48, -inf }
 0x224   : > { %v3027_v49 = vpop.f32.mrf.mxu0 }
 0x225   : > { %v1473_v50 = vsel %vm943_vm3, %v3027_v49, -inf }
 0x226   : > { %1474 = vmax.xlane.f32.xlu0 %v1473_v50  ;;  %v3031_v51 = vpop.f32.mrf.mxu0  ;;  %v909_v50 = vadd.f32 %v2414_v46, %v908_v10 }
 0x227   : > { %v1482_v52 = vsel %vm943_vm3, %v3031_v51, -inf }
 0x228   : > { %v3035_v53 = vpop.f32.mrf.mxu0  ;;  %1483 = vmax.xlane.f32.xlu1 %v1482_v52  ;;  %v914_v52 = vpack.c.bf16 %v909_v50, %v909_v50 }
 0x229   : > { %v1476_v56 = vsel %vm943_vm3, %v3035_v53, -inf }
 0x22a   : > { %1480 = vmax.xlane.f32.xlu0 %v1479_v54  ;;  %v3039_v55 = vpop.f32.mrf.mxu0  ;;  %2576 = vmatprep.subr.msk.bf16.mxu1 %vm1281_vm6, %v914_v52  ;;  %v1283_v54 = vsel %vm1281_vm6, %v914_v52, 0 }
 0x22b   : > { %v1491_v62 = vsel %vm943_vm3, %v3039_v55, -inf  ;;  %2532 = vmatpush3.bf16.msra.mxu1 %v1283_v54 }
 0x22c   : > { %v3043_v57 = vpop.f32.mrf.mxu0  ;;  %1477 = vmax.xlane.f32.xlu1 %v1476_v56 }
 0x22d   : > { %v1485_v58 = vsel %vm943_vm3, %v3043_v57, -inf }
 0x22e   : > { %1486 = vmax.xlane.f32.xlu0 %v1485_v58  ;;  %v3047_v59 = vpop.f32.mrf.mxu0 }
 0x22f   : > { %v1494_v60 = vsel %vm943_vm3, %v3047_v59, -inf }
 0x230   : > { %v3051_v61 = vpop.f32.mrf.mxu0  ;;  %1495 = vmax.xlane.f32.xlu1 %v1494_v60 }
 0x231   : > { %v1488_v63 = vsel %vm943_vm3, %v3051_v61, -inf }
 0x232   : > { %1492 = vmax.xlane.f32.xlu0 %v1491_v62 }
 0x234   : > { %1489 = vmax.xlane.f32.xlu1 %v1488_v63 }
 0x23c   : > { %v1034_v1 = vpop.xlane.xlu1 %1033 }
 0x23d   : > { %v3060_v2 = vmax.f32 %v3057_v0, %v1034_v1 }
 0x23f   : > { %1366 = vst.msk [vmem:[#allocation3] sm:$0xff] %vm1200_vm5, %v3060_v2 }
 0x240   : > { %v1043_v6 = vpop.xlane.xlu1 %1042  ;;  %v1037_v7 = vpop.xlane.xlu0 %1036 }
 0x241   : > { %v3071_v8 = vmax.f32 %v3062_v3, %v1043_v6  ;;  %v3074_v9 = vmax.f32 %v3064_v4, %v1037_v7 }
 0x243   : > { %1369 = vst.msk [vmem:[#allocation3 + $0x18] sm:$0xff] %vm1200_vm5, %v3071_v8  ;;  %v1065_v13 = vsub.f32 %v3064_v4, %v3074_v9  ;;  %1367 = vst.msk [vmem:[#allocation3 + $0x8] sm:$0xff] %vm1200_vm5, %v3074_v9 }
 0x244   : > { %v1040_v15 = vpop.xlane.xlu0 %1039 }
 0x245   : > { %v3089_v17 = vmax.f32 %v3076_v11, %v1040_v15 }
 0x246   : > { %v1055_v19 = vpop.xlane.xlu1 %1054  ;;  %v3144_v56 = vld [vmem:[#allocation3] sm:$0xff] }
 0x247   : > { %v1066_v21 = vsub.f32 %v3076_v11, %v3089_v17  ;;  %1368 = vst.msk [vmem:[#allocation3 + $0x10] sm:$0xff] %vm1200_vm5, %v3089_v17  ;;  %v3098_v22 = vmax.f32 %v3086_v16, %v1055_v19  ;;  %1100 = vperm.xlu1 %2611, %v3089_v17   ;;  %v3578_v11 = vmov 0.0  }
 0x248   : > { %v1046_v25 = vpop.xlane.xlu0 %1045  ;;  %1090 = vperm.xlu0 %2610, %v3060_v2   ;;  %790 = vst.msk [vmem:[#allocation5 + $0x8] sm:$0xff] %vm788_vm8, %v3578_v11  ;;  %789 = vst.msk [vmem:[#allocation5] sm:$0xff] %vm788_vm8, %v3578_v11 }
 0x249   : > { %1373 = vst.msk [vmem:[#allocation3 + $0x38] sm:$0xff] %vm1200_vm5, %v3098_v22  ;;  %v3109_v28 = vmax.f32 %v3091_v20, %v1046_v25 }
 0x24a   : > { %v1049_v29 = vpop.xlane.xlu1 %1048  ;;  %v3149_v62 = vld [vmem:[#allocation3 + $0x18] sm:$0xff]  ;;  %v3168_v18 = vld [vmem:[#allocation3 + $0x8] sm:$0xff]  ;;  %791 = vst.msk [vmem:[#allocation5 + $0x10] sm:$0xff] %vm788_vm8, %v3578_v11  ;;  %792 = vst.msk [vmem:[#allocation5 + $0x18] sm:$0xff] %vm788_vm8, %v3578_v11 }
 0x24b   : > { %1370 = vst.msk [vmem:[#allocation3 + $0x20] sm:$0xff] %vm1200_vm5, %v3109_v28  ;;  %v3118_v36 = vmax.f32 %v3102_v26, %v1049_v29  ;;  %1105 = vperm.xlu1 %2611, %v3071_v8   ;;  %v3580_v17 = vsub.f32 %v3091_v20, %v3109_v28 }
 0x24c   : > { %v1052_v37 = vpop.xlane.xlu0 %1051  ;;  %2613 = vset.pattern.permute.xlu0 %v3572_v40  ;;  %793 = vst.msk [vmem:[#allocation5 + $0x20] sm:$0xff] %vm788_vm8, %v3578_v11  ;;  %794 = vst.msk [vmem:[#allocation5 + $0x28] sm:$0xff] %vm788_vm8, %v3578_v11 }
 0x24d   : > { %1371 = vst.msk [vmem:[#allocation3 + $0x28] sm:$0xff] %vm1200_vm5, %v3118_v36  ;;  %v3127_v44 = vmax.f32 %v3111_v32, %v1052_v37 }
 0x24e   : > { %v3159_v7 = vld [vmem:[#allocation3 + $0x10] sm:$0xff]  ;;  %795 = vst.msk [vmem:[#allocation5 + $0x30] sm:$0xff] %vm788_vm8, %v3578_v11  ;;  %796 = vst.msk [vmem:[#allocation5 + $0x38] sm:$0xff] %vm788_vm8, %v3578_v11 }
 0x24f   : > { %1372 = vst.msk [vmem:[#allocation3 + $0x30] sm:$0xff] %vm1200_vm5, %v3127_v44  ;;  %1095 = vperm.xlu1 %2611, %v3074_v9   ;;  %v3584_v20 = vsub.f32 %v3111_v32, %v3127_v44 }
 0x250   : > { %v3188_v54 = vld [vmem:[#allocation3 + $0x38] sm:$0xff] }
 0x252   : > { %v3178_v29 = vld [vmem:[#allocation3 + $0x20] sm:$0xff] }
 0x253   : > { %1120 = vperm.xlu1 %2611, %v3127_v44   ;;  %v1154_v44 = vld [vmem:[#allocation4 + $0x10] sm:$0xff] }
 0x257   : > { %1110 = vperm.xlu1 %2611, %v3109_v28   ;;  %v1084_v28 = vmul.f32 1.442695, %v3584_v20 }
 0x25b   : > { %1125 = vperm.xlu1 %2611, %v3098_v22  }
 0x25f   : > { %1115 = vperm.xlu1 %2611, %v3118_v36  }
 0x263   : > { %2612 = vset.pattern.permute.xlu1 %v3572_v40 }
 0x2af   : > { %v1475_v58 = vpop.xlane.xlu0 %1474 }
 0x2b0   : > { %v3147_v60 = vmax.f32 %v3144_v56, %v1475_v58 }
 0x2b1   : > { %v1484_v63 = vpop.xlane.xlu1 %1483 }
 0x2b2   : > { %1842 = vst.msk [vmem:[#allocation3] sm:$0xff] %vm1641_vm7, %v3147_v60  ;;  %v3156_v6 = vmax.f32 %v3149_v62, %v1484_v63  ;;  %1531 = vperm.xlu1 %2612, %v3147_v60   ;;  %v3208_v63 = vld [vmem:[#allocation3 + $0x28] sm:$0xff]  ;;  %v3576_v9 = vsub.f32 %v3144_v56, %v3147_v60  ;;  %v3581_v56 = vsub.f32 %v3057_v0, %v3060_v2 }
 0x2b3   : > { %v1481_v10 = vpop.xlane.xlu0 %1480 }
 0x2b4   : > { %1845 = vst.msk [vmem:[#allocation3 + $0x18] sm:$0xff] %vm1641_vm7, %v3156_v6  ;;  %v3166_v15 = vmax.f32 %v3159_v7, %v1481_v10  ;;  %v1072_v60 = vmul.f32 1.442695, %v3581_v56 }
 0x2b5   : > { %v1478_v19 = vpop.xlane.xlu1 %1477 }
 0x2b6   : > { %1844 = vst.msk [vmem:[#allocation3 + $0x10] sm:$0xff] %vm1641_vm7, %v3166_v15  ;;  %v3175_v25 = vmax.f32 %v3168_v18, %v1478_v19  ;;  %1541 = vperm.xlu1 %2612, %v3166_v15   ;;  %v3198_v19 = vld [vmem:[#allocation3 + $0x30] sm:$0xff]  ;;  %v3588_v20 = vsub.f32 %v3159_v7, %v3166_v15 }
 0x2b7   : > { %v1487_v37 = vpop.xlane.xlu0 %1486 }
 0x2b8   : > { %1843 = vst.msk [vmem:[#allocation3 + $0x8] sm:$0xff] %vm1641_vm7, %v3175_v25  ;;  %v3185_v50 = vmax.f32 %v3178_v29, %v1487_v37  ;;  %1536 = vperm.xlu0 %2613, %v3175_v25  }
 0x2b9   : > { %v1496_v58 = vpop.xlane.xlu1 %1495 }
 0x2ba   : > { %1846 = vst.msk [vmem:[#allocation3 + $0x20] sm:$0xff] %vm1641_vm7, %v3185_v50  ;;  %v3195_v10 = vmax.f32 %v3188_v54, %v1496_v58  ;;  %1546 = vperm.xlu1 %2612, %v3156_v6  }
 0x2bb   : > { %v1493_v37 = vpop.xlane.xlu0 %1492 }
 0x2bc   : > { %1849 = vst.msk [vmem:[#allocation3 + $0x38] sm:$0xff] %vm1641_vm7, %v3195_v10  ;;  %v3205_v23 = vmax.f32 %v3198_v19, %v1493_v37  ;;  %1551 = vperm.xlu0 %2613, %v3185_v50   ;;  %v3585_v0 = vsub.f32 %v3188_v54, %v3195_v10 }
 0x2bd   : > { %v1490_v58 = vpop.xlane.xlu1 %1489 }
 0x2be   : > { %1848 = vst.msk [vmem:[#allocation3 + $0x30] sm:$0xff] %vm1641_vm7, %v3205_v23  ;;  %v3215_v27 = vmax.f32 %v3208_v63, %v1490_v58  ;;  %v1527_v2 = vmul.f32 1.442695, %v3585_v0  ;;  %v3589_v0 = vsub.f32 %v3178_v29, %v3185_v50 }
 0x2c0   : > { %1847 = vst.msk [vmem:[#allocation3 + $0x28] sm:$0xff] %vm1641_vm7, %v3215_v27  ;;  %1561 = vperm.xlu0 %2613, %v3205_v23   ;;  %1556 = vperm.xlu1 %2612, %v3215_v27  }
 0x2c2   : > { %v1101_v37 = vpop.permute.xlu1 %1100 }
 0x2c3   : > { %v1091_v45 = vpop.permute.xlu0 %1090  ;;  %v1130_v40 = vsub.f32 %v2967_v30, %v1101_v37 }
 0x2c4   : > { %1711 = vrot.lane.b32.xlu0 %v914_v52, %s2746_s18  ;;  %1566 = vperm.xlu1 %2612, %v3195_v10   ;;  %v1128_v46 = vsub.f32 %v2969_v31, %v1091_v45  ;;  %s2750_s18 = smov 8  }
 0x2c5   : > { %v1140_v12 = vmul.f32 1.442695, %v1130_v40 }
 0x2c6   : > { %v1106_v58 = vpop.permute.xlu1 %1105  ;;  %v1136_v5 = vmul.f32 1.442695, %v1128_v46 }
 0x2c7   : > { %v1131_v42 = vsub.f32 %v2973_v33, %v1106_v58 }
 0x2c8   : > { %2614 = vset.pattern.permute.xlu1 %v2748_v47  ;;  %2624 = vpow2.f32 %v1136_v5 }
 0x2c9   : > { %v1142_v35 = vmul.f32 1.442695, %v1131_v42 }
 0x2ca   : > { %v1096_v14 = vpop.permute.xlu1 %1095 }
 0x2cb   : > { %v1129_v24 = vsub.f32 %v2975_v34, %v1096_v14  ;;  %2626 = vpow2.f32 %v1142_v35 }
 0x2cd   : > { %v1138_v1 = vmul.f32 1.442695, %v1129_v24 }
 0x2ce   : > { %v1121_v52 = vpop.permute.xlu1 %1120 }
 0x2cf   : > { %2628 = vpow2.f32 %v1138_v1  ;;  %v1134_v31 = vsub.f32 %v3005_v38, %v1121_v52 }
 0x2d0   : > { %2630 = vpow2.f32 %v1140_v12 }
 0x2d1   : > { %v1148_v30 = vmul.f32 1.442695, %v1134_v31 }
 0x2d2   : > { %v1111_v45 = vpop.permute.xlu1 %1110 }
 0x2d3   : > { %v1132_v33 = vsub.f32 %v3007_v39, %v1111_v45  ;;  %2632 = vpow2.f32 %v1148_v30 }
 0x2d5   : > { %v1144_v42 = vmul.f32 1.442695, %v1132_v33  ;;  %v2625_v58 = vpop.eup %2624 }
 0x2d6   : > { %v1126_v37 = vpop.permute.xlu1 %1125 }
 0x2d7   : > { %v1135_v46 = vsub.f32 %v3011_v41, %v1126_v37  ;;  %2634 = vpow2.f32 %v1144_v42 }
 0x2d8   : > { %v2627_v5 = vpop.eup %2626 }
 0x2d9   : > { %v1150_v34 = vmul.f32 1.442695, %v1135_v46  ;;  %v1177_v30 = vsel %vm943_vm3, %v2627_v5, 0.0 }
 0x2da   : > { %v1116_v40 = vpop.permute.xlu1 %1115 }
 0x2db   : > { %v1133_v24 = vsub.f32 %v3015_v43, %v1116_v40  ;;  %2636 = vpow2.f32 %v1150_v34  ;;  %v1168_v43 = vsel %vm943_vm3, %v2625_v58, 0.0 }
 0x2dc   : > { %v2629_v35 = vpop.eup %2628 }
 0x2dd   : > { %v2631_v1 = vpop.eup %2630  ;;  %v1146_v12 = vmul.f32 1.442695, %v1133_v24  ;;  %v1265_v38 = vpack.c.bf16 %v2629_v35, %v2625_v58  ;;  %v1171_v41 = vsel %vm943_vm3, %v2629_v35, 0.0 }
 0x2de   : > { %v1266_v14 = vpack.c.bf16 %v2627_v5, %v2631_v1  ;;  %v1174_v39 = vsel %vm943_vm3, %v2631_v1, 0.0 }
 0x2df   : > { %2638 = vpow2.f32 %v1146_v12  ;;  %2533 = vmatprep.mubr.msk.bf16.mxu1 %vm943_vm3, %v1265_v38 }
 0x2e0   : > { %2534 = vmatmul.mubr.msk.bf16.vlgmr.msra.gmra.mxu1 %vm943_vm3, %v1266_v14  ;;  %v2633_v52 = vpop.eup %2632 }
 0x2e1   : > { %v1186_v45 = vsel %vm943_vm3, %v2633_v52, 0.0 }
 0x2e3   : > { %1175 = vadd.xlane.f32.xlu0 %v1174_v39 }
 0x2e4   : > { %v2635_v31 = vpop.eup %2634 }
 0x2e5   : > { %v1180_v42 = vsel %vm943_vm3, %v2635_v31, 0.0 }
 0x2e7   : > { %1172 = vadd.xlane.f32.xlu0 %v1171_v41 }
 0x2e8   : > { %1169 = vadd.xlane.f32.xlu1 %v1168_v43  ;;  %v2637_v33 = vpop.eup %2636 }
 0x2e9   : > { %v1268_v34 = vpack.c.bf16 %v2637_v33, %v2633_v52  ;;  %v1189_v40 = vsel %vm943_vm3, %v2637_v33, 0.0 }
 0x2eb   : > { %1187 = vadd.xlane.f32.xlu0 %v1186_v45 }
 0x2ec   : > { %v2639_v37 = vpop.eup %2638  ;;  %1178 = vadd.xlane.f32.xlu1 %v1177_v30 }
 0x2ed   : > { %v1267_v46 = vpack.c.bf16 %v2639_v37, %v2635_v31  ;;  %v1183_v58 = vsel %vm943_vm3, %v2639_v37, 0.0 }
 0x2ef   : > { %1181 = vadd.xlane.f32.xlu0 %v1180_v42  ;;  %2537 = vmatprep.mubr.msk.bf16.mxu1 %vm943_vm3, %v1267_v46 }
 0x2f0   : > { %1190 = vadd.xlane.f32.xlu1 %v1189_v40  ;;  %2538 = vmatmul.mubr.msk.bf16.gmra.mxu1 %vm943_vm3, %v1268_v34 }
 0x2f4   : > { %1184 = vadd.xlane.f32.xlu1 %v1183_v58 }
 0x32d   : > { %v1532_v24 = vpop.permute.xlu1 %1531 }
 0x32e   : > { %v1569_v5 = vsub.f32 %v3027_v49, %v1532_v24 }
 0x330   : > { %v1577_v35 = vmul.f32 1.442695, %v1569_v5 }
 0x331   : > { %v1542_v1 = vpop.permute.xlu1 %1541 }
 0x332   : > { %2640 = vpow2.f32 %v1577_v35  ;;  %v1571_v12 = vsub.f32 %v3025_v48, %v1542_v1 }
 0x333   : > { %v1537_v38 = vpop.permute.xlu0 %1536 }
 0x334   : > { %v1581_v14 = vmul.f32 1.442695, %v1571_v12  ;;  %v1570_v39 = vsub.f32 %v3035_v53, %v1537_v38 }
 0x335   : > { %v1547_v41 = vpop.permute.xlu1 %1546 }
 0x336   : > { %2642 = vpow2.f32 %v1581_v14  ;;  %v1579_v52 = vmul.f32 1.442695, %v1570_v39  ;;  %v1572_v43 = vsub.f32 %v3031_v51, %v1547_v41  ;;  %v1074_v41 = vmul.f32 1.442695, %v1065_v13 }
 0x337   : > { %v1552_v31 = vpop.permute.xlu0 %1551  ;;  %v1513_v13 = vmul.f32 1.442695, %v3576_v9  ;;  %v1159_v9 = vld [vmem:[#allocation4 + $0x38] sm:$0xff] }
 0x338   : > { %2644 = vpow2.f32 %v1579_v52  ;;  %v1583_v45 = vmul.f32 1.442695, %v1572_v43  ;;  %v1573_v33 = vsub.f32 %v3043_v57, %v1552_v31 }
 0x33a   : > { %2646 = vpow2.f32 %v1583_v45  ;;  %v1585_v49 = vmul.f32 1.442695, %v1573_v33 }
 0x33b   : > { %v1562_v30 = vpop.permute.xlu0 %1561  ;;  %v1557_v37 = vpop.permute.xlu1 %1556 }
 0x33c   : > { %2648 = vpow2.f32 %v1585_v49  ;;  %v1575_v48 = vsub.f32 %v3039_v55, %v1562_v30  ;;  %v1574_v46 = vsub.f32 %v3051_v61, %v1557_v37  ;;  %v1076_v49 = vmul.f32 1.442695, %v1066_v21 }
 0x33d   : > { %v3577_v37 = vsub.f32 %v3062_v3, %v3071_v8  ;;  %v3579_v3 = vsub.f32 %v3149_v62, %v3156_v6  ;;  %v1080_v21 = vmul.f32 1.442695, %v3580_v17  ;;  %v1157_v17 = vld [vmem:[#allocation4 + $0x28] sm:$0xff] }
 0x33e   : > { %v1589_v53 = vmul.f32 1.442695, %v1575_v48  ;;  %v1587_v42 = vmul.f32 1.442695, %v1574_v46  ;;  %v3582_v46 = vsub.f32 %v3208_v63, %v3215_v27 }
 0x33f   : > { %v2641_v34 = vpop.eup %2640  ;;  %v1567_v40 = vpop.permute.xlu1 %1566  ;;  %v1078_v48 = vmul.f32 1.442695, %v3577_v37  ;;  %v1519_v8 = vmul.f32 1.442695, %v3579_v3 }
 0x340   : > { %v1712_v58 = vpop.permute.xlu0 %1711  ;;  %2650 = vpow2.f32 %v1589_v53  ;;  %v1576_v51 = vsub.f32 %v3047_v59, %v1567_v40  ;;  %v1609_v24 = vsel %vm943_vm3, %v2641_v34, 0.0  ;;  %v1523_v53 = vmul.f32 1.442695, %v3582_v46 }
 0x341   : > { %v1726_v57 = vsel %vm1281_vm6, %v1712_v58, 0  ;;  %2578 = vmatprep.subr.msk.bf16.mxu1 %vm1281_vm6, %v1712_v58  ;;  %2652 = vpow2.f32 %v1587_v42  ;;  %1610 = vadd.xlane.f32.xlu0 %v1609_v24  ;;  %v3583_v42 = vsub.f32 %v3102_v26, %v3118_v36  ;;  %v3586_v26 = vsub.f32 %v3086_v16, %v3098_v22  ;;  %v1153_v24 = vld [vmem:[#allocation4 + $0x8] sm:$0xff] }
 0x342   : > { %2552 = vmatpush3.bf16.msra.mxu1 %v1726_v57  ;;  %v1591_v55 = vmul.f32 1.442695, %v1576_v51  ;;  %v1152_v57 = vld [vmem:[#allocation4] sm:$0xff] }
 0x343   : > { %v2643_v5 = vpop.eup %2642  ;;  %v1082_v62 = vmul.f32 1.442695, %v3583_v42  ;;  %v1086_v36 = vmul.f32 1.442695, %v3586_v26 }
 0x344   : > { %2654 = vpow2.f32 %v1591_v55  ;;  %v1615_v61 = vsel %vm943_vm3, %v2643_v5, 0.0 }
 0x345   : > { %v2645_v35 = vpop.eup %2644  ;;  %1616 = vadd.xlane.f32.xlu0 %v1615_v61  ;;  %2656 = vpow2.f32 %v1074_v41 }
 0x346   : > { %v1706_v1 = vpack.c.bf16 %v2645_v35, %v2641_v34  ;;  %v1612_v52 = vsel %vm943_vm3, %v2645_v35, 0.0  ;;  %2658 = vpow2.f32 %v1076_v49 }
 0x347   : > { %v2647_v12 = vpop.eup %2646  ;;  %2660 = vpow2.f32 %v1513_v13 }
 0x348   : > { %v1707_v38 = vpack.c.bf16 %v2647_v12, %v2643_v5  ;;  %2553 = vmatprep.mubr.msk.bf16.mxu1 %vm943_vm3, %v1706_v1  ;;  %v1618_v59 = vsel %vm943_vm3, %v2647_v12, 0.0  ;;  %2662 = vpow2.f32 %v1078_v48  ;;  %v1158_v12 = vld [vmem:[#allocation4 + $0x30] sm:$0xff] }
 0x349   : > { %v2649_v14 = vpop.eup %2648  ;;  %1619 = vadd.xlane.f32.xlu1 %v1618_v59  ;;  %2664 = vpow2.f32 %v1519_v8 }
 0x34a   : > { %2554 = vmatmul.mubr.msk.bf16.vlgmr.msra.gmra.mxu1 %vm943_vm3, %v1707_v38  ;;  %v1621_v39 = vsel %vm943_vm3, %v2649_v14, 0.0  ;;  %2666 = vpow2.f32 %v1080_v21 }
 0x34b   : > { %1622 = vadd.xlane.f32.xlu0 %v1621_v39  ;;  %2668 = vpow2.f32 %v1072_v60 }
 0x34c   : > { %2670 = vpow2.f32 %v1523_v53 }
 0x34d   : > { %v2651_v43 = vpop.eup %2650  ;;  %1613 = vadd.xlane.f32.xlu1 %v1612_v52  ;;  %2672 = vpow2.f32 %v1082_v62  ;;  %v3587_v62 = vsub.f32 %v3168_v18, %v3175_v25  ;;  %v3591_v25 = vmov 1  }
 0x34e   : > { %v3266_v31 = vpop.eup %2652  ;;  %v1627_v45 = vsel %vm943_vm3, %v2651_v43, 0.0  ;;  %2674 = vpow2.f32 %v1084_v28  ;;  %v1517_v28 = vmul.f32 1.442695, %v3588_v20 }
 0x34f   : > { %1628 = vadd.xlane.f32.xlu0 %v1627_v45  ;;  %v1708_v33 = vpack.c.bf16 %v3266_v31, %v2649_v14  ;;  %2676 = vpow2.f32 %v1527_v2  ;;  %v1155_v14 = vld [vmem:[#allocation4 + $0x18] sm:$0xff]  ;;  %v1156_v45 = vld [vmem:[#allocation4 + $0x20] sm:$0xff]  ;;  %v1624_v42 = vsel %vm943_vm3, %v3266_v31, 0.0  ;;  %v1521_v2 = vmul.f32 1.442695, %v3589_v0 }
 0x350   : > { %2678 = vpow2.f32 %v1086_v36  ;;  %v3590_v31 = vsub.f32 %v3198_v19, %v3205_v23 }
 0x351   : > { %v3273_v30 = vpop.eup %2654  ;;  %2557 = vmatprep.mubr.msk.bf16.mxu1 %vm943_vm3, %v1708_v33 }
 0x352   : > { %v1709_v4 = vpack.c.bf16 %v3273_v30, %v2651_v43  ;;  %v2657_v6 = vpop.eup %2656  ;;  %v1630_v53 = vsel %vm943_vm3, %v3273_v30, 0.0  ;;  %v1525_v30 = vmul.f32 1.442695, %v3590_v31 }
 0x353   : > { %v2659_v27 = vpop.eup %2658  ;;  %v1161_v5 = vmul.f32 %v2657_v6, %v1153_v24 }
 0x354   : > { %2558 = vmatmul.mubr.msk.bf16.gmra.mxu1 %vm943_vm3, %v1709_v4  ;;  %v3321_v63 = vpop.eup %2660  ;;  %v1162_v40 = vmul.f32 %v2659_v27, %v1154_v44 }
 0x355   : > { %v2663_v34 = vpop.eup %2662 }
 0x356   : > { %v3327_v32 = vpop.eup %2664  ;;  %v1163_v43 = vmul.f32 %v2663_v34, %v1155_v14 }
 0x357   : > { %v2667_v54 = vpop.eup %2666 }
 0x358   : > { %v2669_v10 = vpop.eup %2668  ;;  %v1164_v37 = vmul.f32 %v2667_v54, %v1156_v45 }
 0x359   : > { %v3330_v58 = vpop.eup %2670  ;;  %v1160_v1 = vmul.f32 %v2669_v10, %v1152_v57 }
 0x35a   : > { %v2673_v16 = vpop.eup %2672 }
 0x35b   : > { %v2675_v55 = vpop.eup %2674  ;;  %v1165_v56 = vmul.f32 %v2673_v16, %v1157_v17 }
 0x35c   : > { %v3334_v61 = vpop.eup %2676  ;;  %v1166_v41 = vmul.f32 %v2675_v55, %v1158_v12 }
 0x35d   : > { %v2679_v33 = vpop.eup %2678 }
 0x35e   : > { %1224 = vperm.xlu1 %2614, %v2657_v6   ;;  %v1167_v11 = vmul.f32 %v2679_v33, %v1159_v9  ;;  %v1515_v6 = vmul.f32 1.442695, %v3587_v62 }
 0x360   : > { %2680 = vpow2.f32 %v1515_v6 }
 0x361   : > { %2682 = vpow2.f32 %v1517_v28 }
 0x362   : > { %1229 = vperm.xlu1 %2614, %v2659_v27   ;;  %2684 = vpow2.f32 %v1521_v2 }
 0x363   : > { %2686 = vpow2.f32 %v1525_v30  ;;  %v1214_v30 = vld [vmem:[#allocation5 + $0x28] sm:$0xff] }
 0x365   : > { %1660 = vperm.xlu0 %2613, %v3321_v63  }
 0x366   : > { %1234 = vperm.xlu1 %2614, %v2663_v34  }
 0x369   : > { %1675 = vperm.xlu0 %2613, %v3327_v32  }
 0x36a   : > { %1239 = vperm.xlu1 %2614, %v2667_v54  }
 0x36c   : > { %v1176_v51 = vpop.xlane.xlu0 %1175 }
 0x36d   : > { %v1194_v22 = vadd.f32 %v1176_v51, %v1162_v40  ;;  %1685 = vperm.xlu0 %2613, %v3330_v58   ;;  %v2681_v18 = vpop.eup %2680 }
 0x36e   : > { %1244 = vperm.xlu1 %2614, %v2673_v16   ;;  %v2683_v7 = vpop.eup %2682 }
 0x36f   : > { %1203 = vst.msk [vmem:[#allocation4 + $0x10] sm:$0xff] %vm1200_vm5, %v1194_v22  ;;  %v2685_v15 = vpop.eup %2684 }
 0x370   : > { %v1173_v35 = vpop.xlane.xlu0 %1172  ;;  %v2687_v27 = vpop.eup %2686 }
 0x371   : > { %v1193_v38 = vadd.f32 %v1173_v35, %v1161_v5  ;;  %1695 = vperm.xlu0 %2613, %v3334_v61   ;;  %v1170_v59 = vpop.xlane.xlu1 %1169 }
 0x372   : > { %v1192_v39 = vadd.f32 %v1170_v59, %v1160_v1 }
 0x373   : > { %1202 = vst.msk [vmem:[#allocation4 + $0x8] sm:$0xff] %vm1200_vm5, %v1193_v38 }
 0x374   : > { %1201 = vst.msk [vmem:[#allocation4] sm:$0xff] %vm1200_vm5, %v1192_v39  ;;  %v1188_v52 = vpop.xlane.xlu0 %1187 }
 0x375   : > { %v1198_v49 = vadd.f32 %v1188_v52, %v1166_v41  ;;  %2616 = vset.pattern.permute.xlu0 %v2748_v47  ;;  %v1179_v4 = vpop.xlane.xlu1 %1178 }
 0x376   : > { %v1195_v13 = vadd.f32 %v1179_v4, %v1163_v43  ;;  %1219 = vperm.xlu0 %2616, %v2669_v10   ;;  %v1595_v23 = vld [vmem:[#allocation4 + $0x10] sm:$0xff] }
 0x377   : > { %1207 = vst.msk [vmem:[#allocation4 + $0x30] sm:$0xff] %vm1200_vm5, %v1198_v49  ;;  %v1603_v36 = vmul.f32 %v2683_v7, %v1595_v23  ;;  %v1211_v49 = vld [vmem:[#allocation5 + $0x10] sm:$0xff] }
 0x378   : > { %1204 = vst.msk [vmem:[#allocation4 + $0x18] sm:$0xff] %vm1200_vm5, %v1195_v13  ;;  %v1182_v48 = vpop.xlane.xlu0 %1181 }
 0x379   : > { %v1196_v3 = vadd.f32 %v1182_v48, %v1164_v37  ;;  %v1191_v8 = vpop.xlane.xlu1 %1190 }
 0x37a   : > { %v1199_v21 = vadd.f32 %v1191_v8, %v1167_v11 }
 0x37b   : > { %1205 = vst.msk [vmem:[#allocation4 + $0x20] sm:$0xff] %vm1200_vm5, %v1196_v3  ;;  %v1593_v29 = vld [vmem:[#allocation4] sm:$0xff]  ;;  %v1212_v3 = vld [vmem:[#allocation5 + $0x18] sm:$0xff] }
 0x37c   : > { %1208 = vst.msk [vmem:[#allocation4 + $0x38] sm:$0xff] %vm1200_vm5, %v1199_v21  ;;  %v1601_v50 = vmul.f32 %v3321_v63, %v1593_v29 }
 0x37d   : > { %v1185_v60 = vpop.xlane.xlu1 %1184 }
 0x37e   : > { %v1197_v46 = vadd.f32 %v1185_v60, %v1165_v56 }
 0x37f   : > { %v1596_v44 = vld [vmem:[#allocation4 + $0x18] sm:$0xff] }
 0x380   : > { %1206 = vst.msk [vmem:[#allocation4 + $0x28] sm:$0xff] %vm1200_vm5, %v1197_v46  ;;  %v1604_v51 = vmul.f32 %v3327_v32, %v1596_v44  ;;  %v1210_v32 = vld [vmem:[#allocation5 + $0x8] sm:$0xff] }
 0x382   : > { %v1597_v40 = vld [vmem:[#allocation4 + $0x20] sm:$0xff] }
 0x383   : > { %v1605_v22 = vmul.f32 %v2685_v15, %v1597_v40 }
 0x392   : > { %1631 = vadd.xlane.f32.xlu1 %v1630_v53 }
 0x396   : > { %1625 = vadd.xlane.f32.xlu1 %v1624_v42  ;;  %v1213_v42 = vld [vmem:[#allocation5 + $0x20] sm:$0xff] }
 0x3a0   : > { %v2535_v10 = vpop.f32.mrf.mxu1 }
 0x3a2   : > { %v3367_v63 = vpop.f32.mrf.mxu1 }
 0x3a4   : > { %v2536_v59 = vpop.f32.mrf.mxu1 }
 0x3a7   : > { %1249 = vperm.xlu1 %2614, %v2675_v55   ;;  %v1599_v55 = vld [vmem:[#allocation4 + $0x30] sm:$0xff] }
 0x3a8   : > { %v1607_v38 = vmul.f32 %v2687_v27, %v1599_v55 }
 0x3ab   : > { %1254 = vperm.xlu1 %2614, %v2679_v33   ;;  %v1322_v33 = vpop.f32.mrf.mxu1 }
 0x3af   : > { %2615 = vset.pattern.permute.xlu1 %v3591_v25 }
 0x3b0   : > { %1665 = vperm.xlu1 %2615, %v2681_v18   ;;  %v3374_v48 = vpop.f32.mrf.mxu1 }
 0x3b2   : > { %v1335_v46 = vpop.f32.mrf.mxu1 }
 0x3b4   : > { %1670 = vperm.xlu1 %2615, %v2683_v7   ;;  %v2540_v2 = vpop.f32.mrf.mxu1 }
 0x3b6   : > { %v1338_v29 = vpop.f32.mrf.mxu1 }
 0x3b8   : > { %1680 = vperm.xlu1 %2615, %v2685_v15  }
 0x3bc   : > { %1690 = vperm.xlu1 %2615, %v2687_v27  }
 0x3c0   : > { %2617 = vset.pattern.permute.xlu1 %v2748_v47  ;;  %v1594_v47 = vld [vmem:[#allocation4 + $0x8] sm:$0xff] }
 0x3c1   : > { %v1602_v35 = vmul.f32 %v2681_v18, %v1594_v47 }
 0x3ca   : > { %v1611_v26 = vpop.xlane.xlu0 %1610 }
 0x3cb   : > { %v1633_v19 = vadd.f32 %v1611_v26, %v1601_v50 }
 0x3cd   : > { %1642 = vst.msk [vmem:[#allocation4] sm:$0xff] %vm1641_vm7, %v1633_v19 }
 0x3ce   : > { %v1617_v34 = vpop.xlane.xlu0 %1616 }
 0x3cf   : > { %v1635_v54 = vadd.f32 %v1617_v34, %v1603_v36  ;;  %v1209_v36 = vld [vmem:[#allocation5] sm:$0xff] }
 0x3d1   : > { %1644 = vst.msk [vmem:[#allocation4 + $0x10] sm:$0xff] %vm1641_vm7, %v1635_v54 }
 0x3d2   : > { %v1620_v24 = vpop.xlane.xlu1 %1619 }
 0x3d3   : > { %v1636_v16 = vadd.f32 %v1620_v24, %v1604_v51 }
 0x3d4   : > { %v1623_v57 = vpop.xlane.xlu0 %1622  ;;  %v1853_v43 = vld [vmem:[#allocation4] sm:$0xff] }
 0x3d5   : > { %1645 = vst.msk [vmem:[#allocation4 + $0x18] sm:$0xff] %vm1641_vm7, %v1636_v16  ;;  %v1637_v5 = vadd.f32 %v1623_v57, %v1605_v22  ;;  %v1600_v57 = vld [vmem:[#allocation4 + $0x38] sm:$0xff] }
 0x3d6   : > { %v1614_v1 = vpop.xlane.xlu1 %1613  ;;  %v1608_v55 = vmul.f32 %v3334_v61, %v1600_v57 }
 0x3d7   : > { %1646 = vst.msk [vmem:[#allocation4 + $0x20] sm:$0xff] %vm1641_vm7, %v1637_v5  ;;  %v1634_v12 = vadd.f32 %v1614_v1, %v1602_v35  ;;  %v1598_v35 = vld [vmem:[#allocation4 + $0x28] sm:$0xff] }
 0x3d8   : > { %v1629_v14 = vpop.xlane.xlu0 %1628  ;;  %v1855_v39 = vld [vmem:[#allocation4 + $0x10] sm:$0xff] }
 0x3d9   : > { %1643 = vst.msk [vmem:[#allocation4 + $0x8] sm:$0xff] %vm1641_vm7, %v1634_v12  ;;  %v1639_v41 = vadd.f32 %v1629_v14, %v1607_v38  ;;  %2688 = vrcp.f32 %v1855_v39  ;;  %v1606_v12 = vmul.f32 %v3330_v58, %v1598_v35  ;;  %v1215_v14 = vld [vmem:[#allocation5 + $0x30] sm:$0xff] }
 0x3da   : > { %v1225_v52 = vpop.permute.xlu1 %1224  ;;  %2690 = vrcp.f32 %v1853_v43 }
 0x3db   : > { %1648 = vst.msk [vmem:[#allocation4 + $0x30] sm:$0xff] %vm1641_vm7, %v1639_v41  ;;  %v1258_v45 = vmul.f32 %v1225_v52, %v1210_v32  ;;  %v1216_v41 = vld [vmem:[#allocation5 + $0x38] sm:$0xff] }
 0x3dc   : > { %v1856_v9 = vld [vmem:[#allocation4 + $0x18] sm:$0xff] }
 0x3dd   : > { %v1351_v4 = vadd.f32 %v1322_v33, %v1258_v45  ;;  %2692 = vrcp.f32 %v1856_v9 }
 0x3de   : > { %v1230_v13 = vpop.permute.xlu1 %1229  ;;  %v1857_v28 = vld [vmem:[#allocation4 + $0x20] sm:$0xff] }
 0x3df   : > { %1359 = vst.msk [vmem:[#allocation5 + $0x8] sm:$0xff] %vm943_vm3, %v1351_v4  ;;  %v1259_v37 = vmul.f32 %v1230_v13, %v1211_v49 }
 0x3e0   : > { %v3376_v11 = vpop.permute.xlu0 %1660  ;;  %v1854_v8 = vld [vmem:[#allocation4 + $0x8] sm:$0xff] }
 0x3e1   : > { %v1352_v17 = vadd.f32 %v2535_v10, %v1259_v37  ;;  %2694 = vrcp.f32 %v1854_v8  ;;  %v1997_v37 = vld [vmem:[%s3567_s10] sm:$0xff] }
 0x3e2   : > { %v1235_v21 = vpop.permute.xlu1 %1234  ;;  %v1859_v56 = vld [vmem:[#allocation4 + $0x30] sm:$0xff] }
 0x3e3   : > { %1360 = vst.msk [vmem:[#allocation5 + $0x10] sm:$0xff] %vm943_vm3, %v1352_v17  ;;  %v1260_v60 = vmul.f32 %v1235_v21, %v1212_v3  ;;  %2696 = vrcp.f32 %v1859_v56 }
 0x3e4   : > { %v3379_v53 = vpop.permute.xlu0 %1675  ;;  %2698 = vrcp.f32 %v1857_v28 }
 0x3e5   : > { %v1353_v62 = vadd.f32 %v2536_v59, %v1260_v60 }
 0x3e6   : > { %v3381_v6 = vpop.eup %2688  ;;  %v1240_v20 = vpop.permute.xlu1 %1239 }
 0x3e7   : > { %1361 = vst.msk [vmem:[#allocation5 + $0x18] sm:$0xff] %vm943_vm3, %v1353_v62  ;;  %v1261_v0 = vmul.f32 %v1240_v20, %v1213_v42  ;;  %1889 = vperm.xlu1 %2617, %v3381_v6   ;;  %v2691_v7 = vpop.eup %2690 }
 0x3e8   : > { %v3385_v31 = vpop.permute.xlu0 %1685 }
 0x3e9   : > { %v1354_v18 = vadd.f32 %v1335_v46, %v1261_v0  ;;  %v1651_v0 = vld [vmem:[#allocation5 + $0x8] sm:$0xff] }
 0x3ea   : > { %v1245_v15 = vpop.permute.xlu1 %1244  ;;  %v2693_v26 = vpop.eup %2692 }
 0x3eb   : > { %1362 = vst.msk [vmem:[#allocation5 + $0x20] sm:$0xff] %vm943_vm3, %v1354_v18  ;;  %v1262_v27 = vmul.f32 %v1245_v15, %v1214_v30  ;;  %1879 = vperm.xlu1 %2617, %v2691_v7  }
 0x3ec   : > { %v3388_v50 = vpop.permute.xlu0 %1695 }
 0x3ed   : > { %v1355_v23 = vadd.f32 %v1338_v29, %v1262_v27 }
 0x3ee   : > { %v3390_v19 = vpop.eup %2694  ;;  %v1653_v46 = vld [vmem:[#allocation5 + $0x18] sm:$0xff] }
 0x3ef   : > { %1363 = vst.msk [vmem:[#allocation5 + $0x28] sm:$0xff] %vm943_vm3, %v1355_v23  ;;  %1894 = vperm.xlu1 %2617, %v2693_v26   ;;  %1884 = vperm.xlu0 %2616, %v3390_v19  }
 0x3f0   : > { %v2697_v44 = vpop.eup %2696 }
 0x3f1   : > { %v1220_v34 = vpop.permute.xlu0 %1219  ;;  %v2699_v40 = vpop.eup %2698 }
 0x3f2   : > { %v1257_v54 = vmul.f32 %v1220_v34, %v1209_v36  ;;  %v1654_v23 = vld [vmem:[#allocation5 + $0x20] sm:$0xff] }
 0x3f3   : > { %1909 = vperm.xlu0 %2616, %v2697_v44  }
 0x3f4   : > { %v1350_v10 = vadd.f32 %v3367_v63, %v1257_v54 }
 0x3f6   : > { %1358 = vst.msk [vmem:[#allocation5] sm:$0xff] %vm943_vm3, %v1350_v10 }
 0x3f7   : > { %1899 = vperm.xlu0 %2616, %v2699_v40  }
 0x3fb   : > { %2618 = vset.pattern.permute.xlu0 %v3591_v25 }
 0x40a   : > { %v2555_v51 = vpop.f32.mrf.mxu1 }
 0x40c   : > { %v1762_v24 = vpop.f32.mrf.mxu1 }
 0x40e   : > { %v2556_v47 = vpop.f32.mrf.mxu1 }
 0x40f   : > { %1807 = vrot.lane.b32.xlu0 %v2556_v47, %s2750_s18 }
 0x410   : > { %v1765_v16 = vpop.f32.mrf.mxu1 }
 0x413   : > { %1803 = vrot.lane.b32.xlu0 %v1765_v16, %s2750_s18 }
 0x414   : > { %v2559_v22 = vpop.f32.mrf.mxu1 }
 0x416   : > { %v1778_v63 = vpop.f32.mrf.mxu1 }
 0x417   : > { %1813 = vrot.lane.b32.xlu0 %v2559_v22, %s2750_s18 }
 0x418   : > { %v2560_v9 = vpop.f32.mrf.mxu1 }
 0x41a   : > { %v1781_v13 = vpop.f32.mrf.mxu1 }
 0x41b   : > { %1809 = vrot.lane.b32.xlu0 %v1778_v63, %s2750_s18  ;;  %v1632_v5 = vpop.xlane.xlu1 %1631 }
 0x41c   : > { %v1640_v1 = vadd.f32 %v1632_v5, %v1608_v55 }
 0x41e   : > { %1649 = vst.msk [vmem:[#allocation4 + $0x38] sm:$0xff] %vm1641_vm7, %v1640_v1  ;;  %v1652_v1 = vld [vmem:[#allocation5 + $0x10] sm:$0xff] }
 0x41f   : > { %1942 = vperm.xlu0 %2618, %v2691_v7   ;;  %v1626_v38 = vpop.xlane.xlu1 %1625 }
 0x420   : > { %v1638_v59 = vadd.f32 %v1626_v38, %v1606_v12 }
 0x422   : > { %1647 = vst.msk [vmem:[#allocation4 + $0x28] sm:$0xff] %vm1641_vm7, %v1638_v59  ;;  %v1650_v59 = vld [vmem:[#allocation5] sm:$0xff] }
 0x423   : > { %1954 = vperm.xlu0 %2618, %v2693_v26   ;;  %v1250_v32 = vpop.permute.xlu1 %1249 }
 0x424   : > { %v1263_v39 = vmul.f32 %v1250_v32, %v1215_v14  ;;  %v1698_v32 = vmul.f32 %v3376_v11, %v1650_v59 }
 0x425   : > { %v1860_v61 = vld [vmem:[#allocation4 + $0x38] sm:$0xff] }
 0x426   : > { %v1356_v52 = vadd.f32 %v3374_v48, %v1263_v39  ;;  %2700 = vrcp.f32 %v1860_v61 }
 0x427   : > { %v1255_v43 = vpop.permute.xlu1 %1254 }
 0x428   : > { %1364 = vst.msk [vmem:[#allocation5 + $0x30] sm:$0xff] %vm943_vm3, %v1356_v52  ;;  %v1264_v45 = vmul.f32 %v1255_v43, %v1216_v41 }
 0x429   : > { %v1858_v33 = vld [vmem:[#allocation4 + $0x28] sm:$0xff] }
 0x42a   : > { %v1357_v58 = vadd.f32 %v2540_v2, %v1264_v45  ;;  %2702 = vrcp.f32 %v1858_v33  ;;  %v1655_v45 = vld [vmem:[#allocation5 + $0x28] sm:$0xff] }
 0x42b   : > { %v1666_v3 = vpop.permute.xlu1 %1665 }
 0x42c   : > { %1365 = vst.msk [vmem:[#allocation5 + $0x38] sm:$0xff] %vm943_vm3, %v1357_v58  ;;  %v1699_v2 = vmul.f32 %v1666_v3, %v1651_v0 }
 0x42f   : > { %v1671_v8 = vpop.permute.xlu1 %1670  ;;  %v1656_v15 = vld [vmem:[#allocation5 + $0x30] sm:$0xff] }
 0x430   : > { %v1700_v12 = vmul.f32 %v1671_v8, %v1652_v1 }
 0x433   : > { %v2701_v49 = vpop.eup %2700  ;;  %v1681_v21 = vpop.permute.xlu1 %1680  ;;  %v1657_v41 = vld [vmem:[#allocation5 + $0x38] sm:$0xff] }
 0x434   : > { %1914 = vperm.xlu1 %2617, %v2701_v49   ;;  %v1705_v52 = vmul.f32 %v3388_v50, %v1657_v41 }
 0x437   : > { %v2703_v4 = vpop.eup %2702  ;;  %v1691_v60 = vpop.permute.xlu1 %1690 }
 0x438   : > { %1962 = vperm.xlu0 %2618, %v2703_v4   ;;  %1904 = vperm.xlu1 %2617, %v2703_v4   ;;  %v1704_v27 = vmul.f32 %v1691_v60, %v1656_v15 }
 0x43c   : > { %1970 = vperm.xlu0 %2618, %v2701_v49   ;;  %1805 = vrot.lane.b32.xlu1 %v2555_v51, %s2750_s18  ;;  %v1703_v49 = vmul.f32 %v3385_v31, %v1655_v45 }
 0x43d   : > { %2619 = vset.pattern.permute.xlu1 %v3591_v25  ;;  %v1998_v25 = vld [vmem:[%s3567_s10 + $0x8] sm:$0xff] }
 0x43e   : > { %v2003_v48 = vpack.c.bf16 %v1998_v25, %v1997_v37 }
 0x440   : > { %1801 = vrot.lane.b32.xlu1 %v1762_v24, %s2750_s18  ;;  %2561 = vmatprep.subr.bf16.mxu0 %v2003_v48 }
 0x441   : > { %2562 = vmatpush3.bf16.msra.mxu0 %v2003_v48 }
 0x444   : > { %1815 = vrot.lane.b32.xlu1 %v2560_v9, %s2750_s18 }
 0x448   : > { %1811 = vrot.lane.b32.xlu1 %v1781_v13, %s2750_s18 }
 0x44c   : > { %1946 = vperm.xlu1 %2619, %v3390_v19  }
 0x450   : > { %1950 = vperm.xlu1 %2619, %v3381_v6   ;;  %v1701_v6 = vmul.f32 %v3379_v53, %v1653_v46  ;;  %v1702_v53 = vmul.f32 %v1681_v21, %v1654_v23 }
 0x454   : > { %1958 = vperm.xlu1 %2619, %v2699_v40  }
 0x458   : > { %1966 = vperm.xlu1 %2619, %v2697_v44  }
 0x462   : > { %v1890_v62 = vpop.permute.xlu1 %1889 }
 0x466   : > { %v1880_v30 = vpop.permute.xlu1 %1879 }
 0x46a   : > { %v1885_v17 = vpop.permute.xlu0 %1884  ;;  %v1895_v19 = vpop.permute.xlu1 %1894 }
 0x46e   : > { %v1910_v56 = vpop.permute.xlu0 %1909 }
 0x472   : > { %v1900_v42 = vpop.permute.xlu0 %1899 }
 0x481   : > { %v1808_v20 = vpop.permute.xlu0 %1807 }
 0x482   : > { %v1828_v28 = vadd.f32 %v1808_v20, %v1701_v6 }
 0x484   : > { %1837 = vst.msk [vmem:[#allocation5 + $0x18] sm:$0xff] %vm1833_vm9, %v1828_v28 }
 0x485   : > { %v1804_v18 = vpop.permute.xlu0 %1803 }
 0x486   : > { %v1826_v7 = vadd.f32 %v1804_v18, %v1699_v2 }
 0x488   : > { %1835 = vst.msk [vmem:[#allocation5 + $0x8] sm:$0xff] %vm1833_vm9, %v1826_v7 }
 0x489   : > { %v1814_v29 = vpop.permute.xlu0 %1813 }
 0x48a   : > { %v1831_v26 = vadd.f32 %v1814_v29, %v1704_v27 }
 0x48b   : > { %v1872_v36 = vld [vmem:[#allocation5 + $0x18] sm:$0xff] }
 0x48c   : > { %1840 = vst.msk [vmem:[#allocation5 + $0x30] sm:$0xff] %vm1833_vm9, %v1831_v26  ;;  %v1920_v34 = vmul.f32 %v1895_v19, %v1872_v36 }
 0x48d   : > { %v1810_v44 = vpop.permute.xlu0 %1809 }
 0x48e   : > { %v1829_v54 = vadd.f32 %v1810_v44, %v1702_v53  ;;  %1928 = vst.msk [vmem:[#allocation5 + $0x18] sm:$0xff] %vm943_vm3, %v1920_v34 }
 0x48f   : > { %v1870_v10 = vld [vmem:[#allocation5 + $0x8] sm:$0xff] }
 0x490   : > { %1838 = vst.msk [vmem:[#allocation5 + $0x20] sm:$0xff] %vm1833_vm9, %v1829_v54  ;;  %v1918_v40 = vmul.f32 %v1885_v17, %v1870_v10 }
 0x492   : > { %1926 = vst.msk [vmem:[#allocation5 + $0x8] sm:$0xff] %vm943_vm3, %v1918_v40 }
 0x493   : > { %v1875_v51 = vld [vmem:[#allocation5 + $0x30] sm:$0xff] }
 0x494   : > { %v1923_v24 = vmul.f32 %v1910_v56, %v1875_v51 }
 0x495   : > { %v1936_v63 = vld [vmem:[#allocation5 + $0x18] sm:$0xff] }
 0x496   : > { %1931 = vst.msk [vmem:[#allocation5 + $0x30] sm:$0xff] %vm943_vm3, %v1923_v24 }
 0x497   : > { %v1873_v47 = vld [vmem:[#allocation5 + $0x20] sm:$0xff] }
 0x498   : > { %v1921_v16 = vmul.f32 %v1900_v42, %v1873_v47  ;;  %v2436_v47 = vld [vmem:[%s3568_s11] ss:$0 sm:$0xff] }
 0x499   : > { %v1934_v25 = vld [vmem:[#allocation5 + $0x8] sm:$0xff] }
 0x49a   : > { %v1943_v22 = vpop.permute.xlu0 %1942  ;;  %1929 = vst.msk [vmem:[#allocation5 + $0x20] sm:$0xff] %vm943_vm3, %v1921_v16 }
 0x49e   : > { %v1955_v57 = vpop.permute.xlu0 %1954 }
 0x49f   : > { %v1976_v55 = vmul.f32 %v1955_v57, %v1936_v63 }
 0x4a1   : > { %1984 = vst.msk [vmem:[#allocation5 + $0x18] sm:$0xff] %vm1833_vm9, %v1976_v55  ;;  %v2089_v55 = vld [vmem:[%s2865_s28] sm:$0xff] }
 0x4a8   : > { %v1992_v53 = vld [vmem:[#allocation5 + $0x18] sm:$0xff] }
 0x4af   : > { %v1915_v5 = vpop.permute.xlu1 %1914 }
 0x4b3   : > { %v1905_v35 = vpop.permute.xlu1 %1904  ;;  %v1963_v56 = vpop.permute.xlu0 %1962 }
 0x4b7   : > { %v1806_v38 = vpop.permute.xlu1 %1805  ;;  %v1971_v0 = vpop.permute.xlu0 %1970 }
 0x4b8   : > { %v1827_v14 = vadd.f32 %v1806_v38, %v1700_v12  ;;  %v2092_v12 = vld [vmem:[%s2865_s28 + $0x18] sm:$0xff] }
 0x4ba   : > { %1836 = vst.msk [vmem:[#allocation5 + $0x10] sm:$0xff] %vm1833_vm9, %v1827_v14 }
 0x4bb   : > { %v1802_v39 = vpop.permute.xlu1 %1801 }
 0x4bc   : > { %v1825_v61 = vadd.f32 %v1802_v39, %v1698_v32  ;;  %v2090_v39 = vld [vmem:[%s2865_s28 + $0x8] sm:$0xff] }
 0x4be   : > { %1834 = vst.msk [vmem:[#allocation5] sm:$0xff] %vm1833_vm9, %v1825_v61 }
 0x4bf   : > { %v1816_v43 = vpop.permute.xlu1 %1815 }
 0x4c0   : > { %v1832_v33 = vadd.f32 %v1816_v43, %v1705_v52 }
 0x4c1   : > { %v1871_v58 = vld [vmem:[#allocation5 + $0x10] sm:$0xff] }
 0x4c2   : > { %1841 = vst.msk [vmem:[#allocation5 + $0x38] sm:$0xff] %vm1833_vm9, %v1832_v33  ;;  %v1919_v4 = vmul.f32 %v1890_v62, %v1871_v58  ;;  %v1937_v62 = vld [vmem:[#allocation5 + $0x20] sm:$0xff] }
 0x4c3   : > { %v1812_v9 = vpop.permute.xlu1 %1811  ;;  %v2093_v58 = vld [vmem:[%s2865_s28 + $0x20] sm:$0xff] }
 0x4c4   : > { %v1830_v13 = vadd.f32 %v1812_v9, %v1703_v49  ;;  %1927 = vst.msk [vmem:[#allocation5 + $0x10] sm:$0xff] %vm943_vm3, %v1919_v4 }
 0x4c5   : > { %v1869_v11 = vld [vmem:[#allocation5] sm:$0xff] }
 0x4c6   : > { %v1917_v37 = vmul.f32 %v1880_v30, %v1869_v11  ;;  %1839 = vst.msk [vmem:[#allocation5 + $0x28] sm:$0xff] %vm1833_vm9, %v1830_v13  ;;  %v1939_v30 = vld [vmem:[#allocation5 + $0x30] sm:$0xff] }
 0x4c7   : > { %v1947_v48 = vpop.permute.xlu1 %1946 }
 0x4c8   : > { %1925 = vst.msk [vmem:[#allocation5] sm:$0xff] %vm943_vm3, %v1917_v37  ;;  %v1974_v50 = vmul.f32 %v1947_v48, %v1934_v25  ;;  %v2095_v37 = vld [vmem:[%s2865_s28 + $0x30] sm:$0xff] }
 0x4c9   : > { %v1876_v3 = vld [vmem:[#allocation5 + $0x38] sm:$0xff] }
 0x4ca   : > { %v1924_v8 = vmul.f32 %v1915_v5, %v1876_v3  ;;  %1982 = vst.msk [vmem:[#allocation5 + $0x8] sm:$0xff] %vm1833_vm9, %v1974_v50  ;;  %v2094_v50 = vld [vmem:[%s2865_s28 + $0x28] sm:$0xff] }
 0x4cb   : > { %v1935_v17 = vld [vmem:[#allocation5 + $0x10] sm:$0xff]  ;;  %v1951_v31 = vpop.permute.xlu1 %1950 }
 0x4cc   : > { %1932 = vst.msk [vmem:[#allocation5 + $0x38] sm:$0xff] %vm943_vm3, %v1924_v8  ;;  %v1975_v21 = vmul.f32 %v1951_v31, %v1935_v17 }
 0x4cd   : > { %v1874_v60 = vld [vmem:[#allocation5 + $0x28] sm:$0xff] }
 0x4ce   : > { %v1922_v46 = vmul.f32 %v1905_v35, %v1874_v60  ;;  %1983 = vst.msk [vmem:[#allocation5 + $0x10] sm:$0xff] %vm1833_vm9, %v1975_v21  ;;  %v2096_v21 = vld [vmem:[%s2865_s28 + $0x38] sm:$0xff] }
 0x4cf   : > { %v1933_v42 = vld [vmem:[#allocation5] sm:$0xff]  ;;  %v1959_v6 = vpop.permute.xlu1 %1958 }
 0x4d0   : > { %v1973_v20 = vmul.f32 %v1943_v22, %v1933_v42  ;;  %1930 = vst.msk [vmem:[#allocation5 + $0x28] sm:$0xff] %vm943_vm3, %v1922_v46  ;;  %v1977_v28 = vmul.f32 %v1959_v6, %v1937_v62  ;;  %v2091_v22 = vld [vmem:[%s2865_s28 + $0x10] sm:$0xff] }
 0x4d1   : > { %v1990_v19 = vld [vmem:[#allocation5 + $0x8] sm:$0xff] }
 0x4d2   : > { %1981 = vst.msk [vmem:[#allocation5] sm:$0xff] %vm1833_vm9, %v1973_v20  ;;  %1985 = vst.msk [vmem:[#allocation5 + $0x20] sm:$0xff] %vm1833_vm9, %v1977_v28 }
 0x4d3   : > { %v1940_v2 = vld [vmem:[#allocation5 + $0x38] sm:$0xff]  ;;  %v1967_v18 = vpop.permute.xlu1 %1966 }
 0x4d4   : > { %v1980_v7 = vmul.f32 %v1971_v0, %v1940_v2  ;;  %v1979_v15 = vmul.f32 %v1967_v18, %v1939_v30 }
 0x4d5   : > { %v1991_v26 = vld [vmem:[#allocation5 + $0x10] sm:$0xff] }
 0x4d6   : > { %1988 = vst.msk [vmem:[#allocation5 + $0x38] sm:$0xff] %vm1833_vm9, %v1980_v7  ;;  %1987 = vst.msk [vmem:[#allocation5 + $0x30] sm:$0xff] %vm1833_vm9, %v1979_v15  ;;  %v2000_v34 = vpack.c.bf16 %v1992_v53, %v1991_v26 }
 0x4d7   : > { %v1938_v27 = vld [vmem:[#allocation5 + $0x28] sm:$0xff] }
 0x4d8   : > { %v1978_v29 = vmul.f32 %v1963_v56, %v1938_v27 }
 0x4d9   : > { %v1989_v23 = vld [vmem:[#allocation5] sm:$0xff] }
 0x4da   : > { %1986 = vst.msk [vmem:[#allocation5 + $0x28] sm:$0xff] %vm1833_vm9, %v1978_v29  ;;  %v1999_v36 = vpack.c.bf16 %v1990_v19, %v1989_v23  ;;  %v1993_v10 = vld [vmem:[#allocation5 + $0x20] sm:$0xff] }
 0x4dc   : > { %2563 = vmatprep.mubr.msk.bf16.mxu0 %vm788_vm8, %v1999_v36 }
 0x4dd   : > { %2564 = vmatmul.mubr.msk.bf16.vlgmr.msra.gmra.mxu0 %vm788_vm8, %v2000_v34  ;;  %v1995_v44 = vld [vmem:[#allocation5 + $0x30] sm:$0xff]  ;;  %v1996_v54 = vld [vmem:[#allocation5 + $0x38] sm:$0xff] }
 0x4de   : > { %v2002_v24 = vpack.c.bf16 %v1996_v54, %v1995_v44 }
 0x4e1   : > { %v1994_v40 = vld [vmem:[#allocation5 + $0x28] sm:$0xff] }
 0x4e2   : > { %v2001_v51 = vpack.c.bf16 %v1994_v40, %v1993_v10 }
 0x4e4   : > { %2567 = vmatprep.mubr.msk.bf16.mxu0 %vm788_vm8, %v2001_v51 }
 0x4e5   : > { %2568 = vmatmul.mubr.msk.bf16.gmra.mxu0 %vm788_vm8, %v2002_v24 }
 0x59d   : > { %v2565_v16 = vpop.f32.mrf.mxu0 }
 0x59e   : > { %v2067_v57 = vadd.f32 %v2565_v16, %v2436_v47 }
 0x59f   : > { %v2058_v63 = vpop.f32.mrf.mxu0 }
 0x5a0   : > { %v2059_v5 = vadd.f32 %v2436_v47, %v2058_v63  ;;  %v2099_v35 = vadd.f32 %v2091_v22, %v2067_v57 }
 0x5a1   : > { %v2566_v1 = vpop.f32.mrf.mxu0 }
 0x5a2   : > { %v2097_v38 = vadd.f32 %v2089_v55, %v2059_v5  ;;  %v2070_v59 = vadd.f32 %v2566_v1, %v2436_v47  ;;  %v2111_v14 = vsel %vm652_vm0, %v2099_v35, 0.0 }
 0x5a3   : > { %2112 = vadd.xlane.f32.xlu0 %v2111_v14  ;;  %v2061_v32 = vpop.f32.mrf.mxu0 }
 0x5a4   : > { %v2100_v41 = vadd.f32 %v2092_v12, %v2070_v59  ;;  %v2062_v61 = vadd.f32 %v2436_v47, %v2061_v32  ;;  %v2105_v52 = vsel %vm652_vm0, %v2097_v38, 0.0 }
 0x5a5   : > { %2106 = vadd.xlane.f32.xlu1 %v2105_v52  ;;  %v2569_v43 = vpop.f32.mrf.mxu0 }
 0x5a6   : > { %v2098_v45 = vadd.f32 %v2090_v39, %v2062_v61  ;;  %v2083_v49 = vadd.f32 %v2569_v43, %v2436_v47  ;;  %v2114_v13 = vsel %vm652_vm0, %v2100_v41, 0.0 }
 0x5a7   : > { %v2074_v33 = vpop.f32.mrf.mxu0 }
 0x5a8   : > { %v2075_v4 = vadd.f32 %v2436_v47, %v2074_v33  ;;  %v2108_v9 = vsel %vm652_vm0, %v2098_v45, 0.0  ;;  %v2103_v31 = vadd.f32 %v2095_v37, %v2083_v49 }
 0x5a9   : > { %2109 = vadd.xlane.f32.xlu0 %v2108_v9  ;;  %2115 = vadd.xlane.f32.xlu1 %v2114_v13  ;;  %v2570_v11 = vpop.f32.mrf.mxu0 }
 0x5aa   : > { %v2101_v25 = vadd.f32 %v2093_v58, %v2075_v4  ;;  %v2086_v3 = vadd.f32 %v2570_v11, %v2436_v47  ;;  %v2123_v42 = vsel %vm652_vm0, %v2103_v31, 0.0 }
 0x5ab   : > { %v2077_v48 = vpop.f32.mrf.mxu0 }
 0x5ac   : > { %v2078_v8 = vadd.f32 %v2436_v47, %v2077_v48  ;;  %v2117_v17 = vsel %vm652_vm0, %v2101_v25, 0.0  ;;  %v2104_v60 = vadd.f32 %v2096_v21, %v2086_v3 }
 0x5ad   : > { %2118 = vadd.xlane.f32.xlu0 %v2117_v17 }
 0x5ae   : > { %v2102_v56 = vadd.f32 %v2094_v50, %v2078_v8  ;;  %v2126_v62 = vsel %vm652_vm0, %v2104_v60, 0.0 }
 0x5b0   : > { %v2120_v46 = vsel %vm652_vm0, %v2102_v56, 0.0 }
 0x5b1   : > { %2121 = vadd.xlane.f32.xlu1 %v2120_v46  ;;  %2124 = vadd.xlane.f32.xlu0 %v2123_v42  ;;  %v2441_v42 = vld [vmem:[%s3569_s12] ss:$0 sm:$0xff] }
 0x5b5   : > { %2127 = vadd.xlane.f32.xlu1 %v2126_v62 }
 0x62c   : > { %v2113_v6 = vpop.xlane.xlu0 %2112 }
 0x62d   : > { %v2132_v20 = vmul.f32 0.03125, %v2113_v6 }
 0x62e   : > { %v2107_v28 = vpop.xlane.xlu1 %2106 }
 0x62f   : > { %v3472_v0 = vsub.f32 %v2099_v35, %v2132_v20  ;;  %v2130_v2 = vmul.f32 0.03125, %v2107_v28  ;;  %v2442_v28 = vld [vmem:[%s3570_s13] ss:$0 sm:$0xff] }
 0x631   : > { %v3474_v30 = vsub.f32 %v2097_v38, %v2130_v2  ;;  %v2148_v18 = vmul.f32 %v3472_v0, %v3472_v0 }
 0x632   : > { %v2110_v7 = vpop.xlane.xlu0 %2109  ;;  %v2116_v15 = vpop.xlane.xlu1 %2115 }
 0x633   : > { %v2131_v27 = vmul.f32 0.03125, %v2110_v7  ;;  %v2133_v29 = vmul.f32 0.03125, %v2116_v15  ;;  %v2160_v26 = vsel %vm652_vm0, %v2148_v18, 0.0  ;;  %v2146_v23 = vmul.f32 %v3474_v30, %v3474_v30 }
 0x634   : > { %2161 = vadd.xlane.f32.xlu0 %v2160_v26 }
 0x635   : > { %v3481_v19 = vsub.f32 %v2098_v45, %v2131_v27  ;;  %v3483_v36 = vsub.f32 %v2100_v41, %v2133_v29  ;;  %v2154_v44 = vsel %vm652_vm0, %v2146_v23, 0.0 }
 0x636   : > { %v2119_v53 = vpop.xlane.xlu0 %2118 }
 0x637   : > { %v2134_v34 = vmul.f32 0.03125, %v2119_v53  ;;  %v2149_v54 = vmul.f32 %v3483_v36, %v3483_v36  ;;  %v2147_v51 = vmul.f32 %v3481_v19, %v3481_v19 }
 0x638   : > { %2155 = vadd.xlane.f32.xlu0 %v2154_v44 }
 0x639   : > { %v3488_v10 = vsub.f32 %v2101_v25, %v2134_v34  ;;  %v2163_v40 = vsel %vm652_vm0, %v2149_v54, 0.0  ;;  %v2157_v35 = vsel %vm652_vm0, %v2147_v51, 0.0 }
 0x63a   : > { %v2125_v24 = vpop.xlane.xlu0 %2124  ;;  %2164 = vadd.xlane.f32.xlu1 %v2163_v40  ;;  %v2122_v47 = vpop.xlane.xlu1 %2121 }
 0x63b   : > { %v2136_v16 = vmul.f32 0.03125, %v2125_v24  ;;  %v2135_v22 = vmul.f32 0.03125, %v2122_v47  ;;  %v2150_v57 = vmul.f32 %v3488_v10, %v3488_v10 }
 0x63d   : > { %v3495_v63 = vsub.f32 %v2103_v31, %v2136_v16  ;;  %v3497_v55 = vsub.f32 %v2102_v56, %v2135_v22  ;;  %v2166_v5 = vsel %vm652_vm0, %v2150_v57, 0.0 }
 0x63e   : > { %2167 = vadd.xlane.f32.xlu0 %v2166_v5  ;;  %2158 = vadd.xlane.f32.xlu1 %v2157_v35  ;;  %v2128_v1 = vpop.xlane.xlu1 %2127 }
 0x63f   : > { %v2137_v12 = vmul.f32 0.03125, %v2128_v1  ;;  %v2152_v38 = vmul.f32 %v3495_v63, %v3495_v63  ;;  %v2151_v59 = vmul.f32 %v3497_v55, %v3497_v55 }
 0x641   : > { %v3505_v14 = vsub.f32 %v2104_v60, %v2137_v12  ;;  %v2172_v32 = vsel %vm652_vm0, %v2152_v38, 0.0  ;;  %v2169_v39 = vsel %vm652_vm0, %v2151_v59, 0.0 }
 0x642   : > { %2173 = vadd.xlane.f32.xlu0 %v2172_v32  ;;  %2170 = vadd.xlane.f32.xlu1 %v2169_v39 }
 0x643   : > { %v2153_v41 = vmul.f32 %v3505_v14, %v3505_v14 }
 0x645   : > { %v2175_v61 = vsel %vm652_vm0, %v2153_v41, 0.0 }
 0x646   : > { %2176 = vadd.xlane.f32.xlu1 %v2175_v61 }
 0x6bd   : > { %v2162_v52 = vpop.xlane.xlu0 %2161 }
 0x6be   : > { %v2180_v43 = vmul.f32 0.03125, %v2162_v52 }
 0x6c0   : > { %v2188_v45 = vadd.f32 1e-05, %v2180_v43 }
 0x6c1   : > { %v2156_v33 = vpop.xlane.xlu0 %2155 }
 0x6c2   : > { %2704 = vrsqrt.f32 %v2188_v45  ;;  %v2178_v58 = vmul.f32 0.03125, %v2156_v33 }
 0x6c3   : > { %v2165_v49 = vpop.xlane.xlu1 %2164 }
 0x6c4   : > { %v2186_v4 = vadd.f32 1e-05, %v2178_v58  ;;  %v2181_v9 = vmul.f32 0.03125, %v2165_v49 }
 0x6c6   : > { %2706 = vrsqrt.f32 %v2186_v4  ;;  %v2189_v13 = vadd.f32 1e-05, %v2181_v9 }
 0x6c7   : > { %v2168_v11 = vpop.xlane.xlu0 %2167  ;;  %v2159_v37 = vpop.xlane.xlu1 %2158 }
 0x6c8   : > { %2708 = vrsqrt.f32 %v2189_v13  ;;  %v2182_v25 = vmul.f32 0.03125, %v2168_v11  ;;  %v2179_v48 = vmul.f32 0.03125, %v2159_v37 }
 0x6ca   : > { %v2190_v50 = vadd.f32 1e-05, %v2182_v25  ;;  %v2187_v3 = vadd.f32 1e-05, %v2179_v48 }
 0x6cb   : > { %v2174_v8 = vpop.xlane.xlu0 %2173  ;;  %v2171_v17 = vpop.xlane.xlu1 %2170 }
 0x6cc   : > { %2710 = vrsqrt.f32 %v2190_v50  ;;  %v2184_v31 = vmul.f32 0.03125, %v2174_v8  ;;  %v2183_v21 = vmul.f32 0.03125, %v2171_v17 }
 0x6cd   : > { %2712 = vrsqrt.f32 %v2187_v3 }
 0x6ce   : > { %v2192_v56 = vadd.f32 1e-05, %v2184_v31  ;;  %v2191_v60 = vadd.f32 1e-05, %v2183_v21 }
 0x6cf   : > { %v2705_v46 = vpop.eup %2704  ;;  %v2177_v62 = vpop.xlane.xlu1 %2176 }
 0x6d0   : > { %v2204_v6 = vmul.f32 %v2705_v46, %v3472_v0  ;;  %2714 = vrsqrt.f32 %v2192_v56  ;;  %v2185_v20 = vmul.f32 0.03125, %v2177_v62 }
 0x6d1   : > { %2716 = vrsqrt.f32 %v2191_v60 }
 0x6d2   : > { %v2219_v2 = vmul.f32 %v2441_v42, %v2204_v6  ;;  %v2193_v18 = vadd.f32 1e-05, %v2185_v20 }
 0x6d3   : > { %v2707_v7 = vpop.eup %2706 }
 0x6d4   : > { %v2234_v15 = vadd.f32 %v2442_v28, %v2219_v2  ;;  %v2202_v0 = vmul.f32 %v2707_v7, %v3474_v30  ;;  %2718 = vrsqrt.f32 %v2193_v18 }
 0x6d5   : > { %v2709_v27 = vpop.eup %2708 }
 0x6d6   : > { %2242 = vst.msk [vmem:[%s3523_s19 + $0x10] sm:$0xff] %vm652_vm0, %v2234_v15  ;;  %v2217_v29 = vmul.f32 %v2441_v42, %v2202_v0  ;;  %v2205_v26 = vmul.f32 %v2709_v27, %v3483_v36 }
 0x6d8   : > { %v2232_v23 = vadd.f32 %v2442_v28, %v2217_v29  ;;  %v2220_v53 = vmul.f32 %v2441_v42, %v2205_v26 }
 0x6d9   : > { %v2711_v34 = vpop.eup %2710 }
 0x6da   : > { %v2713_v44 = vpop.eup %2712  ;;  %2240 = vst.msk [vmem:[%s3523_s19] sm:$0xff] %vm652_vm0, %v2232_v23  ;;  %v2235_v54 = vadd.f32 %v2442_v28, %v2220_v53  ;;  %v2206_v40 = vmul.f32 %v2711_v34, %v3488_v10 }
 0x6db   : > { %v2203_v30 = vmul.f32 %v2713_v44, %v3481_v19 }
 0x6dc   : > { %2243 = vst.msk [vmem:[%s3523_s19 + $0x18] sm:$0xff] %vm652_vm0, %v2235_v54  ;;  %v2221_v51 = vmul.f32 %v2441_v42, %v2206_v40 }
 0x6dd   : > { %v2715_v24 = vpop.eup %2714  ;;  %v2218_v47 = vmul.f32 %v2441_v42, %v2203_v30 }
 0x6de   : > { %v2717_v36 = vpop.eup %2716  ;;  %v2236_v16 = vadd.f32 %v2442_v28, %v2221_v51  ;;  %v2208_v22 = vmul.f32 %v2715_v24, %v3495_v63 }
 0x6df   : > { %v2233_v57 = vadd.f32 %v2442_v28, %v2218_v47  ;;  %v2207_v5 = vmul.f32 %v2717_v36, %v3497_v55 }
 0x6e0   : > { %2244 = vst.msk [vmem:[%s3523_s19 + $0x20] sm:$0xff] %vm652_vm0, %v2236_v16  ;;  %v2223_v10 = vmul.f32 %v2441_v42, %v2208_v22 }
 0x6e1   : > { %v2719_v35 = vpop.eup %2718  ;;  %2241 = vst.msk [vmem:[%s3523_s19 + $0x8] sm:$0xff] %vm652_vm0, %v2233_v57  ;;  %v2222_v19 = vmul.f32 %v2441_v42, %v2207_v5 }
 0x6e2   : > { %v2238_v1 = vadd.f32 %v2442_v28, %v2223_v10  ;;  %v2209_v12 = vmul.f32 %v2719_v35, %v3505_v14 }
 0x6e3   : > { %v2237_v38 = vadd.f32 %v2442_v28, %v2222_v19 }
 0x6e4   : > { %2246 = vst.msk [vmem:[%s3523_s19 + $0x30] sm:$0xff] %vm652_vm0, %v2238_v1  ;;  %v2224_v59 = vmul.f32 %v2441_v42, %v2209_v12 }
 0x6e5   : > { %2245 = vst.msk [vmem:[%s3523_s19 + $0x28] sm:$0xff] %vm652_vm0, %v2237_v38 }
 0x6e6   : > { %v2239_v63 = vadd.f32 %v2442_v28, %v2224_v59 }
 0x6e8   : > { %2247 = vst.msk [vmem:[%s3523_s19 + $0x38] sm:$0xff] %vm652_vm0, %v2239_v63 }
 0x6e9 PF: > { %s24_s15 = sadd.s32 1, %s2742_s15   ;;  %s3592_s29 = smov %s2738_s30 }
 0x6ea   : > { %p21_p5 = scmp.ge.s32.totalorder %s24_s15, 4   ;;  %s3593_s30 = smov %s3595_s16 }
 0x6ec   :  { %23 = sbr.rel (!%p21_p5) target bundleno = 2 (0x2), region = 123 }

</bundles_post_ra>
